<compile_context>
chip_gen: v6e
topology: v6e:2x2x1
jax: 0.10.0
libtpu: 0.0.40
codegen_flags: <defaults>
</compile_context>

<pallas_src>
import math
from functools import partial

import jax
import jax.numpy as jnp
from jax.experimental import pallas as pl
from jax.experimental.pallas import tpu as pltpu


# ------------------------------------------------------------------
# Fused encoder kernel: init-embed seed + L encoder blocks + ctx/proj epilogue
# grid = (B // Bt, L); activation (Bt, N_pad, E) lives in the output block.
# ------------------------------------------------------------------
def _encoder_kernel(depot_ref, nodes_ref, ctx_ref,
                    wd_ref, bd_ref, wni_ref, bni_ref,
                    wce_ref, bce_ref, wpn_ref, wpc_ref, bp_ref,
                    wqkv_ref, wc_ref, bc_ref, w1_ref, b1_ref,
                    w2_ref, b2_ref, g1_ref, be1_ref, g2_ref, be2_ref,
                    o_ref, *, num_heads, qkv_dim, norm_factor, eps, approx_recip):
    H, D = num_heads, qkv_dim
    HD = H * D
    bt, n_pad, E = o_ref.shape
    n_depot = depot_ref.shape[1]
    n_nodes = nodes_ref.shape[1]
    n_valid = n_depot + n_nodes
    w_dt = wqkv_ref.dtype                     # storage dtype (f32 or bf16)
    l = pl.program_id(1)

    # Masks for the padded node axis (trivially cheap VPU work).
    col_ids = jax.lax.broadcasted_iota(jnp.int32, (1, 1, n_pad), 2)
    key_bias = jnp.where(col_ids < n_valid, 0.0, -1e30).astype(jnp.float32)
    row_ids = jax.lax.broadcasted_iota(jnp.int32, (1, n_pad, 1), 1)
    row_mask = (row_ids < n_valid).astype(jnp.float32)
    inv_n = 1.0 / float(n_valid)

    def inorm(h, g, b):
        # Instance norm over the node axis using only the true N rows.
        hm = h * row_mask
        mu = jnp.sum(hm, axis=1, keepdims=True) * inv_n
        d = (h - mu) * row_mask
        var = jnp.sum(d * d, axis=1, keepdims=True) * inv_n
        return ((h - mu) * jax.lax.rsqrt(var + eps) * g.astype(jnp.float32)
                + b.astype(jnp.float32))

    # ---- l == 0: fused init embedding (depot + nodes), padded to n_pad ----
    @pl.when(l == 0)
    def _():
        d_emb = jnp.einsum('bnf,fe->bne', depot_ref[...].astype(w_dt), wd_ref[...],
                           preferred_element_type=jnp.float32) \
            + bd_ref[...].astype(jnp.float32)
        n_emb = jnp.einsum('bnf,fe->bne', nodes_ref[...].astype(w_dt), wni_ref[...],
                           preferred_element_type=jnp.float32) \
            + bni_ref[...].astype(jnp.float32)
        parts = [d_emb, n_emb]
        if n_pad > n_valid:
            parts.append(jnp.zeros((bt, n_pad - n_valid, E), jnp.float32))
        o_ref[...] = jnp.concatenate(parts, axis=1).astype(o_ref.dtype)

    # ---- encoder block for layer l (activation stays VMEM-resident) ----
    x = o_ref[...]                                        # (bt, n_pad, E), storage dtype
    xf = x.astype(jnp.float32)

    # Fused QKV projection: one lane-dense matmul on the full (Bt*N_pad) row slab.
    qkv = jnp.einsum('bne,ek->bnk', x, wqkv_ref[l],
                     preferred_element_type=jnp.float32)  # (bt, n_pad, 3*HD)

    # Per-head attention, head-combine accumulated (no lane-axis concat).
    wc = wc_ref[l]                                        # (HD, E)
    mha_proj = jnp.zeros((bt, n_pad, E), jnp.float32)
    for h in range(H):                                    # static unroll over heads
        qh = qkv[..., h * D:(h + 1) * D]
        kh = qkv[..., HD + h * D:HD + (h + 1) * D]
        vh = qkv[..., 2 * HD + h * D:2 * HD + (h + 1) * D]
        s = norm_factor * jnp.einsum('bnd,bmd->bnm', qh, kh,
                                     preferred_element_type=jnp.float32)
        s = s + key_bias                                  # mask padded key columns
        s = s - jnp.max(s, axis=-1, keepdims=True)
        e = jnp.exp(s)
        p = e * pl.reciprocal(jnp.sum(e, axis=-1, keepdims=True), approx=approx_recip)
        oh = jnp.einsum('bnm,bmd->bnd', p, vh, preferred_element_type=jnp.float32)
        mha_proj = mha_proj + jnp.einsum(
            'bnd,de->bne', oh.astype(w_dt), wc[h * D:(h + 1) * D, :],
            preferred_element_type=jnp.float32)

    # Add & instance-norm 1.
    h1 = xf + mha_proj + bc_ref[l].astype(jnp.float32)
    out1 = inorm(h1, g1_ref[l], be1_ref[l])

    # Feed-forward + Add & instance-norm 2.
    hid = jnp.maximum(
        jnp.einsum('bne,ef->bnf', out1.astype(w_dt), w1_ref[l],
                   preferred_element_type=jnp.float32) + b1_ref[l].astype(jnp.float32),
        0.0)
    ff = jnp.einsum('bnf,fe->bne', hid.astype(w_dt), w2_ref[l],
                    preferred_element_type=jnp.float32) + b2_ref[l].astype(jnp.float32)
    out2 = inorm(out1 + ff, g2_ref[l], be2_ref[l])
    o_ref[...] = out2.astype(o_ref.dtype)

    # ---- l == L-1: fused context encoder + split final 2E->E projection ----
    #   out = node_emb @ W_node + ((ctx @ W_ctx_enc + b_ctx) @ W_ctx + b_proj)
    @pl.when(l == pl.num_programs(1) - 1)
    def _():
        cemb = jnp.einsum('bcf,fe->bce', ctx_ref[...].astype(w_dt), wce_ref[...],
                          preferred_element_type=jnp.float32) \
            + bce_ref[...].astype(jnp.float32)            # (bt, 1, E)
        ctx_term = jnp.einsum('bce,ef->bcf', cemb.astype(w_dt), wpc_ref[...],
                              preferred_element_type=jnp.float32) \
            + bp_ref[...].astype(jnp.float32)             # (bt, 1, E)
        node_term = jnp.einsum('bne,ef->bnf', out2.astype(w_dt), wpn_ref[...],
                               preferred_element_type=jnp.float32)
        o_ref[...] = (node_term + ctx_term).astype(o_ref.dtype)


# ------------------------------------------------------------------
# Wrapper: one pallas_call for the whole encoder forward
# ------------------------------------------------------------------
def encoder_forward(params, depot, node_features, context_features, *,
                    num_heads, qkv_dim, eps=1e-5, batch_tile=None,
                    approx_recip=True):
    B, n_depot, dd = depot.shape
    _, n_nodes, nd = node_features.shape
    _, cd = context_features.shape
    E = params["init_embed_w"].shape[1]
    L, _, threeHD = params["Wqkv"].shape
    HD = num_heads * qkv_dim
    FF = params["W1"].shape[2]
    act_dtype = params["Wqkv"].dtype
    n_valid = n_depot + n_nodes

    # Pad the node axis to a sublane multiple so the (Bt, N, E) tiles are clean.
    pad_mult = 8 if jnp.dtype(act_dtype).itemsize >= 4 else 16
    n_pad = -(-n_valid // pad_mult) * pad_mult

    # Batch tile: amortize per-grid-step overhead / weight reads; keep the
    # parallel batch axis >= 2 grid steps when possible (v7x dual TensorCore).
    if batch_tile is None:
        target = max(1, 256 // n_pad)
        cap = max(1, B // 2) if B >= 2 else 1
        batch_tile = 1
        for d in range(1, B + 1):
            if B % d == 0 and d <= min(target, cap):
                batch_tile = d
    bt = batch_tile
    assert B % bt == 0, "batch must be divisible by batch_tile"

    ctx3 = context_features.reshape(B, 1, cd)
    norm_factor = 1.0 / math.sqrt(qkv_dim)

    bmap = lambda bi, l: (bi, 0, 0)     # batch-tiled, layer-invariant blocks
    cmap2 = lambda bi, l: (0, 0)        # shared 2-D weights, fully VMEM-resident
    cmap3 = lambda bi, l: (0, 0, 0)     # per-layer weights (full L axis resident)

    weight_args = (params["init_depot_w"], params["init_depot_b"],
                   params["init_embed_w"], params["init_embed_b"],
                   params["ctx_w"], params["ctx_b"],
                   params["proj_node_w"], params["proj_ctx_w"], params["proj_b"],
                   params["Wqkv"], params["Wc"], params["bc"],
                   params["W1"], params["b1"], params["W2"], params["b2"],
                   params["g1"], params["be1"], params["g2"], params["be2"])

    # Explicit VMEM budget: resident weights + (double-buffered) activation/io,
    # clamped so it is safe on v7x (64 MiB physical) and above v5e's 16 MiB default.
    wbytes = sum(int(w.size) * w.dtype.itemsize for w in weight_args)
    act_bytes = bt * n_pad * E * jnp.dtype(act_dtype).itemsize
    io_bytes = bt * (n_depot * dd + n_nodes * nd + cd) * depot.dtype.itemsize
    vmem_limit = int(min(max(2 * wbytes + 4 * act_bytes + 4 * io_bytes + (8 << 20),
                             32 << 20), 48 << 20))

    kernel = partial(_encoder_kernel, num_heads=num_heads, qkv_dim=qkv_dim,
                     norm_factor=norm_factor, eps=eps, approx_recip=approx_recip)

    out_padded = pl.pallas_call(
        kernel,
        out_shape=jax.ShapeDtypeStruct((B, n_pad, E), act_dtype),
        grid=(B // bt, L),
        in_specs=[
            pl.BlockSpec((bt, n_depot, dd), bmap),     # depot features
            pl.BlockSpec((bt, n_nodes, nd), bmap),     # node features
            pl.BlockSpec((bt, 1, cd), bmap),           # context features
            pl.BlockSpec((dd, E), cmap2),              # init depot W
            pl.BlockSpec((1, E), cmap2),               # init depot b
            pl.BlockSpec((nd, E), cmap2),              # init embed W
            pl.BlockSpec((1, E), cmap2),               # init embed b
            pl.BlockSpec((cd, E), cmap2),              # ctx encoder W
            pl.BlockSpec((1, E), cmap2),               # ctx encoder b
            pl.BlockSpec((E, E), cmap2),               # final proj (node half)
            pl.BlockSpec((E, E), cmap2),               # final proj (ctx half)
            pl.BlockSpec((1, E), cmap2),               # final proj b
            pl.BlockSpec((L, E, threeHD), cmap3),      # Wqkv (all layers)
            pl.BlockSpec((L, HD, E), cmap3),           # combine W
            pl.BlockSpec((L, 1, E), cmap3),            # combine b
            pl.BlockSpec((L, E, FF), cmap3),           # ff1 W
            pl.BlockSpec((L, 1, FF), cmap3),           # ff1 b
            pl.BlockSpec((L, FF, E), cmap3),           # ff2 W
            pl.BlockSpec((L, 1, E), cmap3),            # ff2 b
            pl.BlockSpec((L, 1, E), cmap3),            # norm1 gamma
            pl.BlockSpec((L, 1, E), cmap3),            # norm1 beta
            pl.BlockSpec((L, 1, E), cmap3),            # norm2 gamma
            pl.BlockSpec((L, 1, E), cmap3),            # norm2 beta
        ],
        out_specs=pl.BlockSpec((bt, n_pad, E), bmap),
        compiler_params=pltpu.CompilerParams(
            dimension_semantics=("parallel", "arbitrary"),
            vmem_limit_bytes=vmem_limit),
    )(depot, node_features, ctx3, *weight_args)

    return (out_padded[:, :n_valid, :],)


# ------------------------------------------------------------------
# Parameter init (deterministic, synthetic) — per-layer params stacked on L
# ------------------------------------------------------------------
def init_encoder_params(key, *, node_dim, ctx_dim, embed_dim, num_heads,
                        qkv_dim, ff_hidden, num_layers, dtype=jnp.float32):
    E, H, D, FF, L = embed_dim, num_heads, qkv_dim, ff_hidden, num_layers
    HD = H * D

    def uniform(k, shape, fan_in):
        s = 1.0 / math.sqrt(fan_in)
        return jax.random.uniform(k, shape, jnp.float32, -s, s)

    keys = jax.random.split(key, 16)
    p = {
        "init_depot_w": uniform(keys[0], (2, E), 2),
        "init_depot_b": uniform(keys[1], (1, E), 2),
        "init_embed_w": uniform(keys[2], (node_dim, E), node_dim),
        "init_embed_b": uniform(keys[3], (1, E), node_dim),
        "ctx_w": uniform(keys[4], (ctx_dim, E), ctx_dim),
        "ctx_b": uniform(keys[5], (1, E), ctx_dim),
        "proj_node_w": uniform(keys[6], (E, E), 2 * E),
        "proj_ctx_w": uniform(keys[7], (E, E), 2 * E),
        "proj_b": uniform(keys[8], (1, E), 2 * E),
        "Wqkv": uniform(keys[9], (L, E, 3 * HD), E),      # [Q | K | V] columns
        "Wc": uniform(keys[10], (L, HD, E), HD),
        "bc": uniform(keys[11], (L, 1, E), HD),
        "W1": uniform(keys[12], (L, E, FF), E),
        "b1": uniform(keys[13], (L, 1, FF), E),
        "W2": uniform(keys[14], (L, FF, E), FF),
        "b2": uniform(keys[15], (L, 1, E), FF),
        "g1": jnp.ones((L, 1, E), jnp.float32),
        "be1": jnp.zeros((L, 1, E), jnp.float32),
        "g2": jnp.ones((L, 1, E), jnp.float32),
        "be2": jnp.zeros((L, 1, E), jnp.float32),
    }
    return jax.tree_util.tree_map(lambda a: a.astype(dtype), p)


# ------------------------------------------------------------------
# Pure-JAX reference (torch-style semantics, f32 math) for correctness check
# ------------------------------------------------------------------
def reference_forward(params, depot, node_features, context_features, *,
                      num_heads, qkv_dim, eps=1e-5):
    p = jax.tree_util.tree_map(lambda a: a.astype(jnp.float32), params)
    depot = depot.astype(jnp.float32)
    node_features = node_features.astype(jnp.float32)
    context_features = context_features.astype(jnp.float32)

    H, D = num_heads, qkv_dim
    HD = H * D
    E = p["init_embed_w"].shape[1]

    def inorm(x, g, b):
        m = x.mean(axis=1, keepdims=True)
        v = ((x - m) ** 2).mean(axis=1, keepdims=True)
        return (x - m) * jax.lax.rsqrt(v + eps) * g + b

    node_emb = node_features @ p["init_embed_w"] + p["init_embed_b"]
    depot_emb = depot @ p["init_depot_w"] + p["init_depot_b"]
    node_emb = jnp.concatenate([depot_emb, node_emb], axis=1)
    B, N, _ = node_emb.shape
    nf = 1.0 / math.sqrt(D)
    L = p["Wqkv"].shape[0]
    for li in range(L):
        qkv = node_emb @ p["Wqkv"][li]
        q = qkv[..., :HD].reshape(B, N, H, D).transpose(0, 2, 1, 3)
        k = qkv[..., HD:2 * HD].reshape(B, N, H, D).transpose(0, 2, 1, 3)
        v = qkv[..., 2 * HD:].reshape(B, N, H, D).transpose(0, 2, 1, 3)
        sc = nf * jnp.einsum("bhnd,bhmd->bhnm", q, k)
        attn = jax.nn.softmax(sc, axis=-1)
        heads = jnp.einsum("bhnm,bhmd->bhnd", attn, v)
        mha = heads.transpose(0, 2, 1, 3).reshape(B, N, HD)
        out1 = inorm(node_emb + mha @ p["Wc"][li] + p["bc"][li, 0],
                     p["g1"][li, 0], p["be1"][li, 0])
        hid = jnp.maximum(out1 @ p["W1"][li] + p["b1"][li, 0], 0.0)
        ff = hid @ p["W2"][li] + p["b2"][li, 0]
        node_emb = inorm(out1 + ff, p["g2"][li, 0], p["be2"][li, 0])
    cntxt = context_features @ p["ctx_w"] + p["ctx_b"]
    cat = jnp.concatenate(
        [node_emb, jnp.broadcast_to(cntxt[:, None, :], (B, N, E))], axis=2)
    w_full = jnp.concatenate([p["proj_node_w"], p["proj_ctx_w"]], axis=0)
    return (cat @ w_full + p["proj_b"],)


# ------------------------------------------------------------------
if __name__ == "__main__":
    jax.config.update("jax_default_matmul_precision", "highest")

    B, n_nodes, node_dim, ctx_dim = 8, 8, 3, 2
    E, H, D, FF, L = 32, 4, 8, 64, 2

    key = jax.random.PRNGKey(0)
    kp, kd, kn, kc = jax.random.split(key, 4)
    params = init_encoder_params(kp, node_dim=node_dim, ctx_dim=ctx_dim,
                                 embed_dim=E, num_heads=H, qkv_dim=D,
                                 ff_hidden=FF, num_layers=L)
    depot = jax.random.normal(kd, (B, 1, 2), jnp.float32)
    node_features = jax.random.normal(kn, (B, n_nodes, node_dim), jnp.float32)
    context_features = jax.random.normal(kc, (B, ctx_dim), jnp.float32)

    # --- f32 storage, exact reciprocal: tight correctness check ---
    out = encoder_forward(params, depot, node_features, context_features,
                          num_heads=H, qkv_dim=D, approx_recip=False)
    out = jax.block_until_ready(out)
    ref = reference_forward(params, depot, node_features, context_features,
                            num_heads=H, qkv_dim=D)
    assert out[0].shape == (B, 1 + n_nodes, E)
    assert jnp.allclose(out[0], ref[0], atol=2e-3, rtol=2e-3), "f32 mismatch vs reference"

    # --- bf16 storage (halved DMA/VMEM, bf16 MXU path), approx reciprocal:
    #     loose correctness check (absorbs bf16 rounding of the resident acts) ---
    to_bf16 = lambda t: jax.tree_util.tree_map(lambda a: a.astype(jnp.bfloat16), t)
    params_bf16 = to_bf16(params)
    depot_b, nodes_b, ctx_b = to_bf16(depot), to_bf16(node_features), to_bf16(context_features)
    out_bf16 = encoder_forward(params_bf16, depot_b, nodes_b, ctx_b,
                               num_heads=H, qkv_dim=D, approx_recip=True)
    out_bf16 = jax.block_until_ready(out_bf16)
    ref_bf16 = reference_forward(params_bf16, depot_b, nodes_b, ctx_b,
                                 num_heads=H, qkv_dim=D)
    err = jnp.max(jnp.abs(out_bf16[0].astype(jnp.float32) - ref_bf16[0]))
    assert bool(jnp.isfinite(err)) and float(err) < 0.2, f"bf16 mismatch vs reference: {err}"

    print("KERNEL_OK")
</pallas_src>

<mosaic_0001>
module attributes {stable_mosaic.version = 11 : i64} {
  func.func @_encoder_kernel(%arg0: i32, %arg1: i32, %arg2: memref<4x1x2xf32, #tpu.memory_space<vmem>>, %arg3: memref<4x8x3xf32, #tpu.memory_space<vmem>>, %arg4: memref<4x1x2xf32, #tpu.memory_space<vmem>>, %arg5: memref<2x32xf32, #tpu.memory_space<vmem>>, %arg6: memref<1x32xf32, #tpu.memory_space<vmem>>, %arg7: memref<3x32xf32, #tpu.memory_space<vmem>>, %arg8: memref<1x32xf32, #tpu.memory_space<vmem>>, %arg9: memref<2x32xf32, #tpu.memory_space<vmem>>, %arg10: memref<1x32xf32, #tpu.memory_space<vmem>>, %arg11: memref<32x32xf32, #tpu.memory_space<vmem>>, %arg12: memref<32x32xf32, #tpu.memory_space<vmem>>, %arg13: memref<1x32xf32, #tpu.memory_space<vmem>>, %arg14: memref<2x32x96xf32, #tpu.memory_space<vmem>>, %arg15: memref<2x32x32xf32, #tpu.memory_space<vmem>>, %arg16: memref<2x1x32xf32, #tpu.memory_space<vmem>>, %arg17: memref<2x32x64xf32, #tpu.memory_space<vmem>>, %arg18: memref<2x1x64xf32, #tpu.memory_space<vmem>>, %arg19: memref<2x64x32xf32, #tpu.memory_space<vmem>>, %arg20: memref<2x1x32xf32, #tpu.memory_space<vmem>>, %arg21: memref<2x1x32xf32, #tpu.memory_space<vmem>>, %arg22: memref<2x1x32xf32, #tpu.memory_space<vmem>>, %arg23: memref<2x1x32xf32, #tpu.memory_space<vmem>>, %arg24: memref<2x1x32xf32, #tpu.memory_space<vmem>>, %arg25: memref<4x16x32xf32, #tpu.memory_space<vmem>>) attributes {dimension_semantics = [#tpu.dimension_semantics<parallel>, #tpu.dimension_semantics<arbitrary>], iteration_bounds = array<i64: 2, 2>, scalar_prefetch = 0 : i64, scratch_operands = 0 : i64, tpu.core_type = #tpu.core_type<tc>, window_params = [{transform_indices = @transform_0, window_bounds = array<i64: 4, 1, 2>}, {transform_indices = @transform_1, window_bounds = array<i64: 4, 8, 3>}, {transform_indices = @transform_2, window_bounds = array<i64: 4, 1, 2>}, {pipeline_mode = #tpu.pipeline_mode<synchronous>, transform_indices = @transform_3, window_bounds = array<i64: 2, 32>}, {pipeline_mode = #tpu.pipeline_mode<synchronous>, transform_indices = @transform_4, window_bounds = array<i64: 1, 32>}, {pipeline_mode = #tpu.pipeline_mode<synchronous>, transform_indices = @transform_5, window_bounds = array<i64: 3, 32>}, {pipeline_mode = #tpu.pipeline_mode<synchronous>, transform_indices = @transform_6, window_bounds = array<i64: 1, 32>}, {pipeline_mode = #tpu.pipeline_mode<synchronous>, transform_indices = @transform_7, window_bounds = array<i64: 2, 32>}, {pipeline_mode = #tpu.pipeline_mode<synchronous>, transform_indices = @transform_8, window_bounds = array<i64: 1, 32>}, {pipeline_mode = #tpu.pipeline_mode<synchronous>, transform_indices = @transform_9, window_bounds = array<i64: 32, 32>}, {pipeline_mode = #tpu.pipeline_mode<synchronous>, transform_indices = @transform_10, window_bounds = array<i64: 32, 32>}, {pipeline_mode = #tpu.pipeline_mode<synchronous>, transform_indices = @transform_11, window_bounds = array<i64: 1, 32>}, {pipeline_mode = #tpu.pipeline_mode<synchronous>, transform_indices = @transform_12, window_bounds = array<i64: 2, 32, 96>}, {pipeline_mode = #tpu.pipeline_mode<synchronous>, transform_indices = @transform_13, window_bounds = array<i64: 2, 32, 32>}, {pipeline_mode = #tpu.pipeline_mode<synchronous>, transform_indices = @transform_14, window_bounds = array<i64: 2, 1, 32>}, {pipeline_mode = #tpu.pipeline_mode<synchronous>, transform_indices = @transform_15, window_bounds = array<i64: 2, 32, 64>}, {pipeline_mode = #tpu.pipeline_mode<synchronous>, transform_indices = @transform_16, window_bounds = array<i64: 2, 1, 64>}, {pipeline_mode = #tpu.pipeline_mode<synchronous>, transform_indices = @transform_17, window_bounds = array<i64: 2, 64, 32>}, {pipeline_mode = #tpu.pipeline_mode<synchronous>, transform_indices = @transform_18, window_bounds = array<i64: 2, 1, 32>}, {pipeline_mode = #tpu.pipeline_mode<synchronous>, transform_indices = @transform_19, window_bounds = array<i64: 2, 1, 32>}, {pipeline_mode = #tpu.pipeline_mode<synchronous>, transform_indices = @transform_20, window_bounds = array<i64: 2, 1, 32>}, {pipeline_mode = #tpu.pipeline_mode<synchronous>, transform_indices = @transform_21, window_bounds = array<i64: 2, 1, 32>}, {pipeline_mode = #tpu.pipeline_mode<synchronous>, transform_indices = @transform_22, window_bounds = array<i64: 2, 1, 32>}, {transform_indices = @transform_23, window_bounds = array<i64: 4, 16, 32>}]} {
    %0 = tpu.iota {dimensions = array<i32: 2>} : vector<1x1x16xi32>
    %c9_i32 = arith.constant 9 : i32
    %1 = vector.broadcast %c9_i32 : i32 to vector<1x1x16xi32>
    %2 = arith.cmpi slt, %0, %1 : vector<1x1x16xi32>
    %cst = arith.constant 0.000000e+00 : f32
    %cst_0 = arith.constant -1.000000e+30 : f32
    %3 = vector.broadcast %cst : f32 to vector<1x1x16xf32>
    %4 = vector.broadcast %cst_0 : f32 to vector<1x1x16xf32>
    %5 = arith.select %2, %3, %4 : vector<1x1x16xi1>, vector<1x1x16xf32>
    %6 = tpu.iota {dimensions = array<i32: 1>} : vector<1x16x1xi32>
    %c9_i32_1 = arith.constant 9 : i32
    %7 = vector.broadcast %c9_i32_1 : i32 to vector<1x16x1xi32>
    %8 = arith.cmpi slt, %6, %7 : vector<1x16x1xi32>
    %9 = arith.extui %8 : vector<1x16x1xi1> to vector<1x16x1xi32>
    %10 = arith.sitofp %9 : vector<1x16x1xi32> to vector<1x16x1xf32>
    %c0_i32 = arith.constant 0 : i32
    %11 = arith.cmpi eq, %arg1, %c0_i32 : i32
    %12 = arith.extui %11 : i1 to i32
    %c0_i32_2 = arith.constant 0 : i32
    %13 = arith.cmpi ne, %12, %c0_i32_2 : i32
    scf.if %13 {
      %c0_70 = arith.constant 0 : index
      %c0_71 = arith.constant 0 : index
      %c0_72 = arith.constant 0 : index
      %213 = vector.load %arg2[%c0_70, %c0_71, %c0_72] : memref<4x1x2xf32, #tpu.memory_space<vmem>>, vector<4x1x2xf32>
      %c0_73 = arith.constant 0 : index
      %c0_74 = arith.constant 0 : index
      %214 = vector.load %arg5[%c0_73, %c0_74] : memref<2x32xf32, #tpu.memory_space<vmem>>, vector<2x32xf32>
      "tpu.trace_start"() <{level = 10 : i32, message = "bnf,fe->bne"}> : () -> ()
      %cst_75 = arith.constant dense<0.000000e+00> : vector<4x1x32xf32>
      %215 = tpu.matmul %213, %214, %cst_75 {dimension_numbers = #tpu.dot_dimension_numbers<[2], [0], [0, 1], [1], [0, 0, 0, 1, 1, 1], [], []>, precision = #tpu.contract_precision<fp32>} : vector<4x1x2xf32>, vector<2x32xf32>, vector<4x1x32xf32> -> vector<4x1x32xf32>
      "tpu.trace_stop"() : () -> ()
      %c0_76 = arith.constant 0 : index
      %c0_77 = arith.constant 0 : index
      %216 = vector.load %arg6[%c0_76, %c0_77] : memref<1x32xf32, #tpu.memory_space<vmem>>, vector<1x32xf32>
      %217 = vector.shape_cast %216 : vector<1x32xf32> to vector<1x1x32xf32>
      %218 = vector.broadcast %217 : vector<1x1x32xf32> to vector<4x1x32xf32>
      %219 = arith.addf %215, %218 : vector<4x1x32xf32>
      %c0_78 = arith.constant 0 : index
      %c0_79 = arith.constant 0 : index
      %c0_80 = arith.constant 0 : index
      %220 = vector.load %arg3[%c0_78, %c0_79, %c0_80] : memref<4x8x3xf32, #tpu.memory_space<vmem>>, vector<4x8x3xf32>
      %c0_81 = arith.constant 0 : index
      %c0_82 = arith.constant 0 : index
      %221 = vector.load %arg7[%c0_81, %c0_82] : memref<3x32xf32, #tpu.memory_space<vmem>>, vector<3x32xf32>
      "tpu.trace_start"() <{level = 10 : i32, message = "bnf,fe->bne"}> : () -> ()
      %cst_83 = arith.constant dense<0.000000e+00> : vector<4x8x32xf32>
      %222 = tpu.matmul %220, %221, %cst_83 {dimension_numbers = #tpu.dot_dimension_numbers<[2], [0], [0, 1], [1], [0, 0, 0, 1, 1, 1], [], []>, precision = #tpu.contract_precision<fp32>} : vector<4x8x3xf32>, vector<3x32xf32>, vector<4x8x32xf32> -> vector<4x8x32xf32>
      "tpu.trace_stop"() : () -> ()
      %c0_84 = arith.constant 0 : index
      %c0_85 = arith.constant 0 : index
      %223 = vector.load %arg8[%c0_84, %c0_85] : memref<1x32xf32, #tpu.memory_space<vmem>>, vector<1x32xf32>
      %224 = vector.shape_cast %223 : vector<1x32xf32> to vector<1x1x32xf32>
      %225 = vector.broadcast %224 : vector<1x1x32xf32> to vector<4x8x32xf32>
      %226 = arith.addf %222, %225 : vector<4x8x32xf32>
      %cst_86 = arith.constant 0.000000e+00 : f32
      %227 = vector.broadcast %cst_86 : f32 to vector<4x7x32xf32>
      %228 = tpu.concatenate %219, %226, %227 in 1 : vector<4x1x32xf32>, vector<4x8x32xf32>, vector<4x7x32xf32> -> vector<4x16x32xf32>
      %c0_87 = arith.constant 0 : index
      %c0_88 = arith.constant 0 : index
      %c0_89 = arith.constant 0 : index
      %229 = vector.load %arg25[%c0_87, %c0_88, %c0_89] : memref<4x16x32xf32, #tpu.memory_space<vmem>>, vector<4x16x32xf32>
      tpu.vector_store %arg25[%c0_87, %c0_88, %c0_89], %228 {strides = array<i32>} : memref<4x16x32xf32, #tpu.memory_space<vmem>>, vector<4x16x32xf32>,
    } else {
    }
    %c0 = arith.constant 0 : index
    %c0_3 = arith.constant 0 : index
    %c0_4 = arith.constant 0 : index
    %14 = vector.load %arg25[%c0, %c0_3, %c0_4] : memref<4x16x32xf32, #tpu.memory_space<vmem>>, vector<4x16x32xf32>
    %15 = arith.index_cast %arg1 : i32 to index
    %c0_5 = arith.constant 0 : index
    %c0_6 = arith.constant 0 : index
    %16 = vector.load %arg14[%15, %c0_5, %c0_6] : memref<2x32x96xf32, #tpu.memory_space<vmem>>, vector<1x32x96xf32>
    %17 = vector.shape_cast %16 : vector<1x32x96xf32> to vector<32x96xf32>
    "tpu.trace_start"() <{level = 10 : i32, message = "bne,ek->bnk"}> : () -> ()
    %cst_7 = arith.constant dense<0.000000e+00> : vector<4x16x96xf32>
    %18 = tpu.matmul %14, %17, %cst_7 {dimension_numbers = #tpu.dot_dimension_numbers<[2], [0], [0, 1], [1], [0, 0, 0, 1, 1, 1], [], []>, precision = #tpu.contract_precision<fp32>} : vector<4x16x32xf32>, vector<32x96xf32>, vector<4x16x96xf32> -> vector<4x16x96xf32>
    "tpu.trace_stop"() : () -> ()
    %19 = arith.index_cast %arg1 : i32 to index
    %c0_8 = arith.constant 0 : index
    %c0_9 = arith.constant 0 : index
    %20 = vector.load %arg15[%19, %c0_8, %c0_9] : memref<2x32x32xf32, #tpu.memory_space<vmem>>, vector<1x32x32xf32>
    %21 = vector.shape_cast %20 : vector<1x32x32xf32> to vector<32x32xf32>
    %cst_10 = arith.constant 0.000000e+00 : f32
    %22 = vector.broadcast %cst_10 : f32 to vector<4x16x32xf32>
    %23 = vector.extract_strided_slice %18 {offsets = [0, 0, 0], sizes = [4, 16, 8], strides = [1, 1, 1]} : vector<4x16x96xf32> to vector<4x16x8xf32>
    %24 = vector.extract_strided_slice %18 {offsets = [0, 0, 32], sizes = [4, 16, 8], strides = [1, 1, 1]} : vector<4x16x96xf32> to vector<4x16x8xf32>
    %25 = vector.extract_strided_slice %18 {offsets = [0, 0, 64], sizes = [4, 16, 8], strides = [1, 1, 1]} : vector<4x16x96xf32> to vector<4x16x8xf32>
    "tpu.trace_start"() <{level = 10 : i32, message = "bnd,bmd->bnm"}> : () -> ()
    %cst_11 = arith.constant dense<0.000000e+00> : vector<4x16x16xf32>
    %26 = tpu.matmul %23, %24, %cst_11 {dimension_numbers = #tpu.dot_dimension_numbers<[2], [2], [1], [1], [0, 0, 0, 1, 1, 1], [0], [0]>, precision = #tpu.contract_precision<fp32>} : vector<4x16x8xf32>, vector<4x16x8xf32>, vector<4x16x16xf32> -> vector<4x16x16xf32>
    "tpu.trace_stop"() : () -> ()
    %cst_12 = arith.constant 0.353553385 : f32
    %27 = vector.broadcast %cst_12 : f32 to vector<4x16x16xf32>
    %28 = arith.mulf %27, %26 : vector<4x16x16xf32>
    %29 = vector.broadcast %5 : vector<1x1x16xf32> to vector<4x16x16xf32>
    %30 = arith.addf %28, %29 : vector<4x16x16xf32>
    %cst_13 = arith.constant dense<0xFF800000> : vector<4x16xf32>
    %31 = vector.multi_reduction <maximumf>, %30, %cst_13 [2] : vector<4x16x16xf32> to vector<4x16xf32>
    %32 = vector.shape_cast %31 : vector<4x16xf32> to vector<4x16x1xf32>
    %33 = vector.broadcast %32 : vector<4x16x1xf32> to vector<4x16x16xf32>
    %34 = arith.subf %30, %33 : vector<4x16x16xf32>
    %35 = math.exp %34 : vector<4x16x16xf32>
    %cst_14 = arith.constant dense<0.000000e+00> : vector<4x16xf32>
    %36 = vector.multi_reduction <add>, %35, %cst_14 [2] : vector<4x16x16xf32> to vector<4x16xf32>
    %37 = vector.shape_cast %36 : vector<4x16xf32> to vector<4x16x1xf32>
    %38 = tpu.reciprocal %37 : vector<4x16x1xf32> -> vector<4x16x1xf32>
    %39 = vector.broadcast %38 : vector<4x16x1xf32> to vector<4x16x16xf32>
    %40 = arith.mulf %35, %39 : vector<4x16x16xf32>
    "tpu.trace_start"() <{level = 10 : i32, message = "bnm,bmd->bnd"}> : () -> ()
    %cst_15 = arith.constant dense<0.000000e+00> : vector<4x16x8xf32>
    %41 = tpu.matmul %40, %25, %cst_15 {dimension_numbers = #tpu.dot_dimension_numbers<[2], [1], [1], [2], [0, 0, 0, 1, 1, 2], [0], [0]>, precision = #tpu.contract_precision<fp32>} : vector<4x16x16xf32>, vector<4x16x8xf32>, vector<4x16x8xf32> -> vector<4x16x8xf32>
    "tpu.trace_stop"() : () -> ()
    %42 = vector.extract_strided_slice %21 {offsets = [0, 0], sizes = [8, 32], strides = [1, 1]} : vector<32x32xf32> to vector<8x32xf32>
    "tpu.trace_start"() <{level = 10 : i32, message = "bnd,de->bne"}> : () -> ()
    %cst_16 = arith.constant dense<0.000000e+00> : vector<4x16x32xf32>
    %43 = tpu.matmul %41, %42, %cst_16 {dimension_numbers = #tpu.dot_dimension_numbers<[2], [0], [0, 1], [1], [0, 0, 0, 1, 1, 1], [], []>, precision = #tpu.contract_precision<fp32>} : vector<4x16x8xf32>, vector<8x32xf32>, vector<4x16x32xf32> -> vector<4x16x32xf32>
    "tpu.trace_stop"() : () -> ()
    %44 = arith.addf %22, %43 : vector<4x16x32xf32>
    %45 = vector.extract_strided_slice %18 {offsets = [0, 0, 8], sizes = [4, 16, 8], strides = [1, 1, 1]} : vector<4x16x96xf32> to vector<4x16x8xf32>
    %46 = vector.extract_strided_slice %18 {offsets = [0, 0, 40], sizes = [4, 16, 8], strides = [1, 1, 1]} : vector<4x16x96xf32> to vector<4x16x8xf32>
    %47 = vector.extract_strided_slice %18 {offsets = [0, 0, 72], sizes = [4, 16, 8], strides = [1, 1, 1]} : vector<4x16x96xf32> to vector<4x16x8xf32>
    "tpu.trace_start"() <{level = 10 : i32, message = "bnd,bmd->bnm"}> : () -> ()
    %cst_17 = arith.constant dense<0.000000e+00> : vector<4x16x16xf32>
    %48 = tpu.matmul %45, %46, %cst_17 {dimension_numbers = #tpu.dot_dimension_numbers<[2], [2], [1], [1], [0, 0, 0, 1, 1, 1], [0], [0]>, precision = #tpu.contract_precision<fp32>} : vector<4x16x8xf32>, vector<4x16x8xf32>, vector<4x16x16xf32> -> vector<4x16x16xf32>
    "tpu.trace_stop"() : () -> ()
    %cst_18 = arith.constant 0.353553385 : f32
    %49 = vector.broadcast %cst_18 : f32 to vector<4x16x16xf32>
    %50 = arith.mulf %49, %48 : vector<4x16x16xf32>
    %51 = vector.broadcast %5 : vector<1x1x16xf32> to vector<4x16x16xf32>
    %52 = arith.addf %50, %51 : vector<4x16x16xf32>
    %cst_19 = arith.constant dense<0xFF800000> : vector<4x16xf32>
    %53 = vector.multi_reduction <maximumf>, %52, %cst_19 [2] : vector<4x16x16xf32> to vector<4x16xf32>
    %54 = vector.shape_cast %53 : vector<4x16xf32> to vector<4x16x1xf32>
    %55 = vector.broadcast %54 : vector<4x16x1xf32> to vector<4x16x16xf32>
    %56 = arith.subf %52, %55 : vector<4x16x16xf32>
    %57 = math.exp %56 : vector<4x16x16xf32>
    %cst_20 = arith.constant dense<0.000000e+00> : vector<4x16xf32>
    %58 = vector.multi_reduction <add>, %57, %cst_20 [2] : vector<4x16x16xf32> to vector<4x16xf32>
    %59 = vector.shape_cast %58 : vector<4x16xf32> to vector<4x16x1xf32>
    %60 = tpu.reciprocal %59 : vector<4x16x1xf32> -> vector<4x16x1xf32>
    %61 = vector.broadcast %60 : vector<4x16x1xf32> to vector<4x16x16xf32>
    %62 = arith.mulf %57, %61 : vector<4x16x16xf32>
    "tpu.trace_start"() <{level = 10 : i32, message = "bnm,bmd->bnd"}> : () -> ()
    %cst_21 = arith.constant dense<0.000000e+00> : vector<4x16x8xf32>
    %63 = tpu.matmul %62, %47, %cst_21 {dimension_numbers = #tpu.dot_dimension_numbers<[2], [1], [1], [2], [0, 0, 0, 1, 1, 2], [0], [0]>, precision = #tpu.contract_precision<fp32>} : vector<4x16x16xf32>, vector<4x16x8xf32>, vector<4x16x8xf32> -> vector<4x16x8xf32>
    "tpu.trace_stop"() : () -> ()
    %64 = vector.extract_strided_slice %21 {offsets = [8, 0], sizes = [8, 32], strides = [1, 1]} : vector<32x32xf32> to vector<8x32xf32>
    "tpu.trace_start"() <{level = 10 : i32, message = "bnd,de->bne"}> : () -> ()
    %cst_22 = arith.constant dense<0.000000e+00> : vector<4x16x32xf32>
    %65 = tpu.matmul %63, %64, %cst_22 {dimension_numbers = #tpu.dot_dimension_numbers<[2], [0], [0, 1], [1], [0, 0, 0, 1, 1, 1], [], []>, precision = #tpu.contract_precision<fp32>} : vector<4x16x8xf32>, vector<8x32xf32>, vector<4x16x32xf32> -> vector<4x16x32xf32>
    "tpu.trace_stop"() : () -> ()
    %66 = arith.addf %44, %65 : vector<4x16x32xf32>
    %67 = vector.extract_strided_slice %18 {offsets = [0, 0, 16], sizes = [4, 16, 8], strides = [1, 1, 1]} : vector<4x16x96xf32> to vector<4x16x8xf32>
    %68 = vector.extract_strided_slice %18 {offsets = [0, 0, 48], sizes = [4, 16, 8], strides = [1, 1, 1]} : vector<4x16x96xf32> to vector<4x16x8xf32>
    %69 = vector.extract_strided_slice %18 {offsets = [0, 0, 80], sizes = [4, 16, 8], strides = [1, 1, 1]} : vector<4x16x96xf32> to vector<4x16x8xf32>
    "tpu.trace_start"() <{level = 10 : i32, message = "bnd,bmd->bnm"}> : () -> ()
    %cst_23 = arith.constant dense<0.000000e+00> : vector<4x16x16xf32>
    %70 = tpu.matmul %67, %68, %cst_23 {dimension_numbers = #tpu.dot_dimension_numbers<[2], [2], [1], [1], [0, 0, 0, 1, 1, 1], [0], [0]>, precision = #tpu.contract_precision<fp32>} : vector<4x16x8xf32>, vector<4x16x8xf32>, vector<4x16x16xf32> -> vector<4x16x16xf32>
    "tpu.trace_stop"() : () -> ()
    %cst_24 = arith.constant 0.353553385 : f32
    %71 = vector.broadcast %cst_24 : f32 to vector<4x16x16xf32>
    %72 = arith.mulf %71, %70 : vector<4x16x16xf32>
    %73 = vector.broadcast %5 : vector<1x1x16xf32> to vector<4x16x16xf32>
    %74 = arith.addf %72, %73 : vector<4x16x16xf32>
    %cst_25 = arith.constant dense<0xFF800000> : vector<4x16xf32>
    %75 = vector.multi_reduction <maximumf>, %74, %cst_25 [2] : vector<4x16x16xf32> to vector<4x16xf32>
    %76 = vector.shape_cast %75 : vector<4x16xf32> to vector<4x16x1xf32>
    %77 = vector.broadcast %76 : vector<4x16x1xf32> to vector<4x16x16xf32>
    %78 = arith.subf %74, %77 : vector<4x16x16xf32>
    %79 = math.exp %78 : vector<4x16x16xf32>
    %cst_26 = arith.constant dense<0.000000e+00> : vector<4x16xf32>
    %80 = vector.multi_reduction <add>, %79, %cst_26 [2] : vector<4x16x16xf32> to vector<4x16xf32>
    %81 = vector.shape_cast %80 : vector<4x16xf32> to vector<4x16x1xf32>
    %82 = tpu.reciprocal %81 : vector<4x16x1xf32> -> vector<4x16x1xf32>
    %83 = vector.broadcast %82 : vector<4x16x1xf32> to vector<4x16x16xf32>
    %84 = arith.mulf %79, %83 : vector<4x16x16xf32>
    "tpu.trace_start"() <{level = 10 : i32, message = "bnm,bmd->bnd"}> : () -> ()
    %cst_27 = arith.constant dense<0.000000e+00> : vector<4x16x8xf32>
    %85 = tpu.matmul %84, %69, %cst_27 {dimension_numbers = #tpu.dot_dimension_numbers<[2], [1], [1], [2], [0, 0, 0, 1, 1, 2], [0], [0]>, precision = #tpu.contract_precision<fp32>} : vector<4x16x16xf32>, vector<4x16x8xf32>, vector<4x16x8xf32> -> vector<4x16x8xf32>
    "tpu.trace_stop"() : () -> ()
    %86 = vector.extract_strided_slice %21 {offsets = [16, 0], sizes = [8, 32], strides = [1, 1]} : vector<32x32xf32> to vector<8x32xf32>
    "tpu.trace_start"() <{level = 10 : i32, message = "bnd,de->bne"}> : () -> ()
    %cst_28 = arith.constant dense<0.000000e+00> : vector<4x16x32xf32>
    %87 = tpu.matmul %85, %86, %cst_28 {dimension_numbers = #tpu.dot_dimension_numbers<[2], [0], [0, 1], [1], [0, 0, 0, 1, 1, 1], [], []>, precision = #tpu.contract_precision<fp32>} : vector<4x16x8xf32>, vector<8x32xf32>, vector<4x16x32xf32> -> vector<4x16x32xf32>
    "tpu.trace_stop"() : () -> ()
    %88 = arith.addf %66, %87 : vector<4x16x32xf32>
    %89 = vector.extract_strided_slice %18 {offsets = [0, 0, 24], sizes = [4, 16, 8], strides = [1, 1, 1]} : vector<4x16x96xf32> to vector<4x16x8xf32>
    %90 = vector.extract_strided_slice %18 {offsets = [0, 0, 56], sizes = [4, 16, 8], strides = [1, 1, 1]} : vector<4x16x96xf32> to vector<4x16x8xf32>
    %91 = vector.extract_strided_slice %18 {offsets = [0, 0, 88], sizes = [4, 16, 8], strides = [1, 1, 1]} : vector<4x16x96xf32> to vector<4x16x8xf32>
    "tpu.trace_start"() <{level = 10 : i32, message = "bnd,bmd->bnm"}> : () -> ()
    %cst_29 = arith.constant dense<0.000000e+00> : vector<4x16x16xf32>
    %92 = tpu.matmul %89, %90, %cst_29 {dimension_numbers = #tpu.dot_dimension_numbers<[2], [2], [1], [1], [0, 0, 0, 1, 1, 1], [0], [0]>, precision = #tpu.contract_precision<fp32>} : vector<4x16x8xf32>, vector<4x16x8xf32>, vector<4x16x16xf32> -> vector<4x16x16xf32>
    "tpu.trace_stop"() : () -> ()
    %cst_30 = arith.constant 0.353553385 : f32
    %93 = vector.broadcast %cst_30 : f32 to vector<4x16x16xf32>
    %94 = arith.mulf %93, %92 : vector<4x16x16xf32>
    %95 = vector.broadcast %5 : vector<1x1x16xf32> to vector<4x16x16xf32>
    %96 = arith.addf %94, %95 : vector<4x16x16xf32>
    %cst_31 = arith.constant dense<0xFF800000> : vector<4x16xf32>
    %97 = vector.multi_reduction <maximumf>, %96, %cst_31 [2] : vector<4x16x16xf32> to vector<4x16xf32>
    %98 = vector.shape_cast %97 : vector<4x16xf32> to vector<4x16x1xf32>
    %99 = vector.broadcast %98 : vector<4x16x1xf32> to vector<4x16x16xf32>
    %100 = arith.subf %96, %99 : vector<4x16x16xf32>
    %101 = math.exp %100 : vector<4x16x16xf32>
    %cst_32 = arith.constant dense<0.000000e+00> : vector<4x16xf32>
    %102 = vector.multi_reduction <add>, %101, %cst_32 [2] : vector<4x16x16xf32> to vector<4x16xf32>
    %103 = vector.shape_cast %102 : vector<4x16xf32> to vector<4x16x1xf32>
    %104 = tpu.reciprocal %103 : vector<4x16x1xf32> -> vector<4x16x1xf32>
    %105 = vector.broadcast %104 : vector<4x16x1xf32> to vector<4x16x16xf32>
    %106 = arith.mulf %101, %105 : vector<4x16x16xf32>
    "tpu.trace_start"() <{level = 10 : i32, message = "bnm,bmd->bnd"}> : () -> ()
    %cst_33 = arith.constant dense<0.000000e+00> : vector<4x16x8xf32>
    %107 = tpu.matmul %106, %91, %cst_33 {dimension_numbers = #tpu.dot_dimension_numbers<[2], [1], [1], [2], [0, 0, 0, 1, 1, 2], [0], [0]>, precision = #tpu.contract_precision<fp32>} : vector<4x16x16xf32>, vector<4x16x8xf32>, vector<4x16x8xf32> -> vector<4x16x8xf32>
    "tpu.trace_stop"() : () -> ()
    %108 = vector.extract_strided_slice %21 {offsets = [24, 0], sizes = [8, 32], strides = [1, 1]} : vector<32x32xf32> to vector<8x32xf32>
    "tpu.trace_start"() <{level = 10 : i32, message = "bnd,de->bne"}> : () -> ()
    %cst_34 = arith.constant dense<0.000000e+00> : vector<4x16x32xf32>
    %109 = tpu.matmul %107, %108, %cst_34 {dimension_numbers = #tpu.dot_dimension_numbers<[2], [0], [0, 1], [1], [0, 0, 0, 1, 1, 1], [], []>, precision = #tpu.contract_precision<fp32>} : vector<4x16x8xf32>, vector<8x32xf32>, vector<4x16x32xf32> -> vector<4x16x32xf32>
    "tpu.trace_stop"() : () -> ()
    %110 = arith.addf %88, %109 : vector<4x16x32xf32>
    %111 = arith.addf %14, %110 : vector<4x16x32xf32>
    %112 = arith.index_cast %arg1 : i32 to index
    %c0_35 = arith.constant 0 : index
    %c0_36 = arith.constant 0 : index
    %113 = vector.load %arg16[%112, %c0_35, %c0_36] : memref<2x1x32xf32, #tpu.memory_space<vmem>>, vector<1x1x32xf32>
    %114 = vector.shape_cast %113 : vector<1x1x32xf32> to vector<1x32xf32>
    %115 = vector.shape_cast %114 : vector<1x32xf32> to vector<1x1x32xf32>
    %116 = vector.broadcast %115 : vector<1x1x32xf32> to vector<4x16x32xf32>
    %117 = arith.addf %111, %116 : vector<4x16x32xf32>
    %118 = arith.index_cast %arg1 : i32 to index
    %c0_37 = arith.constant 0 : index
    %c0_38 = arith.constant 0 : index
    %119 = vector.load %arg21[%118, %c0_37, %c0_38] : memref<2x1x32xf32, #tpu.memory_space<vmem>>, vector<1x1x32xf32>
    %120 = vector.shape_cast %119 : vector<1x1x32xf32> to vector<1x32xf32>
    %121 = arith.index_cast %arg1 : i32 to index
    %c0_39 = arith.constant 0 : index
    %c0_40 = arith.constant 0 : index
    %122 = vector.load %arg22[%121, %c0_39, %c0_40] : memref<2x1x32xf32, #tpu.memory_space<vmem>>, vector<1x1x32xf32>
    %123 = vector.shape_cast %122 : vector<1x1x32xf32> to vector<1x32xf32>
    %124 = vector.broadcast %10 : vector<1x16x1xf32> to vector<4x16x32xf32>
    %125 = arith.mulf %117, %124 : vector<4x16x32xf32>
    %cst_41 = arith.constant dense<0.000000e+00> : vector<4x32xf32>
    %126 = vector.multi_reduction <add>, %125, %cst_41 [1] : vector<4x16x32xf32> to vector<4x32xf32>
    %127 = vector.shape_cast %126 : vector<4x32xf32> to vector<4x1x32xf32>
    %cst_42 = arith.constant 0.111111112 : f32
    %128 = vector.broadcast %cst_42 : f32 to vector<4x1x32xf32>
    %129 = arith.mulf %127, %128 : vector<4x1x32xf32>
    %130 = vector.broadcast %129 : vector<4x1x32xf32> to vector<4x16x32xf32>
    %131 = arith.subf %117, %130 : vector<4x16x32xf32>
    %132 = vector.broadcast %10 : vector<1x16x1xf32> to vector<4x16x32xf32>
    %133 = arith.mulf %131, %132 : vector<4x16x32xf32>
    %134 = arith.mulf %133, %133 : vector<4x16x32xf32>
    %cst_43 = arith.constant dense<0.000000e+00> : vector<4x32xf32>
    %135 = vector.multi_reduction <add>, %134, %cst_43 [1] : vector<4x16x32xf32> to vector<4x32xf32>
    %136 = vector.shape_cast %135 : vector<4x32xf32> to vector<4x1x32xf32>
    %cst_44 = arith.constant 0.111111112 : f32
    %137 = vector.broadcast %cst_44 : f32 to vector<4x1x32xf32>
    %138 = arith.mulf %136, %137 : vector<4x1x32xf32>
    %139 = vector.broadcast %129 : vector<4x1x32xf32> to vector<4x16x32xf32>
    %140 = arith.subf %117, %139 : vector<4x16x32xf32>
    %cst_45 = arith.constant 9.99999974E-6 : f32
    %141 = vector.broadcast %cst_45 : f32 to vector<4x1x32xf32>
    %142 = arith.addf %138, %141 : vector<4x1x32xf32>
    %143 = math.rsqrt %142 : vector<4x1x32xf32>
    %144 = vector.broadcast %143 : vector<4x1x32xf32> to vector<4x16x32xf32>
    %145 = arith.mulf %140, %144 : vector<4x16x32xf32>
    %146 = vector.shape_cast %120 : vector<1x32xf32> to vector<1x1x32xf32>
    %147 = vector.broadcast %146 : vector<1x1x32xf32> to vector<4x16x32xf32>
    %148 = arith.mulf %145, %147 : vector<4x16x32xf32>
    %149 = vector.shape_cast %123 : vector<1x32xf32> to vector<1x1x32xf32>
    %150 = vector.broadcast %149 : vector<1x1x32xf32> to vector<4x16x32xf32>
    %151 = arith.addf %148, %150 : vector<4x16x32xf32>
    %152 = arith.index_cast %arg1 : i32 to index
    %c0_46 = arith.constant 0 : index
    %c0_47 = arith.constant 0 : index
    %153 = vector.load %arg17[%152, %c0_46, %c0_47] : memref<2x32x64xf32, #tpu.memory_space<vmem>>, vector<1x32x64xf32>
    %154 = vector.shape_cast %153 : vector<1x32x64xf32> to vector<32x64xf32>
    "tpu.trace_start"() <{level = 10 : i32, message = "bne,ef->bnf"}> : () -> ()
    %cst_48 = arith.constant dense<0.000000e+00> : vector<4x16x64xf32>
    %155 = tpu.matmul %151, %154, %cst_48 {dimension_numbers = #tpu.dot_dimension_numbers<[2], [0], [0, 1], [1], [0, 0, 0, 1, 1, 1], [], []>, precision = #tpu.contract_precision<fp32>} : vector<4x16x32xf32>, vector<32x64xf32>, vector<4x16x64xf32> -> vector<4x16x64xf32>
    "tpu.trace_stop"() : () -> ()
    %156 = arith.index_cast %arg1 : i32 to index
    %c0_49 = arith.constant 0 : index
    %c0_50 = arith.constant 0 : index
    %157 = vector.load %arg18[%156, %c0_49, %c0_50] : memref<2x1x64xf32, #tpu.memory_space<vmem>>, vector<1x1x64xf32>
    %158 = vector.shape_cast %157 : vector<1x1x64xf32> to vector<1x64xf32>
    %159 = vector.shape_cast %158 : vector<1x64xf32> to vector<1x1x64xf32>
    %160 = vector.broadcast %159 : vector<1x1x64xf32> to vector<4x16x64xf32>
    %161 = arith.addf %155, %160 : vector<4x16x64xf32>
    %cst_51 = arith.constant 0.000000e+00 : f32
    %162 = vector.broadcast %cst_51 : f32 to vector<4x16x64xf32>
    %163 = arith.maximumf %161, %162 : vector<4x16x64xf32>
    %164 = arith.index_cast %arg1 : i32 to index
    %c0_52 = arith.constant 0 : index
    %c0_53 = arith.constant 0 : index
    %165 = vector.load %arg19[%164, %c0_52, %c0_53] : memref<2x64x32xf32, #tpu.memory_space<vmem>>, vector<1x64x32xf32>
    %166 = vector.shape_cast %165 : vector<1x64x32xf32> to vector<64x32xf32>
    "tpu.trace_start"() <{level = 10 : i32, message = "bnf,fe->bne"}> : () -> ()
    %cst_54 = arith.constant dense<0.000000e+00> : vector<4x16x32xf32>
    %167 = tpu.matmul %163, %166, %cst_54 {dimension_numbers = #tpu.dot_dimension_numbers<[2], [0], [0, 1], [1], [0, 0, 0, 1, 1, 1], [], []>, precision = #tpu.contract_precision<fp32>} : vector<4x16x64xf32>, vector<64x32xf32>, vector<4x16x32xf32> -> vector<4x16x32xf32>
    "tpu.trace_stop"() : () -> ()
    %168 = arith.index_cast %arg1 : i32 to index
    %c0_55 = arith.constant 0 : index
    %c0_56 = arith.constant 0 : index
    %169 = vector.load %arg20[%168, %c0_55, %c0_56] : memref<2x1x32xf32, #tpu.memory_space<vmem>>, vector<1x1x32xf32>
    %170 = vector.shape_cast %169 : vector<1x1x32xf32> to vector<1x32xf32>
    %171 = vector.shape_cast %170 : vector<1x32xf32> to vector<1x1x32xf32>
    %172 = vector.broadcast %171 : vector<1x1x32xf32> to vector<4x16x32xf32>
    %173 = arith.addf %167, %172 : vector<4x16x32xf32>
    %174 = arith.addf %151, %173 : vector<4x16x32xf32>
    %175 = arith.index_cast %arg1 : i32 to index
    %c0_57 = arith.constant 0 : index
    %c0_58 = arith.constant 0 : index
    %176 = vector.load %arg23[%175, %c0_57, %c0_58] : memref<2x1x32xf32, #tpu.memory_space<vmem>>, vector<1x1x32xf32>
    %177 = vector.shape_cast %176 : vector<1x1x32xf32> to vector<1x32xf32>
    %178 = arith.index_cast %arg1 : i32 to index
    %c0_59 = arith.constant 0 : index
    %c0_60 = arith.constant 0 : index
    %179 = vector.load %arg24[%178, %c0_59, %c0_60] : memref<2x1x32xf32, #tpu.memory_space<vmem>>, vector<1x1x32xf32>
    %180 = vector.shape_cast %179 : vector<1x1x32xf32> to vector<1x32xf32>
    %181 = vector.broadcast %10 : vector<1x16x1xf32> to vector<4x16x32xf32>
    %182 = arith.mulf %174, %181 : vector<4x16x32xf32>
    %cst_61 = arith.constant dense<0.000000e+00> : vector<4x32xf32>
    %183 = vector.multi_reduction <add>, %182, %cst_61 [1] : vector<4x16x32xf32> to vector<4x32xf32>
    %184 = vector.shape_cast %183 : vector<4x32xf32> to vector<4x1x32xf32>
    %cst_62 = arith.constant 0.111111112 : f32
    %185 = vector.broadcast %cst_62 : f32 to vector<4x1x32xf32>
    %186 = arith.mulf %184, %185 : vector<4x1x32xf32>
    %187 = vector.broadcast %186 : vector<4x1x32xf32> to vector<4x16x32xf32>
    %188 = arith.subf %174, %187 : vector<4x16x32xf32>
    %189 = vector.broadcast %10 : vector<1x16x1xf32> to vector<4x16x32xf32>
    %190 = arith.mulf %188, %189 : vector<4x16x32xf32>
    %191 = arith.mulf %190, %190 : vector<4x16x32xf32>
    %cst_63 = arith.constant dense<0.000000e+00> : vector<4x32xf32>
    %192 = vector.multi_reduction <add>, %191, %cst_63 [1] : vector<4x16x32xf32> to vector<4x32xf32>
    %193 = vector.shape_cast %192 : vector<4x32xf32> to vector<4x1x32xf32>
    %cst_64 = arith.constant 0.111111112 : f32
    %194 = vector.broadcast %cst_64 : f32 to vector<4x1x32xf32>
    %195 = arith.mulf %193, %194 : vector<4x1x32xf32>
    %196 = vector.broadcast %186 : vector<4x1x32xf32> to vector<4x16x32xf32>
    %197 = arith.subf %174, %196 : vector<4x16x32xf32>
    %cst_65 = arith.constant 9.99999974E-6 : f32
    %198 = vector.broadcast %cst_65 : f32 to vector<4x1x32xf32>
    %199 = arith.addf %195, %198 : vector<4x1x32xf32>
    %200 = math.rsqrt %199 : vector<4x1x32xf32>
    %201 = vector.broadcast %200 : vector<4x1x32xf32> to vector<4x16x32xf32>
    %202 = arith.mulf %197, %201 : vector<4x16x32xf32>
    %203 = vector.shape_cast %177 : vector<1x32xf32> to vector<1x1x32xf32>
    %204 = vector.broadcast %203 : vector<1x1x32xf32> to vector<4x16x32xf32>
    %205 = arith.mulf %202, %204 : vector<4x16x32xf32>
    %206 = vector.shape_cast %180 : vector<1x32xf32> to vector<1x1x32xf32>
    %207 = vector.broadcast %206 : vector<1x1x32xf32> to vector<4x16x32xf32>
    %208 = arith.addf %205, %207 : vector<4x16x32xf32>
    %c0_66 = arith.constant 0 : index
    %c0_67 = arith.constant 0 : index
    %c0_68 = arith.constant 0 : index
    %209 = vector.load %arg25[%c0_66, %c0_67, %c0_68] : memref<4x16x32xf32, #tpu.memory_space<vmem>>, vector<4x16x32xf32>
    tpu.vector_store %arg25[%c0_66, %c0_67, %c0_68], %208 {strides = array<i32>} : memref<4x16x32xf32, #tpu.memory_space<vmem>>, vector<4x16x32xf32>,
    %c1_i32 = arith.constant 1 : i32
    %210 = arith.cmpi eq, %arg1, %c1_i32 : i32
    %211 = arith.extui %210 : i1 to i32
    %c0_i32_69 = arith.constant 0 : i32
    %212 = arith.cmpi ne, %211, %c0_i32_69 : i32
    scf.if %212 {
      %c0_70 = arith.constant 0 : index
      %c0_71 = arith.constant 0 : index
      %c0_72 = arith.constant 0 : index
      %213 = vector.load %arg4[%c0_70, %c0_71, %c0_72] : memref<4x1x2xf32, #tpu.memory_space<vmem>>, vector<4x1x2xf32>
      %c0_73 = arith.constant 0 : index
      %c0_74 = arith.constant 0 : index
      %214 = vector.load %arg9[%c0_73, %c0_74] : memref<2x32xf32, #tpu.memory_space<vmem>>, vector<2x32xf32>
      "tpu.trace_start"() <{level = 10 : i32, message = "bcf,fe->bce"}> : () -> ()
      %cst_75 = arith.constant dense<0.000000e+00> : vector<4x1x32xf32>
      %215 = tpu.matmul %213, %214, %cst_75 {dimension_numbers = #tpu.dot_dimension_numbers<[2], [0], [0, 1], [1], [0, 0, 0, 1, 1, 1], [], []>, precision = #tpu.contract_precision<fp32>} : vector<4x1x2xf32>, vector<2x32xf32>, vector<4x1x32xf32> -> vector<4x1x32xf32>
      "tpu.trace_stop"() : () -> ()
      %c0_76 = arith.constant 0 : index
      %c0_77 = arith.constant 0 : index
      %216 = vector.load %arg10[%c0_76, %c0_77] : memref<1x32xf32, #tpu.memory_space<vmem>>, vector<1x32xf32>
      %217 = vector.shape_cast %216 : vector<1x32xf32> to vector<1x1x32xf32>
      %218 = vector.broadcast %217 : vector<1x1x32xf32> to vector<4x1x32xf32>
      %219 = arith.addf %215, %218 : vector<4x1x32xf32>
      %c0_78 = arith.constant 0 : index
      %c0_79 = arith.constant 0 : index
      %220 = vector.load %arg12[%c0_78, %c0_79] : memref<32x32xf32, #tpu.memory_space<vmem>>, vector<32x32xf32>
      "tpu.trace_start"() <{level = 10 : i32, message = "bce,ef->bcf"}> : () -> ()
      %cst_80 = arith.constant dense<0.000000e+00> : vector<4x1x32xf32>
      %221 = tpu.matmul %219, %220, %cst_80 {dimension_numbers = #tpu.dot_dimension_numbers<[2], [0], [0, 1], [1], [0, 0, 0, 1, 1, 1], [], []>, precision = #tpu.contract_precision<fp32>} : vector<4x1x32xf32>, vector<32x32xf32>, vector<4x1x32xf32> -> vector<4x1x32xf32>
      "tpu.trace_stop"() : () -> ()
      %c0_81 = arith.constant 0 : index
      %c0_82 = arith.constant 0 : index
      %222 = vector.load %arg13[%c0_81, %c0_82] : memref<1x32xf32, #tpu.memory_space<vmem>>, vector<1x32xf32>
      %223 = vector.shape_cast %222 : vector<1x32xf32> to vector<1x1x32xf32>
      %224 = vector.broadcast %223 : vector<1x1x32xf32> to vector<4x1x32xf32>
      %225 = arith.addf %221, %224 : vector<4x1x32xf32>
      %c0_83 = arith.constant 0 : index
      %c0_84 = arith.constant 0 : index
      %226 = vector.load %arg11[%c0_83, %c0_84] : memref<32x32xf32, #tpu.memory_space<vmem>>, vector<32x32xf32>
      "tpu.trace_start"() <{level = 10 : i32, message = "bne,ef->bnf"}> : () -> ()
      %cst_85 = arith.constant dense<0.000000e+00> : vector<4x16x32xf32>
      %227 = tpu.matmul %208, %226, %cst_85 {dimension_numbers = #tpu.dot_dimension_numbers<[2], [0], [0, 1], [1], [0, 0, 0, 1, 1, 1], [], []>, precision = #tpu.contract_precision<fp32>} : vector<4x16x32xf32>, vector<32x32xf32>, vector<4x16x32xf32> -> vector<4x16x32xf32>
      "tpu.trace_stop"() : () -> ()
      %228 = vector.broadcast %225 : vector<4x1x32xf32> to vector<4x16x32xf32>
      %229 = arith.addf %227, %228 : vector<4x16x32xf32>
      %c0_86 = arith.constant 0 : index
      %c0_87 = arith.constant 0 : index
      %c0_88 = arith.constant 0 : index
      %230 = vector.load %arg25[%c0_86, %c0_87, %c0_88] : memref<4x16x32xf32, #tpu.memory_space<vmem>>, vector<4x16x32xf32>
      tpu.vector_store %arg25[%c0_86, %c0_87, %c0_88], %229 {strides = array<i32>} : memref<4x16x32xf32, #tpu.memory_space<vmem>>, vector<4x16x32xf32>,
    } else {
    }
    return
  }
  func.func @transform_0(%arg0: i32, %arg1: i32) -> (i32, i32, i32) {
    %c0_i32 = arith.constant 0 : i32
    %c0_i32_0 = arith.constant 0 : i32
    %c0_i32_1 = arith.constant 0 : i32
    return %arg0, %c0_i32, %c0_i32_0 : i32, i32, i32
  }
  func.func @transform_1(%arg0: i32, %arg1: i32) -> (i32, i32, i32) {
    %c0_i32 = arith.constant 0 : i32
    %c0_i32_0 = arith.constant 0 : i32
    %c0_i32_1 = arith.constant 0 : i32
    return %arg0, %c0_i32, %c0_i32_0 : i32, i32, i32
  }
  func.func @transform_2(%arg0: i32, %arg1: i32) -> (i32, i32, i32) {
    %c0_i32 = arith.constant 0 : i32
    %c0_i32_0 = arith.constant 0 : i32
    %c0_i32_1 = arith.constant 0 : i32
    return %arg0, %c0_i32, %c0_i32_0 : i32, i32, i32
  }
  func.func @transform_3(%arg0: i32, %arg1: i32) -> (i32, i32) {
    %c0_i32 = arith.constant 0 : i32
    %c0_i32_0 = arith.constant 0 : i32
    %c0_i32_1 = arith.constant 0 : i32
    return %c0_i32, %c0_i32_0 : i32, i32
  }
  func.func @transform_4(%arg0: i32, %arg1: i32) -> (i32, i32) {
    %c0_i32 = arith.constant 0 : i32
    %c0_i32_0 = arith.constant 0 : i32
    %c0_i32_1 = arith.constant 0 : i32
    return %c0_i32, %c0_i32_0 : i32, i32
  }
  func.func @transform_5(%arg0: i32, %arg1: i32) -> (i32, i32) {
    %c0_i32 = arith.constant 0 : i32
    %c0_i32_0 = arith.constant 0 : i32
    %c0_i32_1 = arith.constant 0 : i32
    return %c0_i32, %c0_i32_0 : i32, i32
  }
  func.func @transform_6(%arg0: i32, %arg1: i32) -> (i32, i32) {
    %c0_i32 = arith.constant 0 : i32
    %c0_i32_0 = arith.constant 0 : i32
    %c0_i32_1 = arith.constant 0 : i32
    return %c0_i32, %c0_i32_0 : i32, i32
  }
  func.func @transform_7(%arg0: i32, %arg1: i32) -> (i32, i32) {
    %c0_i32 = arith.constant 0 : i32
    %c0_i32_0 = arith.constant 0 : i32
    %c0_i32_1 = arith.constant 0 : i32
    return %c0_i32, %c0_i32_0 : i32, i32
  }
  func.func @transform_8(%arg0: i32, %arg1: i32) -> (i32, i32) {
    %c0_i32 = arith.constant 0 : i32
    %c0_i32_0 = arith.constant 0 : i32
    %c0_i32_1 = arith.constant 0 : i32
    return %c0_i32, %c0_i32_0 : i32, i32
  }
  func.func @transform_9(%arg0: i32, %arg1: i32) -> (i32, i32) {
    %c0_i32 = arith.constant 0 : i32
    %c0_i32_0 = arith.constant 0 : i32
    %c0_i32_1 = arith.constant 0 : i32
    return %c0_i32, %c0_i32_0 : i32, i32
  }
  func.func @transform_10(%arg0: i32, %arg1: i32) -> (i32, i32) {
    %c0_i32 = arith.constant 0 : i32
    %c0_i32_0 = arith.constant 0 : i32
    %c0_i32_1 = arith.constant 0 : i32
    return %c0_i32, %c0_i32_0 : i32, i32
  }
  func.func @transform_11(%arg0: i32, %arg1: i32) -> (i32, i32) {
    %c0_i32 = arith.constant 0 : i32
    %c0_i32_0 = arith.constant 0 : i32
    %c0_i32_1 = arith.constant 0 : i32
    return %c0_i32, %c0_i32_0 : i32, i32
  }
  func.func @transform_12(%arg0: i32, %arg1: i32) -> (i32, i32, i32) {
    %c0_i32 = arith.constant 0 : i32
    %c0_i32_0 = arith.constant 0 : i32
    %c0_i32_1 = arith.constant 0 : i32
    %c0_i32_2 = arith.constant 0 : i32
    return %c0_i32, %c0_i32_0, %c0_i32_1 : i32, i32, i32
  }
  func.func @transform_13(%arg0: i32, %arg1: i32) -> (i32, i32, i32) {
    %c0_i32 = arith.constant 0 : i32
    %c0_i32_0 = arith.constant 0 : i32
    %c0_i32_1 = arith.constant 0 : i32
    %c0_i32_2 = arith.constant 0 : i32
    return %c0_i32, %c0_i32_0, %c0_i32_1 : i32, i32, i32
  }
  func.func @transform_14(%arg0: i32, %arg1: i32) -> (i32, i32, i32) {
    %c0_i32 = arith.constant 0 : i32
    %c0_i32_0 = arith.constant 0 : i32
    %c0_i32_1 = arith.constant 0 : i32
    %c0_i32_2 = arith.constant 0 : i32
    return %c0_i32, %c0_i32_0, %c0_i32_1 : i32, i32, i32
  }
  func.func @transform_15(%arg0: i32, %arg1: i32) -> (i32, i32, i32) {
    %c0_i32 = arith.constant 0 : i32
    %c0_i32_0 = arith.constant 0 : i32
    %c0_i32_1 = arith.constant 0 : i32
    %c0_i32_2 = arith.constant 0 : i32
    return %c0_i32, %c0_i32_0, %c0_i32_1 : i32, i32, i32
  }
  func.func @transform_16(%arg0: i32, %arg1: i32) -> (i32, i32, i32) {
    %c0_i32 = arith.constant 0 : i32
    %c0_i32_0 = arith.constant 0 : i32
    %c0_i32_1 = arith.constant 0 : i32
    %c0_i32_2 = arith.constant 0 : i32
    return %c0_i32, %c0_i32_0, %c0_i32_1 : i32, i32, i32
  }
  func.func @transform_17(%arg0: i32, %arg1: i32) -> (i32, i32, i32) {
    %c0_i32 = arith.constant 0 : i32
    %c0_i32_0 = arith.constant 0 : i32
    %c0_i32_1 = arith.constant 0 : i32
    %c0_i32_2 = arith.constant 0 : i32
    return %c0_i32, %c0_i32_0, %c0_i32_1 : i32, i32, i32
  }
  func.func @transform_18(%arg0: i32, %arg1: i32) -> (i32, i32, i32) {
    %c0_i32 = arith.constant 0 : i32
    %c0_i32_0 = arith.constant 0 : i32
    %c0_i32_1 = arith.constant 0 : i32
    %c0_i32_2 = arith.constant 0 : i32
    return %c0_i32, %c0_i32_0, %c0_i32_1 : i32, i32, i32
  }
  func.func @transform_19(%arg0: i32, %arg1: i32) -> (i32, i32, i32) {
    %c0_i32 = arith.constant 0 : i32
    %c0_i32_0 = arith.constant 0 : i32
    %c0_i32_1 = arith.constant 0 : i32
    %c0_i32_2 = arith.constant 0 : i32
    return %c0_i32, %c0_i32_0, %c0_i32_1 : i32, i32, i32
  }
  func.func @transform_20(%arg0: i32, %arg1: i32) -> (i32, i32, i32) {
    %c0_i32 = arith.constant 0 : i32
    %c0_i32_0 = arith.constant 0 : i32
    %c0_i32_1 = arith.constant 0 : i32
    %c0_i32_2 = arith.constant 0 : i32
    return %c0_i32, %c0_i32_0, %c0_i32_1 : i32, i32, i32
  }
  func.func @transform_21(%arg0: i32, %arg1: i32) -> (i32, i32, i32) {
    %c0_i32 = arith.constant 0 : i32
    %c0_i32_0 = arith.constant 0 : i32
    %c0_i32_1 = arith.constant 0 : i32
    %c0_i32_2 = arith.constant 0 : i32
    return %c0_i32, %c0_i32_0, %c0_i32_1 : i32, i32, i32
  }
  func.func @transform_22(%arg0: i32, %arg1: i32) -> (i32, i32, i32) {
    %c0_i32 = arith.constant 0 : i32
    %c0_i32_0 = arith.constant 0 : i32
    %c0_i32_1 = arith.constant 0 : i32
    %c0_i32_2 = arith.constant 0 : i32
    return %c0_i32, %c0_i32_0, %c0_i32_1 : i32, i32, i32
  }
  func.func @transform_23(%arg0: i32, %arg1: i32) -> (i32, i32, i32) {
    %c0_i32 = arith.constant 0 : i32
    %c0_i32_0 = arith.constant 0 : i32
    %c0_i32_1 = arith.constant 0 : i32
    return %arg0, %c0_i32, %c0_i32_0 : i32, i32, i32
  }
}

</mosaic_0001>

<bundles_post_ra>
// kernel: tpu_custom_call.1
= control target key start
LH: loop header
LB: loop body
LE: loop exit
PB: predicated region body
PF: predicated region fallthrough
CT: control target
= control target key end

     0   :  { %s36105_s0 = inlined_call_operand.vmem [shape: f32[8,1,2], index: 0, kind: input, shape index: {}]   ;;  %s36106_s1 = inlined_call_operand.vmem [shape: f32[8,8,3], index: 1, kind: input, shape index: {}]   ;;  %s36107_s2 = inlined_call_operand.vmem [shape: f32[8,1,2], index: 2, kind: input, shape index: {}]   ;;  %s36108_s3 = inlined_call_operand.hbm [shape: f32[2,32], index: 3, kind: input, shape index: {}]   ;;  %s36109_s4 = inlined_call_operand.hbm [shape: f32[1,32], index: 4, kind: input, shape index: {}]   ;;  %s36110_s5 = inlined_call_operand.hbm [shape: f32[3,32], index: 5, kind: input, shape index: {}]   ;;  %s36111_s6 = inlined_call_operand.hbm [shape: f32[1,32], index: 6, kind: input, shape index: {}]   ;;  %s36112_s7 = inlined_call_operand.hbm [shape: f32[2,32], index: 7, kind: input, shape index: {}]   ;;  %s36113_s8 = inlined_call_operand.hbm [shape: f32[1,32], index: 8, kind: input, shape index: {}]   ;;  %s36114_s9 = inlined_call_operand.vmem [shape: f32[32,32], index: 9, kind: input, shape index: {}]   ;;  %s36115_s10 = inlined_call_operand.vmem [shape: f32[32,32], index: 10, kind: input, shape index: {}]   ;;  %s36116_s11 = inlined_call_operand.hbm [shape: f32[1,32], index: 11, kind: input, shape index: {}]   ;;  %s36117_s12 = inlined_call_operand.vmem [shape: f32[2,32,96], index: 12, kind: input, shape index: {}]   ;;  %s36118_s13 = inlined_call_operand.vmem [shape: f32[2,32,32], index: 13, kind: input, shape index: {}]   ;;  %s36119_s14 = inlined_call_operand.vmem [shape: f32[2,1,32], index: 14, kind: input, shape index: {}]   ;;  %s36120_s15 = inlined_call_operand.vmem [shape: f32[2,32,64], index: 15, kind: input, shape index: {}]   ;;  %s36121_s16 = inlined_call_operand.vmem [shape: f32[2,1,64], index: 16, kind: input, shape index: {}]   ;;  %s36122_s17 = inlined_call_operand.vmem [shape: f32[2,64,32], index: 17, kind: input, shape index: {}]   ;;  %s36123_s18 = inlined_call_operand.vmem [shape: f32[2,1,32], index: 18, kind: input, shape index: {}]   ;;  %s36124_s19 = inlined_call_operand.vmem [shape: f32[2,1,32], index: 19, kind: input, shape index: {}]   ;;  %s36125_s20 = inlined_call_operand.vmem [shape: f32[2,1,32], index: 20, kind: input, shape index: {}]   ;;  %s36126_s21 = inlined_call_operand.vmem [shape: f32[2,1,32], index: 21, kind: input, shape index: {}]   ;;  %s36127_s22 = inlined_call_operand.vmem [shape: f32[2,1,32], index: 22, kind: input, shape index: {}]   ;;  %s36128_s23 = inlined_call_operand.hbm [shape: f32[8,16,32], index: 23, kind: output, shape index: {}]  }
   0x1   :  { %36220 = sst [smem:[#allocation89_spill]] %s36105_s0 }
   0x2   :  { %36221 = sst [smem:[#allocation90_spill]] %s36106_s1 }
   0x3   :  { %36222 = sst [smem:[#allocation91_spill]] %s36107_s2 }
   0x4   :  { %36223 = sst [smem:[#allocation92_spill]] %s36108_s3 }
   0x5   :  { %36224 = sst [smem:[#allocation93_spill]] %s36109_s4 }
   0x6   :  { %36225 = sst [smem:[#allocation94_spill]] %s36110_s5 }
   0x7   :  { %36226 = sst [smem:[#allocation95_spill]] %s36111_s6 }
   0x8   :  { %36227 = sst [smem:[#allocation96_spill]] %s36112_s7 }
   0x9   :  { %36228 = sst [smem:[#allocation97_spill]] %s36113_s8 }
   0xa   :  { %36229 = sst [smem:[#allocation98_spill]] %s36114_s9 }
   0xb   :  { %36230 = sst [smem:[#allocation99_spill]] %s36128_s23 }
   0xc   :  { %28 = vsyncpa [#allocation3], 0 }
   0xd   :  { %29 = vsyncpa [#allocation6], 0 }
   0xe   :  { %30 = vsyncpa [#allocation9], 0 }
   0xf   :  { %31 = vsyncpa [#allocation12], 0 }
  0x10   :  { %32 = vsyncpa [#allocation4], 0 }
  0x11   :  { %34 = vsyncpa [#allocation4 + $0x1], 0  ;;  %s31602_s4 = smov 0   ;;  %s31604_s30 = smov 0  }
  0x12   :  { %s31606_s24 = smov 0   ;;  %s31608_s25 = smov 0  }
  0x13   :  { %s31610_s5 = smov 0   ;;  %s31612_s1 = smov 0  }
  0x14   :  { %s31614_s26 = smov 0   ;;  %s31616_s2 = smov 0  }
  0x15 LB: > { %36231 = sst [smem:[#allocation20_spill]] %s31423_s4  ;;  %s27036_s6 = sadd.s32 4294967295, %s31451_s2   ;;  %s31451_s2 = sphi %s31616_s2, %s40_s2   ;;  %s31447_s26 = sphi %s31614_s26, %s36468_s26   ;;  %s31443_s1 = sphi %s31612_s1, %s36467_s1   ;;  %s31439_s5 = sphi %s31610_s5, %s36466_s5   ;;  %s31435_s25 = sphi %s31608_s25, %s36465_s25   ;;  %s31431_s24 = sphi %s31606_s24, %s36464_s24   ;;  %s31427_s30 = sphi %s31604_s30, %s36470_s30   ;;  %s31423_s4 = sphi %s31602_s4, %s36469_s4  }
  0x16   : > { %36232 = sst [smem:[#allocation21_spill]] %s31431_s24  ;;  %s27037_s27 = sadd.s32 4294967294, %s31451_s2  }
  0x17   : > { %36233 = sst [smem:[#allocation22_spill]] %s31443_s1  ;;  %s49_s7 = sadd.s32 1, %s31443_s1 }
  0x18   : > { %36234 = sst [smem:[#allocation23_spill]] %s31447_s26  ;;  %s52_s28 = sadd.s32 1, %s31447_s26 }
  0x19   : > { %36235 = sst [smem:[#allocation24_spill]] %s31451_s2  ;;  %p50_p0 = scmp.ge.s32.totalorder %s49_s7, 2 }
  0x1a   : > { %s557_s29 = sadd.s32 1, %s31431_s24  ;;  %p567_p1 = scmp.ne.s32.totalorder %s31431_s24, %s31427_s30 }
  0x1b   : > { %p568_p2 = scmp.eq.s32.totalorder %s27036_s6, 3  ;;  %s36472_s7 = smov (%p50_p0, %s49_s7), 0 }
  0x1c   : > { %36236 = sst [smem:[#allocation25_spill]] %s36472_s7  ;;  %s36474_s28 = smov (!%p50_p0, %s52_s28), %s31447_s26 }
  0x1d   : > { %p31652_p3 = por %p568_p2, %p567_p1  ;;  %p573_p4 = scmp.ne.s32.totalorder %s31427_s30, %s31423_s4 }
  0x1e   : > { %p54_p5 = scmp.ge.s32.totalorder %s36474_s28, 2  ;;  %p574_p6 = scmp.eq.s32.totalorder %s27037_s27, 3 }
  0x1f   : > { %s36237_s3 = scalar_select %p31652_p3, 1, 0 }
  0x20   : > { %p27038_p7 = scmp.ge.s32.totalorder %s31451_s2, 1  ;;  %p581_p8 = scmp.lt.s32.totalorder %s31451_s2, 5 }
  0x21   : > { %36238 = sst [smem:[#allocation26_spill]] %s36237_s3  ;;  %s36476_s28 = smov (%p54_p5, %s36474_s28), 0 }
  0x22   : > { %36239 = sst [smem:[#allocation27_spill]] %s36476_s28  ;;  %p31662_p9 = por %p574_p6, %p573_p4 }
  0x23   : > { %p31666_p10 = pnand %p27038_p7, %p581_p8  ;;  %s554_s7 = ssub.s32 %s31447_s26, %s36476_s28 }
  0x24   : > { %s36240_s0 = scalar_select %p31662_p9, 1, 0 }
  0x25   : > { %s36242_s1 = scalar_select %p31666_p10, 1, 0 }
  0x26   : > { %36241 = sst [smem:[#allocation28_spill]] %s36240_s0  ;;  %p555_p11 = scmp.eq.s32.totalorder %s554_s7, 0 }
  0x27   : > { %p30873_p12 = pneg %p31666_p10  ;;  %p31674_p13 = scmp.eq.s32.totalorder %s27036_s6, 0 }
  0x28   : > { %s31679_s4 = scalar_select %p555_p11, %s31431_s24, %s557_s29  }
  0x29   : > { %s36243_s27 = scalar_select %p31674_p13, 1, 0 }
  0x2a   : > { %36244 = sst [smem:[#allocation29_spill]] %s31679_s4  ;;  %p31683_p0 = pnand %p31674_p13, %p30873_p12 }
  0x2b   : > { %s31453_s0 = smov [#allocation5]   ;;  %s31454_s28 = smov [#allocation8]  }
  0x2c   : > { %s605_s23 = sshll.u32 %s31453_s0, 4  ;;  %s627_s7 = sshll.u32 %s31454_s28, 4  ;;  %s606_s23 = int_to_ptr.vmem [resolvable:$true] %s605_s23  ;;  %s628_s7 = int_to_ptr.vmem [resolvable:$true] %s627_s7 }
  0x2d   : > { %p31689_p1 = pneg %p31683_p0  ;;  %s31172_s26 = scalar_lea.vmem %s606_s23, 16 }
  0x2e   : > { %p31173_p2 = scmp.ne.s32.totalorder %s606_s23, %s31172_s26  ;;  %s31179_s29 = scalar_lea.vmem %s606_s23, 32 }
  0x2f   : > { %p31180_p6 = scmp.lt.s32.totalorder %s606_s23, %s606_s23  ;;  %p31181_p7 = scmp.lt.s32.totalorder %s31179_s29, %s31172_s26 }
  0x30   : > { %p31175_p4 = pnand %p31173_p2, %p31689_p1 }
  0x31   : > { %p31182_p8 = por %p31181_p7, %p31180_p6 }
  0x32   : > { %p31176_p5 = pneg %p31175_p4 }
  0x34   : > { %p31183_p11 = pnand %p31182_p8, %p31176_p5 }
  0x36   : > { %31186 = shalt.err (!%p31183_p11)
}
  0x37   : > { %s36247_s4 = sld [smem:[#allocation93_spill]]  ;;  %s31198_s24 = scalar_lea.vmem %s628_s7, 16 }
  0x38   : > { %p31199_p12 = scmp.ne.s32.totalorder %s628_s7, %s31198_s24  ;;  %s31205_s3 = scalar_lea.vmem %s628_s7, 32 }
  0x39   : > { %p31206_p4 = scmp.lt.s32.totalorder %s628_s7, %s628_s7  ;;  %p31207_p3 = scmp.lt.s32.totalorder %s31205_s3, %s31198_s24 }
  0x3a   : > { %p31201_p9 = pnand %p31199_p12, %p31689_p1 }
  0x3b   : > { %p31208_p13 = por %p31207_p3, %p31206_p4 }
  0x3c   : > { %p31202_p2 = pneg %p31201_p9 }
  0x3d   : > { %30879 = dma.hbm_to_vmem [thread:$0]  (!%p31683_p0), %s36247_s4, 16, %s606_s23, [#allocation6]  }
  0x3e   : > { %p31209_p6 = pnand %p31208_p13, %p31202_p2 }
  0x40   : > { %31212 = shalt.err (!%p31209_p6)
}
  0x41   : > { %s36248_s9 = sld [smem:[#allocation95_spill]]  ;;  %s31455_s23 = smov [#allocation11]  }
  0x42   : > { %s649_s4 = sshll.u32 %s31455_s23, 4  ;;  %s650_s4 = int_to_ptr.vmem [resolvable:$true] %s649_s4 }
  0x43   : > { %s31224_s28 = scalar_lea.vmem %s650_s4, 16  ;;  %s31231_s0 = scalar_lea.vmem %s650_s4, 32 }
  0x44   : > { %p31225_p5 = scmp.ne.s32.totalorder %s650_s4, %s31224_s28  ;;  %p31232_p8 = scmp.lt.s32.totalorder %s650_s4, %s650_s4 }
  0x45   : > { %p31233_p3 = scmp.lt.s32.totalorder %s31231_s0, %s31224_s28 }
  0x46   : > { %p31227_p9 = pnand %p31225_p5, %p31689_p1 }
  0x47   : > { %30885 = dma.hbm_to_vmem [thread:$0]  (!%p31683_p0), %s36248_s9, 16, %s628_s7, [#allocation9]  }
  0x48   : > { %p31228_p7 = pneg %p31227_p9  ;;  %p31234_p13 = por %p31233_p3, %p31232_p8 }
  0x4a   : > { %p31235_p11 = pnand %p31234_p13, %p31228_p7 }
  0x4c   : > { %31238 = shalt.err (!%p31235_p11)
}
  0x4d   : > { %s36249_s8 = sld [smem:[#allocation97_spill]]  ;;  %s31456_s9 = smov [#allocation2]  }
  0x4e   : > { %s594_s7 = sshll.u32 %s31456_s9, 4  ;;  %s31457_s26 = smov [#allocation7]   ;;  %s595_s7 = int_to_ptr.vmem [resolvable:$true] %s594_s7 }
  0x4f   : > { %s616_s29 = sshll.u32 %s31457_s26, 4  ;;  %s31250_s23 = scalar_lea.vmem %s595_s7, 32  ;;  %s617_s29 = int_to_ptr.vmem [resolvable:$true] %s616_s29 }
  0x50   : > { %p31251_p12 = scmp.ne.s32.totalorder %s595_s7, %s31250_s23  ;;  %p31258_p6 = scmp.lt.s32.totalorder %s595_s7, %s595_s7 }
  0x51   : > { %p31259_p5 = scmp.lt.s32.totalorder %s31250_s23, %s31250_s23 }
  0x52   : > { %p31253_p2 = pnand %p31251_p12, %p31689_p1 }
  0x53   : > { %30891 = dma.hbm_to_vmem [thread:$0]  (!%p31683_p0), %s36249_s8, 16, %s650_s4, [#allocation12]  }
  0x54   : > { %p31254_p4 = pneg %p31253_p2  ;;  %p31260_p9 = por %p31259_p5, %p31258_p6 }
  0x56   : > { %p31261_p7 = pnand %p31260_p9, %p31254_p4 }
  0x58   : > { %31264 = shalt.err (!%p31261_p7)
}
  0x59   : > { %s36250_s0 = sld [smem:[#allocation92_spill]]  ;;  %s31276_s24 = scalar_lea.vmem %s617_s29, 64 }
  0x5a   : > { %p31277_p8 = scmp.ne.s32.totalorder %s617_s29, %s31276_s24  ;;  %p31284_p11 = scmp.lt.s32.totalorder %s617_s29, %s617_s29 }
  0x5b   : > { %p31285_p12 = scmp.lt.s32.totalorder %s31276_s24, %s31276_s24 }
  0x5c   : > { %p31279_p3 = pnand %p31277_p8, %p31689_p1 }
  0x5d   : > { %p31286_p2 = por %p31285_p12, %p31284_p11 }
  0x5e   : > { %p31280_p13 = pneg %p31279_p3 }
  0x5f   : > { %30876 = dma.hbm_to_vmem [thread:$0]  (!%p31683_p0), %s36250_s0, 32, %s595_s7, [#allocation3]  }
  0x60   : > { %p31287_p10 = pnand %p31286_p2, %p31280_p13 }
  0x62   : > { %31290 = shalt.err (!%p31287_p10)
}
  0x63   : > { %s36251_s26 = sld [smem:[#allocation94_spill]]  ;;  %s31458_s23 = smov [#allocation10]  }
  0x64   : > { %s638_s28 = sshll.u32 %s31458_s23, 4  ;;  %s31459_s7 = smov [#allocation13]   ;;  %s639_s28 = int_to_ptr.vmem [resolvable:$true] %s638_s28 }
  0x65   : > { %s666_s4 = sshll.u32 %s31459_s7, 4  ;;  %s31302_s0 = scalar_lea.vmem %s639_s28, 32  ;;  %s667_s4 = int_to_ptr.vmem [resolvable:$true] %s666_s4 }
  0x66   : > { %p31303_p4 = scmp.ne.s32.totalorder %s639_s28, %s31302_s0  ;;  %p31310_p9 = scmp.lt.s32.totalorder %s639_s28, %s639_s28 }
  0x67   : > { %p31311_p10 = scmp.lt.s32.totalorder %s31302_s0, %s31302_s0 }
  0x68   : > { %p31305_p6 = pnand %p31303_p4, %p31689_p1 }
  0x69   : > { %30882 = dma.hbm_to_vmem [thread:$0]  (!%p31683_p0), %s36251_s26, 64, %s617_s29, [#allocation6]  }
  0x6a   : > { %p31306_p5 = pneg %p31305_p6  ;;  %p31312_p7 = por %p31311_p10, %p31310_p9 }
  0x6c   : > { %p31313_p8 = pnand %p31312_p7, %p31306_p5 }
  0x6e   : > { %31316 = shalt.err (!%p31313_p8)
}
  0x6f   : > { %s36252_s3 = sld [smem:[#allocation96_spill]]  ;;  %s31328_s9 = scalar_lea.vmem %s667_s4, 16 }
  0x70   : > { %p31329_p3 = scmp.ne.s32.totalorder %s667_s4, %s31328_s9  ;;  %s31335_s26 = scalar_lea.vmem %s667_s4, 32 }
  0x71   : > { %p31336_p12 = scmp.lt.s32.totalorder %s667_s4, %s667_s4  ;;  %p31337_p2 = scmp.lt.s32.totalorder %s31335_s26, %s31328_s9 }
  0x72   : > { %p31331_p13 = pnand %p31329_p3, %p31689_p1 }
  0x73   : > { %p31338_p4 = por %p31337_p2, %p31336_p12 }
  0x74   : > { %p31332_p11 = pneg %p31331_p13 }
  0x75   : > { %30888 = dma.hbm_to_vmem [thread:$0]  (!%p31683_p0), %s36252_s3, 32, %s639_s28, [#allocation9]  }
  0x76   : > { %p31339_p6 = pnand %p31338_p4, %p31332_p11 }
  0x78   : > { %31342 = shalt.err (!%p31339_p6)
}
  0x79   : > { %30894 = dma.hbm_to_vmem [thread:$0]  (!%p31683_p0), %s36116_s11, 16, %s667_s4, [#allocation12]  }
  0x7a   : > { %p36253_p5 = scmp.ne.s32.totalorder %s36242_s1, 0 }
  0x7c   : > { %737 = sbr.rel (%p36253_p5) target bundleno = 5697 (0x1641), region = 112 }
  0x81   : > { %p36254_p9 = scmp.ne.s32.totalorder %s36243_s27, 0 }
  0x83   : > { %31402 = dma.done.wait (%p36254_p9), [#allocation3], 32  }
  0x84   : > { %31404 = vsyncadd (%p36254_p9), [#allocation3], 4294967264 }
  0x85   : > { %31406 = dma.done.wait (%p36254_p9), [#allocation6], 80  }
  0x86   : > { %31408 = vsyncadd (%p36254_p9), [#allocation6], 4294967216 }
  0x87   : > { %31410 = dma.done.wait (%p36254_p9), [#allocation9], 48  }
  0x88   : > { %31412 = vsyncadd (%p36254_p9), [#allocation9], 4294967248 }
  0x89   : > { %31414 = dma.done.wait (%p36254_p9), [#allocation12], 32  }
  0x8a   : > { %31416 = vsyncadd (%p36254_p9), [#allocation12], 4294967264  ;;  %s36145_s1 = sand.u32 1, %s31427_s30   ;;  %s27056_s2 = sshll.u32 %s31439_s5, 2  ;;  %v850_v0 = vlaneseq  ;;  %v31460_v4 = vmov -1e+30  }
  0x8b   : > { %s27055_s6 = sshll.u32 %s36145_s1, 6  ;;  %p834_p0 = scmp.lt.s32.totalorder %s27056_s2, 7  ;;  %v31461_v6 = vmov 0.0  }
  0x8c   : > { %v851_v1 = vand.u32 127, %v850_v0  ;;  %v31764_v2 = vshrl.u32 %v850_v0, 7  ;;  %s36256_s27 = sld [smem:[#allocation89_spill]]  ;;  %s31784_s28 = scalar_lea.vmem [#allocation14], %s27055_s6 }
  0x8d   : > { %s36478_s2 = smov (!%p834_p0, %s27056_s2), 7  ;;  %s36257_s9 = sld [smem:[#allocation90_spill]] }
  0x8e   : > { %36255 = vst [vmem:[#allocation30_spill] sm:$0xff] %v31764_v2  ;;  %vm852_vm0 = vcmp.lt.s32.totalorder %v851_v1, 9  ;;  %v856_v3 = vadd.s32 8, %v31764_v2  ;;  %s27058_s24 = sshll.u32 %s36478_s2, 3  ;;  %s36258_s1 = sld [smem:[#allocation91_spill]] }
  0x8f   : > { %v31770_v5 = vsel %vm852_vm0, 0.0, %v31460_v4  ;;  %p27061_p1 = scmp.ne.s32.totalorder %s31435_s25, 0 }
  0x90   : > { %vm858_vm1 = vcmp.lt.s32.totalorder %v856_v3, 9 }
  0x91   : > { %v31782_v7 = vsel %vm858_vm1, 1.0, %v31461_v6  ;;  %866 = sbr.rel (%p27061_p1) target bundleno = 413 (0x19d), region = 144 }
  0x92   : > { %s836_s0 = scalar_lea.vmem %s36256_s27, %s36478_s2  ;;  %36259 = vst [vmem:[#allocation31_spill] sm:$0xff] %v31782_v7 }
  0x93   : > { %s31775_s26 = scalar_lea.vmem %s36257_s9, %s27058_s24 }
  0x94   : > { %s31780_s8 = scalar_lea.vmem %s36258_s1, %s36478_s2 }
  0x96   : > { %v871_v8 = vld [vmem:[#allocation2] sm:$0x3]  ;;  %vm922_vm2 = vcmask 1041408   ;;  %v31462_v9 = vmov 0.0   ;;  %vm1426_vm3 = vcmask 1042432   ;;  %vm31463_vm4 = vmmov 0  }
  0x97   : > { %28461 = vmatprep.subr.mxu0 %v31462_v9  ;;  %v924_v10 = vsel %vm922_vm2, %v871_v8, 0  ;;  %28466 = vmatprep.subr.mxu1 %v31462_v9  ;;  %v867_v11 = vld [vmem:[%s836_s0] sm:$0x1]  ;;  %v868_v13 = vld [vmem:[%s836_s0 + $0x1] sm:$0x1]  ;;  %vm1413_vm5 = vcmask 23552  }
  0x98   : > { %v957_v12 = vand.u32 4294901760, %v924_v10  ;;  %28463 = vmatprep.mubr.msk.f32.mxu0 %vm31463_vm4, %v31462_v9  ;;  %28468 = vmatprep.mubr.msk.f32.mxu1 %vm31463_vm4, %v31462_v9  ;;  %v869_v14 = vld [vmem:[%s836_s0 + $0x2] sm:$0x1]  ;;  %v870_v15 = vld [vmem:[%s836_s0 + $0x3] sm:$0x1]  ;;  %v877_v23 = vcombine.low %v867_v11, %v868_v13  ;;  %vm919_vm6 = vcmask 15360  }
  0x99   : > { %v1405_v16 = vld [vmem:[#allocation7] sm:$0x7]  ;;  %v31464_v18 = vmov 1966171168   ;;  %v878_v24 = vcombine.low %v869_v14, %v870_v15  ;;  %v1402_v36 = vld [vmem:[%s31775_s26 + $0x8] sm:$0xff]  ;;  %v1403_v38 = vld [vmem:[%s31775_s26 + $0x10] sm:$0xff] }
  0x9a   : > { %28462 = vmatpush3.msra.mxu0 %v957_v12  ;;  %v31793_v17 = vsub.f32 %v924_v10, %v957_v12  ;;  %v880_v19 = vunpack.c.l.s4 %v31464_v18  ;;  %v1428_v20 = vsel %vm1426_vm3, %v1405_v16, 0  ;;  %v1401_v32 = vld [vmem:[%s31775_s26] sm:$0xff]  ;;  %v1418_v41 = vsel %vm1413_vm5, %v1402_v36, 0  ;;  %v1404_v45 = vld [vmem:[%s31775_s26 + $0x18] sm:$0xff] }
  0x9b   : > { %28471 = vmatprep.subr.mxu0 %v31462_v9  ;;  %v31796_v21 = vand.u32 4294901760, %v1428_v20  ;;  %v1415_v35 = vsel %vm1413_vm5, %v1401_v32, 0  ;;  %v1421_v44 = vsel %vm1413_vm5, %v1403_v38, 0  ;;  %v31826_v47 = vand.u32 4294901760, %v1418_v41 }
  0x9c   : > { %v1035_v22 = vand.u32 4294901760, %v31793_v17  ;;  %v881_v25 = vunpack.c.0.s8 %v880_v19  ;;  %v31819_v40 = vand.u32 4294901760, %v1415_v35  ;;  %v31831_v49 = vand.u32 4294901760, %v1421_v44  ;;  %v31006_v10 = vld [vmem:[#allocation5] ss:$0 sps:$4 sm:$0x11]  }
  0x9d   : > { %v31806_v28 = vsub.f32 %v1428_v20, %v31796_v21  ;;  %v1424_v50 = vsel %vm1413_vm5, %v1404_v45, 0  ;;  %v1507_v54 = vsub.f32 %v1418_v41, %v31826_v47  ;;  %vm2017_vm7 = vcmask 1040384  }
  0x9e   : > { %v1036_v26 = vsub.f32 %v31793_v17, %v1035_v22  ;;  %v31803_v27 = vsub.s32 %v881_v25, %v31764_v2  ;;  %v1497_v48 = vsub.f32 %v1415_v35, %v31819_v40  ;;  %v1526_v55 = vand.u32 4294901760, %v1424_v50 }
  0x9f   : > { %v31813_v34 = vand.u32 4294901760, %v31806_v28  ;;  %v1517_v57 = vsub.f32 %v1421_v44, %v31831_v49  ;;  %v1508_v59 = vand.u32 4294901760, %v1507_v54  ;;  %vm2026_vm8 = vcmask 261120  }
  0xa0   : > { %v1037_v29 = vand.u32 4294901760, %v1036_v26  ;;  %v885_v30 = vrot.slane %v877_v23, %v31803_v27  ;;  %v892_v31 = vrot.slane %v878_v24, %v31803_v27  ;;  %v1498_v56 = vand.u32 4294901760, %v1497_v48 }
  0xa1   : > { %v1570_v43 = vsub.f32 %v31806_v28, %v31813_v34  ;;  %v1527_v60 = vsub.f32 %v1424_v50, %v1526_v55  ;;  %v1518_v62 = vand.u32 4294901760, %v1517_v57  ;;  %v1509_v63 = vsub.f32 %v1507_v54, %v1508_v59 }
  0xa2   : > { %28467 = vmatpush3.msra.mxu1 %v1037_v29  ;;  %v893_v33 = vcombine.low %v885_v30, %v892_v31  ;;  %v1499_v61 = vsub.f32 %v1497_v48, %v1498_v56  ;;  %v909_v11 = vrot.slane %v31006_v10, %v31803_v27 }
  0xa3   : > { %28476 = vmatprep.subr.mxu1 %v31462_v9  ;;  %v1571_v52 = vand.u32 4294901760, %v1570_v43  ;;  %v1528_v0 = vand.u32 4294901760, %v1527_v60  ;;  %v1519_v3 = vsub.f32 %v1517_v57, %v1518_v62  ;;  %v1510_v4 = vand.u32 4294901760, %v1509_v63 }
  0xa4   : > { %v900_v37 = vrot.slane %v893_v33, %v31803_v27  ;;  %v1500_v1 = vand.u32 4294901760, %v1499_v61  ;;  %v910_v13 = vcombine.low %v909_v11, %v909_v11 }
  0xa5   : > { %v1529_v6 = vsub.f32 %v1527_v60, %v1528_v0  ;;  %v1520_v8 = vand.u32 4294901760, %v1519_v3 }
  0xa6   : > { %v920_v39 = vsel %vm919_vm6, %v900_v37, 0  ;;  %v917_v16 = vrot.slane %v910_v13, %v31803_v27  ;;  %v27062_v37 = vld [vmem:[#allocation8] ss:$0 sm:$0xff] }
  0xa7   : > { %v992_v42 = vand.u32 4294901760, %v920_v39 }
  0xa9   : > { %v993_v46 = vsub.f32 %v920_v39, %v992_v42  ;;  %28469 = vmatmul.mubr.f32.vlgmr.msra.gmra.mxu1 %v992_v42 }
  0xaa   : > { %28477 = vmatpush3.msra.mxu1 %v957_v12  ;;  %28478 = vmatprep.mubr.msk.f32.mxu1 %vm31463_vm4, %v31462_v9 }
  0xab   : > { %v994_v51 = vand.u32 4294901760, %v993_v46  ;;  %28486 = vmatprep.subr.mxu1 %v31462_v9 }
  0xad   : > { %v995_v53 = vsub.f32 %v993_v46, %v994_v51  ;;  %28479 = vmatmul.mubr.f32.vlgmr.msra.gmra.mxu1 %v994_v51 }
  0xae   : > { %28487 = vmatpush3.msra.mxu1 %v957_v12  ;;  %28488 = vmatprep.mubr.msk.f32.mxu1 %vm31463_vm4, %v31462_v9 }
  0xaf   : > { %v996_v58 = vand.u32 4294901760, %v995_v53  ;;  %28499 = vmatprep.subr.mxu1 %v1571_v52 }
  0xb1   : > { %28464 = vmatmul.mubr.f32.vlgmr.msra.gmra.mxu0 %v996_v58  ;;  %28489 = vmatmul.mubr.f32.vlgmr.msra.gmra.mxu1 %v992_v42 }
  0xb2   : > { %28472 = vmatpush3.msra.mxu0 %v31793_v17  ;;  %28473 = vmatprep.mubr.msk.f32.mxu0 %vm31463_vm4, %v31462_v9 }
  0xb3   : > { %28481 = vmatprep.subr.mxu0 %v31462_v9  ;;  %28500 = vmatpush3.msra.mxu1 %v1571_v52 }
  0xb4   : > { %28501 = vmatprep.mubr.f32.mxu1 %v31819_v40  ;;  %28515 = vmatprep.subr.mxu1 %v31796_v21 }
  0xb5   : > { %28474 = vmatmul.mubr.f32.vlgmr.msra.gmra.mxu0 %v993_v46  ;;  %28502 = vmatmul.mubr.f32.vlgmr.msra.gmra.mxu1 %v31826_v47 }
  0xb6   : > { %28482 = vmatpush3.msra.mxu0 %v1035_v22  ;;  %28483 = vmatprep.mubr.msk.f32.mxu0 %vm31463_vm4, %v31462_v9  ;;  %v1530_v9 = vand.u32 4294901760, %v1529_v6 }
  0xb7   : > { %28491 = vmatprep.subr.mxu0 %v31796_v21  ;;  %28516 = vmatpush3.msra.mxu1 %v31796_v21 }
  0xb8   : > { %28504 = vmatprep.mubr.f32.mxu1 %v31831_v49  ;;  %28531 = vmatprep.subr.mxu1 %v31796_v21 }
  0xb9   : > { %28484 = vmatmul.mubr.f32.vlgmr.msra.gmra.mxu0 %v992_v42  ;;  %28505 = vmatmul.mubr.f32.gmra.mxu1 %v1526_v55 }
  0xba   : > { %28492 = vmatpush3.msra.mxu0 %v31796_v21  ;;  %28493 = vmatprep.mubr.f32.mxu0 %v1500_v1 }
  0xbb   : > { %28507 = vmatprep.subr.mxu0 %v31806_v28  ;;  %28517 = vmatprep.mubr.f32.mxu1 %v1498_v56 }
  0xbd   : > { %28494 = vmatmul.mubr.f32.vlgmr.msra.gmra.mxu0 %v1510_v4  ;;  %28518 = vmatmul.mubr.f32.vlgmr.msra.gmra.mxu1 %v1508_v59 }
  0xbe   : > { %28508 = vmatpush3.msra.mxu0 %v31806_v28  ;;  %28496 = vmatprep.mubr.f32.mxu0 %v1520_v8 }
  0xbf   : > { %28523 = vmatprep.subr.mxu0 %v31813_v34  ;;  %28532 = vmatpush3.msra.mxu1 %v31796_v21 }
  0xc0   : > { %28520 = vmatprep.mubr.f32.mxu1 %v1518_v62 }
  0xc1   : > { %28497 = vmatmul.mubr.f32.gmra.mxu0 %v1530_v9  ;;  %28521 = vmatmul.mubr.f32.gmra.mxu1 %v1528_v0 }
  0xc2   : > { %28509 = vmatprep.mubr.f32.mxu0 %v1497_v48  ;;  %28533 = vmatprep.mubr.f32.mxu1 %v31819_v40 }
  0xc5   : > { %28510 = vmatmul.mubr.f32.vlgmr.msra.gmra.mxu0 %v1507_v54  ;;  %28534 = vmatmul.mubr.f32.vlgmr.msra.gmra.mxu1 %v31826_v47 }
  0xc6   : > { %28524 = vmatpush3.msra.mxu0 %v31813_v34  ;;  %28512 = vmatprep.mubr.f32.mxu0 %v1517_v57 }
  0xc7   : > { %28536 = vmatprep.mubr.f32.mxu1 %v31831_v49 }
  0xc9   : > { %28513 = vmatmul.mubr.f32.gmra.mxu0 %v1527_v60  ;;  %28537 = vmatmul.mubr.f32.gmra.mxu1 %v1526_v55 }
  0xca   : > { %28525 = vmatprep.mubr.f32.mxu0 %v31819_v40 }
  0xcd   : > { %28526 = vmatmul.mubr.f32.vlgmr.msra.gmra.mxu0 %v31826_v47 }
  0xce   : > { %28528 = vmatprep.mubr.f32.mxu0 %v31831_v49 }
  0xd1   : > { %28529 = vmatmul.mubr.f32.gmra.mxu0 %v1526_v55 }
 0x169   : > { %v1074_v12 = vpop.f32.mrf.mxu1 }
 0x16b   : > { %v28470_v14 = vpop.f32.mrf.mxu1 }
 0x16d   : > { %v1222_v15 = vpop.f32.mrf.mxu1 }
 0x16f   : > { %v28480_v17 = vpop.f32.mrf.mxu1 }
 0x171   : > { %v998_v18 = vpop.f32.mrf.mxu0  ;;  %v1368_v19 = vpop.f32.mrf.mxu1 }
 0x172   : > { %v999_v20 = vadd.f32 %v998_v18, %v917_v16 }
 0x173   : > { %v28465_v21 = vpop.f32.mrf.mxu0  ;;  %v28490_v22 = vpop.f32.mrf.mxu1 }
 0x174   : > { %v1075_v25 = vadd.f32 %v1074_v12, %v999_v20 }
 0x175   : > { %v1148_v23 = vpop.f32.mrf.mxu0  ;;  %v28503_v24 = vpop.f32.mrf.mxu1 }
 0x176   : > { %v1149_v31 = vadd.f32 %v1148_v23, %v1075_v25 }
 0x177   : > { %v28475_v26 = vpop.f32.mrf.mxu0  ;;  %v1608_v28 = vpop.f32.mrf.mxu1 }
 0x178   : > { %v1223_v36 = vadd.f32 %v1222_v15, %v1149_v31 }
 0x179   : > { %v1296_v29 = vpop.f32.mrf.mxu0  ;;  %v28506_v30 = vpop.f32.mrf.mxu1 }
 0x17a   : > { %v1297_v41 = vadd.f32 %v1296_v29, %v1223_v36 }
 0x17b   : > { %v28485_v32 = vpop.f32.mrf.mxu0  ;;  %v1620_v33 = vpop.f32.mrf.mxu1 }
 0x17c   : > { %v1369_v47 = vadd.f32 %v1368_v19, %v1297_v41 }
 0x17d   : > { %v28495_v34 = vpop.f32.mrf.mxu0  ;;  %v28519_v35 = vpop.f32.mrf.mxu1 }
 0x17e   : > { %v1513_v42 = vadd.f32 %v28495_v34, %v27062_v37  ;;  %v1379_v56 = vrot.slane %v1369_v47, %v31803_v27 }
 0x17f   : > { %v1502_v38 = vpop.f32.mrf.mxu0  ;;  %v1795_v39 = vpop.f32.mrf.mxu1 }
 0x180   : > { %v1503_v45 = vadd.f32 %v27062_v37, %v1502_v38  ;;  %v1615_v48 = vadd.f32 %v28503_v24, %v1513_v42  ;;  %v1380_v1 = vcombine.high %v1379_v56, %v1379_v56  ;;  %v1387_v19 = vrot.slane %v1379_v56, %v31803_v27 }
 0x181   : > { %v28498_v40 = vpop.f32.mrf.mxu0  ;;  %v28522_v43 = vpop.f32.mrf.mxu1 }
 0x182   : > { %v1533_v49 = vadd.f32 %v28498_v40, %v27062_v37  ;;  %v1609_v52 = vadd.f32 %v1608_v28, %v1503_v45  ;;  %v1394_v14 = vrot.slane %v1380_v1, %v31803_v27 }
 0x183   : > { %v1522_v44 = vpop.f32.mrf.mxu0  ;;  %v1811_v50 = vpop.f32.mrf.mxu1 }
 0x184   : > { %v1523_v54 = vadd.f32 %v27062_v37, %v1522_v44  ;;  %v1627_v57 = vadd.f32 %v28506_v30, %v1533_v49  ;;  %v1396_v28 = vcombine.high %v1394_v14, %v1394_v14 }
 0x185   : > { %v28511_v46 = vpop.f32.mrf.mxu0  ;;  %v28535_v59 = vpop.f32.mrf.mxu1 }
 0x186   : > { %v1708_v53 = vadd.f32 %v28511_v46, %v1615_v48  ;;  %v1621_v63 = vadd.f32 %v1620_v33, %v1523_v54 }
 0x187   : > { %v1700_v51 = vpop.f32.mrf.mxu0  ;;  %v1983_v6 = vpop.f32.mrf.mxu1 }
 0x188   : > { %v1701_v58 = vadd.f32 %v1700_v51, %v1609_v52  ;;  %v1804_v61 = vadd.f32 %v28519_v35, %v1708_v53  ;;  %v1395_v35 = vcombine.high %v1387_v19, %v1387_v19 }
 0x189   : > { %v28514_v55 = vpop.f32.mrf.mxu0  ;;  %v28538_v18 = vpop.f32.mrf.mxu1 }
 0x18a   : > { %v1722_v62 = vadd.f32 %v28514_v55, %v1627_v57  ;;  %v1796_v3 = vadd.f32 %v1795_v39, %v1701_v58 }
 0x18b   : > { %v1714_v60 = vpop.f32.mrf.mxu0  ;;  %v1995_v31 = vpop.f32.mrf.mxu1 }
 0x18c   : > { %v1715_v8 = vadd.f32 %v1714_v60, %v1621_v63  ;;  %v1820_v10 = vadd.f32 %v28522_v43, %v1722_v62 }
 0x18d   : > { %v28527_v0 = vpop.f32.mrf.mxu0 }
 0x18e   : > { %v1900_v4 = vadd.f32 %v28527_v0, %v1804_v61  ;;  %v1812_v20 = vadd.f32 %v1811_v50, %v1715_v8 }
 0x18f   : > { %v1893_v9 = vpop.f32.mrf.mxu0 }
 0x190   : > { %v1990_v11 = vadd.f32 %v28535_v59, %v1900_v4  ;;  %v1894_v12 = vadd.f32 %v1893_v9, %v1796_v3 }
 0x191   : > { %v28530_v13 = vpop.f32.mrf.mxu0 }
 0x192   : > { %v2010_v15 = vrot.slane %v1990_v11, 7  ;;  %v1984_v16 = vadd.f32 %v1983_v6, %v1894_v12  ;;  %v1912_v17 = vadd.f32 %v28530_v13, %v1820_v10 }
 0x193   : > { %v1905_v21 = vpop.f32.mrf.mxu0 }
 0x194   : > { %v2019_v22 = vsel %vm2017_vm7, %v1394_v14, %v2010_v15  ;;  %v2023_v23 = vsel %vm2017_vm7, %v2010_v15, 0.0  ;;  %v2009_v24 = vrot.slane %v1984_v16, 7  ;;  %v2002_v25 = vadd.f32 %v28538_v18, %v1912_v17 }
 0x195   : > { %2029 = vst.msk [vmem:[%s31784_s28 + $0x10] sm:$0xff] %vm2026_vm8, %v2019_v22  ;;  %2030 = vst.msk [vmem:[%s31784_s28 + $0x18] sm:$0xff] %vm2026_vm8, %v2023_v23  ;;  %v1906_v26 = vadd.f32 %v1905_v21, %v1812_v20 }
 0x196   : > { %v2018_v27 = vsel %vm2017_vm7, %v1387_v19, %v2009_v24  ;;  %v2022_v29 = vsel %vm2017_vm7, %v2009_v24, 0.0  ;;  %v2012_v30 = vrot.slane %v2002_v25, 7 }
 0x197   : > { %2027 = vst.msk [vmem:[%s31784_s28] sm:$0xff] %vm2026_vm8, %v2018_v27  ;;  %2028 = vst.msk [vmem:[%s31784_s28 + $0x8] sm:$0xff] %vm2026_vm8, %v2022_v29  ;;  %v1996_v32 = vadd.f32 %v1995_v31, %v1906_v26 }
 0x198   : > { %v2021_v33 = vsel %vm2017_vm7, %v1396_v28, %v2012_v30  ;;  %v2025_v34 = vsel %vm2017_vm7, %v2012_v30, 0.0 }
 0x199   : > { %2033 = vst.msk [vmem:[%s31784_s28 + $0x30] sm:$0xff] %vm2026_vm8, %v2021_v33  ;;  %2034 = vst.msk [vmem:[%s31784_s28 + $0x38] sm:$0xff] %vm2026_vm8, %v2025_v34  ;;  %v2011_v36 = vrot.slane %v1996_v32, 7 }
 0x19b   : > { %v2020_v37 = vsel %vm2017_vm7, %v1395_v35, %v2011_v36  ;;  %v2024_v38 = vsel %vm2017_vm7, %v2011_v36, 0.0 }
 0x19c   : > { %2031 = vst.msk [vmem:[%s31784_s28 + $0x20] sm:$0xff] %vm2026_vm8, %v2020_v37  ;;  %2032 = vst.msk [vmem:[%s31784_s28 + $0x28] sm:$0xff] %vm2026_vm8, %v2024_v38 }
 0x19d PF: > { %s31896_s1 = sshll.u32 %s31435_s25, 5  ;;  %vm2049_vm9 = vcmask 261120   ;;  %v2037_v41 = vld [vmem:[%s31784_s28 + $0x10] sm:$0xff]  ;;  %v2038_v45 = vld [vmem:[%s31784_s28 + $0x18] sm:$0xff]  ;;  %s31465_s27 = smov 96   ;;  %vm2871_vm10 = vcmask 64512  }
 0x19e   : > { %v2035_v39 = vld [vmem:[%s31784_s28] sm:$0xff]  ;;  %v2036_v40 = vld [vmem:[%s31784_s28 + $0x8] sm:$0xff]  ;;  %s2044_s4 = scalar_lea.vmem %s36117_s12, %s31896_s1  ;;  %v2057_v44 = vsel %vm2049_vm9, %v2037_v41, 0  ;;  %v2060_v56 = vsel %vm2049_vm9, %v2038_v45, 0  ;;  %s31466_s0 = smov 64   ;;  %vm4946_vm11 = vcmask 130048  }
 0x19f   : > { %v2051_v42 = vsel %vm2049_vm9, %v2035_v39, 0  ;;  %v2054_v43 = vsel %vm2049_vm9, %v2036_v40, 0  ;;  %v2048_v46 = vld [vmem:[%s2044_s4 + $0x18] sm:$0xff]  ;;  %v2047_v47 = vld [vmem:[%s2044_s4 + $0x10] sm:$0xff]  ;;  %v2046_v48 = vld [vmem:[%s2044_s4 + $0x8] sm:$0xff]  ;;  %v31913_v51 = vand.u32 4294901760, %v2057_v44  ;;  %s33126_s6 = scalar_lea.vmem %s36118_s13, %s31896_s1  ;;  %s22911_s2 = scalar_lea.vmem %s36124_s19, %s31435_s25 }
 0x1a0   : > { %v31909_v49 = vand.u32 4294901760, %v2051_v42  ;;  %v31911_v50 = vand.u32 4294901760, %v2054_v43  ;;  %v31915_v52 = vand.u32 4294901760, %v2048_v46  ;;  %v31917_v53 = vand.u32 4294901760, %v2047_v47  ;;  %v2045_v55 = vld [vmem:[%s2044_s4] sm:$0xff]  ;;  %v2042_v30 = vld [vmem:[%s31784_s28 + $0x38] sm:$0xff] }
 0x1a1   : > { %v31919_v54 = vand.u32 4294901760, %v2046_v48  ;;  %v31922_v57 = vand.u32 4294901760, %v2045_v55  ;;  %v31931_v60 = vsub.f32 %v2057_v44, %v31913_v51  ;;  %v31939_v63 = vand.u32 4294901760, %v2060_v56  ;;  %v2041_v22 = vld [vmem:[%s31784_s28 + $0x30] sm:$0xff]  ;;  %s31467_s24 = smov 88   ;;  %s31468_s29 = smov 120  }
 0x1a2   : > { %v31925_v58 = vsub.f32 %v2051_v42, %v31909_v49  ;;  %v31928_v59 = vsub.f32 %v2054_v43, %v31911_v50  ;;  %28567 = vmatprep.mubr.f32.mxu1 %v31909_v49  ;;  %28539 = vmatprep.subr.mxu0 %v31915_v52  ;;  %v2249_v61 = vsub.f32 %v2048_v46, %v31915_v52  ;;  %v2069_v34 = vsel %vm2049_vm9, %v2041_v22, 0  ;;  %s31469_s3 = smov 56   ;;  %s31470_s9 = smov 80  }
 0x1a3   : > { %v31937_v62 = vsub.f32 %v2047_v47, %v31917_v53  ;;  %v31942_v0 = vsub.f32 %v2046_v48, %v31919_v54  ;;  %28540 = vmatpush3.msra.mxu0 %v31915_v52  ;;  %v2165_v4 = vand.u32 4294901760, %v31931_v60  ;;  %v31949_v6 = vsub.f32 %v2045_v55, %v31922_v57  ;;  %v2039_v20 = vld [vmem:[%s31784_s28 + $0x20] sm:$0xff]  ;;  %v2040_v21 = vld [vmem:[%s31784_s28 + $0x28] sm:$0xff]  ;;  %s31471_s26 = smov 112   ;;  %s31472_s23 = smov 48  }
 0x1a4   : > { %v2145_v1 = vand.u32 4294901760, %v31925_v58  ;;  %v2155_v3 = vand.u32 4294901760, %v31928_v59  ;;  %28541 = vmatprep.subr.mxu0 %v31917_v53  ;;  %v31952_v8 = vand.u32 4294901760, %v2249_v61  ;;  %v31958_v10 = vsub.f32 %v2060_v56, %v31939_v63  ;;  %s31473_s4 = smov 72   ;;  %p27072_p10 = scmp.ne.s32.totalorder %s31435_s25, 1 }
 0x1a5   : > { %v31955_v9 = vand.u32 4294901760, %v31937_v62  ;;  %v31961_v11 = vand.u32 4294901760, %v31942_v0  ;;  %28542 = vmatpush3.msra.mxu0 %v31917_v53  ;;  %v2166_v14 = vsub.f32 %v31931_v60, %v2165_v4  ;;  %v31974_v15 = vand.u32 4294901760, %v31949_v6 }
 0x1a6   : > { %v2146_v12 = vsub.f32 %v31925_v58, %v2145_v1  ;;  %v2156_v13 = vsub.f32 %v31928_v59, %v2155_v3  ;;  %28543 = vmatprep.subr.mxu0 %v31919_v54  ;;  %v2251_v16 = vsub.f32 %v2249_v61, %v31952_v8  ;;  %v2175_v18 = vand.u32 4294901760, %v31958_v10 }
 0x1a7   : > { %v2258_v17 = vsub.f32 %v31937_v62, %v31955_v9  ;;  %v2265_v19 = vsub.f32 %v31942_v0, %v31961_v11  ;;  %28544 = vmatpush3.msra.mxu0 %v31919_v54  ;;  %v2167_v25 = vand.u32 4294901760, %v2166_v14  ;;  %v2272_v26 = vsub.f32 %v31949_v6, %v31974_v15 }
 0x1a8   : > { %v2147_v23 = vand.u32 4294901760, %v2146_v12  ;;  %v2157_v24 = vand.u32 4294901760, %v2156_v13  ;;  %28545 = vmatprep.subr.mxu0 %v31922_v57  ;;  %v2252_v28 = vand.u32 4294901760, %v2251_v16  ;;  %v2176_v29 = vsub.f32 %v31958_v10, %v2175_v18 }
 0x1a9   : > { %v2259_v27 = vand.u32 4294901760, %v2258_v17  ;;  %28546 = vmatpush3.msra.mxu0 %v31922_v57  ;;  %v2266_v31 = vand.u32 4294901760, %v2265_v19  ;;  %v2063_v32 = vsel %vm2049_vm9, %v2039_v20, 0  ;;  %v2066_v33 = vsel %vm2049_vm9, %v2040_v21, 0 }
 0x1aa   : > { %28547 = vmatprep.mubr.f32.mxu0 %v2147_v23  ;;  %28559 = vmatprep.subr.mxu1 %v2252_v28  ;;  %v2177_v35 = vand.u32 4294901760, %v2176_v29  ;;  %v31998_v36 = vand.u32 4294901760, %v2063_v32  ;;  %v32000_v37 = vand.u32 4294901760, %v2066_v33  ;;  %v32002_v38 = vand.u32 4294901760, %v2069_v34 }
 0x1ab   : > { %28548 = vmatmul.mubr.f32.vlgmr.msra.gmra.mxu0 %v2157_v24  ;;  %28560 = vmatpush3.msra.mxu1 %v2252_v28  ;;  %v2273_v39 = vand.u32 4294901760, %v2272_v26  ;;  %v2072_v40 = vsel %vm2049_vm9, %v2042_v30, 0  ;;  %vm23920_vm12 = vcmask 523264  }
 0x1ac   : > { %28550 = vmatprep.mubr.f32.mxu0 %v2167_v25  ;;  %28561 = vmatprep.subr.mxu1 %v2259_v27  ;;  %v32006_v41 = vsub.f32 %v2063_v32, %v31998_v36  ;;  %v32009_v42 = vsub.f32 %v2066_v33, %v32000_v37  ;;  %v32012_v43 = vsub.f32 %v2069_v34, %v32002_v38  ;;  %v32014_v44 = vand.u32 4294901760, %v2072_v40 }
 0x1ad   : > { %28579 = vmatprep.subr.mxu0 %v2249_v61  ;;  %28562 = vmatpush3.msra.mxu1 %v2259_v27 }
 0x1ae   : > { %28580 = vmatpush3.msra.mxu0 %v2249_v61  ;;  %28563 = vmatprep.subr.mxu1 %v2266_v31  ;;  %v2185_v45 = vand.u32 4294901760, %v32006_v41  ;;  %v2195_v46 = vand.u32 4294901760, %v32009_v42  ;;  %v2205_v47 = vand.u32 4294901760, %v32012_v43  ;;  %v32020_v48 = vsub.f32 %v2072_v40, %v32014_v44 }
 0x1af   : > { %28551 = vmatmul.mubr.f32.gmra.mxu0 %v2177_v35  ;;  %28564 = vmatpush3.msra.mxu1 %v2266_v31 }
 0x1b0   : > { %28581 = vmatprep.subr.mxu0 %v31937_v62  ;;  %28565 = vmatprep.subr.mxu1 %v2273_v39  ;;  %v2186_v55 = vsub.f32 %v32006_v41, %v2185_v45  ;;  %v2196_v56 = vsub.f32 %v32009_v42, %v2195_v46  ;;  %v2206_v61 = vsub.f32 %v32012_v43, %v2205_v47  ;;  %v2215_v12 = vand.u32 4294901760, %v32020_v48 }
 0x1b1   : > { %28582 = vmatpush3.msra.mxu0 %v31937_v62  ;;  %28566 = vmatpush3.msra.mxu1 %v2273_v39 }
 0x1b2   : > { %28583 = vmatprep.subr.mxu0 %v31942_v0  ;;  %v2187_v13 = vand.u32 4294901760, %v2186_v55  ;;  %v2197_v14 = vand.u32 4294901760, %v2196_v56  ;;  %28568 = vmatmul.mubr.f32.vlgmr.msra.gmra.mxu1 %v31911_v50  ;;  %v2207_v16 = vand.u32 4294901760, %v2206_v61  ;;  %v2216_v17 = vsub.f32 %v32020_v48, %v2215_v12 }
 0x1b3   : > { %28584 = vmatpush3.msra.mxu0 %v31942_v0  ;;  %28570 = vmatprep.mubr.f32.mxu1 %v31913_v51 }
 0x1b4   : > { %28585 = vmatprep.subr.mxu0 %v31949_v6  ;;  %28553 = vmatprep.mubr.f32.mxu0 %v2187_v13  ;;  %v2217_v62 = vand.u32 4294901760, %v2216_v17 }
 0x1b5   : > { %28586 = vmatpush3.msra.mxu0 %v31949_v6  ;;  %28599 = vmatprep.subr.mxu1 %v31915_v52 }
 0x1b6   : > { %28554 = vmatmul.mubr.f32.gmra.mxu0 %v2197_v14  ;;  %28571 = vmatmul.mubr.f32.gmra.mxu1 %v31939_v63 }
 0x1b7   : > { %28556 = vmatprep.mubr.f32.mxu0 %v2207_v16  ;;  %28573 = vmatprep.mubr.f32.mxu1 %v31998_v36 }
 0x1b8   : > { %28600 = vmatpush3.msra.mxu1 %v31915_v52  ;;  %28619 = vmatprep.subr.mxu0 %v31952_v8 }
 0x1b9   : > { %28601 = vmatprep.subr.mxu1 %v31917_v53 }
 0x1ba   : > { %28557 = vmatmul.mubr.f32.gmra.mxu0 %v2217_v62  ;;  %28602 = vmatpush3.msra.mxu1 %v31917_v53 }
 0x1bb   : > { %28587 = vmatprep.mubr.f32.mxu0 %v31925_v58  ;;  %28574 = vmatmul.mubr.f32.gmra.mxu1 %v32000_v37 }
 0x1bc   : > { %28576 = vmatprep.mubr.f32.mxu1 %v32002_v38  ;;  %28603 = vmatprep.subr.mxu1 %v31919_v54 }
 0x1bd   : > { %28604 = vmatpush3.msra.mxu1 %v31919_v54 }
 0x1be   : > { %28588 = vmatmul.mubr.f32.vlgmr.msra.gmra.mxu0 %v31928_v59  ;;  %28605 = vmatprep.subr.mxu1 %v31922_v57 }
 0x1bf   : > { %28590 = vmatprep.mubr.f32.mxu0 %v31931_v60  ;;  %28577 = vmatmul.mubr.f32.gmra.mxu1 %v32014_v44 }
 0x1c0   : > { %28606 = vmatpush3.msra.mxu1 %v31922_v57  ;;  %28607 = vmatprep.mubr.f32.mxu1 %v2145_v1 }
 0x1c1   : > { %28620 = vmatpush3.msra.mxu0 %v31952_v8  ;;  %28639 = vmatprep.subr.mxu1 %v31915_v52 }
 0x1c2   : > { %28591 = vmatmul.mubr.f32.gmra.mxu0 %v31958_v10  ;;  %28621 = vmatprep.subr.mxu0 %v31955_v9 }
 0x1c3   : > { %28593 = vmatprep.mubr.f32.mxu0 %v32006_v41  ;;  %28608 = vmatmul.mubr.f32.vlgmr.msra.gmra.mxu1 %v2155_v3 }
 0x1c4   : > { %28610 = vmatprep.mubr.f32.mxu1 %v2165_v4  ;;  %28622 = vmatpush3.msra.mxu0 %v31955_v9 }
 0x1c5   : > { %28623 = vmatprep.subr.mxu0 %v31961_v11  ;;  %28640 = vmatpush3.msra.mxu1 %v31915_v52 }
 0x1c6   : > { %28594 = vmatmul.mubr.f32.gmra.mxu0 %v32009_v42  ;;  %28641 = vmatprep.subr.mxu1 %v31917_v53 }
 0x1c7   : > { %28596 = vmatprep.mubr.f32.mxu0 %v32012_v43  ;;  %28611 = vmatmul.mubr.f32.gmra.mxu1 %v2175_v18 }
 0x1c8   : > { %28624 = vmatpush3.msra.mxu0 %v31961_v11  ;;  %28613 = vmatprep.mubr.f32.mxu1 %v2185_v45 }
 0x1c9   : > { %28625 = vmatprep.subr.mxu0 %v31974_v15  ;;  %28642 = vmatpush3.msra.mxu1 %v31917_v53 }
 0x1ca   : > { %28597 = vmatmul.mubr.f32.gmra.mxu0 %v32020_v48  ;;  %28643 = vmatprep.subr.mxu1 %v31919_v54 }
 0x1cb   : > { %28626 = vmatpush3.msra.mxu0 %v31974_v15  ;;  %28627 = vmatprep.mubr.f32.mxu0 %v31909_v49 }
 0x1cc   : > { %28614 = vmatmul.mubr.f32.gmra.mxu1 %v2195_v46 }
 0x1cd   : > { %28616 = vmatprep.mubr.f32.mxu1 %v2205_v47  ;;  %28644 = vmatpush3.msra.mxu1 %v31919_v54 }
 0x1ce   : > { %28628 = vmatmul.mubr.f32.vlgmr.msra.gmra.mxu0 %v31911_v50  ;;  %28645 = vmatprep.subr.mxu1 %v31922_v57 }
 0x1cf   : > { %28630 = vmatprep.mubr.f32.mxu0 %v31913_v51  ;;  %28646 = vmatpush3.msra.mxu1 %v31922_v57 }
 0x1d0   : > { %28617 = vmatmul.mubr.f32.gmra.mxu1 %v2215_v12 }
 0x1d1   : > { %28647 = vmatprep.mubr.f32.mxu1 %v31909_v49 }
 0x1d2   : > { %28631 = vmatmul.mubr.f32.gmra.mxu0 %v31939_v63 }
 0x1d3   : > { %28633 = vmatprep.mubr.f32.mxu0 %v31998_v36 }
 0x1d4   : > { %28648 = vmatmul.mubr.f32.vlgmr.msra.gmra.mxu1 %v31911_v50 }
 0x1d5   : > { %28650 = vmatprep.mubr.f32.mxu1 %v31913_v51 }
 0x1d6   : > { %28634 = vmatmul.mubr.f32.gmra.mxu0 %v32000_v37 }
 0x1d7   : > { %28636 = vmatprep.mubr.f32.mxu0 %v32002_v38 }
 0x1d8   : > { %28651 = vmatmul.mubr.f32.gmra.mxu1 %v31939_v63 }
 0x1d9   : > { %28653 = vmatprep.mubr.f32.mxu1 %v31998_v36 }
 0x1da   : > { %28637 = vmatmul.mubr.f32.gmra.mxu0 %v32014_v44 }
 0x1dc   : > { %28654 = vmatmul.mubr.f32.gmra.mxu1 %v32000_v37 }
 0x1dd   : > { %28656 = vmatprep.mubr.f32.mxu1 %v32002_v38 }
 0x1e0   : > { %28657 = vmatmul.mubr.f32.gmra.mxu1 %v32014_v44 }
 0x26b   : > { %v28549_v49 = vpop.f32.mrf.mxu0 }
 0x26d   : > { %v2149_v50 = vpop.f32.mrf.mxu0 }
 0x26f   : > { %v28552_v52 = vpop.f32.mrf.mxu0 }
 0x271   : > { %v2169_v51 = vpop.f32.mrf.mxu0 }
 0x272   : > { %v28569_v53 = vpop.f32.mrf.mxu1 }
 0x273   : > { %v2317_v26 = vadd.f32 %v28569_v53, %v28549_v49 }
 0x274   : > { %v2310_v54 = vpop.f32.mrf.mxu1 }
 0x275   : > { %v2311_v29 = vadd.f32 %v2310_v54, %v2149_v50 }
 0x276   : > { %v28555_v57 = vpop.f32.mrf.mxu0  ;;  %v28572_v58 = vpop.f32.mrf.mxu1 }
 0x277   : > { %v2329_v33 = vadd.f32 %v28572_v58, %v28552_v52 }
 0x278   : > { %v2189_v59 = vpop.f32.mrf.mxu0  ;;  %v2322_v60 = vpop.f32.mrf.mxu1 }
 0x279   : > { %v2323_v41 = vadd.f32 %v2322_v60, %v2169_v51 }
 0x27a   : > { %v28558_v63 = vpop.f32.mrf.mxu0 }
 0x27b   : > { %v28575_v0 = vpop.f32.mrf.mxu1 }
 0x27c   : > { %v32108_v1 = vpop.f32.mrf.mxu0  ;;  %v2341_v44 = vadd.f32 %v28575_v0, %v28555_v57 }
 0x27d   : > { %v2334_v3 = vpop.f32.mrf.mxu1 }
 0x27e   : > { %v28589_v4 = vpop.f32.mrf.mxu0  ;;  %v2335_v14 = vadd.f32 %v2334_v3, %v2189_v59 }
 0x27f   : > { %v28578_v6 = vpop.f32.mrf.mxu1  ;;  %v2440_v30 = vadd.f32 %v28589_v4, %v2317_v26 }
 0x280   : > { %v2432_v8 = vpop.f32.mrf.mxu0  ;;  %v2353_v16 = vadd.f32 %v28578_v6, %v28558_v63 }
 0x281   : > { %v2346_v9 = vpop.f32.mrf.mxu1  ;;  %v2433_v34 = vadd.f32 %v2432_v8, %v2311_v29 }
 0x282   : > { %v28592_v10 = vpop.f32.mrf.mxu0  ;;  %v2347_v59 = vadd.f32 %v2346_v9, %v32108_v1 }
 0x283   : > { %v28609_v11 = vpop.f32.mrf.mxu1  ;;  %v2454_v38 = vadd.f32 %v28592_v10, %v2329_v33 }
 0x284   : > { %v2446_v15 = vpop.f32.mrf.mxu0  ;;  %v2567_v35 = vadd.f32 %v28609_v11, %v2440_v30 }
 0x285   : > { %v2558_v18 = vpop.f32.mrf.mxu1  ;;  %v2447_v56 = vadd.f32 %v2446_v15, %v2323_v41 }
 0x286   : > { %v28595_v19 = vpop.f32.mrf.mxu0  ;;  %v2559_v39 = vadd.f32 %v2558_v18, %v2433_v34 }
 0x287   : > { %v28612_v20 = vpop.f32.mrf.mxu1  ;;  %v2468_v61 = vadd.f32 %v28595_v19, %v2341_v44 }
 0x288   : > { %v2460_v21 = vpop.f32.mrf.mxu0  ;;  %v2583_v45 = vadd.f32 %v28612_v20, %v2454_v38 }
 0x289   : > { %v2574_v22 = vpop.f32.mrf.mxu1  ;;  %v2461_v53 = vadd.f32 %v2460_v21, %v2335_v14 }
 0x28a   : > { %v28598_v23 = vpop.f32.mrf.mxu0  ;;  %v2575_v49 = vadd.f32 %v2574_v22, %v2447_v56 }
 0x28b   : > { %v2482_v58 = vadd.f32 %v28598_v23, %v2353_v16 }
 0x28c   : > { %v2474_v24 = vpop.f32.mrf.mxu0  ;;  %v28615_v25 = vpop.f32.mrf.mxu1 }
 0x28d   : > { %v2599_v50 = vadd.f32 %v28615_v25, %v2468_v61  ;;  %v2475_v19 = vadd.f32 %v2474_v24, %v2347_v59 }
 0x28e   : > { %v28629_v28 = vpop.f32.mrf.mxu0  ;;  %v2590_v27 = vpop.f32.mrf.mxu1 }
 0x28f   : > { %v2704_v40 = vadd.f32 %v28629_v28, %v2567_v35  ;;  %v2591_v6 = vadd.f32 %v2590_v27, %v2461_v53 }
 0x290   : > { %v2697_v31 = vpop.f32.mrf.mxu0  ;;  %v28618_v32 = vpop.f32.mrf.mxu1 }
 0x291   : > { %v2698_v46 = vadd.f32 %v2697_v31, %v2559_v39  ;;  %v2615_v8 = vadd.f32 %v28618_v32, %v2482_v58 }
 0x292   : > { %v28632_v36 = vpop.f32.mrf.mxu0  ;;  %v2606_v37 = vpop.f32.mrf.mxu1 }
 0x293   : > { %v2716_v12 = vadd.f32 %v28632_v36, %v2583_v45  ;;  %v2607_v23 = vadd.f32 %v2606_v37, %v2475_v19 }
 0x294   : > { %v2709_v42 = vpop.f32.mrf.mxu0  ;;  %v28649_v43 = vpop.f32.mrf.mxu1 }
 0x295   : > { %v32110_v47 = vadd.f32 %v28649_v43, %v2704_v40  ;;  %v2710_v60 = vadd.f32 %v2709_v42, %v2575_v49 }
 0x296   : > { %v28635_v48 = vpop.f32.mrf.mxu0  ;;  %v2814_v55 = vpop.f32.mrf.mxu1 }
 0x297   : > { %36260 = vst [vmem:[#allocation32_spill] sm:$0xff] %v32110_v47  ;;  %v32112_v13 = vadd.f32 %v2814_v55, %v2698_v46  ;;  %2869 = vrot.lane.b32.xlu0 %v32110_v47, %s31465_s27  ;;  %v2728_v0 = vadd.f32 %v28635_v48, %v2599_v50  ;;  %v2874_v30 = vsel %vm2871_vm10, %v32110_v47, 0 }
 0x298   : > { %v2721_v17 = vpop.f32.mrf.mxu0  ;;  %v28652_v62 = vpop.f32.mrf.mxu1  ;;  %v32159_v31 = vand.u32 4294901760, %v2874_v30 }
 0x299   : > { %36261 = vst [vmem:[#allocation33_spill] sm:$0xff] %v32112_v13  ;;  %v32116_v52 = vadd.f32 %v28652_v62, %v2716_v12  ;;  %v2872_v51 = vsel %vm2871_vm10, %v32112_v13, 0  ;;  %v2722_v20 = vadd.f32 %v2721_v17, %v2591_v6 }
 0x29a   : > { %v2826_v54 = vpop.f32.mrf.mxu1  ;;  %v32120_v57 = vand.u32 4294901760, %v2872_v51  ;;  %v28638_v63 = vpop.f32.mrf.mxu0  ;;  %v32162_v32 = vsub.f32 %v2874_v30, %v32159_v31 }
 0x29b   : > { %3386 = vrot.lane.b32.xlu1 %v32116_v52, %s31465_s27  ;;  %2867 = vrot.lane.b32.xlu0 %v32112_v13, %s31465_s27  ;;  %v32131_v10 = vadd.f32 %v2826_v54, %v2710_v60  ;;  %v2740_v21 = vadd.f32 %v28638_v63, %v2615_v8  ;;  %v3390_v49 = vsel %vm2871_vm10, %v32116_v52, 0 }
 0x29c   : > { %v28655_v3 = vpop.f32.mrf.mxu1  ;;  %28670 = vmatprep.mubr.f32.mxu1 %v32120_v57  ;;  %v32129_v4 = vsub.f32 %v2872_v51, %v32120_v57  ;;  %v2733_v1 = vpop.f32.mrf.mxu0  ;;  %v2959_v36 = vand.u32 4294901760, %v32162_v32  ;;  %v32193_v53 = vand.u32 4294901760, %v3390_v49 }
 0x29d   : > { %36262 = vst [vmem:[#allocation34_spill] sm:$0xff] %v32131_v10  ;;  %v32133_v11 = vadd.f32 %v28655_v3, %v2728_v0  ;;  %v2734_v27 = vadd.f32 %v2733_v1, %v2607_v23  ;;  %v3388_v56 = vsel %vm2871_vm10, %v32131_v10, 0 }
 0x29e   : > { %v2838_v15 = vpop.f32.mrf.mxu1  ;;  %v2949_v18 = vand.u32 4294901760, %v32129_v4  ;;  %v2960_v42 = vsub.f32 %v32162_v32, %v2959_v36  ;;  %v32181_v14 = vand.u32 4294901760, %v3388_v56  ;;  %v32207_v0 = vsub.f32 %v3390_v49, %v32193_v53 }
 0x29f   : > { %36263 = vst [vmem:[#allocation35_spill] sm:$0xff] %v32133_v11  ;;  %3384 = vrot.lane.b32.xlu1 %v32131_v10, %s31465_s27  ;;  %3902 = vrot.lane.b32.xlu0 %v32133_v11, %s31465_s27  ;;  %v32143_v25 = vadd.f32 %v2838_v15, %v2722_v20 }
 0x2a0   : > { %v28658_v9 = vpop.f32.mrf.mxu1  ;;  %v2950_v22 = vsub.f32 %v32129_v4, %v2949_v18  ;;  %v2961_v48 = vand.u32 4294901760, %v2960_v42  ;;  %v32189_v50 = vsub.f32 %v3388_v56, %v32181_v14 }
 0x2a1   : > { %36264 = vst [vmem:[#allocation36_spill] sm:$0xff] %v32143_v25  ;;  %v32145_v26 = vadd.f32 %v28658_v9, %v2740_v21 }
 0x2a2   : > { %v2850_v24 = vpop.f32.mrf.mxu1  ;;  %v2951_v28 = vand.u32 4294901760, %v2950_v22  ;;  %v3465_v60 = vand.u32 4294901760, %v32189_v50 }
 0x2a3   : > { %36265 = vst [vmem:[#allocation37_spill] sm:$0xff] %v32145_v26  ;;  %3900 = vrot.lane.b32.xlu1 %v32143_v25, %s31465_s27  ;;  %4418 = vrot.lane.b32.xlu0 %v32145_v26, %s31465_s27  ;;  %v32151_v29 = vadd.f32 %v2850_v24, %v2734_v27  ;;  %v3906_v27 = vsel %vm2871_vm10, %v32133_v11, 0 }
 0x2a4   : > { %28663 = vmatprep.mubr.f32.mxu0 %v2951_v28  ;;  %v3466_v3 = vsub.f32 %v32189_v50, %v3465_v60 }
 0x2a5   : > { %36266 = vst [vmem:[#allocation38_spill] sm:$0xff] %v32151_v29 }
 0x2a6   : > { %v3467_v8 = vand.u32 4294901760, %v3466_v3 }
 0x2a7   : > { %4416 = vrot.lane.b32.xlu1 %v32151_v29, %s31465_s27  ;;  %s31474_s27 = smov 104  }
 0x2ab   : > { %5037 = vrot.lane.b32.xlu1 %v32110_v47, %s31466_s0 }
 0x309   : > { %v2870_v33 = vpop.permute.xlu0 %2869 }
 0x30a   : > { %v2878_v34 = vsel %vm2871_vm10, %v2870_v33, 0 }
 0x30b   : > { %v32165_v35 = vand.u32 4294901760, %v2878_v34 }
 0x30d   : > { %v2997_v37 = vsub.f32 %v2878_v34, %v32165_v35  ;;  %28659 = vmatprep.subr.mxu0 %v32165_v35  ;;  %v2868_v38 = vpop.permute.xlu0 %2867  ;;  %v3387_v45 = vpop.permute.xlu1 %3386 }
 0x30e   : > { %v2876_v39 = vsel %vm2871_vm10, %v2868_v38, 0  ;;  %28660 = vmatpush3.xpose.msra.mxu0 %v32165_v35  ;;  %v3394_v12 = vsel %vm2871_vm10, %v3387_v45, 0 }
 0x30f   : > { %v32172_v40 = vand.u32 4294901760, %v2876_v39  ;;  %v2998_v41 = vand.u32 4294901760, %v2997_v37  ;;  %v32184_v62 = vand.u32 4294901760, %v3394_v12 }
 0x311   : > { %v3004_v43 = vsub.f32 %v2876_v39, %v32172_v40  ;;  %28661 = vmatprep.subr.mxu0 %v32172_v40  ;;  %v2999_v44 = vsub.f32 %v2997_v37, %v2998_v41  ;;  %v3385_v17 = vpop.permute.xlu1 %3384  ;;  %v3513_v54 = vsub.f32 %v3394_v12, %v32184_v62  ;;  %v3903_v21 = vpop.permute.xlu0 %3902 }
 0x312   : > { %28662 = vmatpush3.xpose.msra.mxu0 %v32172_v40  ;;  %v3392_v51 = vsel %vm2871_vm10, %v3385_v17, 0  ;;  %v3910_v9 = vsel %vm2871_vm10, %v3903_v21, 0 }
 0x313   : > { %28673 = vmatprep.subr.mxu0 %v2997_v37  ;;  %v3000_v46 = vand.u32 4294901760, %v2999_v44  ;;  %v3005_v55 = vand.u32 4294901760, %v3004_v43  ;;  %v32198_v58 = vand.u32 4294901760, %v3392_v51  ;;  %v3514_v59 = vand.u32 4294901760, %v3513_v54 }
 0x314   : > { %v32232_v28 = vand.u32 4294901760, %v3910_v9 }
 0x315   : > { %28666 = vmatprep.subr.mxu1 %v3000_v46  ;;  %28664 = vmatmul.mubr.f32.vlgmr.msra.gmra.mxu0 %v2961_v48  ;;  %v3006_v61 = vsub.f32 %v3004_v43, %v3005_v55  ;;  %v3520_v63 = vsub.f32 %v3392_v51, %v32198_v58  ;;  %v3515_v6 = vsub.f32 %v3513_v54, %v3514_v59  ;;  %v3901_v24 = vpop.permute.xlu1 %3900  ;;  %v4419_v48 = vpop.permute.xlu0 %4418 }
 0x316   : > { %28667 = vmatpush3.xpose.msra.mxu1 %v3000_v46  ;;  %28674 = vmatpush3.xpose.msra.mxu0 %v2997_v37  ;;  %v4029_v33 = vsub.f32 %v3910_v9, %v32232_v28 }
 0x317   : > { %28677 = vmatprep.mubr.f32.mxu0 %v32129_v4  ;;  %28675 = vmatprep.subr.mxu0 %v3004_v43  ;;  %v3007_v16 = vand.u32 4294901760, %v3006_v61  ;;  %v3475_v4 = vand.u32 4294901760, %v32207_v0  ;;  %v3521_v15 = vand.u32 4294901760, %v3520_v63  ;;  %v3516_v19 = vand.u32 4294901760, %v3515_v6 }
 0x318   : > { %v4030_v37 = vand.u32 4294901760, %v4029_v33  ;;  %v4426_v61 = vsel %vm2871_vm10, %v4419_v48, 0 }
 0x319   : > { %28668 = vmatprep.subr.mxu1 %v3007_v16  ;;  %v3522_v20 = vsub.f32 %v3520_v63, %v3521_v15  ;;  %v32278_v17 = vand.u32 4294901760, %v4426_v61 }
 0x31a   : > { %28669 = vmatpush3.xpose.msra.mxu1 %v3007_v16  ;;  %28676 = vmatpush3.xpose.msra.mxu0 %v3004_v43  ;;  %v4417_v16 = vpop.permute.xlu1 %4416 }
 0x31b   : > { %28680 = vmatprep.subr.mxu1 %v32165_v35  ;;  %28687 = vmatprep.subr.mxu0 %v2998_v41  ;;  %v3523_v22 = vand.u32 4294901760, %v3522_v20 }
 0x31d   : > { %28671 = vmatmul.mubr.f32.vlgmr.msra.gmra.mxu1 %v32159_v31  ;;  %28678 = vmatmul.mubr.f32.vlgmr.msra.gmra.mxu0 %v32162_v32  ;;  %v32241_v32 = vand.u32 4294901760, %v3906_v27 }
 0x31e   : > { %28681 = vmatpush3.xpose.msra.mxu1 %v32165_v35  ;;  %28684 = vmatprep.mubr.f32.mxu1 %v2949_v18  ;;  %v3476_v18 = vsub.f32 %v32207_v0, %v3475_v4  ;;  %v5038_v21 = vpop.permute.xlu1 %5037 }
 0x31f   : > { %28688 = vmatpush3.xpose.msra.mxu0 %v2998_v41  ;;  %28691 = vmatprep.mubr.f32.mxu0 %v32120_v57  ;;  %v4031_v41 = vsub.f32 %v4029_v33, %v4030_v37 }
 0x320   : > { %28682 = vmatprep.subr.mxu1 %v32172_v40  ;;  %28689 = vmatprep.subr.mxu0 %v3005_v55  ;;  %v3477_v1 = vand.u32 4294901760, %v3476_v18 }
 0x321   : > { %v4032_v45 = vand.u32 4294901760, %v4031_v41 }
 0x322   : > { %28683 = vmatpush3.xpose.msra.mxu1 %v32172_v40 }
 0x323   : > { %28690 = vmatpush3.xpose.msra.mxu0 %v3005_v55  ;;  %28694 = vmatprep.subr.mxu1 %v32165_v35  ;;  %v4420_v55 = vsel %vm2871_vm10, %v32151_v29, 0 }
 0x324   : > { %28701 = vmatprep.subr.mxu0 %v32184_v62 }
 0x325   : > { %28685 = vmatmul.mubr.f32.vlgmr.msra.gmra.mxu1 %v2959_v36  ;;  %v32253_v36 = vsub.f32 %v3906_v27, %v32241_v32 }
 0x326   : > { %28692 = vmatmul.mubr.f32.vlgmr.msra.gmra.mxu0 %v32159_v31  ;;  %28695 = vmatpush3.xpose.msra.mxu1 %v32165_v35 }
 0x327   : > { %28698 = vmatprep.mubr.f32.mxu1 %v32120_v57  ;;  %28702 = vmatpush3.xpose.msra.mxu0 %v32184_v62  ;;  %v3904_v57 = vsel %vm2871_vm10, %v32143_v25, 0 }
 0x328   : > { %28705 = vmatprep.mubr.f32.mxu0 %v3467_v8  ;;  %28696 = vmatprep.subr.mxu1 %v32172_v40  ;;  %v32228_v23 = vand.u32 4294901760, %v3904_v57 }
 0x329   : > { %28703 = vmatprep.subr.mxu0 %v32198_v58 }
 0x32a   : > { %28697 = vmatpush3.xpose.msra.mxu1 %v32172_v40  ;;  %v32237_v30 = vsub.f32 %v3904_v57, %v32228_v23  ;;  %v3991_v40 = vand.u32 4294901760, %v32253_v36 }
 0x32b   : > { %28704 = vmatpush3.xpose.msra.mxu0 %v32198_v58  ;;  %28708 = vmatprep.subr.mxu1 %v3516_v19 }
 0x32c   : > { %28715 = vmatprep.subr.mxu0 %v3513_v54  ;;  %v3981_v35 = vand.u32 4294901760, %v32237_v30  ;;  %v3992_v44 = vsub.f32 %v32253_v36, %v3991_v40 }
 0x32d   : > { %28699 = vmatmul.mubr.f32.vlgmr.msra.gmra.mxu1 %v32159_v31  ;;  %v3908_v31 = vsel %vm2871_vm10, %v3901_v24, 0 }
 0x32e   : > { %28706 = vmatmul.mubr.f32.vlgmr.msra.gmra.mxu0 %v3477_v1  ;;  %28709 = vmatpush3.xpose.msra.mxu1 %v3516_v19  ;;  %v32245_v34 = vand.u32 4294901760, %v3908_v31  ;;  %v3982_v39 = vsub.f32 %v32237_v30, %v3981_v35  ;;  %v3993_v56 = vand.u32 4294901760, %v3992_v44  ;;  %v32315_v1 = vand.u32 4294901760, %v5038_v21 }
 0x32f   : > { %28712 = vmatprep.mubr.f32.mxu1 %v32181_v14  ;;  %28716 = vmatpush3.xpose.msra.mxu0 %v3513_v54 }
 0x330   : > { %28719 = vmatprep.mubr.f32.mxu0 %v32189_v50  ;;  %28710 = vmatprep.subr.mxu1 %v3523_v22  ;;  %v4036_v38 = vsub.f32 %v3908_v31, %v32245_v34  ;;  %v3983_v42 = vand.u32 4294901760, %v3982_v39  ;;  %v4424_v50 = vsel %vm2871_vm10, %v4417_v16, 0  ;;  %v32319_v9 = vsub.f32 %v5038_v21, %v32315_v1 }
 0x331   : > { %28717 = vmatprep.subr.mxu0 %v3520_v63  ;;  %v32291_v54 = vand.u32 4294901760, %v4424_v50 }
 0x332   : > { %28711 = vmatpush3.xpose.msra.mxu1 %v3523_v22  ;;  %v4037_v43 = vand.u32 4294901760, %v4036_v38  ;;  %v32326_v22 = vand.u32 4294901760, %v32319_v9 }
 0x333   : > { %28718 = vmatpush3.xpose.msra.mxu0 %v3520_v63  ;;  %28722 = vmatprep.subr.mxu1 %v32184_v62 }
 0x334   : > { %28729 = vmatprep.subr.mxu0 %v3514_v59  ;;  %v4038_v46 = vsub.f32 %v4036_v38, %v4037_v43 }
 0x335   : > { %28713 = vmatmul.mubr.f32.vlgmr.msra.gmra.mxu1 %v32193_v53 }
 0x336   : > { %28720 = vmatmul.mubr.f32.vlgmr.msra.gmra.mxu0 %v32207_v0  ;;  %28723 = vmatpush3.xpose.msra.mxu1 %v32184_v62  ;;  %v4039_v12 = vand.u32 4294901760, %v4038_v46 }
 0x337   : > { %28726 = vmatprep.mubr.f32.mxu1 %v3465_v60  ;;  %28730 = vmatpush3.xpose.msra.mxu0 %v3514_v59  ;;  %v4552_v59 = vsub.f32 %v4424_v50, %v32291_v54 }
 0x338   : > { %28733 = vmatprep.mubr.f32.mxu0 %v32181_v14  ;;  %28724 = vmatprep.subr.mxu1 %v32198_v58 }
 0x339   : > { %28731 = vmatprep.subr.mxu0 %v3521_v15  ;;  %v4553_v8 = vand.u32 4294901760, %v4552_v59 }
 0x33a   : > { %28725 = vmatpush3.xpose.msra.mxu1 %v32198_v58 }
 0x33b   : > { %28732 = vmatpush3.xpose.msra.mxu0 %v3521_v15  ;;  %28736 = vmatprep.subr.mxu1 %v32184_v62  ;;  %v4554_v19 = vsub.f32 %v4552_v59, %v4553_v8 }
 0x33c   : > { %28743 = vmatprep.subr.mxu0 %v32232_v28 }
 0x33d   : > { %28727 = vmatmul.mubr.f32.vlgmr.msra.gmra.mxu1 %v3475_v4  ;;  %v4555_v57 = vand.u32 4294901760, %v4554_v19 }
 0x33e   : > { %28734 = vmatmul.mubr.f32.vlgmr.msra.gmra.mxu0 %v32193_v53  ;;  %28737 = vmatpush3.xpose.msra.mxu1 %v32184_v62  ;;  %v4422_v62 = vsel %vm2871_vm10, %v32145_v26, 0 }
 0x33f   : > { %28740 = vmatprep.mubr.f32.mxu1 %v32181_v14  ;;  %28744 = vmatpush3.xpose.msra.mxu0 %v32232_v28  ;;  %v32274_v14 = vand.u32 4294901760, %v4420_v55  ;;  %v32287_v51 = vand.u32 4294901760, %v4422_v62 }
 0x340   : > { %28747 = vmatprep.mubr.f32.mxu0 %v3983_v42  ;;  %28738 = vmatprep.subr.mxu1 %v32198_v58 }
 0x341   : > { %28745 = vmatprep.subr.mxu0 %v32245_v34  ;;  %v32283_v49 = vsub.f32 %v4420_v55, %v32274_v14  ;;  %v4506_v60 = vsub.f32 %v4422_v62, %v32287_v51 }
 0x342   : > { %28739 = vmatpush3.xpose.msra.mxu1 %v32198_v58 }
 0x343   : > { %28746 = vmatpush3.xpose.msra.mxu0 %v32245_v34  ;;  %28750 = vmatprep.subr.mxu1 %v4032_v45  ;;  %v4497_v58 = vand.u32 4294901760, %v32283_v49  ;;  %v4507_v3 = vand.u32 4294901760, %v4506_v60 }
 0x344   : > { %28757 = vmatprep.subr.mxu0 %v4029_v33 }
 0x345   : > { %28741 = vmatmul.mubr.f32.vlgmr.msra.gmra.mxu1 %v32193_v53  ;;  %v4545_v53 = vsub.f32 %v4426_v61, %v32278_v17  ;;  %v4498_v63 = vsub.f32 %v32283_v49, %v4497_v58  ;;  %v4508_v15 = vsub.f32 %v4506_v60, %v4507_v3 }
 0x346   : > { %28748 = vmatmul.mubr.f32.vlgmr.msra.gmra.mxu0 %v3993_v56  ;;  %28751 = vmatpush3.xpose.msra.mxu1 %v4032_v45 }
 0x347   : > { %28754 = vmatprep.mubr.f32.mxu1 %v32228_v23  ;;  %28758 = vmatpush3.xpose.msra.mxu0 %v4029_v33  ;;  %v4546_v0 = vand.u32 4294901760, %v4545_v53  ;;  %v4499_v6 = vand.u32 4294901760, %v4498_v63  ;;  %v4509_v20 = vand.u32 4294901760, %v4508_v15 }
 0x348   : > { %28761 = vmatprep.mubr.f32.mxu0 %v32237_v30  ;;  %28752 = vmatprep.subr.mxu1 %v4039_v12 }
 0x349   : > { %28759 = vmatprep.subr.mxu0 %v4036_v38  ;;  %v4547_v4 = vsub.f32 %v4545_v53, %v4546_v0 }
 0x34a   : > { %28753 = vmatpush3.xpose.msra.mxu1 %v4039_v12 }
 0x34b   : > { %28760 = vmatpush3.xpose.msra.mxu0 %v4036_v38  ;;  %28764 = vmatprep.subr.mxu1 %v32232_v28  ;;  %v4548_v18 = vand.u32 4294901760, %v4547_v4 }
 0x34c   : > { %28771 = vmatprep.subr.mxu0 %v4030_v37 }
 0x34d   : > { %28755 = vmatmul.mubr.f32.vlgmr.msra.gmra.mxu1 %v32241_v32 }
 0x34e   : > { %28762 = vmatmul.mubr.f32.vlgmr.msra.gmra.mxu0 %v32253_v36  ;;  %28765 = vmatpush3.xpose.msra.mxu1 %v32232_v28 }
 0x34f   : > { %28768 = vmatprep.mubr.f32.mxu1 %v3981_v35  ;;  %28772 = vmatpush3.xpose.msra.mxu0 %v4030_v37 }
 0x350   : > { %28775 = vmatprep.mubr.f32.mxu0 %v32228_v23  ;;  %28766 = vmatprep.subr.mxu1 %v32245_v34 }
 0x351   : > { %28773 = vmatprep.subr.mxu0 %v4037_v43 }
 0x352   : > { %28767 = vmatpush3.xpose.msra.mxu1 %v32245_v34 }
 0x353   : > { %28774 = vmatpush3.xpose.msra.mxu0 %v4037_v43  ;;  %28778 = vmatprep.subr.mxu1 %v32232_v28 }
 0x354   : > { %28785 = vmatprep.subr.mxu0 %v32278_v17 }
 0x355   : > { %28769 = vmatmul.mubr.f32.vlgmr.msra.gmra.mxu1 %v3991_v40 }
 0x356   : > { %28776 = vmatmul.mubr.f32.vlgmr.msra.gmra.mxu0 %v32241_v32  ;;  %28779 = vmatpush3.xpose.msra.mxu1 %v32232_v28 }
 0x357   : > { %28782 = vmatprep.mubr.f32.mxu1 %v32228_v23  ;;  %28786 = vmatpush3.xpose.msra.mxu0 %v32278_v17  ;;  %v5166_v23 = vsub.f32 %v32319_v9, %v32326_v22 }
 0x358   : > { %28789 = vmatprep.mubr.f32.mxu0 %v4499_v6  ;;  %28780 = vmatprep.subr.mxu1 %v32245_v34 }
 0x359   : > { %28787 = vmatprep.subr.mxu0 %v32291_v54  ;;  %v5167_v24 = vand.u32 4294901760, %v5166_v23 }
 0x35a   : > { %28781 = vmatpush3.xpose.msra.mxu1 %v32245_v34 }
 0x35b   : > { %28788 = vmatpush3.xpose.msra.mxu0 %v32291_v54  ;;  %28792 = vmatprep.subr.mxu1 %v4548_v18 }
 0x35c   : > { %28799 = vmatprep.subr.mxu0 %v4545_v53 }
 0x35d   : > { %28783 = vmatmul.mubr.f32.vlgmr.msra.gmra.mxu1 %v32241_v32 }
 0x35e   : > { %28790 = vmatmul.mubr.f32.vlgmr.msra.gmra.mxu0 %v4509_v20  ;;  %28793 = vmatpush3.xpose.msra.mxu1 %v4548_v18 }
 0x35f   : > { %28796 = vmatprep.mubr.f32.mxu1 %v32274_v14  ;;  %28800 = vmatpush3.xpose.msra.mxu0 %v4545_v53 }
 0x360   : > { %28803 = vmatprep.mubr.f32.mxu0 %v32283_v49  ;;  %28794 = vmatprep.subr.mxu1 %v4555_v57 }
 0x361   : > { %28801 = vmatprep.subr.mxu0 %v4552_v59 }
 0x362   : > { %28795 = vmatpush3.xpose.msra.mxu1 %v4555_v57 }
 0x363   : > { %28802 = vmatpush3.xpose.msra.mxu0 %v4552_v59  ;;  %28806 = vmatprep.subr.mxu1 %v32278_v17 }
 0x364   : > { %28813 = vmatprep.subr.mxu0 %v4546_v0 }
 0x365   : > { %28797 = vmatmul.mubr.f32.vlgmr.msra.gmra.mxu1 %v32287_v51 }
 0x366   : > { %28804 = vmatmul.mubr.f32.vlgmr.msra.gmra.mxu0 %v4506_v60  ;;  %28807 = vmatpush3.xpose.msra.mxu1 %v32278_v17 }
 0x367   : > { %28810 = vmatprep.mubr.f32.mxu1 %v4497_v58  ;;  %28814 = vmatpush3.xpose.msra.mxu0 %v4546_v0 }
 0x368   : > { %28817 = vmatprep.mubr.f32.mxu0 %v32274_v14  ;;  %28808 = vmatprep.subr.mxu1 %v32291_v54 }
 0x369   : > { %28815 = vmatprep.subr.mxu0 %v4553_v8 }
 0x36a   : > { %28809 = vmatpush3.xpose.msra.mxu1 %v32291_v54 }
 0x36b   : > { %28816 = vmatpush3.xpose.msra.mxu0 %v4553_v8  ;;  %28820 = vmatprep.subr.mxu1 %v32278_v17 }
 0x36c   : > { %28827 = vmatprep.subr.mxu0 %v32315_v1 }
 0x36d   : > { %28811 = vmatmul.mubr.f32.vlgmr.msra.gmra.mxu1 %v4507_v3 }
 0x36e   : > { %28818 = vmatmul.mubr.f32.vlgmr.msra.gmra.mxu0 %v32287_v51  ;;  %28821 = vmatpush3.xpose.msra.mxu1 %v32278_v17 }
 0x36f   : > { %28824 = vmatprep.mubr.f32.mxu1 %v32274_v14  ;;  %28828 = vmatpush3.msra.mxu0 %v32315_v1 }
 0x370   : > { %28822 = vmatprep.subr.mxu1 %v32291_v54 }
 0x372   : > { %28823 = vmatpush3.xpose.msra.mxu1 %v32291_v54 }
 0x373   : > { %28834 = vmatprep.subr.mxu1 %v5167_v24 }
 0x375   : > { %28825 = vmatmul.mubr.f32.vlgmr.msra.gmra.mxu1 %v32287_v51 }
 0x376   : > { %28835 = vmatpush3.msra.mxu1 %v5167_v24 }
 0x3d5   : > { %v28665_v28 = vpop.f32.mrf.mxu0 }
 0x3d7   : > { %v2953_v30 = vpop.f32.mrf.mxu0 }
 0x3dd   : > { %v28672_v27 = vpop.f32.mrf.mxu1  ;;  %v28679_v33 = vpop.f32.mrf.mxu0 }
 0x3de   : > { %v3051_v32 = vadd.f32 %v28672_v27, %v28665_v28 }
 0x3df   : > { %v3044_v31 = vpop.f32.mrf.mxu1  ;;  %v3126_v37 = vpop.f32.mrf.mxu0 }
 0x3e0   : > { %v3045_v34 = vadd.f32 %v3044_v31, %v2953_v30  ;;  %v3134_v36 = vadd.f32 %v28679_v33, %v3051_v32 }
 0x3e2   : > { %v3127_v39 = vadd.f32 %v3126_v37, %v3045_v34 }
 0x3e5   : > { %v28686_v35 = vpop.f32.mrf.mxu1 }
 0x3e6   : > { %v3217_v40 = vadd.f32 %v28686_v35, %v3134_v36  ;;  %v28693_v41 = vpop.f32.mrf.mxu0 }
 0x3e7   : > { %v3208_v38 = vpop.f32.mrf.mxu1 }
 0x3e8   : > { %v3209_v42 = vadd.f32 %v3208_v38, %v3127_v39  ;;  %v3300_v43 = vadd.f32 %v28693_v41, %v3217_v40  ;;  %v3293_v44 = vpop.f32.mrf.mxu0 }
 0x3ea   : > { %v3294_v46 = vadd.f32 %v3293_v44, %v3209_v42 }
 0x3ed   : > { %v28700_v45 = vpop.f32.mrf.mxu1 }
 0x3ee   : > { %v3379_v48 = vadd.f32 %v28700_v45, %v3300_v43  ;;  %v28707_v62 = vpop.f32.mrf.mxu0 }
 0x3ef   : > { %v3372_v55 = vpop.f32.mrf.mxu1 }
 0x3f0   : > { %v4931_v56 = vmul.f32 0.35355338, %v3379_v48  ;;  %v3373_v61 = vadd.f32 %v3372_v55, %v3294_v46  ;;  %v3469_v51 = vpop.f32.mrf.mxu0 }
 0x3f2   : > { %v32341_v12 = vadd.f32 %v4931_v56, %v31770_v5  ;;  %v4930_v14 = vmul.f32 0.35355338, %v3373_v61 }
 0x3f4   : > { %v4950_v16 = vsel %vm4946_vm11, %v32341_v12, -inf  ;;  %v32346_v17 = vadd.f32 %v4930_v14, %v31770_v5 }
 0x3f5   : > { %v28714_v49 = vpop.f32.mrf.mxu1  ;;  %4951 = vmax.xlane.f32.xlu1 %v4950_v16 }
 0x3f6   : > { %v4947_v50 = vsel %vm4946_vm11, %v32346_v17, -inf  ;;  %v3567_v54 = vadd.f32 %v28714_v49, %v28707_v62  ;;  %v28721_v58 = vpop.f32.mrf.mxu0 }
 0x3f7   : > { %4948 = vmax.xlane.f32.xlu0 %v4947_v50  ;;  %v3560_v53 = vpop.f32.mrf.mxu1 }
 0x3f8   : > { %v3561_v60 = vadd.f32 %v3560_v53, %v3469_v51  ;;  %v3650_v59 = vadd.f32 %v28721_v58, %v3567_v54  ;;  %v3642_v63 = vpop.f32.mrf.mxu0 }
 0x3fa   : > { %v3643_v4 = vadd.f32 %v3642_v63, %v3561_v60 }
 0x3fd   : > { %v28728_v0 = vpop.f32.mrf.mxu1 }
 0x3fe   : > { %v3733_v6 = vadd.f32 %v28728_v0, %v3650_v59  ;;  %v28735_v8 = vpop.f32.mrf.mxu0 }
 0x3ff   : > { %v3724_v3 = vpop.f32.mrf.mxu1 }
 0x400   : > { %v3725_v15 = vadd.f32 %v3724_v3, %v3643_v4  ;;  %v3816_v18 = vadd.f32 %v28735_v8, %v3733_v6  ;;  %v3809_v19 = vpop.f32.mrf.mxu0 }
 0x402   : > { %v3810_v21 = vadd.f32 %v3809_v19, %v3725_v15 }
 0x405   : > { %v28742_v20 = vpop.f32.mrf.mxu1 }
 0x406   : > { %v3895_v57 = vadd.f32 %v28742_v20, %v3816_v18  ;;  %v28749_v33 = vpop.f32.mrf.mxu0 }
 0x407   : > { %v3888_v23 = vpop.f32.mrf.mxu1 }
 0x408   : > { %v4933_v24 = vmul.f32 0.35355338, %v3895_v57  ;;  %v3889_v28 = vadd.f32 %v3888_v23, %v3810_v21  ;;  %v3985_v36 = vpop.f32.mrf.mxu0 }
 0x40a   : > { %v32351_v27 = vadd.f32 %v4933_v24, %v31770_v5  ;;  %v4932_v30 = vmul.f32 0.35355338, %v3889_v28 }
 0x40c   : > { %v4956_v31 = vsel %vm4946_vm11, %v32351_v27, -inf  ;;  %v32356_v32 = vadd.f32 %v4932_v30, %v31770_v5 }
 0x40d   : > { %v28756_v34 = vpop.f32.mrf.mxu1  ;;  %4957 = vmax.xlane.f32.xlu0 %v4956_v31 }
 0x40e   : > { %v4953_v35 = vsel %vm4946_vm11, %v32356_v32, -inf  ;;  %v4083_v38 = vadd.f32 %v28756_v34, %v28749_v33  ;;  %v28763_v39 = vpop.f32.mrf.mxu0 }
 0x40f   : > { %v4076_v37 = vpop.f32.mrf.mxu1 }
 0x410   : > { %v4077_v40 = vadd.f32 %v4076_v37, %v3985_v36  ;;  %v4166_v42 = vadd.f32 %v28763_v39, %v4083_v38  ;;  %v4158_v43 = vpop.f32.mrf.mxu0 }
 0x411   : > { %4954 = vmax.xlane.f32.xlu0 %v4953_v35 }
 0x412   : > { %v4159_v45 = vadd.f32 %v4158_v43, %v4077_v40 }
 0x415   : > { %v28770_v41 = vpop.f32.mrf.mxu1 }
 0x416   : > { %v4249_v46 = vadd.f32 %v28770_v41, %v4166_v42  ;;  %v28777_v48 = vpop.f32.mrf.mxu0 }
 0x417   : > { %v4240_v44 = vpop.f32.mrf.mxu1 }
 0x418   : > { %v4241_v55 = vadd.f32 %v4240_v44, %v4159_v45  ;;  %v4332_v56 = vadd.f32 %v28777_v48, %v4249_v46  ;;  %v4325_v61 = vpop.f32.mrf.mxu0 }
 0x41a   : > { %v4326_v16 = vadd.f32 %v4325_v61, %v4241_v55 }
 0x41d   : > { %v28784_v14 = vpop.f32.mrf.mxu1 }
 0x41e   : > { %v4411_v62 = vadd.f32 %v28784_v14, %v4332_v56  ;;  %v28791_v59 = vpop.f32.mrf.mxu0 }
 0x41f   : > { %v4404_v49 = vpop.f32.mrf.mxu1 }
 0x420   : > { %v4935_v50 = vmul.f32 0.35355338, %v4411_v62  ;;  %v4405_v51 = vadd.f32 %v4404_v49, %v4326_v16  ;;  %v4501_v4 = vpop.f32.mrf.mxu0 }
 0x422   : > { %v32361_v53 = vadd.f32 %v4935_v50, %v31770_v5  ;;  %v4934_v54 = vmul.f32 0.35355338, %v4405_v51 }
 0x424   : > { %v4962_v58 = vsel %vm4946_vm11, %v32361_v53, -inf  ;;  %v32366_v60 = vadd.f32 %v4934_v54, %v31770_v5 }
 0x425   : > { %4963 = vmax.xlane.f32.xlu0 %v4962_v58  ;;  %v28798_v63 = vpop.f32.mrf.mxu1 }
 0x426   : > { %v4959_v0 = vsel %vm4946_vm11, %v32366_v60, -inf  ;;  %v4599_v3 = vadd.f32 %v28798_v63, %v28791_v59  ;;  %v28805_v8 = vpop.f32.mrf.mxu0 }
 0x427   : > { %4960 = vmax.xlane.f32.xlu1 %v4959_v0  ;;  %v4592_v6 = vpop.f32.mrf.mxu1 }
 0x428   : > { %v4682_v18 = vadd.f32 %v28805_v8, %v4599_v3  ;;  %v4674_v20 = vpop.f32.mrf.mxu0  ;;  %v4593_v34 = vadd.f32 %v4592_v6, %v4501_v4 }
 0x42a   : > { %v4675_v35 = vadd.f32 %v4674_v20, %v4593_v34 }
 0x42d   : > { %v28812_v15 = vpop.f32.mrf.mxu1 }
 0x42e   : > { %v4765_v19 = vadd.f32 %v28812_v15, %v4682_v18  ;;  %v28819_v21 = vpop.f32.mrf.mxu0 }
 0x42f   : > { %v4756_v57 = vpop.f32.mrf.mxu1 }
 0x430   : > { %v4848_v23 = vadd.f32 %v28819_v21, %v4765_v19  ;;  %v4757_v36 = vadd.f32 %v4756_v57, %v4675_v35  ;;  %v4841_v37 = vpop.f32.mrf.mxu0 }
 0x432   : > { %v4842_v39 = vadd.f32 %v4841_v37, %v4757_v36 }
 0x435   : > { %v28826_v24 = vpop.f32.mrf.mxu1 }
 0x436   : > { %v4927_v28 = vadd.f32 %v28826_v24, %v4848_v23 }
 0x437   : > { %v4920_v38 = vpop.f32.mrf.mxu1 }
 0x438   : > { %v4937_v30 = vmul.f32 0.35355338, %v4927_v28  ;;  %5551 = vrot.lane.b32.xlu1 %v32116_v52, %s31466_s0  ;;  %v4921_v40 = vadd.f32 %v4920_v38, %v4842_v39 }
 0x43a   : > { %v32373_v31 = vadd.f32 %v4937_v30, %v31770_v5  ;;  %v4936_v41 = vmul.f32 0.35355338, %v4921_v40 }
 0x43c   : > { %v4968_v33 = vsel %vm4946_vm11, %v32373_v31, -inf  ;;  %v32380_v42 = vadd.f32 %v4936_v41, %v31770_v5 }
 0x43d   : > { %4969 = vmax.xlane.f32.xlu0 %v4968_v33 }
 0x43e   : > { %v4965_v43 = vsel %vm4946_vm11, %v32380_v42, -inf }
 0x453   : > { %5035 = vrot.lane.b32.xlu0 %v32112_v13, %s31466_s0 }
 0x45c   : > { %4966 = vmax.xlane.f32.xlu1 %v4965_v43 }
 0x47e   : > { %v4952_v44 = vpop.xlane.xlu1 %4951 }
 0x47f   : > { %v4972_v45 = vsub.f32 %v32341_v12, %v4952_v44 }
 0x480   : > { %v4949_v46 = vpop.xlane.xlu0 %4948 }
 0x481   : > { %v4981_v48 = vmul.f32 1.442695, %v4972_v45  ;;  %v4971_v55 = vsub.f32 %v32346_v17, %v4949_v46 }
 0x483   : > { %31007 = vpow2.f32 %v4981_v48  ;;  %v4979_v56 = vmul.f32 1.442695, %v4971_v55 }
 0x485   : > { %31009 = vpow2.f32 %v4979_v56 }
 0x490   : > { %v32386_v61 = vpop.eup %31007 }
 0x491   : > { %v4998_v14 = vsel %vm4946_vm11, %v32386_v61, 0.0 }
 0x492   : > { %v32390_v16 = vpop.eup %31009  ;;  %4999 = vadd.xlane.f32.xlu0 %v4998_v14 }
 0x493   : > { %v4995_v62 = vsel %vm4946_vm11, %v32390_v16, 0.0 }
 0x494   : > { %4996 = vadd.xlane.f32.xlu1 %v4995_v62 }
 0x496   : > { %v4958_v12 = vpop.xlane.xlu0 %4957 }
 0x497   : > { %v4974_v49 = vsub.f32 %v32351_v27, %v4958_v12 }
 0x499   : > { %v4985_v50 = vmul.f32 1.442695, %v4974_v49 }
 0x49a   : > { %v4955_v17 = vpop.xlane.xlu0 %4954 }
 0x49b   : > { %31011 = vpow2.f32 %v4985_v50  ;;  %v4973_v51 = vsub.f32 %v32356_v32, %v4955_v17 }
 0x49d   : > { %v4983_v54 = vmul.f32 1.442695, %v4973_v51 }
 0x49f   : > { %31013 = vpow2.f32 %v4983_v54 }
 0x4a8   : > { %v32396_v58 = vpop.eup %31011 }
 0x4a9   : > { %v5004_v0 = vsel %vm4946_vm11, %v32396_v58, 0.0 }
 0x4aa   : > { %5005 = vadd.xlane.f32.xlu0 %v5004_v0 }
 0x4ac   : > { %v32400_v59 = vpop.eup %31013 }
 0x4ad   : > { %v5001_v63 = vsel %vm4946_vm11, %v32400_v59, 0.0 }
 0x4ae   : > { %v4964_v3 = vpop.xlane.xlu0 %4963  ;;  %5002 = vadd.xlane.f32.xlu1 %v5001_v63 }
 0x4af   : > { %v4976_v27 = vsub.f32 %v32361_v53, %v4964_v3 }
 0x4b0   : > { %v4961_v15 = vpop.xlane.xlu1 %4960 }
 0x4b1   : > { %v4989_v4 = vmul.f32 1.442695, %v4976_v27  ;;  %v4975_v18 = vsub.f32 %v32366_v60, %v4961_v15 }
 0x4b3   : > { %31015 = vpow2.f32 %v4989_v4  ;;  %v4987_v21 = vmul.f32 1.442695, %v4975_v18 }
 0x4b4   : > { %v5552_v36 = vpop.permute.xlu1 %5551 }
 0x4b5   : > { %31017 = vpow2.f32 %v4987_v21  ;;  %v32458_v44 = vand.u32 4294901760, %v5552_v36 }
 0x4b7   : > { %v32468_v56 = vsub.f32 %v5552_v36, %v32458_v44 }
 0x4b9   : > { %v32478_v50 = vand.u32 4294901760, %v32468_v56 }
 0x4bb   : > { %v5680_v0 = vsub.f32 %v32468_v56, %v32478_v50 }
 0x4bd   : > { %v5681_v4 = vand.u32 4294901760, %v5680_v0 }
 0x4bf   : > { %6065 = vrot.lane.b32.xlu1 %v32133_v11, %s31466_s0 }
 0x4c0   : > { %v32407_v32 = vpop.eup %31015 }
 0x4c1   : > { %v5010_v6 = vsel %vm4946_vm11, %v32407_v32, 0.0 }
 0x4c2   : > { %5011 = vadd.xlane.f32.xlu0 %v5010_v6  ;;  %v32429_v28 = vpop.eup %31017 }
 0x4c3   : > { %v5007_v33 = vsel %vm4946_vm11, %v32429_v28, 0.0 }
 0x4c6   : > { %v4970_v8 = vpop.xlane.xlu0 %4969 }
 0x4c7   : > { %v4978_v24 = vsub.f32 %v32373_v31, %v4970_v8 }
 0x4c9   : > { %v4993_v30 = vmul.f32 1.442695, %v4978_v24 }
 0x4ca   : > { %v5036_v19 = vpop.permute.xlu0 %5035 }
 0x4cb   : > { %v32412_v20 = vand.u32 4294901760, %v5036_v19  ;;  %31019 = vpow2.f32 %v4993_v30 }
 0x4cd   : > { %v32415_v53 = vsub.f32 %v5036_v19, %v32412_v20  ;;  %28829 = vmatprep.subr.mxu0 %v32412_v20 }
 0x4ce   : > { %28830 = vmatpush3.msra.mxu0 %v32412_v20 }
 0x4cf   : > { %28841 = vmatprep.subr.mxu0 %v32319_v9  ;;  %v32421_v57 = vand.u32 4294901760, %v32415_v53 }
 0x4d1   : > { %v5173_v23 = vsub.f32 %v32415_v53, %v32421_v57 }
 0x4d3   : > { %v5174_v60 = vand.u32 4294901760, %v5173_v23 }
 0x4d5   : > { %28836 = vmatprep.subr.mxu1 %v5174_v60 }
 0x4d6   : > { %28837 = vmatpush3.msra.mxu1 %v5174_v60 }
 0x4d7   : > { %28848 = vmatprep.subr.mxu1 %v32315_v1 }
 0x4d8   : > { %5549 = vrot.lane.b32.xlu0 %v32131_v10, %s31466_s0  ;;  %v32433_v34 = vpop.eup %31019 }
 0x4d9   : > { %v5016_v35 = vsel %vm4946_vm11, %v32433_v34, 0.0 }
 0x4e3   : > { %5008 = vadd.xlane.f32.xlu1 %v5007_v33 }
 0x4e5   : > { %v4967_v37 = vpop.xlane.xlu1 %4966 }
 0x4e6   : > { %v4977_v31 = vsub.f32 %v32380_v42, %v4967_v37 }
 0x4e8   : > { %v4991_v38 = vmul.f32 1.442695, %v4977_v31 }
 0x4ea   : > { %31021 = vpow2.f32 %v4991_v38 }
 0x4f4   : > { %6063 = vrot.lane.b32.xlu1 %v32143_v25, %s31466_s0 }
 0x4f7   : > { %5017 = vadd.xlane.f32.xlu0 %v5016_v35  ;;  %v32444_v39 = vpop.eup %31021 }
 0x4f8   : > { %v5013_v40 = vsel %vm4946_vm11, %v32444_v39, 0.0 }
 0x50d   : > { %6579 = vrot.lane.b32.xlu0 %v32145_v26, %s31466_s0 }
 0x511   : > { %7097 = vrot.lane.b32.xlu0 %v32110_v47, %s31467_s24 }
 0x515   : > { %7091 = vrot.lane.b32.xlu0 %v32112_v13, %s31468_s29 }
 0x518   : > { %5014 = vadd.xlane.f32.xlu1 %v5013_v40 }
 0x519   : > { %7615 = vrot.lane.b32.xlu0 %v32116_v52, %s31467_s24 }
 0x51b   : > { %v5000_v41 = vpop.xlane.xlu0 %4999 }
 0x51c   : > { %31023 = vrcp.f32 %v5000_v41 }
 0x51d   : > { %7609 = vrot.lane.b32.xlu0 %v32131_v10, %s31468_s29  ;;  %v4997_v42 = vpop.xlane.xlu1 %4996 }
 0x51e   : > { %31025 = vrcp.f32 %v4997_v42 }
 0x521   : > { %8133 = vrot.lane.b32.xlu0 %v32133_v11, %s31467_s24 }
 0x525   : > { %8127 = vrot.lane.b32.xlu0 %v32143_v25, %s31468_s29 }
 0x529   : > { %v31024_v43 = vpop.eup %31023  ;;  %8651 = vrot.lane.b32.xlu0 %v32145_v26, %s31467_s24  ;;  %6577 = vrot.lane.b32.xlu1 %v32151_v29, %s31466_s0  ;;  %s31475_s0 = smov 40  }
 0x52a   : > { %v5028_v45 = vmul.f32 %v31024_v43, %v32386_v61 }
 0x52b   : > { %v31026_v46 = vpop.eup %31025 }
 0x52c   : > { %v5027_v48 = vmul.f32 %v31026_v46, %v32390_v16  ;;  %v5045_v55 = vsel %vm4946_vm11, %v5028_v45, 0 }
 0x52d   : > { %8645 = vrot.lane.b32.xlu0 %v32151_v29, %s31468_s29  ;;  %7095 = vrot.lane.b32.xlu1 %v32112_v13, %s31467_s24  ;;  %v5124_v14 = vand.u32 4294901760, %v5045_v55 }
 0x52e   : > { %v5042_v62 = vsel %vm4946_vm11, %v5027_v48, 0 }
 0x52f   : > { %v5114_v12 = vand.u32 4294901760, %v5042_v62  ;;  %v5125_v49 = vsub.f32 %v5045_v55, %v5124_v14 }
 0x531   : > { %7093 = vrot.lane.b32.xlu1 %v32110_v47, %s31468_s29  ;;  %28838 = vmatprep.mubr.f32.mxu1 %v5114_v12  ;;  %v5115_v61 = vsub.f32 %v5042_v62, %v5114_v12  ;;  %v5126_v16 = vand.u32 4294901760, %v5125_v49 }
 0x532   : > { %28839 = vmatmul.mubr.f32.vlgmr.msra.gmra.mxu1 %v5124_v14 }
 0x533   : > { %28849 = vmatpush3.msra.mxu1 %v32315_v1  ;;  %v5006_v17 = vpop.xlane.xlu0 %5005  ;;  %v5116_v51 = vand.u32 4294901760, %v5115_v61  ;;  %v5127_v63 = vsub.f32 %v5125_v49, %v5126_v16 }
 0x534   : > { %31027 = vrcp.f32 %v5006_v17  ;;  %28850 = vmatprep.subr.mxu1 %v32412_v20 }
 0x535   : > { %28851 = vmatpush3.msra.mxu1 %v32412_v20  ;;  %7613 = vrot.lane.b32.xlu1 %v32131_v10, %s31467_s24  ;;  %v5117_v54 = vsub.f32 %v5115_v61, %v5116_v51  ;;  %v5128_v6 = vand.u32 4294901760, %v5127_v63 }
 0x536   : > { %28852 = vmatprep.mubr.f32.mxu1 %v5116_v51  ;;  %28862 = vmatprep.subr.mxu1 %v32315_v1 }
 0x537   : > { %28853 = vmatmul.mubr.f32.vlgmr.msra.gmra.mxu1 %v5126_v16  ;;  %v5003_v3 = vpop.xlane.xlu1 %5002  ;;  %v5118_v27 = vand.u32 4294901760, %v5117_v54 }
 0x538   : > { %28863 = vmatpush3.msra.mxu1 %v32315_v1  ;;  %28866 = vmatprep.mubr.f32.mxu1 %v5114_v12  ;;  %31029 = vrcp.f32 %v5003_v3 }
 0x539   : > { %28864 = vmatprep.subr.mxu1 %v32412_v20  ;;  %7611 = vrot.lane.b32.xlu1 %v32116_v52, %s31468_s29 }
 0x53a   : > { %28865 = vmatpush3.msra.mxu1 %v32412_v20  ;;  %28831 = vmatprep.mubr.f32.mxu0 %v5118_v27 }
 0x53b   : > { %28876 = vmatprep.subr.mxu1 %v5681_v4  ;;  %28832 = vmatmul.mubr.f32.vlgmr.msra.gmra.mxu0 %v5128_v6  ;;  %v6066_v30 = vpop.permute.xlu1 %6065 }
 0x53c   : > { %28842 = vmatpush3.msra.mxu0 %v32319_v9  ;;  %28867 = vmatmul.mubr.f32.vlgmr.msra.gmra.mxu1 %v5124_v14  ;;  %v32516_v31 = vand.u32 4294901760, %v6066_v30 }
 0x53d   : > { %28877 = vmatpush3.msra.mxu1 %v5681_v4  ;;  %28843 = vmatprep.subr.mxu0 %v32415_v53 }
 0x53e   : > { %28845 = vmatprep.mubr.f32.mxu0 %v5115_v61  ;;  %28844 = vmatpush3.msra.mxu0 %v32415_v53  ;;  %v32521_v41 = vsub.f32 %v6066_v30, %v32516_v31 }
 0x53f   : > { %8131 = vrot.lane.b32.xlu1 %v32143_v25, %s31467_s24  ;;  %28855 = vmatprep.subr.mxu0 %v32326_v22 }
 0x540   : > { %28846 = vmatmul.mubr.f32.vlgmr.msra.gmra.mxu0 %v5125_v49  ;;  %v32526_v43 = vand.u32 4294901760, %v32521_v41 }
 0x541   : > { %v31028_v1 = vpop.eup %31027  ;;  %28856 = vmatpush3.msra.mxu0 %v32326_v22  ;;  %28859 = vmatprep.mubr.f32.mxu0 %v5114_v12 }
 0x542   : > { %28857 = vmatprep.subr.mxu0 %v32421_v57  ;;  %v5030_v9 = vmul.f32 %v31028_v1, %v32396_v58  ;;  %v6194_v45 = vsub.f32 %v32521_v41, %v32526_v43 }
 0x543   : > { %28858 = vmatpush3.msra.mxu0 %v32421_v57  ;;  %8129 = vrot.lane.b32.xlu1 %v32133_v11, %s31468_s29 }
 0x544   : > { %28869 = vmatprep.subr.mxu0 %v32458_v44  ;;  %28860 = vmatmul.mubr.f32.vlgmr.msra.gmra.mxu0 %v5124_v14  ;;  %v5559_v8 = vsel %vm4946_vm11, %v5030_v9, 0  ;;  %v6195_v46 = vand.u32 4294901760, %v6194_v45 }
 0x545   : > { %v31030_v15 = vpop.eup %31029  ;;  %28870 = vmatpush3.msra.mxu0 %v32458_v44  ;;  %v5638_v18 = vand.u32 4294901760, %v5559_v8 }
 0x546   : > { %v5029_v22 = vmul.f32 %v31030_v15, %v32400_v59 }
 0x547   : > { %8649 = vrot.lane.b32.xlu1 %v32151_v29, %s31467_s24  ;;  %v5639_v58 = vsub.f32 %v5559_v8, %v5638_v18 }
 0x548   : > { %v5556_v19 = vsel %vm4946_vm11, %v5029_v22, 0 }
 0x549   : > { %v5628_v20 = vand.u32 4294901760, %v5556_v19  ;;  %v5640_v53 = vand.u32 4294901760, %v5639_v58 }
 0x54b   : > { %8647 = vrot.lane.b32.xlu1 %v32145_v26, %s31468_s29  ;;  %v5012_v21 = vpop.xlane.xlu0 %5011  ;;  %28880 = vmatprep.mubr.f32.mxu1 %v5628_v20  ;;  %v5629_v57 = vsub.f32 %v5556_v19, %v5628_v20  ;;  %v5641_v60 = vsub.f32 %v5639_v58, %v5640_v53  ;;  %s24793_s29 = scalar_lea.vmem %s36127_s22, %s31435_s25 }
 0x54c   : > { %31031 = vrcp.f32 %v5012_v21 }
 0x54d   : > { %v5630_v23 = vand.u32 4294901760, %v5629_v57  ;;  %v5642_v37 = vand.u32 4294901760, %v5641_v60 }
 0x54f   : > { %9269 = vrot.lane.b32.xlu1 %v32110_v47, %s31469_s3  ;;  %v5550_v59 = vpop.permute.xlu0 %5549  ;;  %v5631_v24 = vsub.f32 %v5629_v57, %v5630_v23 }
 0x550   : > { %v5593_v33 = vand.u32 4294901760, %v5550_v59 }
 0x551   : > { %v5632_v35 = vand.u32 4294901760, %v5631_v24 }
 0x552   : > { %v5685_v36 = vsub.f32 %v5550_v59, %v5593_v33  ;;  %28871 = vmatprep.subr.mxu0 %v5593_v33 }
 0x553   : > { %28872 = vmatpush3.msra.mxu0 %v5593_v33  ;;  %28873 = vmatprep.mubr.f32.mxu0 %v5632_v35 }
 0x554   : > { %28874 = vmatmul.mubr.f32.vlgmr.msra.gmra.mxu0 %v5642_v37  ;;  %28883 = vmatprep.subr.mxu0 %v32468_v56  ;;  %v5686_v38 = vand.u32 4294901760, %v5685_v36 }
 0x555   : > { %28884 = vmatpush3.msra.mxu0 %v32468_v56  ;;  %28887 = vmatprep.mubr.f32.mxu0 %v5629_v57 }
 0x556   : > { %28885 = vmatprep.subr.mxu0 %v5685_v36  ;;  %v5687_v40 = vsub.f32 %v5685_v36, %v5686_v38 }
 0x557   : > { %28886 = vmatpush3.msra.mxu0 %v5685_v36 }
 0x558   : > { %28888 = vmatmul.mubr.f32.vlgmr.msra.gmra.mxu0 %v5639_v58  ;;  %28897 = vmatprep.subr.mxu0 %v32478_v50  ;;  %v5688_v42 = vand.u32 4294901760, %v5687_v40 }
 0x559   : > { %28898 = vmatpush3.msra.mxu0 %v32478_v50  ;;  %28901 = vmatprep.mubr.f32.mxu0 %v5628_v20  ;;  %v31032_v55 = vpop.eup %31031 }
 0x55a   : > { %28878 = vmatprep.subr.mxu1 %v5688_v42  ;;  %28899 = vmatprep.subr.mxu0 %v5686_v38  ;;  %v5032_v14 = vmul.f32 %v31032_v55, %v32407_v32 }
 0x55b   : > { %28879 = vmatpush3.msra.mxu1 %v5688_v42  ;;  %28900 = vmatpush3.msra.mxu0 %v5686_v38 }
 0x55c   : > { %28881 = vmatmul.mubr.f32.vlgmr.msra.gmra.mxu1 %v5638_v18  ;;  %28890 = vmatprep.subr.mxu1 %v32458_v44  ;;  %v6073_v49 = vsel %vm4946_vm11, %v5032_v14, 0 }
 0x55d   : > { %28902 = vmatmul.mubr.f32.vlgmr.msra.gmra.mxu0 %v5638_v18  ;;  %28911 = vmatprep.subr.mxu0 %v32516_v31  ;;  %v6152_v16 = vand.u32 4294901760, %v6073_v49 }
 0x55e   : > { %28891 = vmatpush3.msra.mxu1 %v32458_v44  ;;  %28894 = vmatprep.mubr.f32.mxu1 %v5630_v23 }
 0x55f   : > { %28912 = vmatpush3.msra.mxu0 %v32516_v31  ;;  %28892 = vmatprep.subr.mxu1 %v5593_v33  ;;  %v6153_v54 = vsub.f32 %v6073_v49, %v6152_v16 }
 0x560   : > { %28893 = vmatpush3.msra.mxu1 %v5593_v33 }
 0x561   : > { %28895 = vmatmul.mubr.f32.vlgmr.msra.gmra.mxu1 %v5640_v53  ;;  %28904 = vmatprep.subr.mxu1 %v32458_v44  ;;  %v6154_v63 = vand.u32 4294901760, %v6153_v54 }
 0x562   : > { %28905 = vmatpush3.msra.mxu1 %v32458_v44  ;;  %28908 = vmatprep.mubr.f32.mxu1 %v5628_v20 }
 0x563   : > { %28906 = vmatprep.subr.mxu1 %v5593_v33  ;;  %v6155_v6 = vsub.f32 %v6153_v54, %v6154_v63 }
 0x564   : > { %28907 = vmatpush3.msra.mxu1 %v5593_v33 }
 0x565   : > { %28909 = vmatmul.mubr.f32.vlgmr.msra.gmra.mxu1 %v5638_v18  ;;  %28918 = vmatprep.subr.mxu1 %v6195_v46  ;;  %v6156_v18 = vand.u32 4294901760, %v6155_v6 }
 0x566   : > { %28919 = vmatpush3.msra.mxu1 %v6195_v46 }
 0x56c   : > { %v5009_v48 = vpop.xlane.xlu1 %5008 }
 0x56d   : > { %31033 = vrcp.f32 %v5009_v48 }
 0x570   : > { %v6064_v56 = vpop.permute.xlu1 %6063 }
 0x571   : > { %v6107_v62 = vand.u32 4294901760, %v6064_v56 }
 0x573   : > { %v6199_v12 = vsub.f32 %v6064_v56, %v6107_v62  ;;  %28913 = vmatprep.subr.mxu0 %v6107_v62 }
 0x574   : > { %28914 = vmatpush3.msra.mxu0 %v6107_v62 }
 0x575   : > { %28925 = vmatprep.subr.mxu0 %v32521_v41  ;;  %v6200_v44 = vand.u32 4294901760, %v6199_v12 }
 0x577   : > { %v6201_v61 = vsub.f32 %v6199_v12, %v6200_v44 }
 0x579   : > { %v6202_v50 = vand.u32 4294901760, %v6201_v61 }
 0x57a   : > { %v31034_v17 = vpop.eup %31033 }
 0x57b   : > { %28920 = vmatprep.subr.mxu1 %v6202_v50  ;;  %v5031_v51 = vmul.f32 %v31034_v17, %v32429_v28 }
 0x57c   : > { %28921 = vmatpush3.msra.mxu1 %v6202_v50 }
 0x57d   : > { %28932 = vmatprep.subr.mxu1 %v32516_v31  ;;  %v6070_v32 = vsel %vm4946_vm11, %v5031_v51, 0 }
 0x57e   : > { %v6142_v0 = vand.u32 4294901760, %v6070_v32 }
 0x580   : > { %v5018_v3 = vpop.xlane.xlu0 %5017  ;;  %28922 = vmatprep.mubr.f32.mxu1 %v6142_v0  ;;  %v6143_v27 = vsub.f32 %v6070_v32, %v6142_v0 }
 0x581   : > { %28923 = vmatmul.mubr.f32.vlgmr.msra.gmra.mxu1 %v6152_v16  ;;  %31035 = vrcp.f32 %v5018_v3 }
 0x582   : > { %28933 = vmatpush3.msra.mxu1 %v32516_v31  ;;  %v6144_v4 = vand.u32 4294901760, %v6143_v27 }
 0x583   : > { %28934 = vmatprep.subr.mxu1 %v6107_v62 }
 0x584   : > { %28935 = vmatpush3.msra.mxu1 %v6107_v62  ;;  %v6580_v1 = vpop.permute.xlu0 %6579  ;;  %28936 = vmatprep.mubr.f32.mxu1 %v6144_v4  ;;  %v6145_v28 = vsub.f32 %v6143_v27, %v6144_v4 }
 0x585   : > { %v32543_v9 = vand.u32 4294901760, %v6580_v1  ;;  %28946 = vmatprep.subr.mxu1 %v32516_v31  ;;  %28937 = vmatmul.mubr.f32.vlgmr.msra.gmra.mxu1 %v6154_v63 }
 0x586   : > { %28947 = vmatpush3.msra.mxu1 %v32516_v31  ;;  %28950 = vmatprep.mubr.f32.mxu1 %v6142_v0  ;;  %v6146_v8 = vand.u32 4294901760, %v6145_v28 }
 0x587   : > { %v32548_v15 = vsub.f32 %v6580_v1, %v32543_v9  ;;  %28948 = vmatprep.subr.mxu1 %v6107_v62 }
 0x588   : > { %28949 = vmatpush3.msra.mxu1 %v6107_v62  ;;  %28915 = vmatprep.mubr.f32.mxu0 %v6146_v8  ;;  %v7098_v23 = vpop.permute.xlu0 %7097 }
 0x589   : > { %28916 = vmatmul.mubr.f32.vlgmr.msra.gmra.mxu0 %v6156_v18  ;;  %28951 = vmatmul.mubr.f32.vlgmr.msra.gmra.mxu1 %v6152_v16  ;;  %v32551_v22 = vand.u32 4294901760, %v32548_v15  ;;  %v7105_v24 = vsel %vm2871_vm10, %v7098_v23, 0 }
 0x58a   : > { %28926 = vmatpush3.msra.mxu0 %v32521_v41  ;;  %28929 = vmatprep.mubr.f32.mxu0 %v6143_v27  ;;  %v32569_v36 = vand.u32 4294901760, %v7105_v24 }
 0x58b   : > { %28927 = vmatprep.subr.mxu0 %v6199_v12  ;;  %v6708_v58 = vsub.f32 %v32548_v15, %v32551_v22 }
 0x58c   : > { %28928 = vmatpush3.msra.mxu0 %v6199_v12  ;;  %v32579_v42 = vsub.f32 %v7105_v24, %v32569_v36  ;;  %v7092_v46 = vpop.permute.xlu0 %7091 }
 0x58d   : > { %28939 = vmatprep.subr.mxu0 %v32526_v43  ;;  %28930 = vmatmul.mubr.f32.vlgmr.msra.gmra.mxu0 %v6153_v54  ;;  %v6709_v19 = vand.u32 4294901760, %v6708_v58  ;;  %v7099_v12 = vsel %vm2871_vm10, %v7092_v46, 0 }
 0x58e   : > { %28940 = vmatpush3.msra.mxu0 %v32526_v43  ;;  %28943 = vmatprep.mubr.f32.mxu0 %v6142_v0  ;;  %v31036_v53 = vpop.eup %31035  ;;  %v32589_v62 = vand.u32 4294901760, %v32579_v42  ;;  %v32597_v61 = vand.u32 4294901760, %v7099_v12 }
 0x58f   : > { %28941 = vmatprep.subr.mxu0 %v6200_v44  ;;  %28960 = vmatprep.subr.mxu1 %v6709_v19  ;;  %v5034_v57 = vmul.f32 %v31036_v53, %v32433_v34 }
 0x590   : > { %28942 = vmatpush3.msra.mxu0 %v6200_v44  ;;  %28961 = vmatpush3.msra.mxu1 %v6709_v19  ;;  %v7226_v50 = vsub.f32 %v32579_v42, %v32589_v62  ;;  %v32607_v63 = vsub.f32 %v7099_v12, %v32597_v61  ;;  %v7616_v4 = vpop.permute.xlu0 %7615 }
 0x591   : > { %28953 = vmatprep.subr.mxu0 %v32543_v9  ;;  %28944 = vmatmul.mubr.f32.vlgmr.msra.gmra.mxu0 %v6152_v16  ;;  %v6587_v33 = vsel %vm4946_vm11, %v5034_v57, 0  ;;  %v7623_v28 = vsel %vm2871_vm10, %v7616_v4, 0 }
 0x592   : > { %28954 = vmatpush3.msra.mxu0 %v32543_v9  ;;  %v32574_v31 = vand.u32 4294901760, %v6587_v33  ;;  %v7227_v3 = vand.u32 4294901760, %v7226_v50 }
 0x594   : > { %v6667_v45 = vsub.f32 %v6587_v33, %v32574_v31 }
 0x596   : > { %v6668_v14 = vand.u32 4294901760, %v6667_v45 }
 0x598   : > { %v6669_v17 = vsub.f32 %v6667_v45, %v6668_v14 }
 0x59a   : > { %v6670_v27 = vand.u32 4294901760, %v6669_v17 }
 0x5a1   : > { %v5015_v20 = vpop.xlane.xlu1 %5014 }
 0x5a2   : > { %31037 = vrcp.f32 %v5015_v20 }
 0x5a5   : > { %v6578_v21 = vpop.permute.xlu1 %6577 }
 0x5a6   : > { %v6621_v60 = vand.u32 4294901760, %v6578_v21 }
 0x5a8   : > { %v32561_v59 = vsub.f32 %v6578_v21, %v6621_v60  ;;  %28955 = vmatprep.subr.mxu0 %v6621_v60  ;;  %v7610_v21 = vpop.permute.xlu0 %7609 }
 0x5a9   : > { %28956 = vmatpush3.msra.mxu0 %v6621_v60  ;;  %v7096_v30 = vpop.permute.xlu1 %7095 }
 0x5aa   : > { %28967 = vmatprep.subr.mxu0 %v32548_v15  ;;  %v32567_v35 = vand.u32 4294901760, %v32561_v59  ;;  %v7103_v34 = vsel %vm2871_vm10, %v7096_v30, 0 }
 0x5ab   : > { %v32576_v41 = vand.u32 4294901760, %v7103_v34 }
 0x5ac   : > { %v6715_v37 = vsub.f32 %v32561_v59, %v32567_v35 }
 0x5ad   : > { %v32586_v55 = vsub.f32 %v7103_v34, %v32576_v41  ;;  %v7094_v16 = vpop.permute.xlu1 %7093 }
 0x5ae   : > { %v6716_v38 = vand.u32 4294901760, %v6715_v37  ;;  %v7101_v54 = vsel %vm2871_vm10, %v7094_v16, 0 }
 0x5af   : > { %v31038_v40 = vpop.eup %31037  ;;  %v32595_v44 = vand.u32 4294901760, %v32586_v55  ;;  %v32609_v6 = vand.u32 4294901760, %v7101_v54 }
 0x5b0   : > { %28962 = vmatprep.subr.mxu1 %v6716_v38  ;;  %v5033_v43 = vmul.f32 %v31038_v40, %v32444_v39 }
 0x5b1   : > { %28963 = vmatpush3.msra.mxu1 %v6716_v38  ;;  %v7233_v0 = vsub.f32 %v32586_v55, %v32595_v44  ;;  %v32617_v8 = vsub.f32 %v7101_v54, %v32609_v6  ;;  %v7614_v18 = vpop.permute.xlu1 %7613 }
 0x5b2   : > { %28974 = vmatprep.subr.mxu1 %v32543_v9  ;;  %v6584_v48 = vsel %vm4946_vm11, %v5033_v43, 0  ;;  %v7621_v20 = vsel %vm2871_vm10, %v7614_v18, 0 }
 0x5b3   : > { %v6656_v56 = vand.u32 4294901760, %v6584_v48  ;;  %v7234_v1 = vand.u32 4294901760, %v7233_v0  ;;  %v7186_v19 = vand.u32 4294901760, %v32617_v8  ;;  %v32638_v57 = vand.u32 4294901760, %v7621_v20 }
 0x5b5   : > { %28964 = vmatprep.mubr.f32.mxu1 %v6656_v56  ;;  %v6657_v39 = vsub.f32 %v6584_v48, %v6656_v56  ;;  %v7187_v23 = vsub.f32 %v32617_v8, %v7186_v19  ;;  %v32650_v24 = vsub.f32 %v7621_v20, %v32638_v57  ;;  %v7612_v34 = vpop.permute.xlu1 %7611 }
 0x5b6   : > { %28965 = vmatmul.mubr.f32.vlgmr.msra.gmra.mxu1 %v32574_v31  ;;  %v7619_v38 = vsel %vm2871_vm10, %v7612_v34, 0 }
 0x5b7   : > { %28975 = vmatpush3.msra.mxu1 %v32543_v9  ;;  %v6658_v49 = vand.u32 4294901760, %v6657_v39  ;;  %v7188_v30 = vand.u32 4294901760, %v7187_v23  ;;  %v32663_v37 = vand.u32 4294901760, %v32650_v24  ;;  %v32674_v43 = vand.u32 4294901760, %v7619_v38 }
 0x5b8   : > { %28976 = vmatprep.subr.mxu1 %v6621_v60 }
 0x5b9   : > { %28977 = vmatpush3.msra.mxu1 %v6621_v60  ;;  %28978 = vmatprep.mubr.f32.mxu1 %v6658_v49  ;;  %v6659_v51 = vsub.f32 %v6657_v39, %v6658_v49  ;;  %v7703_v48 = vsub.f32 %v7619_v38, %v32674_v43 }
 0x5ba   : > { %28988 = vmatprep.subr.mxu1 %v32543_v9  ;;  %28979 = vmatmul.mubr.f32.vlgmr.msra.gmra.mxu1 %v6668_v14 }
 0x5bb   : > { %28989 = vmatpush3.msra.mxu1 %v32543_v9  ;;  %28992 = vmatprep.mubr.f32.mxu1 %v6656_v56  ;;  %v6660_v32 = vand.u32 4294901760, %v6659_v51  ;;  %v7176_v9 = vand.u32 4294901760, %v32607_v63 }
 0x5bc   : > { %28990 = vmatprep.subr.mxu1 %v6621_v60 }
 0x5bd   : > { %28991 = vmatpush3.msra.mxu1 %v6621_v60  ;;  %28957 = vmatprep.mubr.f32.mxu0 %v6660_v32  ;;  %v7177_v58 = vsub.f32 %v32607_v63, %v7176_v9 }
 0x5be   : > { %29002 = vmatprep.subr.mxu1 %v7227_v3  ;;  %28958 = vmatmul.mubr.f32.vlgmr.msra.gmra.mxu0 %v6670_v27 }
 0x5bf   : > { %28968 = vmatpush3.msra.mxu0 %v32548_v15  ;;  %28993 = vmatmul.mubr.f32.vlgmr.msra.gmra.mxu1 %v32574_v31  ;;  %v32621_v15 = vand.u32 4294901760, %v7623_v28 }
 0x5c0   : > { %29003 = vmatpush3.xpose.msra.mxu1 %v7227_v3  ;;  %28969 = vmatprep.subr.mxu0 %v32561_v59 }
 0x5c1   : > { %28971 = vmatprep.mubr.f32.mxu0 %v6657_v39  ;;  %29004 = vmatprep.subr.mxu1 %v7234_v1  ;;  %v32632_v53 = vsub.f32 %v7623_v28, %v32621_v15 }
 0x5c2   : > { %29006 = vmatprep.mubr.f32.mxu1 %v32597_v61  ;;  %28970 = vmatpush3.msra.mxu0 %v32561_v59  ;;  %v7617_v59 = vsel %vm2871_vm10, %v7610_v21, 0 }
 0x5c3   : > { %28981 = vmatprep.subr.mxu0 %v32551_v22  ;;  %28972 = vmatmul.mubr.f32.vlgmr.msra.gmra.mxu0 %v6667_v45  ;;  %v32645_v60 = vand.u32 4294901760, %v32632_v53  ;;  %v32655_v33 = vand.u32 4294901760, %v7617_v59 }
 0x5c4   : > { %28982 = vmatpush3.msra.mxu0 %v32551_v22  ;;  %29005 = vmatpush3.xpose.msra.mxu1 %v7234_v1  ;;  %v7178_v22 = vand.u32 4294901760, %v7177_v58 }
 0x5c5   : > { %28983 = vmatprep.subr.mxu0 %v32567_v35  ;;  %28985 = vmatprep.mubr.f32.mxu0 %v6656_v56  ;;  %v8132_v56 = vpop.permute.xlu1 %8131 }
 0x5c6   : > { %29016 = vmatprep.subr.mxu1 %v32569_v36  ;;  %28984 = vmatpush3.msra.mxu0 %v32567_v35  ;;  %v7744_v35 = vsub.f32 %v32632_v53, %v32645_v60  ;;  %v8139_v12 = vsel %vm2871_vm10, %v8132_v56, 0 }
 0x5c7   : > { %28995 = vmatprep.subr.mxu0 %v32569_v36  ;;  %29007 = vmatmul.mubr.f32.vlgmr.msra.gmra.mxu1 %v32609_v6  ;;  %v32697_v16 = vand.u32 4294901760, %v8139_v12 }
 0x5c8   : > { %28986 = vmatmul.mubr.f32.vlgmr.msra.gmra.mxu0 %v32574_v31  ;;  %29017 = vmatpush3.xpose.msra.mxu1 %v32569_v36  ;;  %v7693_v31 = vsub.f32 %v7617_v59, %v32655_v33  ;;  %v7745_v40 = vand.u32 4294901760, %v7744_v35 }
 0x5c9   : > { %28996 = vmatpush3.xpose.msra.mxu0 %v32569_v36  ;;  %29020 = vmatprep.mubr.f32.mxu1 %v7176_v9  ;;  %v32708_v51 = vsub.f32 %v8139_v12, %v32697_v16 }
 0x5ca   : > { %28997 = vmatprep.subr.mxu0 %v32576_v41  ;;  %28999 = vmatprep.mubr.f32.mxu0 %v7178_v22  ;;  %v7694_v45 = vand.u32 4294901760, %v7693_v31 }
 0x5cb   : > { %29018 = vmatprep.subr.mxu1 %v32576_v41  ;;  %v32720_v3 = vand.u32 4294901760, %v32708_v51 }
 0x5cc   : > { %29019 = vmatpush3.xpose.msra.mxu1 %v32576_v41  ;;  %v7695_v14 = vsub.f32 %v7693_v31, %v7694_v45 }
 0x5cd   : > { %28998 = vmatpush3.xpose.msra.mxu0 %v32576_v41  ;;  %29030 = vmatprep.subr.mxu1 %v32569_v36  ;;  %v8269_v28 = vsub.f32 %v32708_v51, %v32720_v3 }
 0x5ce   : > { %29009 = vmatprep.subr.mxu0 %v32579_v42  ;;  %v7696_v49 = vand.u32 4294901760, %v7695_v14 }
 0x5cf   : > { %29021 = vmatmul.mubr.f32.vlgmr.msra.gmra.mxu1 %v7186_v19  ;;  %v8270_v18 = vand.u32 4294901760, %v8269_v28 }
 0x5d0   : > { %29000 = vmatmul.mubr.f32.vlgmr.msra.gmra.mxu0 %v7188_v30  ;;  %29031 = vmatpush3.xpose.msra.mxu1 %v32569_v36  ;;  %v8134_v36 = vpop.permute.xlu0 %8133 }
 0x5d1   : > { %29010 = vmatpush3.xpose.msra.mxu0 %v32579_v42  ;;  %29013 = vmatprep.mubr.f32.mxu0 %v32607_v63  ;;  %v7751_v42 = vsub.f32 %v32650_v24, %v32663_v37  ;;  %v8141_v46 = vsel %vm2871_vm10, %v8134_v36, 0  ;;  %v8130_v63 = vpop.permute.xlu1 %8129 }
 0x5d2   : > { %29034 = vmatprep.mubr.f32.mxu1 %v32597_v61  ;;  %29011 = vmatprep.subr.mxu0 %v32586_v55  ;;  %v8137_v4 = vsel %vm2871_vm10, %v8130_v63, 0 }
 0x5d3   : > { %29032 = vmatprep.subr.mxu1 %v32576_v41  ;;  %v32733_v9 = vand.u32 4294901760, %v8137_v4 }
 0x5d4   : > { %29033 = vmatpush3.xpose.msra.mxu1 %v32576_v41  ;;  %v7752_v41 = vand.u32 4294901760, %v7751_v42 }
 0x5d5   : > { %29012 = vmatpush3.xpose.msra.mxu0 %v32586_v55  ;;  %29044 = vmatprep.subr.mxu1 %v7745_v40  ;;  %v32685_v55 = vand.u32 4294901760, %v8141_v46  ;;  %v32742_v58 = vsub.f32 %v8137_v4, %v32733_v9  ;;  %v8650_v20 = vpop.permute.xlu1 %8649 }
 0x5d6   : > { %29023 = vmatprep.subr.mxu0 %v32589_v62  ;;  %v8657_v21 = vsel %vm2871_vm10, %v8650_v20, 0 }
 0x5d7   : > { %29035 = vmatmul.mubr.f32.vlgmr.msra.gmra.mxu1 %v32609_v6  ;;  %v32692_v39 = vsub.f32 %v8141_v46, %v32685_v55  ;;  %v8222_v22 = vand.u32 4294901760, %v32742_v58 }
 0x5d8   : > { %29014 = vmatmul.mubr.f32.vlgmr.msra.gmra.mxu0 %v32617_v8  ;;  %29045 = vmatpush3.xpose.msra.mxu1 %v7745_v40 }
 0x5d9   : > { %29024 = vmatpush3.xpose.msra.mxu0 %v32589_v62  ;;  %29027 = vmatprep.mubr.f32.mxu0 %v32597_v61  ;;  %v7704_v62 = vand.u32 4294901760, %v7703_v48  ;;  %v8128_v61 = vpop.permute.xlu0 %8127  ;;  %v32703_v50 = vand.u32 4294901760, %v32692_v39  ;;  %v8223_v30 = vsub.f32 %v32742_v58, %v8222_v22  ;;  %v8648_v46 = vpop.permute.xlu1 %8647 }
 0x5da   : > { %29048 = vmatprep.mubr.f32.mxu1 %v32655_v33  ;;  %29025 = vmatprep.subr.mxu0 %v32595_v44  ;;  %v8135_v17 = vsel %vm2871_vm10, %v8128_v61, 0 }
 0x5db   : > { %29046 = vmatprep.subr.mxu1 %v7752_v41  ;;  %v32713_v32 = vand.u32 4294901760, %v8135_v17  ;;  %v8262_v0 = vsub.f32 %v32692_v39, %v32703_v50  ;;  %v8224_v42 = vand.u32 4294901760, %v8223_v30 }
 0x5dc   : > { %29047 = vmatpush3.xpose.msra.mxu1 %v7752_v41 }
 0x5dd   : > { %29026 = vmatpush3.xpose.msra.mxu0 %v32595_v44  ;;  %29058 = vmatprep.subr.mxu1 %v32621_v15  ;;  %v7705_v44 = vsub.f32 %v7703_v48, %v7704_v62  ;;  %v32725_v27 = vsub.f32 %v8135_v17, %v32713_v32  ;;  %v8652_v1 = vpop.permute.xlu0 %8651  ;;  %v9270_v4 = vpop.permute.xlu1 %9269 }
 0x5de   : > { %29037 = vmatprep.subr.mxu0 %v32621_v15 }
 0x5df   : > { %29049 = vmatmul.mubr.f32.vlgmr.msra.gmra.mxu1 %v32674_v43  ;;  %v7706_v54 = vand.u32 4294901760, %v7705_v44  ;;  %v8212_v8 = vand.u32 4294901760, %v32725_v27 }
 0x5e0   : > { %29028 = vmatmul.mubr.f32.vlgmr.msra.gmra.mxu0 %v32609_v6  ;;  %29059 = vmatpush3.xpose.msra.mxu1 %v32621_v15  ;;  %v8263_v6 = vand.u32 4294901760, %v8262_v0 }
 0x5e1   : > { %29038 = vmatpush3.xpose.msra.mxu0 %v32621_v15  ;;  %29041 = vmatprep.mubr.f32.mxu0 %v7696_v49  ;;  %v8646_v59 = vpop.permute.xlu0 %8645 }
 0x5e2   : > { %29062 = vmatprep.mubr.f32.mxu1 %v7694_v45  ;;  %29039 = vmatprep.subr.mxu0 %v32638_v57 }
 0x5e3   : > { %29060 = vmatprep.subr.mxu1 %v32638_v57 }
 0x5e4   : > { %29061 = vmatpush3.xpose.msra.mxu1 %v32638_v57 }
 0x5e5   : > { %29040 = vmatpush3.xpose.msra.mxu0 %v32638_v57  ;;  %29072 = vmatprep.subr.mxu1 %v32621_v15 }
 0x5e6   : > { %29051 = vmatprep.subr.mxu0 %v32632_v53 }
 0x5e7   : > { %29063 = vmatmul.mubr.f32.vlgmr.msra.gmra.mxu1 %v7704_v62 }
 0x5e8   : > { %29042 = vmatmul.mubr.f32.vlgmr.msra.gmra.mxu0 %v7706_v54  ;;  %29073 = vmatpush3.xpose.msra.mxu1 %v32621_v15  ;;  %v8659_v15 = vsel %vm2871_vm10, %v8652_v1, 0 }
 0x5e9   : > { %29052 = vmatpush3.xpose.msra.mxu0 %v32632_v53  ;;  %29055 = vmatprep.mubr.f32.mxu0 %v7693_v31  ;;  %v32746_v19 = vand.u32 4294901760, %v8659_v15  ;;  %v8213_v53 = vsub.f32 %v32725_v27, %v8212_v8 }
 0x5ea   : > { %29076 = vmatprep.mubr.f32.mxu1 %v32655_v33  ;;  %29053 = vmatprep.subr.mxu0 %v32650_v24 }
 0x5eb   : > { %29074 = vmatprep.subr.mxu1 %v32638_v57  ;;  %v32755_v23 = vsub.f32 %v8659_v15, %v32746_v19 }
 0x5ec   : > { %29075 = vmatpush3.xpose.msra.mxu1 %v32638_v57 }
 0x5ed   : > { %29054 = vmatpush3.xpose.msra.mxu0 %v32650_v24  ;;  %29086 = vmatprep.subr.mxu1 %v8263_v6  ;;  %v32760_v24 = vand.u32 4294901760, %v8657_v21  ;;  %v32769_v34 = vand.u32 4294901760, %v32755_v23 }
 0x5ee   : > { %29065 = vmatprep.subr.mxu0 %v32645_v60 }
 0x5ef   : > { %29077 = vmatmul.mubr.f32.vlgmr.msra.gmra.mxu1 %v32674_v43  ;;  %v32774_v38 = vsub.f32 %v8657_v21, %v32760_v24  ;;  %v8780_v45 = vsub.f32 %v32755_v23, %v32769_v34 }
 0x5f0   : > { %29056 = vmatmul.mubr.f32.vlgmr.msra.gmra.mxu0 %v7703_v48  ;;  %29087 = vmatpush3.xpose.msra.mxu1 %v8263_v6  ;;  %v32816_v6 = vand.u32 4294901760, %v9270_v4 }
 0x5f1   : > { %29066 = vmatpush3.xpose.msra.mxu0 %v32645_v60  ;;  %29069 = vmatprep.mubr.f32.mxu0 %v32655_v33  ;;  %v8214_v60 = vand.u32 4294901760, %v8213_v53  ;;  %v32789_v56 = vand.u32 4294901760, %v32774_v38  ;;  %v8781_v49 = vand.u32 4294901760, %v8780_v45 }
 0x5f2   : > { %29090 = vmatprep.mubr.f32.mxu1 %v32713_v32  ;;  %29067 = vmatprep.subr.mxu0 %v32663_v37  ;;  %v28840_v57 = vpop.f32.mrf.mxu1 }
 0x5f3   : > { %29088 = vmatprep.subr.mxu1 %v8270_v18  ;;  %v8787_v17 = vsub.f32 %v32774_v38, %v32789_v56 }
 0x5f4   : > { %29089 = vmatpush3.xpose.msra.mxu1 %v8270_v18  ;;  %v32764_v33 = vpop.f32.mrf.mxu1 }
 0x5f5   : > { %29068 = vmatpush3.xpose.msra.mxu0 %v32663_v37  ;;  %29100 = vmatprep.subr.mxu1 %v32685_v55  ;;  %v8653_v37 = vsel %vm2871_vm10, %v8646_v59, 0 }
 0x5f6   : > { %29079 = vmatprep.subr.mxu0 %v32685_v55 }
 0x5f7   : > { %29091 = vmatmul.mubr.f32.vlgmr.msra.gmra.mxu1 %v32733_v9  ;;  %v28854_v36 = vpop.f32.mrf.mxu1 }
 0x5f8   : > { %29070 = vmatmul.mubr.f32.vlgmr.msra.gmra.mxu0 %v32674_v43  ;;  %29101 = vmatpush3.xpose.msra.mxu1 %v32685_v55  ;;  %v32781_v43 = vand.u32 4294901760, %v8653_v37 }
 0x5f9   : > { %29080 = vmatpush3.xpose.msra.mxu0 %v32685_v55  ;;  %29083 = vmatprep.mubr.f32.mxu0 %v8214_v60  ;;  %v32791_v14 = vpop.f32.mrf.mxu1 }
 0x5fa   : > { %29104 = vmatprep.mubr.f32.mxu1 %v8212_v8  ;;  %29081 = vmatprep.subr.mxu0 %v32697_v16  ;;  %v8729_v12 = vsub.f32 %v8653_v37, %v32781_v43 }
 0x5fb   : > { %29102 = vmatprep.subr.mxu1 %v32697_v16  ;;  %v28833_v35 = vpop.f32.mrf.mxu0 }
 0x5fc   : > { %v5218_v31 = vadd.f32 %v28840_v57, %v28833_v35  ;;  %29103 = vmatpush3.xpose.msra.mxu1 %v32697_v16  ;;  %v28868_v0 = vpop.f32.mrf.mxu1 }
 0x5fd   : > { %29082 = vmatpush3.xpose.msra.mxu0 %v32697_v16  ;;  %29114 = vmatprep.subr.mxu1 %v32685_v55  ;;  %v32778_v40 = vpop.f32.mrf.mxu0 }
 0x5fe   : > { %29093 = vmatprep.subr.mxu0 %v32692_v39  ;;  %v32845_v53 = vpop.f32.mrf.mxu1 }
 0x5ff   : > { %29105 = vmatmul.mubr.f32.vlgmr.msra.gmra.mxu1 %v8222_v22 }
 0x600   : > { %29084 = vmatmul.mubr.f32.vlgmr.msra.gmra.mxu0 %v8224_v42  ;;  %v28847_v41 = vpop.f32.mrf.mxu0  ;;  %29115 = vmatpush3.xpose.msra.mxu1 %v32685_v55  ;;  %v8655_v55 = vsel %vm2871_vm10, %v8648_v46, 0 }
 0x601   : > { %v5301_v48 = vadd.f32 %v28847_v41, %v5218_v31  ;;  %29094 = vmatpush3.xpose.msra.mxu0 %v32692_v39  ;;  %29097 = vmatprep.mubr.f32.mxu0 %v32725_v27  ;;  %v32804_v54 = vand.u32 4294901760, %v8655_v55  ;;  %v8730_v27 = vand.u32 4294901760, %v8729_v12 }
 0x602   : > { %29118 = vmatprep.mubr.f32.mxu1 %v32713_v32  ;;  %29095 = vmatprep.subr.mxu0 %v32708_v51  ;;  %v32795_v62 = vpop.f32.mrf.mxu0 }
 0x603   : > { %29116 = vmatprep.subr.mxu1 %v32697_v16  ;;  %v5384_v39 = vadd.f32 %v28854_v36, %v5301_v48  ;;  %v8731_v1 = vsub.f32 %v8729_v12, %v8730_v27 }
 0x604   : > { %v28861_v61 = vpop.f32.mrf.mxu0  ;;  %29117 = vmatpush3.xpose.msra.mxu1 %v32697_v16  ;;  %v8788_v16 = vand.u32 4294901760, %v8787_v17 }
 0x605   : > { %v5467_v44 = vadd.f32 %v28861_v61, %v5384_v39  ;;  %29096 = vmatpush3.xpose.msra.mxu0 %v32708_v51  ;;  %29128 = vmatprep.subr.mxu1 %v8781_v49  ;;  %v8739_v51 = vsub.f32 %v8655_v55, %v32804_v54 }
 0x606   : > { %29107 = vmatprep.subr.mxu0 %v32703_v50 }
 0x607   : > { %v32807_v63 = vadd.f32 %v28868_v0, %v5467_v44  ;;  %29119 = vmatmul.mubr.f32.vlgmr.msra.gmra.mxu1 %v32733_v9  ;;  %v8740_v28 = vand.u32 4294901760, %v8739_v51 }
 0x608   : > { %29098 = vmatmul.mubr.f32.vlgmr.msra.gmra.mxu0 %v32742_v58  ;;  %29129 = vmatpush3.xpose.msra.mxu1 %v8781_v49 }
 0x609   : > { %29108 = vmatpush3.xpose.msra.mxu0 %v32703_v50  ;;  %29111 = vmatprep.mubr.f32.mxu0 %v32713_v32  ;;  %v32822_v50 = vsub.f32 %v9270_v4, %v32816_v6  ;;  %v8732_v32 = vand.u32 4294901760, %v8731_v1  ;;  %v8741_v8 = vsub.f32 %v8739_v51, %v8740_v28 }
 0x60a   : > { %29132 = vmatprep.mubr.f32.mxu1 %v32781_v43  ;;  %29109 = vmatprep.subr.mxu0 %v32720_v3 }
 0x60b   : > { %29130 = vmatprep.subr.mxu1 %v8788_v16  ;;  %v32833_v15 = vand.u32 4294901760, %v32822_v50 }
 0x60c   : > { %29131 = vmatpush3.xpose.msra.mxu1 %v8788_v16 }
 0x60d   : > { %29110 = vmatpush3.xpose.msra.mxu0 %v32720_v3  ;;  %29142 = vmatprep.subr.mxu1 %v32746_v19  ;;  %v32828_v3 = vpop.f32.mrf.mxu0  ;;  %v9398_v20 = vsub.f32 %v32822_v50, %v32833_v15 }
 0x60e   : > { %29121 = vmatprep.subr.mxu0 %v32746_v19 }
 0x60f   : > { %29133 = vmatmul.mubr.f32.vlgmr.msra.gmra.mxu1 %v32804_v54  ;;  %v9399_v21 = vand.u32 4294901760, %v9398_v20 }
 0x610   : > { %29112 = vmatmul.mubr.f32.vlgmr.msra.gmra.mxu0 %v32733_v9  ;;  %29143 = vmatpush3.xpose.msra.mxu1 %v32746_v19  ;;  %v8742_v9 = vand.u32 4294901760, %v8741_v8 }
 0x611   : > { %29122 = vmatpush3.xpose.msra.mxu0 %v32746_v19  ;;  %29125 = vmatprep.mubr.f32.mxu0 %v8732_v32 }
 0x612   : > { %29146 = vmatprep.mubr.f32.mxu1 %v8730_v27  ;;  %29123 = vmatprep.subr.mxu0 %v32760_v24 }
 0x613   : > { %29144 = vmatprep.subr.mxu1 %v32760_v24 }
 0x614   : > { %29145 = vmatpush3.xpose.msra.mxu1 %v32760_v24  ;;  %v28875_v18 = vpop.f32.mrf.mxu0 }
 0x615   : > { %29124 = vmatpush3.xpose.msra.mxu0 %v32760_v24  ;;  %29156 = vmatprep.subr.mxu1 %v32746_v19 }
 0x616   : > { %29135 = vmatprep.subr.mxu0 %v32755_v23  ;;  %v32839_v58 = vpop.f32.mrf.mxu0 }
 0x617   : > { %29147 = vmatmul.mubr.f32.vlgmr.msra.gmra.mxu1 %v8740_v28 }
 0x618   : > { %29126 = vmatmul.mubr.f32.vlgmr.msra.gmra.mxu0 %v8742_v9  ;;  %29157 = vmatpush3.xpose.msra.mxu1 %v32746_v19  ;;  %v28889_v22 = vpop.f32.mrf.mxu0 }
 0x619   : > { %29136 = vmatpush3.xpose.msra.mxu0 %v32755_v23  ;;  %29139 = vmatprep.mubr.f32.mxu0 %v8729_v12 }
 0x61a   : > { %29160 = vmatprep.mubr.f32.mxu1 %v32781_v43  ;;  %29137 = vmatprep.subr.mxu0 %v32774_v38  ;;  %v32855_v60 = vpop.f32.mrf.mxu0 }
 0x61b   : > { %29158 = vmatprep.subr.mxu1 %v32760_v24 }
 0x61c   : > { %29159 = vmatpush3.xpose.msra.mxu1 %v32760_v24  ;;  %v28882_v57 = vpop.f32.mrf.mxu1 }
 0x61d   : > { %29138 = vmatpush3.xpose.msra.mxu0 %v32774_v38  ;;  %29170 = vmatprep.subr.mxu1 %v9399_v21  ;;  %v5732_v19 = vadd.f32 %v28882_v57, %v28875_v18  ;;  %v28903_v35 = vpop.f32.mrf.mxu0 }
 0x61e   : > { %29149 = vmatprep.subr.mxu0 %v32769_v34  ;;  %v32853_v23 = vpop.f32.mrf.mxu1 }
 0x61f   : > { %29161 = vmatmul.mubr.f32.vlgmr.msra.gmra.mxu1 %v32804_v54  ;;  %v5815_v59 = vadd.f32 %v28889_v22, %v5732_v19 }
 0x620   : > { %29140 = vmatmul.mubr.f32.vlgmr.msra.gmra.mxu0 %v8739_v51  ;;  %29171 = vmatpush3.msra.mxu1 %v9399_v21 }
 0x621   : > { %29150 = vmatpush3.xpose.msra.mxu0 %v32769_v34  ;;  %29153 = vmatprep.mubr.f32.mxu0 %v32781_v43  ;;  %v28896_v24 = vpop.f32.mrf.mxu1  ;;  %v32871_v43 = vpop.f32.mrf.mxu0 }
 0x622   : > { %29151 = vmatprep.subr.mxu0 %v32789_v56  ;;  %v5898_v30 = vadd.f32 %v28896_v24, %v5815_v59 }
 0x623   : > { %v32861_v37 = vpop.f32.mrf.mxu1 }
 0x624   : > { %v5981_v31 = vadd.f32 %v28903_v35, %v5898_v30 }
 0x625   : > { %29152 = vmatpush3.xpose.msra.mxu0 %v32789_v56  ;;  %v28910_v38 = vpop.f32.mrf.mxu1 }
 0x626   : > { %29163 = vmatprep.subr.mxu0 %v32816_v6  ;;  %v32865_v36 = vadd.f32 %v28910_v38, %v5981_v31 }
 0x627   : > { %v32869_v34 = vpop.f32.mrf.mxu1 }
 0x628   : > { %36267 = vst [vmem:[#allocation39_spill] sm:$0xff] %v32865_v36  ;;  %29154 = vmatmul.mubr.f32.vlgmr.msra.gmra.mxu0 %v32804_v54 }
 0x629   : > { %29164 = vmatpush3.msra.mxu0 %v32816_v6 }
 0x641   : > { %v28924_v42 = vpop.f32.mrf.mxu1 }
 0x643   : > { %v32873_v45 = vpop.f32.mrf.mxu1 }
 0x645   : > { %v28938_v48 = vpop.f32.mrf.mxu1 }
 0x647   : > { %v32877_v39 = vpop.f32.mrf.mxu1 }
 0x649   : > { %v28917_v46 = vpop.f32.mrf.mxu0  ;;  %v28952_v54 = vpop.f32.mrf.mxu1 }
 0x64a   : > { %v6246_v41 = vadd.f32 %v28924_v42, %v28917_v46 }
 0x64b   : > { %v32875_v56 = vpop.f32.mrf.mxu0  ;;  %v32883_v27 = vpop.f32.mrf.mxu1 }
 0x64d   : > { %v28931_v12 = vpop.f32.mrf.mxu0 }
 0x64e   : > { %v6329_v55 = vadd.f32 %v28931_v12, %v6246_v41 }
 0x64f   : > { %v32879_v49 = vpop.f32.mrf.mxu0 }
 0x650   : > { %v6412_v61 = vadd.f32 %v28938_v48, %v6329_v55 }
 0x651   : > { %v28945_v44 = vpop.f32.mrf.mxu0 }
 0x652   : > { %v6495_v17 = vadd.f32 %v28945_v44, %v6412_v61 }
 0x653   : > { %v32885_v16 = vpop.f32.mrf.mxu0 }
 0x654   : > { %v32881_v0 = vadd.f32 %v28952_v54, %v6495_v17 }
 0x656   : > { %36268 = vst [vmem:[#allocation40_spill] sm:$0xff] %v32881_v0 }
 0x676   : > { %v28966_v4 = vpop.f32.mrf.mxu1 }
 0x678   : > { %v32887_v51 = vpop.f32.mrf.mxu1 }
 0x67a   : > { %v28980_v8 = vpop.f32.mrf.mxu1 }
 0x67c   : > { %v32893_v22 = vpop.f32.mrf.mxu1 }
 0x67e   : > { %v28959_v1 = vpop.f32.mrf.mxu0 }
 0x67f   : > { %v6760_v28 = vadd.f32 %v28966_v4, %v28959_v1  ;;  %v28994_v59 = vpop.f32.mrf.mxu1 }
 0x680   : > { %v32889_v32 = vpop.f32.mrf.mxu0 }
 0x681   : > { %v32899_v35 = vpop.f32.mrf.mxu1 }
 0x682   : > { %36270 = vst [vmem:[#allocation42_spill] sm:$0xff] %v32899_v35 }
 0x683   : > { %v28973_v18 = vpop.f32.mrf.mxu0 }
 0x684   : > { %v6843_v9 = vadd.f32 %v28973_v18, %v6760_v28 }
 0x685   : > { %v32891_v20 = vpop.f32.mrf.mxu0 }
 0x686   : > { %v6926_v21 = vadd.f32 %v28980_v8, %v6843_v9 }
 0x687   : > { %v29008_v38 = vpop.f32.mrf.mxu1 }
 0x688   : > { %v28987_v57 = vpop.f32.mrf.mxu0 }
 0x689   : > { %v7009_v19 = vadd.f32 %v28987_v57, %v6926_v21  ;;  %v7271_v46 = vpop.f32.mrf.mxu1 }
 0x68a   : > { %v32897_v30 = vpop.f32.mrf.mxu0 }
 0x68b   : > { %v32895_v24 = vadd.f32 %v28994_v59, %v7009_v19 }
 0x68d   : > { %36269 = vst [vmem:[#allocation41_spill] sm:$0xff] %v32895_v24 }
 0x68f   : > { %v29022_v12 = vpop.f32.mrf.mxu1 }
 0x690   : > { %v29001_v31 = vpop.f32.mrf.mxu0 }
 0x691   : > { %v7278_v48 = vadd.f32 %v29008_v38, %v29001_v31  ;;  %v7435_v54 = vpop.f32.mrf.mxu1 }
 0x692   : > { %v7180_v42 = vpop.f32.mrf.mxu0 }
 0x693   : > { %v7272_v61 = vadd.f32 %v7271_v46, %v7180_v42 }
 0x697   : > { %v29036_v1 = vpop.f32.mrf.mxu1 }
 0x698   : > { %v29015_v41 = vpop.f32.mrf.mxu0 }
 0x699   : > { %v7361_v44 = vadd.f32 %v29015_v41, %v7278_v48  ;;  %v7599_v19 = vpop.f32.mrf.mxu1 }
 0x69a   : > { %v7353_v55 = vpop.f32.mrf.mxu0 }
 0x69b   : > { %v7354_v17 = vadd.f32 %v7353_v55, %v7272_v61  ;;  %v7444_v4 = vadd.f32 %v29022_v12, %v7361_v44 }
 0x69d   : > { %v7436_v18 = vadd.f32 %v7435_v54, %v7354_v17 }
 0x69f   : > { %v29050_v48 = vpop.f32.mrf.mxu1 }
 0x6a0   : > { %v29029_v28 = vpop.f32.mrf.mxu0 }
 0x6a1   : > { %v7527_v8 = vadd.f32 %v29029_v28, %v7444_v4  ;;  %v7789_v55 = vpop.f32.mrf.mxu1 }
 0x6a2   : > { %v7520_v9 = vpop.f32.mrf.mxu0 }
 0x6a3   : > { %v7606_v21 = vadd.f32 %v29036_v1, %v7527_v8  ;;  %v7521_v57 = vadd.f32 %v7520_v9, %v7436_v18 }
 0x6a5   : > { %v9164_v59 = vmul.f32 0.35355338, %v7606_v21  ;;  %v7600_v2 = vadd.f32 %v7599_v19, %v7521_v57 }
 0x6a7   : > { %v32902_v7 = vadd.f32 %v9164_v59, %v31770_v5  ;;  %v9163_v31 = vmul.f32 0.35355338, %v7600_v2  ;;  %v29064_v17 = vpop.f32.mrf.mxu1 }
 0x6a8   : > { %v29043_v46 = vpop.f32.mrf.mxu0 }
 0x6a9   : > { %v9182_v38 = vsel %vm4946_vm11, %v32902_v7, -inf  ;;  %v32907_v42 = vadd.f32 %v9163_v31, %v31770_v5  ;;  %v7796_v44 = vadd.f32 %v29050_v48, %v29043_v46  ;;  %v7953_v28 = vpop.f32.mrf.mxu1 }
 0x6aa   : > { %9183 = vmax.xlane.f32.xlu1 %v9182_v38  ;;  %v7698_v12 = vpop.f32.mrf.mxu0 }
 0x6ab   : > { %v9179_v41 = vsel %vm4946_vm11, %v32907_v42, -inf  ;;  %v7790_v2 = vadd.f32 %v7789_v55, %v7698_v12 }
 0x6ac   : > { %9180 = vmax.xlane.f32.xlu0 %v9179_v41 }
 0x6af   : > { %v29078_v18 = vpop.f32.mrf.mxu1 }
 0x6b0   : > { %v29057_v61 = vpop.f32.mrf.mxu0 }
 0x6b1   : > { %v7879_v4 = vadd.f32 %v29057_v61, %v7796_v44  ;;  %v8117_v38 = vpop.f32.mrf.mxu1 }
 0x6b2   : > { %v7871_v54 = vpop.f32.mrf.mxu0 }
 0x6b3   : > { %v7872_v1 = vadd.f32 %v7871_v54, %v7790_v2  ;;  %v7962_v8 = vadd.f32 %v29064_v17, %v7879_v4 }
 0x6b5   : > { %v7954_v57 = vadd.f32 %v7953_v28, %v7872_v1 }
 0x6b7   : > { %v29092_v61 = vpop.f32.mrf.mxu1 }
 0x6b8   : > { %v29071_v9 = vpop.f32.mrf.mxu0 }
 0x6b9   : > { %v8045_v21 = vadd.f32 %v29071_v9, %v7962_v8  ;;  %v8307_v54 = vpop.f32.mrf.mxu1 }
 0x6ba   : > { %v8038_v19 = vpop.f32.mrf.mxu0 }
 0x6bb   : > { %v8124_v59 = vadd.f32 %v29078_v18, %v8045_v21  ;;  %v8039_v31 = vadd.f32 %v8038_v19, %v7954_v57 }
 0x6bd   : > { %v9166_v41 = vmul.f32 0.35355338, %v8124_v59  ;;  %v8118_v24 = vadd.f32 %v8117_v38, %v8039_v31 }
 0x6bf   : > { %v32912_v0 = vadd.f32 %v9166_v41, %v31770_v5  ;;  %v9165_v46 = vmul.f32 0.35355338, %v8118_v24  ;;  %v29106_v1 = vpop.f32.mrf.mxu1 }
 0x6c0   : > { %v29085_v55 = vpop.f32.mrf.mxu0 }
 0x6c1   : > { %v9188_v48 = vsel %vm4946_vm11, %v32912_v0, -inf  ;;  %v32917_v12 = vadd.f32 %v9165_v46, %v31770_v5  ;;  %v8314_v4 = vadd.f32 %v29092_v61, %v29085_v55  ;;  %v8471_v9 = vpop.f32.mrf.mxu1 }
 0x6c2   : > { %9189 = vmax.xlane.f32.xlu0 %v9188_v48  ;;  %v8216_v17 = vpop.f32.mrf.mxu0 }
 0x6c3   : > { %v9185_v44 = vsel %vm4946_vm11, %v32917_v12, -inf  ;;  %v8308_v24 = vadd.f32 %v8307_v54, %v8216_v17 }
 0x6c6   : > { %9186 = vmax.xlane.f32.xlu0 %v9185_v44 }
 0x6c7   : > { %v29120_v57 = vpop.f32.mrf.mxu1 }
 0x6c8   : > { %v29099_v2 = vpop.f32.mrf.mxu0 }
 0x6c9   : > { %v8397_v8 = vadd.f32 %v29099_v2, %v8314_v4  ;;  %v8635_v48 = vpop.f32.mrf.mxu1 }
 0x6ca   : > { %v8389_v28 = vpop.f32.mrf.mxu0 }
 0x6cb   : > { %v8390_v18 = vadd.f32 %v8389_v28, %v8308_v24  ;;  %v8480_v21 = vadd.f32 %v29106_v1, %v8397_v8 }
 0x6cd   : > { %v8472_v31 = vadd.f32 %v8471_v9, %v8390_v18 }
 0x6cf   : > { %v29134_v4 = vpop.f32.mrf.mxu1 }
 0x6d0   : > { %v29113_v19 = vpop.f32.mrf.mxu0 }
 0x6d1   : > { %v8563_v59 = vadd.f32 %v29113_v19, %v8480_v21  ;;  %v8825_v8 = vpop.f32.mrf.mxu1 }
 0x6d2   : > { %v8556_v38 = vpop.f32.mrf.mxu0 }
 0x6d3   : > { %v8642_v41 = vadd.f32 %v29120_v57, %v8563_v59  ;;  %v8557_v46 = vadd.f32 %v8556_v38, %v8472_v31 }
 0x6d5   : > { %v9168_v35 = vmul.f32 0.35355338, %v8642_v41  ;;  %v8636_v44 = vadd.f32 %v8635_v48, %v8557_v46 }
 0x6d7   : > { %v32922_v36 = vadd.f32 %v9168_v35, %v31770_v5  ;;  %v9167_v55 = vmul.f32 0.35355338, %v8636_v44  ;;  %v29148_v18 = vpop.f32.mrf.mxu1 }
 0x6d8   : > { %v29127_v54 = vpop.f32.mrf.mxu0 }
 0x6d9   : > { %v9194_v61 = vsel %vm4946_vm11, %v32922_v36, -inf  ;;  %v32927_v17 = vadd.f32 %v9167_v55, %v31770_v5  ;;  %v8832_v24 = vadd.f32 %v29134_v4, %v29127_v54  ;;  %v8989_v57 = vpop.f32.mrf.mxu1 }
 0x6da   : > { %9195 = vmax.xlane.f32.xlu0 %v9194_v61  ;;  %v8734_v1 = vpop.f32.mrf.mxu0 }
 0x6db   : > { %v9191_v2 = vsel %vm4946_vm11, %v32927_v17, -inf  ;;  %v8826_v44 = vadd.f32 %v8825_v8, %v8734_v1 }
 0x6dc   : > { %9192 = vmax.xlane.f32.xlu1 %v9191_v2 }
 0x6df   : > { %v29162_v31 = vpop.f32.mrf.mxu1 }
 0x6e0   : > { %v29141_v28 = vpop.f32.mrf.mxu0 }
 0x6e1   : > { %v8915_v35 = vadd.f32 %v29141_v28, %v8832_v24  ;;  %v9153_v4 = vpop.f32.mrf.mxu1 }
 0x6e2   : > { %v8907_v9 = vpop.f32.mrf.mxu0 }
 0x6e3   : > { %v8998_v21 = vadd.f32 %v29148_v18, %v8915_v35  ;;  %v8908_v55 = vadd.f32 %v8907_v9, %v8826_v44 }
 0x6e5   : > { %v8990_v54 = vadd.f32 %v8989_v57, %v8908_v55 }
 0x6e8   : > { %v29155_v19 = vpop.f32.mrf.mxu0 }
 0x6e9   : > { %v9081_v59 = vadd.f32 %v29155_v19, %v8998_v21 }
 0x6ea   : > { %v9074_v61 = vpop.f32.mrf.mxu0 }
 0x6eb   : > { %v9160_v38 = vadd.f32 %v29162_v31, %v9081_v59  ;;  %v9075_v2 = vadd.f32 %v9074_v61, %v8990_v54 }
 0x6ed   : > { %9783 = vrot.lane.b32.xlu1 %v32116_v52, %s31469_s3  ;;  %v9170_v41 = vmul.f32 0.35355338, %v9160_v38  ;;  %v9154_v28 = vadd.f32 %v9153_v4, %v9075_v2 }
 0x6ef   : > { %v32934_v46 = vadd.f32 %v9170_v41, %v31770_v5  ;;  %v9169_v24 = vmul.f32 0.35355338, %v9154_v28 }
 0x6f1   : > { %v9200_v48 = vsel %vm4946_vm11, %v32934_v46, -inf  ;;  %v32941_v35 = vadd.f32 %v9169_v24, %v31770_v5 }
 0x6f2   : > { %9201 = vmax.xlane.f32.xlu0 %v9200_v48 }
 0x6f3   : > { %v9197_v18 = vsel %vm4946_vm11, %v32941_v35, -inf }
 0x708   : > { %9267 = vrot.lane.b32.xlu0 %v32112_v13, %s31469_s3 }
 0x711   : > { %9198 = vmax.xlane.f32.xlu1 %v9197_v18 }
 0x733   : > { %v9184_v21 = vpop.xlane.xlu1 %9183 }
 0x734   : > { %v9204_v1 = vsub.f32 %v32902_v7, %v9184_v21 }
 0x735   : > { %v9181_v8 = vpop.xlane.xlu0 %9180 }
 0x736   : > { %v9213_v9 = vmul.f32 1.442695, %v9204_v1  ;;  %v9203_v57 = vsub.f32 %v32907_v42, %v9181_v8 }
 0x738   : > { %31039 = vpow2.f32 %v9213_v9  ;;  %v9211_v19 = vmul.f32 1.442695, %v9203_v57 }
 0x73a   : > { %31041 = vpow2.f32 %v9211_v19 }
 0x745   : > { %v32947_v59 = vpop.eup %31039 }
 0x746   : > { %v9230_v31 = vsel %vm4946_vm11, %v32947_v59, 0.0 }
 0x747   : > { %v32951_v38 = vpop.eup %31041  ;;  %9231 = vadd.xlane.f32.xlu0 %v9230_v31 }
 0x748   : > { %v9227_v41 = vsel %vm4946_vm11, %v32951_v38, 0.0 }
 0x749   : > { %9228 = vadd.xlane.f32.xlu1 %v9227_v41 }
 0x74b   : > { %v9190_v7 = vpop.xlane.xlu0 %9189 }
 0x74c   : > { %v9206_v48 = vsub.f32 %v32912_v0, %v9190_v7 }
 0x74e   : > { %v9217_v44 = vmul.f32 1.442695, %v9206_v48 }
 0x74f   : > { %v9187_v42 = vpop.xlane.xlu0 %9186 }
 0x750   : > { %31043 = vpow2.f32 %v9217_v44  ;;  %v9205_v55 = vsub.f32 %v32917_v12, %v9187_v42 }
 0x752   : > { %v9215_v61 = vmul.f32 1.442695, %v9205_v55 }
 0x754   : > { %31045 = vpow2.f32 %v9215_v61 }
 0x75d   : > { %v32957_v54 = vpop.eup %31043 }
 0x75e   : > { %v9236_v2 = vsel %vm4946_vm11, %v32957_v54, 0.0 }
 0x75f   : > { %9237 = vadd.xlane.f32.xlu0 %v9236_v2 }
 0x761   : > { %v32961_v4 = vpop.eup %31045 }
 0x762   : > { %v9233_v28 = vsel %vm4946_vm11, %v32961_v4, 0.0 }
 0x763   : > { %v9196_v24 = vpop.xlane.xlu0 %9195  ;;  %9234 = vadd.xlane.f32.xlu1 %v9233_v28 }
 0x764   : > { %v9208_v0 = vsub.f32 %v32922_v36, %v9196_v24 }
 0x765   : > { %v9193_v8 = vpop.xlane.xlu1 %9192 }
 0x766   : > { %v9221_v18 = vmul.f32 1.442695, %v9208_v0  ;;  %v9207_v9 = vsub.f32 %v32927_v17, %v9193_v8 }
 0x768   : > { %31047 = vpow2.f32 %v9221_v18  ;;  %v9219_v31 = vmul.f32 1.442695, %v9207_v9 }
 0x769   : > { %v9784_v28 = vpop.permute.xlu1 %9783 }
 0x76a   : > { %31049 = vpow2.f32 %v9219_v31  ;;  %v33019_v9 = vand.u32 4294901760, %v9784_v28 }
 0x774   : > { %10297 = vrot.lane.b32.xlu1 %v32133_v11, %s31469_s3 }
 0x775   : > { %v32968_v12 = vpop.eup %31047 }
 0x776   : > { %v9242_v21 = vsel %vm4946_vm11, %v32968_v12, 0.0 }
 0x777   : > { %9243 = vadd.xlane.f32.xlu0 %v9242_v21  ;;  %v32990_v44 = vpop.eup %31049 }
 0x778   : > { %v9239_v55 = vsel %vm4946_vm11, %v32990_v44, 0.0 }
 0x77b   : > { %v9202_v1 = vpop.xlane.xlu0 %9201 }
 0x77c   : > { %v9210_v48 = vsub.f32 %v32934_v46, %v9202_v1 }
 0x77e   : > { %v9225_v42 = vmul.f32 1.442695, %v9210_v48  ;;  %v33029_v48 = vsub.f32 %v9784_v28, %v33019_v9 }
 0x77f   : > { %v9268_v57 = vpop.permute.xlu0 %9267 }
 0x780   : > { %v32973_v19 = vand.u32 4294901760, %v9268_v57  ;;  %31051 = vpow2.f32 %v9225_v42  ;;  %v33039_v28 = vand.u32 4294901760, %v33029_v48 }
 0x782   : > { %v32976_v36 = vsub.f32 %v9268_v57, %v32973_v19  ;;  %29165 = vmatprep.subr.mxu0 %v32973_v19 }
 0x783   : > { %29166 = vmatpush3.msra.mxu0 %v32973_v19 }
 0x784   : > { %29177 = vmatprep.subr.mxu0 %v32822_v50  ;;  %v32982_v41 = vand.u32 4294901760, %v32976_v36 }
 0x786   : > { %v9405_v7 = vsub.f32 %v32976_v36, %v32982_v41 }
 0x788   : > { %v9406_v17 = vand.u32 4294901760, %v9405_v7 }
 0x78a   : > { %29172 = vmatprep.subr.mxu1 %v9406_v17 }
 0x78b   : > { %29173 = vmatpush3.msra.mxu1 %v9406_v17 }
 0x78c   : > { %29184 = vmatprep.subr.mxu1 %v32816_v6 }
 0x78d   : > { %9781 = vrot.lane.b32.xlu0 %v32131_v10, %s31469_s3  ;;  %v32994_v61 = vpop.eup %31051 }
 0x78e   : > { %v9248_v2 = vsel %vm4946_vm11, %v32994_v61, 0.0 }
 0x798   : > { %9240 = vadd.xlane.f32.xlu1 %v9239_v55 }
 0x79a   : > { %v9199_v24 = vpop.xlane.xlu1 %9198 }
 0x79b   : > { %v9209_v46 = vsub.f32 %v32941_v35, %v9199_v24 }
 0x79d   : > { %v9223_v0 = vmul.f32 1.442695, %v9209_v46 }
 0x79f   : > { %31053 = vpow2.f32 %v9223_v0 }
 0x7a9   : > { %10295 = vrot.lane.b32.xlu1 %v32143_v25, %s31469_s3 }
 0x7ac   : > { %9249 = vadd.xlane.f32.xlu0 %v9248_v2  ;;  %v33005_v18 = vpop.eup %31053 }
 0x7ad   : > { %v9245_v21 = vsel %vm4946_vm11, %v33005_v18, 0.0 }
 0x7c2   : > { %10811 = vrot.lane.b32.xlu0 %v32145_v26, %s31469_s3 }
 0x7c6   : > { %12871 = vrot.lane.b32.xlu0 %v32110_v47, %s31470_s9 }
 0x7ca   : > { %12865 = vrot.lane.b32.xlu0 %v32112_v13, %s31471_s26 }
 0x7cd   : > { %9246 = vadd.xlane.f32.xlu1 %v9245_v21 }
 0x7ce   : > { %13389 = vrot.lane.b32.xlu0 %v32116_v52, %s31470_s9 }
 0x7d0   : > { %v9232_v35 = vpop.xlane.xlu0 %9231 }
 0x7d1   : > { %31055 = vrcp.f32 %v9232_v35  ;;  %v9912_v35 = vsub.f32 %v33029_v48, %v33039_v28 }
 0x7d2   : > { %13383 = vrot.lane.b32.xlu0 %v32131_v10, %s31471_s26  ;;  %v9229_v1 = vpop.xlane.xlu1 %9228 }
 0x7d3   : > { %31057 = vrcp.f32 %v9229_v1 }
 0x7d6   : > { %13907 = vrot.lane.b32.xlu0 %v32133_v11, %s31470_s9 }
 0x7da   : > { %13901 = vrot.lane.b32.xlu0 %v32143_v25, %s31471_s26 }
 0x7de   : > { %v31056_v8 = vpop.eup %31055  ;;  %14425 = vrot.lane.b32.xlu0 %v32145_v26, %s31470_s9  ;;  %10809 = vrot.lane.b32.xlu1 %v32151_v29, %s31469_s3  ;;  %s23071_s3 = scalar_lea.vmem %s36120_s15, %s31896_s1 }
 0x7df   : > { %v9260_v57 = vmul.f32 %v31056_v8, %v32947_v59 }
 0x7e0   : > { %v31058_v31 = vpop.eup %31057 }
 0x7e1   : > { %v9259_v7 = vmul.f32 %v31058_v31, %v32951_v38  ;;  %v9277_v17 = vsel %vm4946_vm11, %v9260_v57, 0  ;;  %v9913_v31 = vand.u32 4294901760, %v9912_v35 }
 0x7e2   : > { %14419 = vrot.lane.b32.xlu0 %v32151_v29, %s31471_s26  ;;  %12869 = vrot.lane.b32.xlu1 %v32112_v13, %s31470_s9  ;;  %v9356_v42 = vand.u32 4294901760, %v9277_v17 }
 0x7e3   : > { %v9274_v55 = vsel %vm4946_vm11, %v9259_v7, 0 }
 0x7e4   : > { %v9346_v2 = vand.u32 4294901760, %v9274_v55  ;;  %v9357_v24 = vsub.f32 %v9277_v17, %v9356_v42 }
 0x7e6   : > { %12867 = vrot.lane.b32.xlu1 %v32110_v47, %s31471_s26  ;;  %29174 = vmatprep.mubr.f32.mxu1 %v9346_v2  ;;  %v9347_v59 = vsub.f32 %v9274_v55, %v9346_v2  ;;  %v9358_v38 = vand.u32 4294901760, %v9357_v24 }
 0x7e7   : > { %29175 = vmatmul.mubr.f32.vlgmr.msra.gmra.mxu1 %v9356_v42 }
 0x7e8   : > { %29185 = vmatpush3.msra.mxu1 %v32816_v6  ;;  %v9238_v46 = vpop.xlane.xlu0 %9237  ;;  %v9348_v0 = vand.u32 4294901760, %v9347_v59  ;;  %v9359_v1 = vsub.f32 %v9357_v24, %v9358_v38 }
 0x7e9   : > { %31059 = vrcp.f32 %v9238_v46  ;;  %29186 = vmatprep.subr.mxu1 %v32973_v19 }
 0x7ea   : > { %29187 = vmatpush3.msra.mxu1 %v32973_v19  ;;  %13387 = vrot.lane.b32.xlu1 %v32131_v10, %s31470_s9  ;;  %v9349_v21 = vsub.f32 %v9347_v59, %v9348_v0  ;;  %v9360_v7 = vand.u32 4294901760, %v9359_v1 }
 0x7eb   : > { %29188 = vmatprep.mubr.f32.mxu1 %v9348_v0  ;;  %29198 = vmatprep.subr.mxu1 %v32816_v6 }
 0x7ec   : > { %29189 = vmatmul.mubr.f32.vlgmr.msra.gmra.mxu1 %v9358_v38  ;;  %v9235_v8 = vpop.xlane.xlu1 %9234  ;;  %v9350_v57 = vand.u32 4294901760, %v9349_v21 }
 0x7ed   : > { %29199 = vmatpush3.msra.mxu1 %v32816_v6  ;;  %29202 = vmatprep.mubr.f32.mxu1 %v9346_v2  ;;  %31061 = vrcp.f32 %v9235_v8 }
 0x7ee   : > { %29200 = vmatprep.subr.mxu1 %v32973_v19  ;;  %13385 = vrot.lane.b32.xlu1 %v32116_v52, %s31471_s26 }
 0x7ef   : > { %29201 = vmatpush3.msra.mxu1 %v32973_v19  ;;  %29167 = vmatprep.mubr.f32.mxu0 %v9350_v57 }
 0x7f0   : > { %29212 = vmatprep.subr.mxu1 %v9913_v31  ;;  %29168 = vmatmul.mubr.f32.vlgmr.msra.gmra.mxu0 %v9360_v7  ;;  %v10298_v0 = vpop.permute.xlu1 %10297 }
 0x7f1   : > { %29178 = vmatpush3.msra.mxu0 %v32822_v50  ;;  %29203 = vmatmul.mubr.f32.vlgmr.msra.gmra.mxu1 %v9356_v42  ;;  %v33077_v57 = vand.u32 4294901760, %v10298_v0 }
 0x7f2   : > { %29213 = vmatpush3.msra.mxu1 %v9913_v31  ;;  %29179 = vmatprep.subr.mxu0 %v32976_v36 }
 0x7f3   : > { %29181 = vmatprep.mubr.f32.mxu0 %v9347_v59  ;;  %29180 = vmatpush3.msra.mxu0 %v32976_v36 }
 0x7f4   : > { %13905 = vrot.lane.b32.xlu1 %v32143_v25, %s31470_s9  ;;  %29191 = vmatprep.subr.mxu0 %v32833_v15 }
 0x7f5   : > { %29182 = vmatmul.mubr.f32.vlgmr.msra.gmra.mxu0 %v9357_v24 }
 0x7f6   : > { %v31060_v6 = vpop.eup %31059  ;;  %29192 = vmatpush3.msra.mxu0 %v32833_v15  ;;  %29195 = vmatprep.mubr.f32.mxu0 %v9346_v2 }
 0x7f7   : > { %v9262_v19 = vmul.f32 %v31060_v6, %v32957_v54  ;;  %29193 = vmatprep.subr.mxu0 %v32982_v41  ;;  %v33082_v6 = vsub.f32 %v10298_v0, %v33077_v57 }
 0x7f8   : > { %29194 = vmatpush3.msra.mxu0 %v32982_v41  ;;  %13903 = vrot.lane.b32.xlu1 %v32133_v11, %s31471_s26 }
 0x7f9   : > { %29205 = vmatprep.subr.mxu0 %v33019_v9  ;;  %29196 = vmatmul.mubr.f32.vlgmr.msra.gmra.mxu0 %v9356_v42  ;;  %v9791_v50 = vsel %vm4946_vm11, %v9262_v19, 0 }
 0x7fa   : > { %v31062_v36 = vpop.eup %31061  ;;  %29206 = vmatpush3.msra.mxu0 %v33019_v9  ;;  %v9870_v17 = vand.u32 4294901760, %v9791_v50 }
 0x7fb   : > { %v9261_v15 = vmul.f32 %v31062_v36, %v32961_v4 }
 0x7fc   : > { %14423 = vrot.lane.b32.xlu1 %v32151_v29, %s31470_s9  ;;  %v9871_v54 = vsub.f32 %v9791_v50, %v9870_v17 }
 0x7fd   : > { %v9788_v41 = vsel %vm4946_vm11, %v9261_v15, 0 }
 0x7fe   : > { %v9860_v55 = vand.u32 4294901760, %v9788_v41  ;;  %v9872_v2 = vand.u32 4294901760, %v9871_v54 }
 0x800   : > { %14421 = vrot.lane.b32.xlu1 %v32145_v26, %s31471_s26  ;;  %v9244_v42 = vpop.xlane.xlu0 %9243  ;;  %29216 = vmatprep.mubr.f32.mxu1 %v9860_v55  ;;  %v9861_v24 = vsub.f32 %v9788_v41, %v9860_v55  ;;  %v9873_v38 = vsub.f32 %v9871_v54, %v9872_v2  ;;  %s22895_s26 = scalar_lea.vmem %s36119_s14, %s31435_s25 }
 0x801   : > { %31063 = vrcp.f32 %v9244_v42 }
 0x802   : > { %v9862_v59 = vand.u32 4294901760, %v9861_v24  ;;  %v9874_v8 = vand.u32 4294901760, %v9873_v38 }
 0x804   : > { %15043 = vrot.lane.b32.xlu1 %v32110_v47, %s31472_s23  ;;  %v9782_v4 = vpop.permute.xlu0 %9781  ;;  %v9863_v46 = vsub.f32 %v9861_v24, %v9862_v59 }
 0x805   : > { %v9825_v21 = vand.u32 4294901760, %v9782_v4 }
 0x806   : > { %v9864_v35 = vand.u32 4294901760, %v9863_v46 }
 0x807   : > { %v9917_v1 = vsub.f32 %v9782_v4, %v9825_v21  ;;  %29207 = vmatprep.subr.mxu0 %v9825_v21 }
 0x808   : > { %29208 = vmatpush3.msra.mxu0 %v9825_v21  ;;  %29209 = vmatprep.mubr.f32.mxu0 %v9864_v35 }
 0x809   : > { %29210 = vmatmul.mubr.f32.vlgmr.msra.gmra.mxu0 %v9874_v8  ;;  %29219 = vmatprep.subr.mxu0 %v33029_v48  ;;  %v9918_v31 = vand.u32 4294901760, %v9917_v1 }
 0x80a   : > { %29220 = vmatpush3.msra.mxu0 %v33029_v48  ;;  %29223 = vmatprep.mubr.f32.mxu0 %v9861_v24  ;;  %v33087_v48 = vand.u32 4294901760, %v33082_v6 }
 0x80b   : > { %29221 = vmatprep.subr.mxu0 %v9917_v1  ;;  %v9919_v7 = vsub.f32 %v9917_v1, %v9918_v31 }
 0x80c   : > { %29222 = vmatpush3.msra.mxu0 %v9917_v1 }
 0x80d   : > { %29224 = vmatmul.mubr.f32.vlgmr.msra.gmra.mxu0 %v9871_v54  ;;  %29233 = vmatprep.subr.mxu0 %v33039_v28  ;;  %v9920_v19 = vand.u32 4294901760, %v9919_v7 }
 0x80e   : > { %29234 = vmatpush3.msra.mxu0 %v33039_v28  ;;  %29237 = vmatprep.mubr.f32.mxu0 %v9860_v55  ;;  %v10426_v28 = vsub.f32 %v33082_v6, %v33087_v48  ;;  %v31064_v15 = vpop.eup %31063 }
 0x80f   : > { %29214 = vmatprep.subr.mxu1 %v9920_v19  ;;  %29235 = vmatprep.subr.mxu0 %v9918_v31  ;;  %v9264_v41 = vmul.f32 %v31064_v15, %v32968_v12 }
 0x810   : > { %29215 = vmatpush3.msra.mxu1 %v9920_v19  ;;  %29236 = vmatpush3.msra.mxu0 %v9918_v31  ;;  %v10427_v50 = vand.u32 4294901760, %v10426_v28 }
 0x811   : > { %29217 = vmatmul.mubr.f32.vlgmr.msra.gmra.mxu1 %v9870_v17  ;;  %29226 = vmatprep.subr.mxu1 %v33019_v9 }
 0x812   : > { %29238 = vmatmul.mubr.f32.vlgmr.msra.gmra.mxu0 %v9870_v17  ;;  %29247 = vmatprep.subr.mxu0 %v33077_v57 }
 0x813   : > { %29227 = vmatpush3.msra.mxu1 %v33019_v9  ;;  %29230 = vmatprep.mubr.f32.mxu1 %v9862_v59 }
 0x814   : > { %29248 = vmatpush3.msra.mxu0 %v33077_v57  ;;  %29228 = vmatprep.subr.mxu1 %v9825_v21 }
 0x815   : > { %29229 = vmatpush3.msra.mxu1 %v9825_v21 }
 0x816   : > { %29231 = vmatmul.mubr.f32.vlgmr.msra.gmra.mxu1 %v9872_v2  ;;  %29240 = vmatprep.subr.mxu1 %v33019_v9  ;;  %v10305_v2 = vsel %vm4946_vm11, %v9264_v41, 0 }
 0x817   : > { %29241 = vmatpush3.msra.mxu1 %v33019_v9  ;;  %29244 = vmatprep.mubr.f32.mxu1 %v9860_v55  ;;  %v10384_v59 = vand.u32 4294901760, %v10305_v2 }
 0x818   : > { %29242 = vmatprep.subr.mxu1 %v9825_v21 }
 0x819   : > { %29243 = vmatpush3.msra.mxu1 %v9825_v21  ;;  %v10385_v46 = vsub.f32 %v10305_v2, %v10384_v59 }
 0x81a   : > { %29245 = vmatmul.mubr.f32.vlgmr.msra.gmra.mxu1 %v9870_v17  ;;  %29254 = vmatprep.subr.mxu1 %v10427_v50 }
 0x81b   : > { %29255 = vmatpush3.msra.mxu1 %v10427_v50  ;;  %v10386_v21 = vand.u32 4294901760, %v10385_v46 }
 0x81d   : > { %v10387_v31 = vsub.f32 %v10385_v46, %v10386_v21 }
 0x821   : > { %v9241_v36 = vpop.xlane.xlu1 %9240 }
 0x822   : > { %31065 = vrcp.f32 %v9241_v36  ;;  %v10388_v36 = vand.u32 4294901760, %v10387_v31 }
 0x825   : > { %v10296_v54 = vpop.permute.xlu1 %10295 }
 0x826   : > { %v10339_v42 = vand.u32 4294901760, %v10296_v54 }
 0x828   : > { %v10431_v24 = vsub.f32 %v10296_v54, %v10339_v42  ;;  %29249 = vmatprep.subr.mxu0 %v10339_v42 }
 0x829   : > { %29250 = vmatpush3.msra.mxu0 %v10339_v42 }
 0x82a   : > { %29261 = vmatprep.subr.mxu0 %v33082_v6  ;;  %v10432_v9 = vand.u32 4294901760, %v10431_v24 }
 0x82c   : > { %v10433_v55 = vsub.f32 %v10431_v24, %v10432_v9 }
 0x82e   : > { %v10434_v17 = vand.u32 4294901760, %v10433_v55  ;;  %v2862_v55 = vld [vmem:[%s33126_s6 + $0x8] sm:$0xff] }
 0x82f   : > { %v31066_v38 = vpop.eup %31065 }
 0x830   : > { %29256 = vmatprep.subr.mxu1 %v10434_v17  ;;  %v9263_v4 = vmul.f32 %v31066_v38, %v32990_v44 }
 0x831   : > { %29257 = vmatpush3.msra.mxu1 %v10434_v17 }
 0x832   : > { %29268 = vmatprep.subr.mxu1 %v33077_v57  ;;  %v10302_v12 = vsel %vm4946_vm11, %v9263_v4, 0 }
 0x833   : > { %v10374_v0 = vand.u32 4294901760, %v10302_v12 }
 0x835   : > { %v9250_v35 = vpop.xlane.xlu0 %9249  ;;  %29258 = vmatprep.mubr.f32.mxu1 %v10374_v0  ;;  %v10375_v1 = vsub.f32 %v10302_v12, %v10374_v0 }
 0x836   : > { %29259 = vmatmul.mubr.f32.vlgmr.msra.gmra.mxu1 %v10384_v59  ;;  %31067 = vrcp.f32 %v9250_v35 }
 0x837   : > { %29269 = vmatpush3.msra.mxu1 %v33077_v57  ;;  %v10376_v8 = vand.u32 4294901760, %v10375_v1 }
 0x838   : > { %29270 = vmatprep.subr.mxu1 %v10339_v42 }
 0x839   : > { %29271 = vmatpush3.msra.mxu1 %v10339_v42  ;;  %v10812_v7 = vpop.permute.xlu0 %10811  ;;  %29272 = vmatprep.mubr.f32.mxu1 %v10376_v8  ;;  %v10377_v44 = vsub.f32 %v10375_v1, %v10376_v8 }
 0x83a   : > { %v33104_v19 = vand.u32 4294901760, %v10812_v7  ;;  %29282 = vmatprep.subr.mxu1 %v33077_v57  ;;  %29273 = vmatmul.mubr.f32.vlgmr.msra.gmra.mxu1 %v10386_v21 }
 0x83b   : > { %29283 = vmatpush3.msra.mxu1 %v33077_v57  ;;  %29286 = vmatprep.mubr.f32.mxu1 %v10374_v0  ;;  %v10378_v28 = vand.u32 4294901760, %v10377_v44 }
 0x83c   : > { %v33109_v50 = vsub.f32 %v10812_v7, %v33104_v19  ;;  %29284 = vmatprep.subr.mxu1 %v10339_v42 }
 0x83d   : > { %29285 = vmatpush3.msra.mxu1 %v10339_v42  ;;  %29251 = vmatprep.mubr.f32.mxu0 %v10378_v28 }
 0x83e   : > { %29252 = vmatmul.mubr.f32.vlgmr.msra.gmra.mxu0 %v10388_v36  ;;  %29287 = vmatmul.mubr.f32.vlgmr.msra.gmra.mxu1 %v10384_v59  ;;  %v33112_v15 = vand.u32 4294901760, %v33109_v50 }
 0x83f   : > { %29262 = vmatpush3.msra.mxu0 %v33082_v6  ;;  %29265 = vmatprep.mubr.f32.mxu0 %v10375_v1 }
 0x840   : > { %29263 = vmatprep.subr.mxu0 %v10431_v24  ;;  %v10940_v57 = vsub.f32 %v33109_v50, %v33112_v15 }
 0x841   : > { %29264 = vmatpush3.msra.mxu0 %v10431_v24 }
 0x842   : > { %29275 = vmatprep.subr.mxu0 %v33087_v48  ;;  %29266 = vmatmul.mubr.f32.vlgmr.msra.gmra.mxu0 %v10385_v46  ;;  %v10941_v54 = vand.u32 4294901760, %v10940_v57 }
 0x843   : > { %29276 = vmatpush3.msra.mxu0 %v33087_v48  ;;  %29279 = vmatprep.mubr.f32.mxu0 %v10374_v0  ;;  %v31068_v41 = vpop.eup %31067 }
 0x844   : > { %29277 = vmatprep.subr.mxu0 %v10432_v9  ;;  %29296 = vmatprep.subr.mxu1 %v10941_v54  ;;  %v9266_v42 = vmul.f32 %v31068_v41, %v32994_v61  ;;  %v33131_v61 = vand.u32 4294901760, %v2862_v55 }
 0x845   : > { %29278 = vmatpush3.msra.mxu0 %v10432_v9  ;;  %29297 = vmatpush3.msra.mxu1 %v10941_v54 }
 0x846   : > { %29289 = vmatprep.subr.mxu0 %v33104_v19  ;;  %29280 = vmatmul.mubr.f32.vlgmr.msra.gmra.mxu0 %v10384_v59  ;;  %v10819_v9 = vsel %vm4946_vm11, %v9266_v42, 0  ;;  %v33135_v21 = vsub.f32 %v2862_v55, %v33131_v61 }
 0x847   : > { %29290 = vmatpush3.msra.mxu0 %v33104_v19  ;;  %v10898_v38 = vand.u32 4294901760, %v10819_v9 }
 0x848   : > { %v33140_v31 = vand.u32 4294901760, %v33135_v21 }
 0x849   : > { %v10899_v0 = vsub.f32 %v10819_v9, %v10898_v38 }
 0x84a   : > { %v11527_v28 = vsub.f32 %v33135_v21, %v33140_v31 }
 0x84b   : > { %v10900_v8 = vand.u32 4294901760, %v10899_v0 }
 0x84d   : > { %v10901_v44 = vsub.f32 %v10899_v0, %v10900_v8 }
 0x84f   : > { %v10902_v54 = vand.u32 4294901760, %v10901_v44 }
 0x856   : > { %v9247_v6 = vpop.xlane.xlu1 %9246 }
 0x857   : > { %31069 = vrcp.f32 %v9247_v6  ;;  %v11528_v6 = vand.u32 4294901760, %v11527_v28 }
 0x85a   : > { %v10810_v24 = vpop.permute.xlu1 %10809 }
 0x85b   : > { %v10853_v2 = vand.u32 4294901760, %v10810_v24 }
 0x85d   : > { %v10945_v48 = vsub.f32 %v10810_v24, %v10853_v2  ;;  %29291 = vmatprep.subr.mxu0 %v10853_v2 }
 0x85e   : > { %29292 = vmatpush3.msra.mxu0 %v10853_v2 }
 0x85f   : > { %29303 = vmatprep.subr.mxu0 %v33109_v50  ;;  %v10946_v59 = vand.u32 4294901760, %v10945_v48 }
 0x861   : > { %v10947_v17 = vsub.f32 %v10945_v48, %v10946_v59 }
 0x863   : > { %v10948_v4 = vand.u32 4294901760, %v10947_v17 }
 0x864   : > { %v31070_v46 = vpop.eup %31069 }
 0x865   : > { %29298 = vmatprep.subr.mxu1 %v10948_v4  ;;  %v9265_v12 = vmul.f32 %v31070_v46, %v33005_v18 }
 0x866   : > { %29299 = vmatpush3.msra.mxu1 %v10948_v4 }
 0x867   : > { %29310 = vmatprep.subr.mxu1 %v33104_v19  ;;  %v10816_v35 = vsel %vm4946_vm11, %v9265_v12, 0 }
 0x868   : > { %v10888_v1 = vand.u32 4294901760, %v10816_v35 }
 0x86a   : > { %29300 = vmatprep.mubr.f32.mxu1 %v10888_v1  ;;  %v10889_v7 = vsub.f32 %v10816_v35, %v10888_v1 }
 0x86b   : > { %29301 = vmatmul.mubr.f32.vlgmr.msra.gmra.mxu1 %v10898_v38 }
 0x86c   : > { %29311 = vmatpush3.msra.mxu1 %v33104_v19  ;;  %v10890_v18 = vand.u32 4294901760, %v10889_v7 }
 0x86d   : > { %29312 = vmatprep.subr.mxu1 %v10853_v2 }
 0x86e   : > { %29313 = vmatpush3.msra.mxu1 %v10853_v2  ;;  %29314 = vmatprep.mubr.f32.mxu1 %v10890_v18  ;;  %v10891_v36 = vsub.f32 %v10889_v7, %v10890_v18 }
 0x86f   : > { %29324 = vmatprep.subr.mxu1 %v33104_v19  ;;  %29315 = vmatmul.mubr.f32.vlgmr.msra.gmra.mxu1 %v10900_v8 }
 0x870   : > { %29325 = vmatpush3.msra.mxu1 %v33104_v19  ;;  %29328 = vmatprep.mubr.f32.mxu1 %v10888_v1  ;;  %v10892_v57 = vand.u32 4294901760, %v10891_v36 }
 0x871   : > { %29326 = vmatprep.subr.mxu1 %v10853_v2 }
 0x872   : > { %29327 = vmatpush3.msra.mxu1 %v10853_v2  ;;  %29293 = vmatprep.mubr.f32.mxu0 %v10892_v57 }
 0x873   : > { %29294 = vmatmul.mubr.f32.vlgmr.msra.gmra.mxu0 %v10902_v54  ;;  %29329 = vmatmul.mubr.f32.vlgmr.msra.gmra.mxu1 %v10898_v38 }
 0x874   : > { %29304 = vmatpush3.msra.mxu0 %v33109_v50  ;;  %29307 = vmatprep.mubr.f32.mxu0 %v10889_v7 }
 0x875   : > { %29305 = vmatprep.subr.mxu0 %v10945_v48  ;;  %29345 = vmatprep.subr.mxu1 %v11528_v6 }
 0x876   : > { %29306 = vmatpush3.msra.mxu0 %v10945_v48  ;;  %29346 = vmatpush3.msra.mxu1 %v11528_v6 }
 0x877   : > { %29317 = vmatprep.subr.mxu0 %v33112_v15  ;;  %29308 = vmatmul.mubr.f32.vlgmr.msra.gmra.mxu0 %v10899_v0 }
 0x878   : > { %29318 = vmatpush3.msra.mxu0 %v33112_v15  ;;  %29321 = vmatprep.mubr.f32.mxu0 %v10888_v1 }
 0x879   : > { %29319 = vmatprep.subr.mxu0 %v10946_v59  ;;  %29373 = vmatprep.subr.mxu1 %v33131_v61 }
 0x87a   : > { %29320 = vmatpush3.msra.mxu0 %v10946_v59 }
 0x87b   : > { %29322 = vmatmul.mubr.f32.vlgmr.msra.gmra.mxu0 %v10898_v38  ;;  %29331 = vmatprep.subr.mxu0 %v33131_v61 }
 0x87c   : > { %29332 = vmatpush3.msra.mxu0 %v33131_v61 }
 0x87d   : > { %29359 = vmatprep.subr.mxu0 %v33135_v21 }
 0x8a7   : > { %v29176_v19 = vpop.f32.mrf.mxu1 }
 0x8a9   : > { %v9443_v50 = vpop.f32.mrf.mxu1 }
 0x8ac   : > { %v29190_v42 = vpop.f32.mrf.mxu1 }
 0x8ae   : > { %v9607_v48 = vpop.f32.mrf.mxu1 }
 0x8b0   : > { %v29169_v41 = vpop.f32.mrf.mxu0 }
 0x8b1   : > { %v9450_v2 = vadd.f32 %v29176_v19, %v29169_v41  ;;  %v29204_v38 = vpop.f32.mrf.mxu1 }
 0x8b2   : > { %v9352_v24 = vpop.f32.mrf.mxu0 }
 0x8b3   : > { %v9444_v9 = vadd.f32 %v9443_v50, %v9352_v24  ;;  %v9771_v7 = vpop.f32.mrf.mxu1 }
 0x8b5   : > { %v29183_v15 = vpop.f32.mrf.mxu0 }
 0x8b6   : > { %v9533_v55 = vadd.f32 %v29183_v15, %v9450_v2 }
 0x8b7   : > { %v9525_v17 = vpop.f32.mrf.mxu0 }
 0x8b8   : > { %v9526_v4 = vadd.f32 %v9525_v17, %v9444_v9  ;;  %v9616_v59 = vadd.f32 %v29190_v42, %v9533_v55 }
 0x8b9   : > { %v29197_v46 = vpop.f32.mrf.mxu0 }
 0x8ba   : > { %v9699_v12 = vadd.f32 %v29197_v46, %v9616_v59  ;;  %v9608_v0 = vadd.f32 %v9607_v48, %v9526_v4 }
 0x8bb   : > { %v9692_v35 = vpop.f32.mrf.mxu0 }
 0x8bc   : > { %v9778_v1 = vadd.f32 %v29204_v38, %v9699_v12  ;;  %v9693_v8 = vadd.f32 %v9692_v35, %v9608_v0 }
 0x8be   : > { %v11327_v18 = vsel %vm2871_vm10, %v9778_v1, 0  ;;  %v9772_v44 = vadd.f32 %v9771_v7, %v9693_v8 }
 0x8bf   : > { %v33155_v28 = vand.u32 4294901760, %v11327_v18 }
 0x8c0   : > { %v11324_v36 = vsel %vm2871_vm10, %v9772_v44, 0 }
 0x8c1   : > { %v33159_v57 = vsub.f32 %v11327_v18, %v33155_v28  ;;  %v33161_v54 = vand.u32 4294901760, %v11324_v36 }
 0x8c3   : > { %v36149_v6 = vand.u32 4294901760, %v33159_v57  ;;  %v33165_v19 = vsub.f32 %v11324_v36, %v33161_v54  ;;  %29347 = vmatprep.mubr.f32.mxu1 %v33161_v54 }
 0x8c4   : > { %29348 = vmatmul.mubr.f32.vlgmr.msra.gmra.mxu1 %v33155_v28 }
 0x8c5   : > { %v36152_v50 = vand.u32 4294901760, %v33165_v19  ;;  %29374 = vmatpush3.msra.mxu1 %v33131_v61  ;;  %v11426_v41 = vsub.f32 %v33159_v57, %v36149_v6 }
 0x8c6   : > { %29401 = vmatprep.subr.mxu1 %v33131_v61 }
 0x8c7   : > { %v11416_v42 = vsub.f32 %v33165_v19, %v36152_v50  ;;  %v11427_v48 = vand.u32 4294901760, %v11426_v41 }
 0x8c9   : > { %v29211_v24 = vpop.f32.mrf.mxu0  ;;  %v11417_v2 = vand.u32 4294901760, %v11416_v42 }
 0x8cb   : > { %29333 = vmatprep.mubr.f32.mxu0 %v11417_v2  ;;  %v9866_v15 = vpop.f32.mrf.mxu0 }
 0x8cc   : > { %29334 = vmatmul.mubr.f32.vlgmr.msra.gmra.mxu0 %v11427_v48 }
 0x8cd   : > { %29360 = vmatpush3.msra.mxu0 %v33135_v21  ;;  %v29225_v9 = vpop.f32.mrf.mxu0 }
 0x8ce   : > { %29387 = vmatprep.subr.mxu0 %v33140_v31 }
 0x8cf   : > { %v10039_v17 = vpop.f32.mrf.mxu0 }
 0x8d1   : > { %v29218_v55 = vpop.f32.mrf.mxu1 }
 0x8d2   : > { %v9964_v4 = vadd.f32 %v29218_v55, %v29211_v24  ;;  %v29239_v12 = vpop.f32.mrf.mxu0 }
 0x8d3   : > { %v9957_v59 = vpop.f32.mrf.mxu1 }
 0x8d4   : > { %v9958_v38 = vadd.f32 %v9957_v59, %v9866_v15  ;;  %v10047_v46 = vadd.f32 %v29225_v9, %v9964_v4  ;;  %v10206_v44 = vpop.f32.mrf.mxu0 }
 0x8d6   : > { %v29232_v0 = vpop.f32.mrf.mxu1  ;;  %v10040_v35 = vadd.f32 %v10039_v17, %v9958_v38 }
 0x8d7   : > { %v10130_v1 = vadd.f32 %v29232_v0, %v10047_v46 }
 0x8d8   : > { %v10121_v8 = vpop.f32.mrf.mxu1 }
 0x8d9   : > { %v10122_v7 = vadd.f32 %v10121_v8, %v10040_v35  ;;  %v10213_v18 = vadd.f32 %v29239_v12, %v10130_v1 }
 0x8da   : > { %v29246_v36 = vpop.f32.mrf.mxu1 }
 0x8db   : > { %v10292_v41 = vadd.f32 %v29246_v36, %v10213_v18  ;;  %v10207_v21 = vadd.f32 %v10206_v44, %v10122_v7 }
 0x8dc   : > { %v10285_v42 = vpop.f32.mrf.mxu1 }
 0x8dd   : > { %v11333_v2 = vsel %vm2871_vm10, %v10292_v41, 0  ;;  %v10286_v48 = vadd.f32 %v10285_v42, %v10207_v21 }
 0x8de   : > { %v33181_v6 = vand.u32 4294901760, %v11333_v2 }
 0x8df   : > { %v11330_v24 = vsel %vm2871_vm10, %v10286_v48, 0 }
 0x8e0   : > { %v33185_v15 = vsub.f32 %v11333_v2, %v33181_v6  ;;  %v33187_v9 = vand.u32 4294901760, %v11330_v24 }
 0x8e2   : > { %v36150_v55 = vand.u32 4294901760, %v33185_v15  ;;  %v33191_v17 = vsub.f32 %v11330_v24, %v33187_v9  ;;  %29350 = vmatprep.mubr.f32.mxu1 %v33187_v9 }
 0x8e3   : > { %29351 = vmatmul.mubr.f32.gmra.mxu1 %v33181_v6 }
 0x8e4   : > { %v36151_v4 = vand.u32 4294901760, %v33191_v17  ;;  %v11446_v59 = vsub.f32 %v33185_v15, %v36150_v55 }
 0x8e6   : > { %v11436_v38 = vsub.f32 %v33191_v17, %v36151_v4  ;;  %v11447_v12 = vand.u32 4294901760, %v11446_v59 }
 0x8e8   : > { %v11437_v46 = vand.u32 4294901760, %v11436_v38 }
 0x8ea   : > { %29336 = vmatprep.mubr.f32.mxu0 %v11437_v46 }
 0x8eb   : > { %29337 = vmatmul.mubr.f32.gmra.mxu0 %v11447_v12 }
 0x8f6   : > { %v29260_v0 = vpop.f32.mrf.mxu1 }
 0x8f8   : > { %v10471_v35 = vpop.f32.mrf.mxu1 }
 0x8fa   : > { %v29274_v1 = vpop.f32.mrf.mxu1 }
 0x8fc   : > { %v10635_v44 = vpop.f32.mrf.mxu1 }
 0x8fe   : > { %v29253_v8 = vpop.f32.mrf.mxu0  ;;  %v29288_v24 = vpop.f32.mrf.mxu1 }
 0x8ff   : > { %v10478_v18 = vadd.f32 %v29260_v0, %v29253_v8 }
 0x900   : > { %v10380_v7 = vpop.f32.mrf.mxu0  ;;  %v10799_v50 = vpop.f32.mrf.mxu1 }
 0x901   : > { %v10472_v41 = vadd.f32 %v10471_v35, %v10380_v7 }
 0x902   : > { %v29267_v36 = vpop.f32.mrf.mxu0 }
 0x903   : > { %v10561_v21 = vadd.f32 %v29267_v36, %v10478_v18 }
 0x904   : > { %v10553_v42 = vpop.f32.mrf.mxu0 }
 0x905   : > { %v10554_v2 = vadd.f32 %v10553_v42, %v10472_v41  ;;  %v10644_v48 = vadd.f32 %v29274_v1, %v10561_v21  ;;  %v2861_v42 = vld [vmem:[%s33126_s6] sm:$0xff] }
 0x906   : > { %v29281_v55 = vpop.f32.mrf.mxu0 }
 0x907   : > { %v10727_v4 = vadd.f32 %v29281_v55, %v10644_v48  ;;  %v10636_v38 = vadd.f32 %v10635_v44, %v10554_v2 }
 0x908   : > { %v10720_v59 = vpop.f32.mrf.mxu0 }
 0x909   : > { %v10806_v46 = vadd.f32 %v29288_v24, %v10727_v4  ;;  %v10721_v12 = vadd.f32 %v10720_v59, %v10636_v38 }
 0x90b   : > { %v11339_v29 = vsel %vm2871_vm10, %v10806_v46, 0  ;;  %v10800_v47 = vadd.f32 %v10799_v50, %v10721_v12  ;;  %v33223_v46 = vand.u32 4294901760, %v2861_v42 }
 0x90c   : > { %v33203_v26 = vand.u32 4294901760, %v11339_v29 }
 0x90d   : > { %v11336_v0 = vsel %vm2871_vm10, %v10800_v47, 0  ;;  %v33226_v25 = vsub.f32 %v2861_v42, %v33223_v46 }
 0x90e   : > { %v33207_v35 = vsub.f32 %v11339_v29, %v33203_v26  ;;  %v33209_v8 = vand.u32 4294901760, %v11336_v0 }
 0x910   : > { %v33212_v1 = vsub.f32 %v11336_v0, %v33209_v8  ;;  %29353 = vmatprep.mubr.f32.mxu1 %v33209_v8  ;;  %v36159_v55 = vand.u32 4294901760, %v33207_v35 }
 0x911   : > { %29354 = vmatmul.mubr.f32.gmra.mxu1 %v33203_v26 }
 0x912   : > { %v11455_v50 = vand.u32 4294901760, %v33212_v1  ;;  %v11466_v47 = vsub.f32 %v33207_v35, %v36159_v55 }
 0x914   : > { %v11456_v29 = vsub.f32 %v33212_v1, %v11455_v50  ;;  %v11467_v7 = vand.u32 4294901760, %v11466_v47 }
 0x916   : > { %v11457_v4 = vand.u32 4294901760, %v11456_v29 }
 0x918   : > { %29339 = vmatprep.mubr.f32.mxu0 %v11457_v4 }
 0x919   : > { %29340 = vmatmul.mubr.f32.gmra.mxu0 %v11467_v7 }
 0x92b   : > { %v29302_v18 = vpop.f32.mrf.mxu1 }
 0x92d   : > { %v10985_v44 = vpop.f32.mrf.mxu1 }
 0x92f   : > { %v29316_v36 = vpop.f32.mrf.mxu1 }
 0x931   : > { %v11149_v48 = vpop.f32.mrf.mxu1 }
 0x933   : > { %v29295_v41 = vpop.f32.mrf.mxu0  ;;  %v29330_v29 = vpop.f32.mrf.mxu1 }
 0x934   : > { %v10992_v2 = vadd.f32 %v29302_v18, %v29295_v41 }
 0x935   : > { %v10894_v21 = vpop.f32.mrf.mxu0  ;;  %v11313_v18 = vpop.f32.mrf.mxu1 }
 0x936   : > { %v10986_v38 = vadd.f32 %v10985_v44, %v10894_v21  ;;  %v33230_v21 = vand.u32 4294901760, %v33226_v25 }
 0x937   : > { %v29309_v24 = vpop.f32.mrf.mxu0 }
 0x938   : > { %v11075_v59 = vadd.f32 %v29309_v24, %v10992_v2  ;;  %v12298_v42 = vsub.f32 %v33226_v25, %v33230_v21  ;;  %v36271_v24 = vand.u32 4294901760, %v33165_v19 }
 0x939   : > { %v11067_v12 = vpop.f32.mrf.mxu0 }
 0x93a   : > { %v11068_v0 = vadd.f32 %v11067_v12, %v10986_v38  ;;  %v11158_v55 = vadd.f32 %v29316_v36, %v11075_v59  ;;  %v12299_v12 = vand.u32 4294901760, %v12298_v42 }
 0x93b   : > { %v29323_v47 = vpop.f32.mrf.mxu0 }
 0x93c   : > { %v11241_v4 = vadd.f32 %v29323_v47, %v11158_v55  ;;  %v11150_v7 = vadd.f32 %v11149_v48, %v11068_v0  ;;  %v5726_v47 = vadd.f32 %v32853_v23, %v32839_v58  ;;  %v6240_v58 = vadd.f32 %v32873_v45, %v32875_v56 }
 0x93d   : > { %v11234_v10 = vpop.f32.mrf.mxu0 }
 0x93e   : > { %v11320_v11 = vadd.f32 %v29330_v29, %v11241_v4  ;;  %v11235_v13 = vadd.f32 %v11234_v10, %v11150_v7  ;;  %v36272_v4 = vand.u32 4294901760, %v33159_v57  ;;  %v36273_v7 = vand.u32 4294901760, %v33191_v17 }
 0x940   : > { %v11345_v41 = vsel %vm2871_vm10, %v11320_v11, 0  ;;  %v11314_v44 = vadd.f32 %v11313_v18, %v11235_v13  ;;  %v5212_v13 = vadd.f32 %v32764_v33, %v32778_v40 }
 0x941   : > { %v33232_v2 = vand.u32 4294901760, %v11345_v41 }
 0x942   : > { %v11342_v36 = vsel %vm2871_vm10, %v11314_v44, 0  ;;  %v5294_v0 = vadd.f32 %v32795_v62, %v5212_v13  ;;  %v5808_v62 = vadd.f32 %v32855_v60, %v5726_v47  ;;  %v6322_v44 = vadd.f32 %v32879_v49, %v6240_v58 }
 0x943   : > { %v11484_v55 = vsub.f32 %v11345_v41, %v33232_v2  ;;  %v33236_v48 = vand.u32 4294901760, %v11342_v36  ;;  %v36274_v41 = vand.u32 4294901760, %v33185_v15  ;;  %v6754_v60 = vadd.f32 %v32887_v51, %v32889_v32 }
 0x944   : > { %v5376_v40 = vadd.f32 %v32791_v14, %v5294_v0  ;;  %v36275_v14 = vand.u32 4294901760, %v33207_v35 }
 0x945   : > { %v11474_v10 = vsub.f32 %v11342_v36, %v33236_v48  ;;  %29356 = vmatprep.mubr.f32.mxu1 %v33236_v48  ;;  %v11485_v11 = vand.u32 4294901760, %v11484_v55  ;;  %v6836_v56 = vadd.f32 %v32891_v20, %v6754_v60  ;;  %v12870_v60 = vpop.permute.xlu1 %12869 }
 0x946   : > { %29357 = vmatmul.mubr.f32.gmra.mxu1 %v33232_v2  ;;  %v5461_v23 = vadd.f32 %v32828_v3, %v5376_v40 }
 0x947   : > { %29375 = vmatprep.mubr.f32.mxu1 %v36271_v24  ;;  %v11475_v38 = vand.u32 4294901760, %v11474_v10  ;;  %v11486_v59 = vsub.f32 %v11484_v55, %v11485_v11  ;;  %v6918_v32 = vadd.f32 %v32893_v22, %v6836_v56 }
 0x948   : > { %v5540_v45 = vadd.f32 %v32845_v53, %v5461_v23 }
 0x949   : > { %v11476_v29 = vsub.f32 %v11474_v10, %v11475_v38  ;;  %v11487_v33 = vand.u32 4294901760, %v11486_v59  ;;  %v7003_v20 = vadd.f32 %v32897_v30, %v6918_v32  ;;  %v36277_v30 = vld [vmem:[#allocation42_spill] sm:$0xff] }
 0x94a   : > { %29376 = vmatmul.mubr.f32.vlgmr.msra.gmra.mxu1 %v36272_v4  ;;  %v12095_v49 = vsel %vm2871_vm10, %v5540_v45, 0 }
 0x94b   : > { %29378 = vmatprep.mubr.f32.mxu1 %v36273_v7  ;;  %v11477_v18 = vand.u32 4294901760, %v11476_v29  ;;  %29402 = vmatpush3.msra.mxu1 %v33131_v61  ;;  %v5890_v61 = vadd.f32 %v32861_v37, %v5808_v62  ;;  %v6404_v37 = vadd.f32 %v32877_v39, %v6322_v44  ;;  %v12098_v39 = vsel %vm2871_vm10, %v32807_v63, 0  ;;  %v36276_v63 = vld [vmem:[#allocation39_spill] sm:$0xff] }
 0x94c   : > { %29429 = vmatprep.subr.mxu1 %v12299_v12  ;;  %v33298_v22 = vand.u32 4294901760, %v12098_v39 }
 0x94d   : > { %29342 = vmatprep.mubr.f32.mxu0 %v11477_v18  ;;  %v5975_v3 = vadd.f32 %v32871_v43, %v5890_v61  ;;  %v6489_v53 = vadd.f32 %v32885_v16, %v6404_v37  ;;  %v33287_v43 = vand.u32 4294901760, %v12095_v49 }
 0x94e   : > { %29343 = vmatmul.mubr.f32.gmra.mxu0 %v11487_v33  ;;  %29379 = vmatmul.mubr.f32.gmra.mxu1 %v36274_v41 }
 0x94f   : > { %29361 = vmatprep.mubr.f32.mxu0 %v33165_v19  ;;  %29381 = vmatprep.mubr.f32.mxu1 %v11455_v50  ;;  %v6054_v51 = vadd.f32 %v32869_v34, %v5975_v3  ;;  %v6568_v16 = vadd.f32 %v32883_v27, %v6489_v53  ;;  %v12877_v53 = vsel %vm2871_vm10, %v12870_v60, 0 }
 0x951   : > { %v12101_v34 = vsel %vm2871_vm10, %v6054_v51, 0  ;;  %v12107_v27 = vsel %vm2871_vm10, %v6568_v16, 0 }
 0x952   : > { %29362 = vmatmul.mubr.f32.vlgmr.msra.gmra.mxu0 %v33159_v57  ;;  %29382 = vmatmul.mubr.f32.gmra.mxu1 %v36275_v14  ;;  %v12104_v57 = vsel %vm2871_vm10, %v36276_v63, 0  ;;  %v33305_v19 = vand.u32 4294901760, %v12101_v34 }
 0x953   : > { %29364 = vmatprep.mubr.f32.mxu0 %v33191_v17  ;;  %29384 = vmatprep.mubr.f32.mxu1 %v11475_v38  ;;  %v33316_v17 = vand.u32 4294901760, %v12104_v57  ;;  %v36279_v38 = vld [vmem:[#allocation41_spill] sm:$0xff] }
 0x954   : > { %29388 = vmatpush3.msra.mxu0 %v33140_v31  ;;  %v33301_v31 = vsub.f32 %v12095_v49, %v33287_v43  ;;  %v33321_v50 = vsub.f32 %v12101_v34, %v33305_v19  ;;  %v12116_v59 = vsel %vm2871_vm10, %v36279_v38, 0  ;;  %v33401_v34 = vand.u32 4294901760, %v12877_v53 }
 0x955   : > { %29415 = vmatprep.subr.mxu0 %v33223_v46  ;;  %v33362_v7 = vand.u32 4294901760, %v12116_v59 }
 0x956   : > { %29365 = vmatmul.mubr.f32.gmra.mxu0 %v33185_v15  ;;  %29385 = vmatmul.mubr.f32.gmra.mxu1 %v11485_v11  ;;  %v7082_v15 = vadd.f32 %v36277_v30, %v7003_v20  ;;  %v33336_v11 = vsub.f32 %v12104_v57, %v33316_v17  ;;  %v33405_v63 = vsub.f32 %v12877_v53, %v33401_v34  ;;  %v12868_v30 = vpop.permute.xlu1 %12867 }
 0x957   : > { %29367 = vmatprep.mubr.f32.mxu0 %v33212_v1  ;;  %29403 = vmatprep.mubr.f32.mxu1 %v33161_v54  ;;  %v12186_v1 = vand.u32 4294901760, %v33301_v31  ;;  %v33378_v41 = vsub.f32 %v12116_v59, %v33362_v7 }
 0x958   : > { %v12216_v47 = vand.u32 4294901760, %v33336_v11  ;;  %v33410_v57 = vand.u32 4294901760, %v33405_v63 }
 0x959   : > { %v12187_v24 = vsub.f32 %v33301_v31, %v12186_v1  ;;  %v12256_v37 = vand.u32 4294901760, %v33378_v41 }
 0x95a   : > { %29368 = vmatmul.mubr.f32.gmra.mxu0 %v33207_v35  ;;  %29404 = vmatmul.mubr.f32.vlgmr.msra.gmra.mxu1 %v33155_v28  ;;  %v12872_v35 = vpop.permute.xlu0 %12871  ;;  %v12217_v58 = vsub.f32 %v33336_v11, %v12216_v47 }
 0x95b   : > { %29370 = vmatprep.mubr.f32.mxu0 %v11474_v10  ;;  %29406 = vmatprep.mubr.f32.mxu1 %v33187_v9  ;;  %v12879_v42 = vsel %vm2871_vm10, %v12872_v35, 0  ;;  %v12257_v32 = vsub.f32 %v33378_v41, %v12256_v37 }
 0x95c   : > { %29430 = vmatpush3.msra.mxu1 %v12299_v12  ;;  %v12206_v12 = vand.u32 4294901760, %v33321_v50  ;;  %v33351_v0 = vand.u32 4294901760, %v12879_v42  ;;  %v12218_v45 = vand.u32 4294901760, %v12217_v58 }
 0x95d   : > { %29457 = vmatprep.subr.mxu1 %v33223_v46  ;;  %v12258_v20 = vand.u32 4294901760, %v12257_v32 }
 0x95e   : > { %29371 = vmatmul.mubr.f32.gmra.mxu0 %v11484_v55  ;;  %29407 = vmatmul.mubr.f32.gmra.mxu1 %v33181_v6  ;;  %v33325_v55 = vand.u32 4294901760, %v12107_v27  ;;  %v12207_v33 = vsub.f32 %v33321_v50, %v12206_v12  ;;  %v33372_v40 = vsub.f32 %v12879_v42, %v33351_v0 }
 0x95f   : > { %29389 = vmatprep.mubr.f32.mxu0 %v33161_v54  ;;  %29409 = vmatprep.mubr.f32.mxu1 %v33209_v8  ;;  %v33314_v54 = vsub.f32 %v12098_v39, %v33298_v22 }
 0x960   : > { %v12208_v61 = vand.u32 4294901760, %v12207_v33 }
 0x961   : > { %v12196_v10 = vand.u32 4294901760, %v33314_v54 }
 0x962   : > { %29390 = vmatmul.mubr.f32.vlgmr.msra.gmra.mxu0 %v33155_v28  ;;  %29410 = vmatmul.mubr.f32.gmra.mxu1 %v33203_v26  ;;  %v36278_v28 = vld [vmem:[#allocation40_spill] sm:$0xff] }
 0x963   : > { %29392 = vmatprep.mubr.f32.mxu0 %v33187_v9  ;;  %29412 = vmatprep.mubr.f32.mxu1 %v33236_v48  ;;  %v12110_v36 = vsel %vm2871_vm10, %v36278_v28, 0  ;;  %v12113_v9 = vsel %vm2871_vm10, %v7082_v15, 0  ;;  %v12197_v29 = vsub.f32 %v33314_v54, %v12196_v10 }
 0x964   : > { %29416 = vmatpush3.msra.mxu0 %v33223_v46  ;;  %v33338_v13 = vand.u32 4294901760, %v12110_v36 }
 0x965   : > { %29443 = vmatprep.subr.mxu0 %v33226_v25  ;;  %v12198_v62 = vand.u32 4294901760, %v12197_v29 }
 0x966   : > { %29393 = vmatmul.mubr.f32.gmra.mxu0 %v33181_v6  ;;  %29413 = vmatmul.mubr.f32.gmra.mxu1 %v33232_v2  ;;  %v33344_v6 = vsub.f32 %v12107_v27, %v33325_v55  ;;  %v33360_v4 = vsub.f32 %v12110_v36, %v33338_v13 }
 0x967   : > { %29395 = vmatprep.mubr.f32.mxu0 %v33209_v8  ;;  %29431 = vmatprep.mubr.f32.mxu1 %v33287_v43  ;;  %v33348_v8 = vand.u32 4294901760, %v12113_v9 }
 0x968   : > { %v12236_v23 = vand.u32 4294901760, %v33360_v4 }
 0x969   : > { %v33366_v18 = vsub.f32 %v12113_v9, %v33348_v8 }
 0x96a   : > { %29396 = vmatmul.mubr.f32.gmra.mxu0 %v33203_v26  ;;  %29432 = vmatmul.mubr.f32.vlgmr.msra.gmra.mxu1 %v33298_v22  ;;  %v12188_v26 = vand.u32 4294901760, %v12187_v24  ;;  %v12237_v3 = vsub.f32 %v33360_v4, %v12236_v23 }
 0x96b   : > { %29398 = vmatprep.mubr.f32.mxu0 %v33236_v48  ;;  %29434 = vmatprep.mubr.f32.mxu1 %v33305_v19  ;;  %v12226_v48 = vand.u32 4294901760, %v33344_v6  ;;  %v12246_v14 = vand.u32 4294901760, %v33366_v18 }
 0x96c   : > { %29458 = vmatpush3.msra.mxu1 %v33223_v46 }
 0x96d   : > { %29485 = vmatprep.subr.mxu1 %v33223_v46  ;;  %v12227_v44 = vsub.f32 %v33344_v6, %v12226_v48  ;;  %v12247_v49 = vsub.f32 %v33366_v18, %v12246_v14 }
 0x96e   : > { %29399 = vmatmul.mubr.f32.gmra.mxu0 %v33232_v2  ;;  %29435 = vmatmul.mubr.f32.gmra.mxu1 %v33316_v17  ;;  %v33386_v2 = vand.u32 4294901760, %v33372_v40 }
 0x96f   : > { %29417 = vmatprep.mubr.f32.mxu0 %v12188_v26  ;;  %29437 = vmatprep.mubr.f32.mxu1 %v33325_v55  ;;  %v12228_v56 = vand.u32 4294901760, %v12227_v44  ;;  %v12248_v39 = vand.u32 4294901760, %v12247_v49 }
 0x970   : > { %v13000_v51 = vsub.f32 %v33372_v40, %v33386_v2 }
 0x972   : > { %29418 = vmatmul.mubr.f32.vlgmr.msra.gmra.mxu0 %v12198_v62  ;;  %29438 = vmatmul.mubr.f32.gmra.mxu1 %v33338_v13  ;;  %v13001_v16 = vand.u32 4294901760, %v13000_v51 }
 0x973   : > { %29420 = vmatprep.mubr.f32.mxu0 %v12208_v61  ;;  %29440 = vmatprep.mubr.f32.mxu1 %v33348_v8 }
 0x974   : > { %29444 = vmatpush3.msra.mxu0 %v33226_v25  ;;  %v12238_v25 = vand.u32 4294901760, %v12237_v3 }
 0x975   : > { %29471 = vmatprep.subr.mxu0 %v33230_v21 }
 0x976   : > { %29421 = vmatmul.mubr.f32.gmra.mxu0 %v12218_v45  ;;  %29441 = vmatmul.mubr.f32.gmra.mxu1 %v33362_v7 }
 0x977   : > { %29423 = vmatprep.mubr.f32.mxu0 %v12228_v56  ;;  %29459 = vmatprep.mubr.f32.mxu1 %v12186_v1  ;;  %v12875_v1 = vsel %vm2871_vm10, %v12868_v30, 0 }
 0x978   : > { %v33433_v36 = vand.u32 4294901760, %v12875_v1 }
 0x97a   : > { %29424 = vmatmul.mubr.f32.gmra.mxu0 %v12238_v25  ;;  %29460 = vmatmul.mubr.f32.vlgmr.msra.gmra.mxu1 %v12196_v10  ;;  %v13388_v10 = vpop.permute.xlu1 %13387 }
 0x97b   : > { %29486 = vmatpush3.msra.mxu1 %v33223_v46  ;;  %29426 = vmatprep.mubr.f32.mxu0 %v12248_v39  ;;  %v13007_v46 = vsub.f32 %v33405_v63, %v33410_v57 }
 0x97c   : > { %29462 = vmatprep.mubr.f32.mxu1 %v12206_v12  ;;  %29506 = vmatprep.subr.mxu1 %v13001_v16 }
 0x97e   : > { %29427 = vmatmul.mubr.f32.gmra.mxu0 %v12258_v20  ;;  %29463 = vmatmul.mubr.f32.gmra.mxu1 %v12216_v47 }
 0x97f   : > { %29445 = vmatprep.mubr.f32.mxu0 %v33301_v31  ;;  %29465 = vmatprep.mubr.f32.mxu1 %v12226_v48  ;;  %v12866_v31 = vpop.permute.xlu0 %12865 }
 0x980   : > { %v12873_v27 = vsel %vm2871_vm10, %v12866_v31, 0 }
 0x981   : > { %v33425_v35 = vand.u32 4294901760, %v12873_v27 }
 0x982   : > { %29446 = vmatmul.mubr.f32.vlgmr.msra.gmra.mxu0 %v33314_v54  ;;  %29466 = vmatmul.mubr.f32.gmra.mxu1 %v12236_v23 }
 0x983   : > { %29472 = vmatpush3.msra.mxu0 %v33230_v21  ;;  %29448 = vmatprep.mubr.f32.mxu0 %v33321_v50  ;;  %v13008_v21 = vand.u32 4294901760, %v13007_v46  ;;  %v13390_v28 = vpop.permute.xlu0 %13389  ;;  %v12949_v9 = vsub.f32 %v12873_v27, %v33425_v35 }
 0x984   : > { %29468 = vmatprep.mubr.f32.mxu1 %v12246_v14  ;;  %29499 = vmatprep.subr.mxu0 %v33351_v0  ;;  %v29349_v15 = vpop.f32.mrf.mxu1  ;;  %v13397_v42 = vsel %vm2871_vm10, %v13390_v28, 0 }
 0x985   : > { %v33446_v24 = vand.u32 4294901760, %v13397_v42 }
 0x986   : > { %29449 = vmatmul.mubr.f32.gmra.mxu0 %v33336_v11  ;;  %29469 = vmatmul.mubr.f32.gmra.mxu1 %v12256_v37  ;;  %v12950_v11 = vand.u32 4294901760, %v12949_v9  ;;  %v33496_v58 = vpop.f32.mrf.mxu1 }
 0x987   : > { %29451 = vmatprep.mubr.f32.mxu0 %v33344_v6  ;;  %29487 = vmatprep.mubr.f32.mxu1 %v33287_v43  ;;  %v33456_v38 = vsub.f32 %v13397_v42, %v33446_v24 }
 0x988   : > { %v12951_v6 = vsub.f32 %v12949_v9, %v12950_v11 }
 0x989   : > { %v33467_v29 = vand.u32 4294901760, %v33456_v38 }
 0x98a   : > { %29452 = vmatmul.mubr.f32.gmra.mxu0 %v33360_v4  ;;  %29488 = vmatmul.mubr.f32.vlgmr.msra.gmra.mxu1 %v33298_v22  ;;  %v12952_v12 = vand.u32 4294901760, %v12951_v6 }
 0x98b   : > { %29507 = vmatpush3.xpose.msra.mxu1 %v13001_v16  ;;  %29454 = vmatprep.mubr.f32.mxu0 %v33366_v18  ;;  %v13386_v18 = vpop.permute.xlu1 %13385 }
 0x98c   : > { %v29335_v54 = vpop.f32.mrf.mxu0  ;;  %29490 = vmatprep.mubr.f32.mxu1 %v33305_v19  ;;  %29508 = vmatprep.subr.mxu1 %v13008_v21  ;;  %v13393_v33 = vsel %vm2871_vm10, %v13386_v18, 0 }
 0x98d   : > { %v33428_v50 = vadd.f32 %v29349_v15, %v29335_v54 }
 0x98e   : > { %29455 = vmatmul.mubr.f32.gmra.mxu0 %v33378_v41  ;;  %29491 = vmatmul.mubr.f32.gmra.mxu1 %v33316_v17  ;;  %v33493_v41 = vand.u32 4294901760, %v13393_v33  ;;  %v33498_v23 = vpop.f32.mrf.mxu0 }
 0x98f   : > { %29509 = vmatpush3.xpose.msra.mxu1 %v13008_v21  ;;  %29473 = vmatprep.mubr.f32.mxu0 %v33287_v43  ;;  %v12959_v43 = vsub.f32 %v12875_v1, %v33433_v36  ;;  %v13906_v56 = vpop.permute.xlu1 %13905 }
 0x990   : > { %29493 = vmatprep.mubr.f32.mxu1 %v33325_v55  ;;  %29520 = vmatprep.subr.mxu1 %v33351_v0  ;;  %v13477_v3 = vsub.f32 %v13393_v33, %v33493_v41  ;;  %v13913_v53 = vsel %vm2871_vm10, %v13906_v56, 0 }
 0x991   : > { %v33521_v16 = vand.u32 4294901760, %v13913_v53 }
 0x992   : > { %29474 = vmatmul.mubr.f32.vlgmr.msra.gmra.mxu0 %v33298_v22  ;;  %29494 = vmatmul.mubr.f32.gmra.mxu1 %v33338_v13  ;;  %v12960_v22 = vand.u32 4294901760, %v12959_v43 }
 0x993   : > { %29500 = vmatpush3.xpose.msra.mxu0 %v33351_v0  ;;  %29476 = vmatprep.mubr.f32.mxu0 %v33305_v19  ;;  %v13395_v19 = vsel %vm2871_vm10, %v13388_v10, 0  ;;  %v33532_v46 = vsub.f32 %v13913_v53, %v33521_v16  ;;  %v13904_v27 = vpop.permute.xlu1 %13903 }
 0x994   : > { %29496 = vmatprep.mubr.f32.mxu1 %v33348_v8  ;;  %29501 = vmatprep.subr.mxu0 %v33401_v34  ;;  %v12961_v59 = vsub.f32 %v12959_v43, %v12960_v22  ;;  %v13911_v15 = vsel %vm2871_vm10, %v13904_v27, 0 }
 0x995   : > { %v33544_v21 = vand.u32 4294901760, %v33532_v46  ;;  %v33552_v1 = vand.u32 4294901760, %v13911_v15 }
 0x996   : > { %29477 = vmatmul.mubr.f32.gmra.mxu0 %v33316_v17  ;;  %29497 = vmatmul.mubr.f32.gmra.mxu1 %v33362_v7  ;;  %v33460_v17 = vand.u32 4294901760, %v13395_v19 }
 0x997   : > { %29502 = vmatpush3.xpose.msra.mxu0 %v33401_v34  ;;  %29479 = vmatprep.mubr.f32.mxu0 %v33325_v55  ;;  %v13384_v55 = vpop.permute.xlu0 %13383  ;;  %v14043_v28 = vsub.f32 %v33532_v46, %v33544_v21 }
 0x998   : > { %29510 = vmatprep.mubr.f32.mxu1 %v33425_v35  ;;  %29513 = vmatprep.subr.mxu0 %v33372_v40  ;;  %v33471_v47 = vsub.f32 %v13395_v19, %v33460_v17 }
 0x999   : > { %v14044_v10 = vand.u32 4294901760, %v14043_v28 }
 0x99a   : > { %29480 = vmatmul.mubr.f32.gmra.mxu0 %v33338_v13  ;;  %29511 = vmatmul.mubr.f32.vlgmr.msra.gmra.mxu1 %v33433_v36  ;;  %v13391_v13 = vsel %vm2871_vm10, %v13384_v55, 0  ;;  %v33482_v26 = vand.u32 4294901760, %v33471_v47 }
 0x99b   : > { %29521 = vmatpush3.xpose.msra.mxu1 %v33351_v0  ;;  %29482 = vmatprep.mubr.f32.mxu0 %v33348_v8  ;;  %v12962_v8 = vand.u32 4294901760, %v12961_v59  ;;  %v33475_v4 = vand.u32 4294901760, %v13391_v13 }
 0x99c   : > { %29522 = vmatprep.subr.mxu1 %v33401_v34  ;;  %29524 = vmatprep.mubr.f32.mxu1 %v12950_v11  ;;  %v14424_v11 = vpop.permute.xlu1 %14423 }
 0x99d   : > { %v13467_v48 = vsub.f32 %v13391_v13, %v33475_v4  ;;  %v14431_v6 = vsel %vm2871_vm10, %v14424_v11, 0 }
 0x99e   : > { %29483 = vmatmul.mubr.f32.gmra.mxu0 %v33362_v7  ;;  %v13518_v7 = vsub.f32 %v33456_v38, %v33467_v29 }
 0x99f   : > { %29523 = vmatpush3.xpose.msra.mxu1 %v33401_v34  ;;  %29503 = vmatprep.mubr.f32.mxu0 %v12952_v12  ;;  %v13468_v61 = vand.u32 4294901760, %v13467_v48  ;;  %v33581_v12 = vand.u32 4294901760, %v14431_v6 }
 0x9a0   : > { %29534 = vmatprep.subr.mxu1 %v33351_v0  ;;  %v13519_v62 = vand.u32 4294901760, %v13518_v7  ;;  %v14422_v18 = vpop.permute.xlu1 %14421 }
 0x9a1   : > { %v13469_v49 = vsub.f32 %v13467_v48, %v13468_v61  ;;  %v14429_v33 = vsel %vm2871_vm10, %v14422_v18, 0 }
 0x9a2   : > { %29525 = vmatmul.mubr.f32.vlgmr.msra.gmra.mxu1 %v12960_v22  ;;  %29504 = vmatmul.mubr.f32.vlgmr.msra.gmra.mxu0 %v12962_v8  ;;  %v33592_v8 = vsub.f32 %v14431_v6, %v33581_v12 }
 0x9a3   : > { %29514 = vmatpush3.xpose.msra.mxu0 %v33372_v40  ;;  %29535 = vmatpush3.xpose.msra.mxu1 %v33351_v0  ;;  %v13525_v0 = vsub.f32 %v33471_v47, %v33482_v26  ;;  %v13908_v40 = vpop.permute.xlu0 %13907  ;;  %v29352_v44 = vpop.f32.mrf.mxu1  ;;  %v13470_v25 = vand.u32 4294901760, %v13469_v49 }
 0x9a4   : > { %29538 = vmatprep.mubr.f32.mxu1 %v33425_v35  ;;  %29515 = vmatprep.subr.mxu0 %v33405_v63  ;;  %v13915_v45 = vsel %vm2871_vm10, %v13908_v40, 0  ;;  %v15044_v56 = vpop.permute.xlu1 %15043 }
 0x9a5   : > { %29517 = vmatprep.mubr.f32.mxu0 %v12949_v9  ;;  %29536 = vmatprep.subr.mxu1 %v33401_v34  ;;  %v13526_v60 = vand.u32 4294901760, %v13525_v0  ;;  %v33509_v51 = vand.u32 4294901760, %v13915_v45 }
 0x9a7   : > { %29516 = vmatpush3.xpose.msra.mxu0 %v33405_v63  ;;  %29537 = vmatpush3.xpose.msra.mxu1 %v33401_v34  ;;  %v33517_v32 = vsub.f32 %v13915_v45, %v33509_v51  ;;  %v13902_v39 = vpop.permute.xlu0 %13901 }
 0x9a8   : > { %29527 = vmatprep.subr.mxu0 %v33386_v2  ;;  %29548 = vmatprep.subr.mxu1 %v13519_v62  ;;  %v13909_v20 = vsel %vm2871_vm10, %v13902_v39, 0 }
 0x9a9   : > { %v33529_v63 = vand.u32 4294901760, %v33517_v32  ;;  %v33537_v31 = vand.u32 4294901760, %v13909_v20 }
 0x9aa   : > { %29518 = vmatmul.mubr.f32.vlgmr.msra.gmra.mxu0 %v12959_v43  ;;  %29539 = vmatmul.mubr.f32.vlgmr.msra.gmra.mxu1 %v33433_v36  ;;  %v33562_v43 = vsub.f32 %v13911_v15, %v33552_v1 }
 0x9ab   : > { %v29338_v14 = vpop.f32.mrf.mxu0  ;;  %29528 = vmatpush3.xpose.msra.mxu0 %v33386_v2  ;;  %29531 = vmatprep.mubr.f32.mxu0 %v33425_v35  ;;  %v13478_v2 = vand.u32 4294901760, %v13477_v3  ;;  %v14036_v30 = vsub.f32 %v33517_v32, %v33529_v63  ;;  %v13985_v54 = vsub.f32 %v13909_v20, %v33537_v31 }
 0x9ac   : > { %v33505_v37 = vadd.f32 %v29352_v44, %v29338_v14  ;;  %29549 = vmatpush3.xpose.msra.mxu1 %v13519_v62  ;;  %29552 = vmatprep.mubr.f32.mxu1 %v33475_v4  ;;  %v13996_v19 = vand.u32 4294901760, %v33562_v43  ;;  %v33611_v62 = vpop.f32.mrf.mxu1 }
 0x9ad   : > { %29529 = vmatprep.subr.mxu0 %v33410_v57  ;;  %29550 = vmatprep.subr.mxu1 %v13526_v60  ;;  %v13479_v34 = vsub.f32 %v13477_v3, %v13478_v2  ;;  %v14037_v35 = vand.u32 4294901760, %v14036_v30  ;;  %v13986_v9 = vand.u32 4294901760, %v13985_v54  ;;  %v33613_v0 = vpop.f32.mrf.mxu0 }
 0x9ae   : > { %v13997_v59 = vsub.f32 %v33562_v43, %v13996_v19 }
 0x9af   : > { %29530 = vmatpush3.xpose.msra.mxu0 %v33410_v57  ;;  %v13480_v57 = vand.u32 4294901760, %v13479_v34 }
 0x9b0   : > { %29551 = vmatpush3.xpose.msra.mxu1 %v13526_v60  ;;  %29541 = vmatprep.subr.mxu0 %v33446_v24 }
 0x9b1   : > { %29562 = vmatprep.subr.mxu1 %v33446_v24 }
 0x9b2   : > { %29532 = vmatmul.mubr.f32.vlgmr.msra.gmra.mxu0 %v33433_v36  ;;  %v14426_v36 = vpop.permute.xlu0 %14425 }
 0x9b3   : > { %29553 = vmatmul.mubr.f32.vlgmr.msra.gmra.mxu1 %v33493_v41  ;;  %29542 = vmatpush3.xpose.msra.mxu0 %v33446_v24  ;;  %v14433_v42 = vsel %vm2871_vm10, %v14426_v36, 0 }
 0x9b4   : > { %29545 = vmatprep.mubr.f32.mxu0 %v13470_v25  ;;  %29563 = vmatpush3.xpose.msra.mxu1 %v33446_v24  ;;  %v33567_v22 = vand.u32 4294901760, %v14433_v42 }
 0x9b5   : > { %29566 = vmatprep.mubr.f32.mxu1 %v13468_v61  ;;  %29543 = vmatprep.subr.mxu0 %v33460_v17 }
 0x9b6   : > { %29564 = vmatprep.subr.mxu1 %v33460_v17  ;;  %v14420_v55 = vpop.permute.xlu0 %14419 }
 0x9b7   : > { %29544 = vmatpush3.xpose.msra.mxu0 %v33460_v17 }
 0x9b8   : > { %29565 = vmatpush3.xpose.msra.mxu1 %v33460_v17  ;;  %29555 = vmatprep.subr.mxu0 %v33456_v38 }
 0x9b9   : > { %29576 = vmatprep.subr.mxu1 %v33446_v24 }
 0x9ba   : > { %29546 = vmatmul.mubr.f32.vlgmr.msra.gmra.mxu0 %v13480_v57 }
 0x9bb   : > { %29567 = vmatmul.mubr.f32.vlgmr.msra.gmra.mxu1 %v13478_v2  ;;  %29556 = vmatpush3.xpose.msra.mxu0 %v33456_v38  ;;  %v33631_v2 = vand.u32 4294901760, %v15044_v56 }
 0x9bc   : > { %29559 = vmatprep.mubr.f32.mxu0 %v13467_v48  ;;  %29577 = vmatpush3.xpose.msra.mxu1 %v33446_v24  ;;  %v13987_v24 = vsub.f32 %v13985_v54, %v13986_v9 }
 0x9bd   : > { %29580 = vmatprep.mubr.f32.mxu1 %v33475_v4  ;;  %29557 = vmatprep.subr.mxu0 %v33471_v47 }
 0x9be   : > { %29578 = vmatprep.subr.mxu1 %v33460_v17  ;;  %v13988_v38 = vand.u32 4294901760, %v13987_v24 }
 0x9bf   : > { %29558 = vmatpush3.xpose.msra.mxu0 %v33471_v47  ;;  %v13998_v47 = vand.u32 4294901760, %v13997_v59 }
 0x9c0   : > { %29579 = vmatpush3.xpose.msra.mxu1 %v33460_v17  ;;  %29569 = vmatprep.subr.mxu0 %v33467_v29  ;;  %v33576_v17 = vsub.f32 %v14433_v42, %v33567_v22 }
 0x9c1   : > { %29590 = vmatprep.subr.mxu1 %v14037_v35 }
 0x9c2   : > { %29560 = vmatmul.mubr.f32.vlgmr.msra.gmra.mxu0 %v13477_v3  ;;  %v33589_v13 = vand.u32 4294901760, %v33576_v17 }
 0x9c3   : > { %29581 = vmatmul.mubr.f32.vlgmr.msra.gmra.mxu1 %v33493_v41  ;;  %29570 = vmatpush3.xpose.msra.mxu0 %v33467_v29  ;;  %v14427_v29 = vsel %vm2871_vm10, %v14420_v55, 0 }
 0x9c4   : > { %29573 = vmatprep.mubr.f32.mxu0 %v33475_v4  ;;  %29591 = vmatpush3.xpose.msra.mxu1 %v14037_v35  ;;  %v33597_v4 = vand.u32 4294901760, %v14427_v29  ;;  %v14554_v7 = vsub.f32 %v33576_v17, %v33589_v13 }
 0x9c5   : > { %29594 = vmatprep.mubr.f32.mxu1 %v33537_v31  ;;  %29571 = vmatprep.subr.mxu0 %v33482_v26 }
 0x9c6   : > { %29592 = vmatprep.subr.mxu1 %v14044_v10  ;;  %v14503_v48 = vsub.f32 %v14427_v29, %v33597_v4  ;;  %v14555_v40 = vand.u32 4294901760, %v14554_v7 }
 0x9c7   : > { %29572 = vmatpush3.xpose.msra.mxu0 %v33482_v26  ;;  %v33604_v26 = vand.u32 4294901760, %v33592_v8 }
 0x9c8   : > { %29593 = vmatpush3.xpose.msra.mxu1 %v14044_v10  ;;  %29583 = vmatprep.subr.mxu0 %v33509_v51  ;;  %v14504_v60 = vand.u32 4294901760, %v14503_v48 }
 0x9c9   : > { %29604 = vmatprep.subr.mxu1 %v33509_v51  ;;  %v14561_v61 = vsub.f32 %v33592_v8, %v33604_v26 }
 0x9ca   : > { %29574 = vmatmul.mubr.f32.vlgmr.msra.gmra.mxu0 %v33493_v41  ;;  %v33616_v41 = vand.u32 4294901760, %v14429_v33 }
 0x9cb   : > { %29595 = vmatmul.mubr.f32.vlgmr.msra.gmra.mxu1 %v33552_v1  ;;  %29584 = vmatpush3.xpose.msra.mxu0 %v33509_v51  ;;  %v14562_v49 = vand.u32 4294901760, %v14561_v61 }
 0x9cc   : > { %29587 = vmatprep.mubr.f32.mxu0 %v13988_v38  ;;  %29605 = vmatpush3.xpose.msra.mxu1 %v33509_v51  ;;  %v14513_v3 = vsub.f32 %v14429_v33, %v33616_v41 }
 0x9cd   : > { %29608 = vmatprep.mubr.f32.mxu1 %v13986_v9  ;;  %29585 = vmatprep.subr.mxu0 %v33521_v16 }
 0x9ce   : > { %29606 = vmatprep.subr.mxu1 %v33521_v16  ;;  %v14514_v53 = vand.u32 4294901760, %v14513_v3 }
 0x9cf   : > { %29586 = vmatpush3.xpose.msra.mxu0 %v33521_v16 }
 0x9d0   : > { %29607 = vmatpush3.xpose.msra.mxu1 %v33521_v16  ;;  %29597 = vmatprep.subr.mxu0 %v33517_v32  ;;  %v14515_v39 = vsub.f32 %v14513_v3, %v14514_v53 }
 0x9d1   : > { %29618 = vmatprep.subr.mxu1 %v33509_v51  ;;  %v29355_v44 = vpop.f32.mrf.mxu1 }
 0x9d2   : > { %29588 = vmatmul.mubr.f32.vlgmr.msra.gmra.mxu0 %v13998_v47 }
 0x9d3   : > { %29609 = vmatmul.mubr.f32.vlgmr.msra.gmra.mxu1 %v13996_v19  ;;  %29598 = vmatpush3.xpose.msra.mxu0 %v33517_v32  ;;  %v33638_v32 = vsub.f32 %v15044_v56, %v33631_v2  ;;  %v33670_v57 = vpop.f32.mrf.mxu1 }
 0x9d4   : > { %29601 = vmatprep.mubr.f32.mxu0 %v13985_v54  ;;  %29619 = vmatpush3.xpose.msra.mxu1 %v33509_v51  ;;  %v14505_v51 = vsub.f32 %v14503_v48, %v14504_v60 }
 0x9d5   : > { %29622 = vmatprep.mubr.f32.mxu1 %v33537_v31  ;;  %29599 = vmatprep.subr.mxu0 %v33532_v46  ;;  %v33647_v34 = vand.u32 4294901760, %v33638_v32 }
 0x9d6   : > { %29620 = vmatprep.subr.mxu1 %v33521_v16  ;;  %v14506_v25 = vand.u32 4294901760, %v14505_v51 }
 0x9d7   : > { %29600 = vmatpush3.xpose.msra.mxu0 %v33532_v46  ;;  %v15172_v20 = vsub.f32 %v33638_v32, %v33647_v34 }
 0x9d8   : > { %29621 = vmatpush3.xpose.msra.mxu1 %v33521_v16  ;;  %29611 = vmatprep.subr.mxu0 %v33529_v63  ;;  %v14516_v16 = vand.u32 4294901760, %v14515_v39 }
 0x9d9   : > { %29632 = vmatprep.subr.mxu1 %v14555_v40  ;;  %v29341_v14 = vpop.f32.mrf.mxu0 }
 0x9da   : > { %v33622_v45 = vadd.f32 %v29355_v44, %v29341_v14  ;;  %29602 = vmatmul.mubr.f32.vlgmr.msra.gmra.mxu0 %v33562_v43 }
 0x9db   : > { %29623 = vmatmul.mubr.f32.vlgmr.msra.gmra.mxu1 %v33552_v1  ;;  %29612 = vmatpush3.xpose.msra.mxu0 %v33529_v63  ;;  %v15173_v63 = vand.u32 4294901760, %v15172_v20  ;;  %v33674_v30 = vpop.f32.mrf.mxu0 }
 0x9dc   : > { %29615 = vmatprep.mubr.f32.mxu0 %v33537_v31  ;;  %29633 = vmatpush3.xpose.msra.mxu1 %v14555_v40 }
 0x9dd   : > { %29636 = vmatprep.mubr.f32.mxu1 %v33597_v4  ;;  %29613 = vmatprep.subr.mxu0 %v33544_v21 }
 0x9de   : > { %29634 = vmatprep.subr.mxu1 %v14562_v49 }
 0x9df   : > { %29614 = vmatpush3.xpose.msra.mxu0 %v33544_v21 }
 0x9e0   : > { %29635 = vmatpush3.xpose.msra.mxu1 %v14562_v49  ;;  %29625 = vmatprep.subr.mxu0 %v33567_v22 }
 0x9e1   : > { %29646 = vmatprep.subr.mxu1 %v33567_v22 }
 0x9e2   : > { %29616 = vmatmul.mubr.f32.vlgmr.msra.gmra.mxu0 %v33552_v1 }
 0x9e3   : > { %29637 = vmatmul.mubr.f32.vlgmr.msra.gmra.mxu1 %v33616_v41  ;;  %29626 = vmatpush3.xpose.msra.mxu0 %v33567_v22 }
 0x9e4   : > { %29629 = vmatprep.mubr.f32.mxu0 %v14506_v25  ;;  %29647 = vmatpush3.xpose.msra.mxu1 %v33567_v22 }
 0x9e5   : > { %29650 = vmatprep.mubr.f32.mxu1 %v14504_v60  ;;  %29627 = vmatprep.subr.mxu0 %v33581_v12 }
 0x9e6   : > { %29648 = vmatprep.subr.mxu1 %v33581_v12 }
 0x9e7   : > { %29628 = vmatpush3.xpose.msra.mxu0 %v33581_v12 }
 0x9e8   : > { %29649 = vmatpush3.xpose.msra.mxu1 %v33581_v12  ;;  %29639 = vmatprep.subr.mxu0 %v33576_v17 }
 0x9e9   : > { %29660 = vmatprep.subr.mxu1 %v33567_v22 }
 0x9ea   : > { %29630 = vmatmul.mubr.f32.vlgmr.msra.gmra.mxu0 %v14516_v16 }
 0x9eb   : > { %29651 = vmatmul.mubr.f32.vlgmr.msra.gmra.mxu1 %v14514_v53  ;;  %29640 = vmatpush3.xpose.msra.mxu0 %v33576_v17 }
 0x9ec   : > { %29643 = vmatprep.mubr.f32.mxu0 %v14503_v48  ;;  %29661 = vmatpush3.xpose.msra.mxu1 %v33567_v22 }
 0x9ed   : > { %29664 = vmatprep.mubr.f32.mxu1 %v33597_v4  ;;  %29641 = vmatprep.subr.mxu0 %v33592_v8 }
 0x9ee   : > { %29662 = vmatprep.subr.mxu1 %v33581_v12 }
 0x9ef   : > { %29642 = vmatpush3.xpose.msra.mxu0 %v33592_v8 }
 0x9f0   : > { %29663 = vmatpush3.xpose.msra.mxu1 %v33581_v12  ;;  %29653 = vmatprep.subr.mxu0 %v33589_v13 }
 0x9f1   : > { %29674 = vmatprep.subr.mxu1 %v15173_v63 }
 0x9f2   : > { %29644 = vmatmul.mubr.f32.vlgmr.msra.gmra.mxu0 %v14513_v3 }
 0x9f3   : > { %29665 = vmatmul.mubr.f32.vlgmr.msra.gmra.mxu1 %v33616_v41  ;;  %29654 = vmatpush3.xpose.msra.mxu0 %v33589_v13 }
 0x9f4   : > { %29657 = vmatprep.mubr.f32.mxu0 %v33597_v4  ;;  %29675 = vmatpush3.msra.mxu1 %v15173_v63 }
 0x9f5   : > { %29655 = vmatprep.subr.mxu0 %v33604_v26 }
 0x9f7   : > { %29656 = vmatpush3.xpose.msra.mxu0 %v33604_v26 }
 0x9f8   : > { %29667 = vmatprep.subr.mxu0 %v33631_v2 }
 0x9fa   : > { %29658 = vmatmul.mubr.f32.vlgmr.msra.gmra.mxu0 %v33616_v41 }
 0x9fb   : > { %29668 = vmatpush3.msra.mxu0 %v33631_v2 }
 0xa06   : > { %v29358_v46 = vpop.f32.mrf.mxu1 }
 0xa08   : > { %v33672_v31 = vpop.f32.mrf.mxu1 }
 0xa0a   : > { %v29377_v27 = vpop.f32.mrf.mxu1 }
 0xa0c   : > { %v33676_v21 = vpop.f32.mrf.mxu1 }
 0xa0e   : > { %v29344_v15 = vpop.f32.mrf.mxu0  ;;  %v29380_v54 = vpop.f32.mrf.mxu1 }
 0xa0f   : > { %v11608_v35 = vadd.f32 %v29358_v46, %v29344_v15 }
 0xa10   : > { %v33678_v1 = vpop.f32.mrf.mxu0  ;;  %v33680_v28 = vpop.f32.mrf.mxu1 }
 0xa12   : > { %v29363_v36 = vpop.f32.mrf.mxu0  ;;  %v29383_v9 = vpop.f32.mrf.mxu1 }
 0xa13   : > { %v11689_v42 = vadd.f32 %v29363_v36, %v33428_v50 }
 0xa14   : > { %v33683_v43 = vpop.f32.mrf.mxu0  ;;  %v33685_v10 = vpop.f32.mrf.mxu1 }
 0xa15   : > { %36280 = vst [vmem:[#allocation39_spill] sm:$0xff] %v33685_v10  ;;  %v11813_v11 = vadd.f32 %v29377_v27, %v11689_v42 }
 0xa16   : > { %v29366_v24 = vpop.f32.mrf.mxu0  ;;  %v29386_v22 = vpop.f32.mrf.mxu1 }
 0xa17   : > { %v11703_v19 = vadd.f32 %v29366_v24, %v33505_v37 }
 0xa18   : > { %v33688_v6 = vpop.f32.mrf.mxu0  ;;  %v33690_v38 = vpop.f32.mrf.mxu1 }
 0xa19   : > { %36281 = vst [vmem:[#allocation42_spill] sm:$0xff] %v33690_v38  ;;  %v11829_v17 = vadd.f32 %v29380_v54, %v11703_v19 }
 0xa1a   : > { %v29369_v55 = vpop.f32.mrf.mxu0  ;;  %v29405_v59 = vpop.f32.mrf.mxu1 }
 0xa1b   : > { %v11717_v12 = vadd.f32 %v29369_v55, %v33622_v45 }
 0xa1c   : > { %v33693_v29 = vpop.f32.mrf.mxu0  ;;  %v33695_v50 = vpop.f32.mrf.mxu1 }
 0xa1d   : > { %36282 = vst [vmem:[#allocation40_spill] sm:$0xff] %v33695_v50  ;;  %v11845_v13 = vadd.f32 %v29383_v9, %v11717_v12 }
 0xa1e   : > { %v29372_v47 = vpop.f32.mrf.mxu0  ;;  %v29408_v8 = vpop.f32.mrf.mxu1 }
 0xa1f   : > { %v11731_v4 = vadd.f32 %v29372_v47, %v11608_v35 }
 0xa20   : > { %v33697_v18 = vpop.f32.mrf.mxu0  ;;  %v33699_v37 = vpop.f32.mrf.mxu1 }
 0xa21   : > { %36283 = vst [vmem:[#allocation41_spill] sm:$0xff] %v33699_v37  ;;  %v11861_v7 = vadd.f32 %v29386_v22, %v11731_v4 }
 0xa22   : > { %v29391_v26 = vpop.f32.mrf.mxu0  ;;  %v29411_v33 = vpop.f32.mrf.mxu1 }
 0xa23   : > { %v11941_v48 = vadd.f32 %v29391_v26, %v11813_v11 }
 0xa24   : > { %v33701_v40 = vpop.f32.mrf.mxu0  ;;  %v33703_v41 = vpop.f32.mrf.mxu1 }
 0xa25   : > { %36284 = vst [vmem:[#allocation43_spill] sm:$0xff] %v33701_v40  ;;  %36285 = vst [vmem:[#allocation44_spill] sm:$0xff] %v33703_v41  ;;  %v12055_v61 = vadd.f32 %v29405_v59, %v11941_v48 }
 0xa26   : > { %v29394_v44 = vpop.f32.mrf.mxu0  ;;  %v29414_v14 = vpop.f32.mrf.mxu1 }
 0xa27   : > { %v11953_v60 = vadd.f32 %v29394_v44, %v11829_v17 }
 0xa28   : > { %v33705_v45 = vpop.f32.mrf.mxu0  ;;  %v33707_v3 = vpop.f32.mrf.mxu1 }
 0xa29   : > { %36286 = vst [vmem:[#allocation45_spill] sm:$0xff] %v33705_v45  ;;  %36287 = vst [vmem:[#allocation46_spill] sm:$0xff] %v33707_v3  ;;  %v12067_v56 = vadd.f32 %v29408_v8, %v11953_v60 }
 0xa2a   : > { %v29397_v49 = vpop.f32.mrf.mxu0  ;;  %v29433_v51 = vpop.f32.mrf.mxu1 }
 0xa2b   : > { %v11965_v53 = vadd.f32 %v29397_v49, %v11845_v13 }
 0xa2c   : > { %v33709_v25 = vpop.f32.mrf.mxu0  ;;  %v33711_v39 = vpop.f32.mrf.mxu1 }
 0xa2d   : > { %36288 = vst [vmem:[#allocation47_spill] sm:$0xff] %v33709_v25  ;;  %36289 = vst [vmem:[#allocation48_spill] sm:$0xff] %v33711_v39  ;;  %v12079_v16 = vadd.f32 %v29411_v33, %v11965_v53 }
 0xa2e   : > { %v29400_v20 = vpop.f32.mrf.mxu0  ;;  %v29436_v63 = vpop.f32.mrf.mxu1 }
 0xa2f   : > { %v11977_v46 = vadd.f32 %v29400_v20, %v11861_v7 }
 0xa30   : > { %v33713_v27 = vpop.f32.mrf.mxu0  ;;  %v33715_v15 = vpop.f32.mrf.mxu1 }
 0xa31   : > { %36290 = vst [vmem:[#allocation49_spill] sm:$0xff] %v33713_v27  ;;  %36291 = vst [vmem:[#allocation50_spill] sm:$0xff] %v33715_v15  ;;  %v12091_v54 = vadd.f32 %v29414_v14, %v11977_v46 }
 0xa32   : > { %v29419_v35 = vpop.f32.mrf.mxu0  ;;  %v29439_v36 = vpop.f32.mrf.mxu1 }
 0xa33   : > { %v12201_v9 = vadd.f32 %v29419_v35, %v12055_v61 }
 0xa34   : > { %v33717_v42 = vpop.f32.mrf.mxu0  ;;  %v33719_v11 = vpop.f32.mrf.mxu1 }
 0xa35   : > { %36292 = vst [vmem:[#allocation51_spill] sm:$0xff] %v33717_v42  ;;  %36293 = vst [vmem:[#allocation52_spill] sm:$0xff] %v33719_v11  ;;  %v12343_v24 = vadd.f32 %v29433_v51, %v12201_v9 }
 0xa36   : > { %v29422_v22 = vpop.f32.mrf.mxu0  ;;  %v29442_v19 = vpop.f32.mrf.mxu1 }
 0xa37   : > { %v12221_v17 = vadd.f32 %v29422_v22, %v12067_v56 }
 0xa38   : > { %v33721_v55 = vpop.f32.mrf.mxu0  ;;  %v33723_v59 = vpop.f32.mrf.mxu1 }
 0xa39   : > { %36294 = vst [vmem:[#allocation53_spill] sm:$0xff] %v33721_v55  ;;  %36295 = vst [vmem:[#allocation54_spill] sm:$0xff] %v33723_v59  ;;  %v12355_v12 = vadd.f32 %v29436_v63, %v12221_v17 }
 0xa3a   : > { %v29425_v13 = vpop.f32.mrf.mxu0  ;;  %v29461_v47 = vpop.f32.mrf.mxu1 }
 0xa3b   : > { %v12241_v8 = vadd.f32 %v29425_v13, %v12079_v16 }
 0xa3c   : > { %v33725_v4 = vpop.f32.mrf.mxu0  ;;  %v33727_v7 = vpop.f32.mrf.mxu1 }
 0xa3d   : > { %36296 = vst [vmem:[#allocation55_spill] sm:$0xff] %v33725_v4  ;;  %36297 = vst [vmem:[#allocation56_spill] sm:$0xff] %v33727_v7  ;;  %v12367_v26 = vadd.f32 %v29439_v36, %v12241_v8 }
 0xa3e   : > { %v29428_v33 = vpop.f32.mrf.mxu0  ;;  %v29464_v48 = vpop.f32.mrf.mxu1 }
 0xa3f   : > { %v12261_v61 = vadd.f32 %v29428_v33, %v12091_v54 }
 0xa40   : > { %v33729_v44 = vpop.f32.mrf.mxu0  ;;  %v33731_v14 = vpop.f32.mrf.mxu1 }
 0xa41   : > { %36298 = vst [vmem:[#allocation57_spill] sm:$0xff] %v33729_v44  ;;  %36299 = vst [vmem:[#allocation58_spill] sm:$0xff] %v33731_v14  ;;  %v12379_v60 = vadd.f32 %v29442_v19, %v12261_v61 }
 0xa42   : > { %v29447_v56 = vpop.f32.mrf.mxu0  ;;  %v29467_v49 = vpop.f32.mrf.mxu1 }
 0xa43   : > { %v12460_v51 = vadd.f32 %v29447_v56, %v12343_v24 }
 0xa44   : > { %v33733_v53 = vpop.f32.mrf.mxu0  ;;  %v33735_v20 = vpop.f32.mrf.mxu1 }
 0xa45   : > { %36300 = vst [vmem:[#allocation59_spill] sm:$0xff] %v33733_v53  ;;  %36301 = vst [vmem:[#allocation60_spill] sm:$0xff] %v33735_v20  ;;  %v12584_v16 = vadd.f32 %v29461_v47, %v12460_v51 }
 0xa46   : > { %v29450_v63 = vpop.f32.mrf.mxu0  ;;  %v29470_v46 = vpop.f32.mrf.mxu1 }
 0xa47   : > { %v12474_v35 = vadd.f32 %v29450_v63, %v12355_v12 }
 0xa48   : > { %v33737_v36 = vpop.f32.mrf.mxu0  ;;  %v33739_v9 = vpop.f32.mrf.mxu1 }
 0xa49   : > { %36302 = vst [vmem:[#allocation61_spill] sm:$0xff] %v33737_v36  ;;  %36303 = vst [vmem:[#allocation62_spill] sm:$0xff] %v33739_v9  ;;  %v12600_v54 = vadd.f32 %v29464_v48, %v12474_v35 }
 0xa4a   : > { %v29453_v22 = vpop.f32.mrf.mxu0  ;;  %v29489_v17 = vpop.f32.mrf.mxu1 }
 0xa4b   : > { %v12488_v13 = vadd.f32 %v29453_v22, %v12367_v26 }
 0xa4c   : > { %v33741_v19 = vpop.f32.mrf.mxu0  ;;  %v33743_v8 = vpop.f32.mrf.mxu1 }
 0xa4d   : > { %36304 = vst [vmem:[#allocation63_spill] sm:$0xff] %v33741_v19  ;;  %36305 = vst [vmem:[#allocation64_spill] sm:$0xff] %v33743_v8  ;;  %v12616_v24 = vadd.f32 %v29467_v49, %v12488_v13 }
 0xa4e   : > { %v29456_v33 = vpop.f32.mrf.mxu0  ;;  %v29492_v61 = vpop.f32.mrf.mxu1 }
 0xa4f   : > { %v12502_v56 = vadd.f32 %v29456_v33, %v12379_v60 }
 0xa50   : > { %v33745_v47 = vpop.f32.mrf.mxu0  ;;  %v33747_v12 = vpop.f32.mrf.mxu1 }
 0xa51   : > { %36306 = vst [vmem:[#allocation65_spill] sm:$0xff] %v33745_v47  ;;  %v12632_v51 = vadd.f32 %v29470_v46, %v12502_v56  ;;  %36307 = vst [vmem:[#allocation66_spill] sm:$0xff] %v33747_v12 }
 0xa52   : > { %v29475_v63 = vpop.f32.mrf.mxu0  ;;  %v29495_v26 = vpop.f32.mrf.mxu1 }
 0xa53   : > { %v12712_v20 = vadd.f32 %v29475_v63, %v12584_v16 }
 0xa54   : > { %v33749_v9 = vpop.f32.mrf.mxu0  ;;  %v33757_v13 = vpop.f32.mrf.mxu1 }
 0xa55   : > { %36308 = vst [vmem:[#allocation67_spill] sm:$0xff] %v33749_v9  ;;  %v33751_v48 = vadd.f32 %v29489_v17, %v12712_v20  ;;  %36310 = vst [vmem:[#allocation69_spill] sm:$0xff] %v33757_v13 }
 0xa56   : > { %v29478_v35 = vpop.f32.mrf.mxu0  ;;  %v29498_v16 = vpop.f32.mrf.mxu1 }
 0xa57   : > { %v12724_v22 = vadd.f32 %v29478_v35, %v12600_v54 }
 0xa58   : > { %v33753_v14 = vpop.f32.mrf.mxu0  ;;  %v33767_v54 = vpop.f32.mrf.mxu1 }
 0xa59   : > { %36309 = vst [vmem:[#allocation68_spill] sm:$0xff] %v33753_v14  ;;  %v33755_v49 = vadd.f32 %v29492_v61, %v12724_v22  ;;  %36313 = vst [vmem:[#allocation72_spill] sm:$0xff] %v33767_v54 }
 0xa5a   : > { %v29481_v60 = vpop.f32.mrf.mxu0  ;;  %v29512_v61 = vpop.f32.mrf.mxu1 }
 0xa5b   : > { %v12736_v33 = vadd.f32 %v29481_v60, %v12616_v24 }
 0xa5c   : > { %v33759_v46 = vpop.f32.mrf.mxu0  ;;  %v13045_v8 = vpop.f32.mrf.mxu1 }
 0xa5d   : > { %36311 = vst [vmem:[#allocation70_spill] sm:$0xff] %v33759_v46  ;;  %v33761_v56 = vadd.f32 %v29495_v26, %v12736_v33 }
 0xa5e   : > { %v29484_v63 = vpop.f32.mrf.mxu0 }
 0xa5f   : > { %v12748_v12 = vadd.f32 %v29484_v63, %v12632_v51 }
 0xa60   : > { %v33763_v20 = vpop.f32.mrf.mxu0 }
 0xa61   : > { %36312 = vst [vmem:[#allocation71_spill] sm:$0xff] %v33763_v20  ;;  %v33765_v17 = vadd.f32 %v29498_v16, %v12748_v12 }
 0xa62   : > { %v29505_v35 = vpop.f32.mrf.mxu0  ;;  %v29526_v24 = vpop.f32.mrf.mxu1 }
 0xa63   : > { %v13052_v14 = vadd.f32 %v29512_v61, %v29505_v35 }
 0xa64   : > { %v12954_v22 = vpop.f32.mrf.mxu0  ;;  %v13209_v9 = vpop.f32.mrf.mxu1 }
 0xa65   : > { %v13046_v46 = vadd.f32 %v13045_v8, %v12954_v22 }
 0xa6a   : > { %v29519_v13 = vpop.f32.mrf.mxu0  ;;  %v29540_v51 = vpop.f32.mrf.mxu1 }
 0xa6b   : > { %v13135_v26 = vadd.f32 %v29519_v13, %v13052_v14 }
 0xa6c   : > { %v13127_v60 = vpop.f32.mrf.mxu0  ;;  %v13373_v59 = vpop.f32.mrf.mxu1 }
 0xa6d   : > { %v13128_v33 = vadd.f32 %v13127_v60, %v13046_v46  ;;  %v13218_v47 = vadd.f32 %v29526_v24, %v13135_v26 }
 0xa6f   : > { %v13210_v12 = vadd.f32 %v13209_v9, %v13128_v33 }
 0xa72   : > { %v29533_v63 = vpop.f32.mrf.mxu0 }
 0xa73   : > { %v13301_v20 = vadd.f32 %v29533_v63, %v13218_v47  ;;  %v29554_v47 = vpop.f32.mrf.mxu1 }
 0xa74   : > { %v13294_v16 = vpop.f32.mrf.mxu0 }
 0xa75   : > { %v13380_v7 = vadd.f32 %v29540_v51, %v13301_v20  ;;  %v13295_v54 = vadd.f32 %v13294_v16, %v13210_v12 }
 0xa77   : > { %v14938_v19 = vmul.f32 0.35355338, %v13380_v7  ;;  %v13374_v36 = vadd.f32 %v13373_v59, %v13295_v54  ;;  %v13563_v7 = vpop.f32.mrf.mxu1 }
 0xa79   : > { %v33770_v11 = vadd.f32 %v14938_v19, %v31770_v5  ;;  %v14937_v35 = vmul.f32 0.35355338, %v13374_v36 }
 0xa7a   : > { %v29547_v13 = vpop.f32.mrf.mxu0 }
 0xa7b   : > { %v14956_v14 = vsel %vm4946_vm11, %v33770_v11, -inf  ;;  %v33775_v8 = vadd.f32 %v14937_v35, %v31770_v5  ;;  %v13570_v20 = vadd.f32 %v29554_v47, %v29547_v13  ;;  %v29568_v19 = vpop.f32.mrf.mxu1 }
 0xa7c   : > { %14957 = vmax.xlane.f32.xlu1 %v14956_v14  ;;  %v13472_v46 = vpop.f32.mrf.mxu0 }
 0xa7d   : > { %v14953_v9 = vsel %vm4946_vm11, %v33775_v8, -inf  ;;  %v13564_v36 = vadd.f32 %v13563_v7, %v13472_v46  ;;  %v13727_v24 = vpop.f32.mrf.mxu1 }
 0xa7e   : > { %14954 = vmax.xlane.f32.xlu0 %v14953_v9 }
 0xa82   : > { %v29561_v59 = vpop.f32.mrf.mxu0 }
 0xa83   : > { %v13653_v61 = vadd.f32 %v29561_v59, %v13570_v20  ;;  %v29582_v26 = vpop.f32.mrf.mxu1 }
 0xa84   : > { %v13645_v54 = vpop.f32.mrf.mxu0 }
 0xa85   : > { %v13646_v22 = vadd.f32 %v13645_v54, %v13564_v36  ;;  %v13736_v60 = vadd.f32 %v29568_v19, %v13653_v61  ;;  %v13891_v14 = vpop.f32.mrf.mxu1 }
 0xa87   : > { %v13728_v63 = vadd.f32 %v13727_v24, %v13646_v22 }
 0xa8a   : > { %v29575_v33 = vpop.f32.mrf.mxu0 }
 0xa8b   : > { %v13819_v51 = vadd.f32 %v29575_v33, %v13736_v60  ;;  %v29596_v59 = vpop.f32.mrf.mxu1 }
 0xa8c   : > { %v13812_v12 = vpop.f32.mrf.mxu0 }
 0xa8d   : > { %v13898_v16 = vadd.f32 %v29582_v26, %v13819_v51  ;;  %v13813_v35 = vadd.f32 %v13812_v12, %v13728_v63  ;;  %v14081_v54 = vpop.f32.mrf.mxu1 }
 0xa8f   : > { %v14940_v9 = vmul.f32 0.35355338, %v13898_v16  ;;  %v13892_v53 = vadd.f32 %v13891_v14, %v13813_v35 }
 0xa91   : > { %v33780_v44 = vadd.f32 %v14940_v9, %v31770_v5  ;;  %v14939_v13 = vmul.f32 0.35355338, %v13892_v53 }
 0xa92   : > { %v29589_v7 = vpop.f32.mrf.mxu0 }
 0xa93   : > { %v14962_v47 = vsel %vm4946_vm11, %v33780_v44, -inf  ;;  %v33785_v46 = vadd.f32 %v14939_v13, %v31770_v5  ;;  %v14088_v61 = vadd.f32 %v29596_v59, %v29589_v7  ;;  %v29610_v22 = vpop.f32.mrf.mxu1 }
 0xa94   : > { %14963 = vmax.xlane.f32.xlu0 %v14962_v47  ;;  %v13990_v19 = vpop.f32.mrf.mxu0 }
 0xa95   : > { %v14959_v20 = vsel %vm4946_vm11, %v33785_v46, -inf  ;;  %v14082_v53 = vadd.f32 %v14081_v54, %v13990_v19  ;;  %v14245_v33 = vpop.f32.mrf.mxu1 }
 0xa98   : > { %14960 = vmax.xlane.f32.xlu0 %v14959_v20 }
 0xa9a   : > { %v29603_v36 = vpop.f32.mrf.mxu0 }
 0xa9b   : > { %v14171_v60 = vadd.f32 %v29603_v36, %v14088_v61  ;;  %v29624_v63 = vpop.f32.mrf.mxu1 }
 0xa9c   : > { %v14163_v24 = vpop.f32.mrf.mxu0 }
 0xa9d   : > { %v14164_v26 = vadd.f32 %v14163_v24, %v14082_v53  ;;  %v14254_v51 = vadd.f32 %v29610_v22, %v14171_v60  ;;  %v14409_v47 = vpop.f32.mrf.mxu1 }
 0xa9f   : > { %v14246_v35 = vadd.f32 %v14245_v33, %v14164_v26 }
 0xaa2   : > { %v29617_v12 = vpop.f32.mrf.mxu0 }
 0xaa3   : > { %v14337_v16 = vadd.f32 %v29617_v12, %v14254_v51  ;;  %v29638_v61 = vpop.f32.mrf.mxu1 }
 0xaa4   : > { %v14330_v14 = vpop.f32.mrf.mxu0 }
 0xaa5   : > { %v14416_v9 = vadd.f32 %v29624_v63, %v14337_v16  ;;  %v14331_v13 = vadd.f32 %v14330_v14, %v14246_v35  ;;  %v14599_v60 = vpop.f32.mrf.mxu1 }
 0xaa7   : > { %v14942_v15 = vmul.f32 0.35355338, %v14416_v9  ;;  %v14410_v20 = vadd.f32 %v14409_v47, %v14331_v13 }
 0xaa9   : > { %v33790_v39 = vadd.f32 %v14942_v15, %v31770_v5  ;;  %v14941_v7 = vmul.f32 0.35355338, %v14410_v20 }
 0xaaa   : > { %v29631_v54 = vpop.f32.mrf.mxu0 }
 0xaab   : > { %v14968_v59 = vsel %vm4946_vm11, %v33790_v39, -inf  ;;  %v33795_v19 = vadd.f32 %v14941_v7, %v31770_v5  ;;  %v14606_v53 = vadd.f32 %v29638_v61, %v29631_v54  ;;  %v29652_v26 = vpop.f32.mrf.mxu1 }
 0xaac   : > { %14969 = vmax.xlane.f32.xlu0 %v14968_v59  ;;  %v14508_v22 = vpop.f32.mrf.mxu0 }
 0xaad   : > { %v14965_v36 = vsel %vm4946_vm11, %v33795_v19, -inf  ;;  %v14763_v63 = vpop.f32.mrf.mxu1  ;;  %v14600_v20 = vadd.f32 %v14599_v60, %v14508_v22 }
 0xaae   : > { %14966 = vmax.xlane.f32.xlu1 %v14965_v36 }
 0xab2   : > { %v29645_v24 = vpop.f32.mrf.mxu0 }
 0xab3   : > { %v14689_v15 = vadd.f32 %v29645_v24, %v14606_v53  ;;  %v29666_v35 = vpop.f32.mrf.mxu1  ;;  %v36314_v53 = vld [vmem:[#allocation33_spill] sm:$0xff] }
 0xab4   : > { %v14681_v33 = vpop.f32.mrf.mxu0 }
 0xab5   : > { %v14772_v51 = vadd.f32 %v29652_v26, %v14689_v15  ;;  %v14682_v7 = vadd.f32 %v14681_v33, %v14600_v20  ;;  %v14927_v61 = vpop.f32.mrf.mxu1 }
 0xab7   : > { %v14764_v54 = vadd.f32 %v14763_v63, %v14682_v7 }
 0xaba   : > { %v29659_v12 = vpop.f32.mrf.mxu0 }
 0xabb   : > { %v14855_v16 = vadd.f32 %v29659_v12, %v14772_v51 }
 0xabc   : > { %v14848_v59 = vpop.f32.mrf.mxu0 }
 0xabd   : > { %v14934_v14 = vadd.f32 %v29666_v35, %v14855_v16  ;;  %v14849_v36 = vadd.f32 %v14848_v59, %v14764_v54 }
 0xabf   : > { %15557 = vrot.lane.b32.xlu1 %v32116_v52, %s31472_s23  ;;  %v14944_v9 = vmul.f32 0.35355338, %v14934_v14  ;;  %v14928_v24 = vadd.f32 %v14927_v61, %v14849_v36 }
 0xac1   : > { %v33802_v13 = vadd.f32 %v14944_v9, %v31770_v5  ;;  %v14943_v15 = vmul.f32 0.35355338, %v14928_v24 }
 0xac3   : > { %v14974_v47 = vsel %vm4946_vm11, %v33802_v13, -inf  ;;  %v33809_v26 = vadd.f32 %v14943_v15, %v31770_v5 }
 0xac4   : > { %14975 = vmax.xlane.f32.xlu0 %v14974_v47 }
 0xac5   : > { %v14971_v51 = vsel %vm4946_vm11, %v33809_v26, -inf }
 0xada   : > { %15041 = vrot.lane.b32.xlu0 %v36314_v53, %s31472_s23 }
 0xae3   : > { %14972 = vmax.xlane.f32.xlu1 %v14971_v51 }
 0xb05   : > { %v14958_v12 = vpop.xlane.xlu1 %14957 }
 0xb06   : > { %v14978_v22 = vsub.f32 %v33770_v11, %v14958_v12 }
 0xb07   : > { %v14955_v60 = vpop.xlane.xlu0 %14954 }
 0xb08   : > { %v14987_v33 = vmul.f32 1.442695, %v14978_v22  ;;  %v14977_v63 = vsub.f32 %v33775_v8, %v14955_v60 }
 0xb0a   : > { %31071 = vpow2.f32 %v14987_v33  ;;  %v14985_v16 = vmul.f32 1.442695, %v14977_v63 }
 0xb0c   : > { %31073 = vpow2.f32 %v14985_v16 }
 0xb17   : > { %v33815_v35 = vpop.eup %31071 }
 0xb18   : > { %v15004_v14 = vsel %vm4946_vm11, %v33815_v35, 0.0 }
 0xb19   : > { %v33819_v9 = vpop.eup %31073  ;;  %15005 = vadd.xlane.f32.xlu0 %v15004_v14 }
 0xb1a   : > { %v15001_v47 = vsel %vm4946_vm11, %v33819_v9, 0.0 }
 0xb1b   : > { %15002 = vadd.xlane.f32.xlu1 %v15001_v47 }
 0xb1d   : > { %v14964_v11 = vpop.xlane.xlu0 %14963 }
 0xb1e   : > { %v14980_v20 = vsub.f32 %v33780_v44, %v14964_v11 }
 0xb20   : > { %v14991_v7 = vmul.f32 1.442695, %v14980_v20 }
 0xb21   : > { %v14961_v8 = vpop.xlane.xlu0 %14960 }
 0xb22   : > { %31075 = vpow2.f32 %v14991_v7  ;;  %v14979_v59 = vsub.f32 %v33785_v46, %v14961_v8  ;;  %v36315_v46 = vld [vmem:[#allocation35_spill] sm:$0xff]  ;;  %v36316_v8 = vld [vmem:[#allocation34_spill] sm:$0xff] }
 0xb24   : > { %v14989_v54 = vmul.f32 1.442695, %v14979_v59 }
 0xb26   : > { %31077 = vpow2.f32 %v14989_v54 }
 0xb2f   : > { %v33825_v36 = vpop.eup %31075 }
 0xb30   : > { %v15010_v61 = vsel %vm4946_vm11, %v33825_v36, 0.0 }
 0xb31   : > { %15011 = vadd.xlane.f32.xlu0 %v15010_v61 }
 0xb33   : > { %v33829_v24 = vpop.eup %31077 }
 0xb34   : > { %v15007_v15 = vsel %vm4946_vm11, %v33829_v24, 0.0 }
 0xb35   : > { %v14970_v51 = vpop.xlane.xlu0 %14969  ;;  %15008 = vadd.xlane.f32.xlu1 %v15007_v15 }
 0xb36   : > { %v14982_v44 = vsub.f32 %v33790_v39, %v14970_v51 }
 0xb37   : > { %v14967_v63 = vpop.xlane.xlu1 %14966 }
 0xb38   : > { %v14995_v12 = vmul.f32 1.442695, %v14982_v44  ;;  %v14981_v16 = vsub.f32 %v33795_v19, %v14967_v63  ;;  %v36317_v44 = vld [vmem:[#allocation36_spill] sm:$0xff] }
 0xb3a   : > { %31079 = vpow2.f32 %v14995_v12  ;;  %v14993_v11 = vmul.f32 1.442695, %v14981_v16  ;;  %v36318_v16 = vld [vmem:[#allocation37_spill] sm:$0xff] }
 0xb3c   : > { %31081 = vpow2.f32 %v14993_v11 }
 0xb46   : > { %16071 = vrot.lane.b32.xlu1 %v36315_v46, %s31472_s23 }
 0xb47   : > { %v33836_v22 = vpop.eup %31079 }
 0xb48   : > { %v15016_v60 = vsel %vm4946_vm11, %v33836_v22, 0.0 }
 0xb49   : > { %15017 = vadd.xlane.f32.xlu0 %v15016_v60  ;;  %v33858_v54 = vpop.eup %31081  ;;  %v15558_v60 = vpop.permute.xlu1 %15557 }
 0xb4a   : > { %v15013_v15 = vsel %vm4946_vm11, %v33858_v54, 0.0 }
 0xb4d   : > { %v14976_v33 = vpop.xlane.xlu0 %14975 }
 0xb4e   : > { %v14984_v59 = vsub.f32 %v33802_v13, %v14976_v33 }
 0xb50   : > { %v14999_v61 = vmul.f32 1.442695, %v14984_v59 }
 0xb51   : > { %v15042_v14 = vpop.permute.xlu0 %15041 }
 0xb52   : > { %v33841_v47 = vand.u32 4294901760, %v15042_v14  ;;  %31083 = vpow2.f32 %v14999_v61  ;;  %v33887_v61 = vand.u32 4294901760, %v15558_v60 }
 0xb54   : > { %v33844_v39 = vsub.f32 %v15042_v14, %v33841_v47  ;;  %29669 = vmatprep.subr.mxu0 %v33841_v47  ;;  %v36319_v14 = vld [vmem:[#allocation32_spill] sm:$0xff] }
 0xb55   : > { %29670 = vmatpush3.msra.mxu0 %v33841_v47 }
 0xb56   : > { %29681 = vmatprep.subr.mxu0 %v33638_v32  ;;  %v33850_v20 = vand.u32 4294901760, %v33844_v39 }
 0xb58   : > { %v15179_v7 = vsub.f32 %v33844_v39, %v33850_v20 }
 0xb5a   : > { %v15180_v19 = vand.u32 4294901760, %v15179_v7 }
 0xb5c   : > { %29676 = vmatprep.subr.mxu1 %v15180_v19 }
 0xb5d   : > { %29677 = vmatpush3.msra.mxu1 %v15180_v19 }
 0xb5e   : > { %29688 = vmatprep.subr.mxu1 %v33631_v2 }
 0xb5f   : > { %15555 = vrot.lane.b32.xlu0 %v36316_v8, %s31472_s23  ;;  %v33862_v51 = vpop.eup %31083 }
 0xb60   : > { %v15022_v12 = vsel %vm4946_vm11, %v33862_v51, 0.0 }
 0xb6a   : > { %15014 = vadd.xlane.f32.xlu1 %v15013_v15  ;;  %v36320_v15 = vld [vmem:[#allocation38_spill] sm:$0xff] }
 0xb6c   : > { %v14973_v63 = vpop.xlane.xlu1 %14972 }
 0xb6d   : > { %v14983_v13 = vsub.f32 %v33809_v26, %v14973_v63 }
 0xb6f   : > { %v14997_v33 = vmul.f32 1.442695, %v14983_v13 }
 0xb71   : > { %31085 = vpow2.f32 %v14997_v33 }
 0xb7b   : > { %16069 = vrot.lane.b32.xlu1 %v36317_v44, %s31472_s23 }
 0xb7e   : > { %15023 = vadd.xlane.f32.xlu0 %v15022_v12  ;;  %v33873_v11 = vpop.eup %31085 }
 0xb7f   : > { %v15019_v7 = vsel %vm4946_vm11, %v33873_v11, 0.0 }
 0xb94   : > { %16585 = vrot.lane.b32.xlu0 %v36318_v16, %s31472_s23 }
 0xb98   : > { %17882 = vrot.lane.b32.xlu0 %v36319_v14, %s31473_s4 }
 0xb9c   : > { %17876 = vrot.lane.b32.xlu0 %v36314_v53, %s31474_s27 }
 0xb9f   : > { %15020 = vadd.xlane.f32.xlu1 %v15019_v7  ;;  %v33897_v7 = vsub.f32 %v15558_v60, %v33887_v61 }
 0xba0   : > { %18400 = vrot.lane.b32.xlu0 %v32116_v52, %s31473_s4 }
 0xba1   : > { %v33907_v60 = vand.u32 4294901760, %v33897_v7 }
 0xba2   : > { %v15006_v26 = vpop.xlane.xlu0 %15005 }
 0xba3   : > { %31087 = vrcp.f32 %v15006_v26 }
 0xba4   : > { %18394 = vrot.lane.b32.xlu0 %v36316_v8, %s31474_s27  ;;  %v15003_v19 = vpop.xlane.xlu1 %15002 }
 0xba5   : > { %31089 = vrcp.f32 %v15003_v19 }
 0xba8   : > { %18918 = vrot.lane.b32.xlu0 %v36315_v46, %s31473_s4 }
 0xbac   : > { %18912 = vrot.lane.b32.xlu0 %v36317_v44, %s31474_s27 }
 0xbb0   : > { %v31088_v59 = vpop.eup %31087  ;;  %19436 = vrot.lane.b32.xlu0 %v36318_v16, %s31473_s4  ;;  %16583 = vrot.lane.b32.xlu1 %v36320_v15, %s31472_s23 }
 0xbb1   : > { %v15034_v12 = vmul.f32 %v31088_v59, %v33815_v35 }
 0xbb2   : > { %v31090_v63 = vpop.eup %31089 }
 0xbb3   : > { %v15033_v13 = vmul.f32 %v31090_v63, %v33819_v9  ;;  %v15051_v33 = vsel %vm4946_vm11, %v15034_v12, 0 }
 0xbb4   : > { %19430 = vrot.lane.b32.xlu0 %v36320_v15, %s31474_s27  ;;  %17880 = vrot.lane.b32.xlu1 %v36314_v53, %s31473_s4  ;;  %v15130_v26 = vand.u32 4294901760, %v15051_v33 }
 0xbb5   : > { %v15048_v19 = vsel %vm4946_vm11, %v15033_v13, 0  ;;  %v15686_v13 = vsub.f32 %v33897_v7, %v33907_v60 }
 0xbb6   : > { %v15120_v3 = vand.u32 4294901760, %v15048_v19  ;;  %v15131_v4 = vsub.f32 %v15051_v33, %v15130_v26 }
 0xbb8   : > { %17878 = vrot.lane.b32.xlu1 %v36319_v14, %s31474_s27  ;;  %29678 = vmatprep.mubr.f32.mxu1 %v15120_v3  ;;  %v15121_v35 = vsub.f32 %v15048_v19, %v15120_v3  ;;  %v15132_v9 = vand.u32 4294901760, %v15131_v4 }
 0xbb9   : > { %29679 = vmatmul.mubr.f32.vlgmr.msra.gmra.mxu1 %v15130_v26 }
 0xbba   : > { %29689 = vmatpush3.msra.mxu1 %v33631_v2  ;;  %v15012_v59 = vpop.xlane.xlu0 %15011  ;;  %v15122_v12 = vand.u32 4294901760, %v15121_v35  ;;  %v15133_v33 = vsub.f32 %v15131_v4, %v15132_v9 }
 0xbbb   : > { %31091 = vrcp.f32 %v15012_v59  ;;  %29690 = vmatprep.subr.mxu1 %v33841_v47  ;;  %v15687_v59 = vand.u32 4294901760, %v15686_v13 }
 0xbbc   : > { %29691 = vmatpush3.msra.mxu1 %v33841_v47  ;;  %18398 = vrot.lane.b32.xlu1 %v36316_v8, %s31473_s4  ;;  %v15123_v63 = vsub.f32 %v15121_v35, %v15122_v12  ;;  %v15134_v41 = vand.u32 4294901760, %v15133_v33 }
 0xbbd   : > { %29692 = vmatprep.mubr.f32.mxu1 %v15122_v12  ;;  %29702 = vmatprep.subr.mxu1 %v33631_v2 }
 0xbbe   : > { %29693 = vmatmul.mubr.f32.vlgmr.msra.gmra.mxu1 %v15132_v9  ;;  %v15009_v19 = vpop.xlane.xlu1 %15008  ;;  %v15124_v55 = vand.u32 4294901760, %v15123_v63 }
 0xbbf   : > { %29703 = vmatpush3.msra.mxu1 %v33631_v2  ;;  %29706 = vmatprep.mubr.f32.mxu1 %v15120_v3  ;;  %31093 = vrcp.f32 %v15009_v19 }
 0xbc0   : > { %29704 = vmatprep.subr.mxu1 %v33841_v47  ;;  %18396 = vrot.lane.b32.xlu1 %v32116_v52, %s31474_s27 }
 0xbc1   : > { %29705 = vmatpush3.msra.mxu1 %v33841_v47  ;;  %29671 = vmatprep.mubr.f32.mxu0 %v15124_v55 }
 0xbc2   : > { %29716 = vmatprep.subr.mxu1 %v15687_v59  ;;  %29672 = vmatmul.mubr.f32.vlgmr.msra.gmra.mxu0 %v15134_v41  ;;  %v16072_v63 = vpop.permute.xlu1 %16071 }
 0xbc3   : > { %29682 = vmatpush3.msra.mxu0 %v33638_v32  ;;  %29707 = vmatmul.mubr.f32.vlgmr.msra.gmra.mxu1 %v15130_v26 }
 0xbc4   : > { %29717 = vmatpush3.msra.mxu1 %v15687_v59  ;;  %29683 = vmatprep.subr.mxu0 %v33844_v39 }
 0xbc5   : > { %29685 = vmatprep.mubr.f32.mxu0 %v15121_v35  ;;  %29684 = vmatpush3.msra.mxu0 %v33844_v39 }
 0xbc6   : > { %18916 = vrot.lane.b32.xlu1 %v36317_v44, %s31473_s4  ;;  %29695 = vmatprep.subr.mxu0 %v33647_v34 }
 0xbc7   : > { %29686 = vmatmul.mubr.f32.vlgmr.msra.gmra.mxu0 %v15131_v4 }
 0xbc8   : > { %v31092_v2 = vpop.eup %31091  ;;  %29696 = vmatpush3.msra.mxu0 %v33647_v34  ;;  %29699 = vmatprep.mubr.f32.mxu0 %v15120_v3 }
 0xbc9   : > { %v15036_v41 = vmul.f32 %v31092_v2, %v33825_v36  ;;  %29697 = vmatprep.subr.mxu0 %v33850_v20  ;;  %v33948_v2 = vand.u32 4294901760, %v16072_v63 }
 0xbca   : > { %29698 = vmatpush3.msra.mxu0 %v33850_v20  ;;  %18914 = vrot.lane.b32.xlu1 %v36315_v46, %s31474_s27 }
 0xbcb   : > { %v15565_v32 = vsel %vm4946_vm11, %v15036_v41, 0  ;;  %29709 = vmatprep.subr.mxu0 %v33887_v61  ;;  %29700 = vmatmul.mubr.f32.vlgmr.msra.gmra.mxu0 %v15130_v26 }
 0xbcc   : > { %v31094_v55 = vpop.eup %31093  ;;  %v33936_v4 = vand.u32 4294901760, %v15565_v32  ;;  %29710 = vmatpush3.msra.mxu0 %v33887_v61 }
 0xbcd   : > { %v15035_v34 = vmul.f32 %v31094_v55, %v33829_v24 }
 0xbce   : > { %19434 = vrot.lane.b32.xlu1 %v36320_v15, %s31473_s4  ;;  %v15645_v3 = vsub.f32 %v15565_v32, %v33936_v4  ;;  %v33953_v32 = vsub.f32 %v16072_v63, %v33948_v2  ;;  %s36453_s4 = sld [smem:[#allocation98_spill]] (!%p27072_p10) }
 0xbcf   : > { %v15562_v36 = vsel %vm4946_vm11, %v15035_v34, 0 }
 0xbd0   : > { %v15634_v47 = vand.u32 4294901760, %v15562_v36  ;;  %v15646_v39 = vand.u32 4294901760, %v15645_v3 }
 0xbd2   : > { %19432 = vrot.lane.b32.xlu1 %v36318_v16, %s31474_s27  ;;  %v15018_v20 = vpop.xlane.xlu0 %15017  ;;  %29720 = vmatprep.mubr.f32.mxu1 %v15634_v47  ;;  %v15635_v26 = vsub.f32 %v15562_v36, %v15634_v47  ;;  %v15647_v9 = vsub.f32 %v15645_v3, %v15646_v39  ;;  %s22913_s27 = scalar_lea.vmem %s36125_s20, %s31435_s25 }
 0xbd3   : > { %31095 = vrcp.f32 %v15018_v20 }
 0xbd4   : > { %v15636_v35 = vand.u32 4294901760, %v15635_v26  ;;  %v15648_v59 = vand.u32 4294901760, %v15647_v9 }
 0xbd6   : > { %20054 = vrot.lane.b32.xlu1 %v36319_v14, %s31475_s0  ;;  %v15556_v24 = vpop.permute.xlu0 %15555  ;;  %v15637_v12 = vsub.f32 %v15635_v26, %v15636_v35 }
 0xbd7   : > { %v15599_v13 = vand.u32 4294901760, %v15556_v24 }
 0xbd8   : > { %v15638_v33 = vand.u32 4294901760, %v15637_v12 }
 0xbd9   : > { %v15691_v19 = vsub.f32 %v15556_v24, %v15599_v13  ;;  %29711 = vmatprep.subr.mxu0 %v15599_v13 }
 0xbda   : > { %29712 = vmatpush3.msra.mxu0 %v15599_v13  ;;  %29713 = vmatprep.mubr.f32.mxu0 %v15638_v33 }
 0xbdb   : > { %29714 = vmatmul.mubr.f32.vlgmr.msra.gmra.mxu0 %v15648_v59  ;;  %29723 = vmatprep.subr.mxu0 %v33897_v7  ;;  %v15692_v41 = vand.u32 4294901760, %v15691_v19 }
 0xbdc   : > { %29724 = vmatpush3.msra.mxu0 %v33897_v7  ;;  %29727 = vmatprep.mubr.f32.mxu0 %v15635_v26  ;;  %v33958_v7 = vand.u32 4294901760, %v33953_v32 }
 0xbdd   : > { %29725 = vmatprep.subr.mxu0 %v15691_v19  ;;  %v15693_v14 = vsub.f32 %v15691_v19, %v15692_v41 }
 0xbde   : > { %29726 = vmatpush3.msra.mxu0 %v15691_v19 }
 0xbdf   : > { %29728 = vmatmul.mubr.f32.vlgmr.msra.gmra.mxu0 %v15645_v3  ;;  %29737 = vmatprep.subr.mxu0 %v33907_v60  ;;  %v15694_v55 = vand.u32 4294901760, %v15693_v14 }
 0xbe0   : > { %29738 = vmatpush3.msra.mxu0 %v33907_v60  ;;  %29741 = vmatprep.mubr.f32.mxu0 %v15634_v47  ;;  %v16200_v60 = vsub.f32 %v33953_v32, %v33958_v7  ;;  %v31096_v36 = vpop.eup %31095 }
 0xbe1   : > { %29718 = vmatprep.subr.mxu1 %v15694_v55  ;;  %29739 = vmatprep.subr.mxu0 %v15692_v41  ;;  %v15038_v26 = vmul.f32 %v31096_v36, %v33836_v22 }
 0xbe2   : > { %29719 = vmatpush3.msra.mxu1 %v15694_v55  ;;  %29740 = vmatpush3.msra.mxu0 %v15692_v41  ;;  %v16201_v34 = vand.u32 4294901760, %v16200_v60 }
 0xbe3   : > { %29721 = vmatmul.mubr.f32.vlgmr.msra.gmra.mxu1 %v33936_v4  ;;  %29730 = vmatprep.subr.mxu1 %v33887_v61 }
 0xbe4   : > { %29742 = vmatmul.mubr.f32.vlgmr.msra.gmra.mxu0 %v33936_v4  ;;  %29751 = vmatprep.subr.mxu0 %v33948_v2 }
 0xbe5   : > { %29731 = vmatpush3.msra.mxu1 %v33887_v61  ;;  %29734 = vmatprep.mubr.f32.mxu1 %v15636_v35 }
 0xbe6   : > { %29752 = vmatpush3.msra.mxu0 %v33948_v2  ;;  %29732 = vmatprep.subr.mxu1 %v15599_v13 }
 0xbe7   : > { %29733 = vmatpush3.msra.mxu1 %v15599_v13 }
 0xbe8   : > { %29735 = vmatmul.mubr.f32.vlgmr.msra.gmra.mxu1 %v15646_v39  ;;  %29744 = vmatprep.subr.mxu1 %v33887_v61 }
 0xbe9   : > { %29745 = vmatpush3.msra.mxu1 %v33887_v61  ;;  %29748 = vmatprep.mubr.f32.mxu1 %v15634_v47  ;;  %v16079_v61 = vsel %vm4946_vm11, %v15038_v26, 0 }
 0xbea   : > { %29746 = vmatprep.subr.mxu1 %v15599_v13  ;;  %v16158_v24 = vand.u32 4294901760, %v16079_v61 }
 0xbeb   : > { %29747 = vmatpush3.msra.mxu1 %v15599_v13 }
 0xbec   : > { %29749 = vmatmul.mubr.f32.vlgmr.msra.gmra.mxu1 %v33936_v4  ;;  %29758 = vmatprep.subr.mxu1 %v16201_v34  ;;  %v16159_v13 = vsub.f32 %v16079_v61, %v16158_v24 }
 0xbed   : > { %29759 = vmatpush3.msra.mxu1 %v16201_v34 }
 0xbee   : > { %v16160_v19 = vand.u32 4294901760, %v16159_v13 }
 0xbf0   : > { %v16161_v55 = vsub.f32 %v16159_v13, %v16160_v19 }
 0xbf2   : > { %v16162_v26 = vand.u32 4294901760, %v16161_v55 }
 0xbf3   : > { %v15015_v3 = vpop.xlane.xlu1 %15014 }
 0xbf4   : > { %31097 = vrcp.f32 %v15015_v3 }
 0xbf7   : > { %v16070_v20 = vpop.permute.xlu1 %16069 }
 0xbf8   : > { %v16113_v35 = vand.u32 4294901760, %v16070_v20 }
 0xbfa   : > { %v16205_v39 = vsub.f32 %v16070_v20, %v16113_v35  ;;  %29753 = vmatprep.subr.mxu0 %v16113_v35 }
 0xbfb   : > { %29754 = vmatpush3.msra.mxu0 %v16113_v35 }
 0xbfc   : > { %29765 = vmatprep.subr.mxu0 %v33953_v32  ;;  %v16206_v47 = vand.u32 4294901760, %v16205_v39 }
 0xbfe   : > { %v16207_v9 = vsub.f32 %v16205_v39, %v16206_v47 }
 0xc00   : > { %v16208_v4 = vand.u32 4294901760, %v16207_v9 }
 0xc01   : > { %v31098_v12 = vpop.eup %31097 }
 0xc02   : > { %29760 = vmatprep.subr.mxu1 %v16208_v4  ;;  %v15037_v63 = vmul.f32 %v31098_v12, %v33858_v54  ;;  %v2863_v12 = vld [vmem:[%s33126_s6 + $0x10] sm:$0xff] }
 0xc03   : > { %29761 = vmatpush3.msra.mxu1 %v16208_v4 }
 0xc04   : > { %29772 = vmatprep.subr.mxu1 %v33948_v2  ;;  %v16076_v22 = vsel %vm4946_vm11, %v15037_v63, 0 }
 0xc05   : > { %v16148_v33 = vand.u32 4294901760, %v16076_v22 }
 0xc07   : > { %v15024_v59 = vpop.xlane.xlu0 %15023  ;;  %29762 = vmatprep.mubr.f32.mxu1 %v16148_v33  ;;  %v16149_v41 = vsub.f32 %v16076_v22, %v16148_v33  ;;  %v33999_v22 = vand.u32 4294901760, %v2863_v12 }
 0xc08   : > { %29763 = vmatmul.mubr.f32.vlgmr.msra.gmra.mxu1 %v16158_v24  ;;  %31099 = vrcp.f32 %v15024_v59 }
 0xc09   : > { %29773 = vmatpush3.msra.mxu1 %v33948_v2  ;;  %v16150_v14 = vand.u32 4294901760, %v16149_v41 }
 0xc0a   : > { %29774 = vmatprep.subr.mxu1 %v16113_v35 }
 0xc0b   : > { %29775 = vmatpush3.msra.mxu1 %v16113_v35  ;;  %v16586_v60 = vpop.permute.xlu0 %16585  ;;  %29776 = vmatprep.mubr.f32.mxu1 %v16150_v14  ;;  %v16151_v54 = vsub.f32 %v16149_v41, %v16150_v14 }
 0xc0c   : > { %v33978_v34 = vand.u32 4294901760, %v16586_v60  ;;  %29786 = vmatprep.subr.mxu1 %v33948_v2  ;;  %29777 = vmatmul.mubr.f32.vlgmr.msra.gmra.mxu1 %v16160_v19 }
 0xc0d   : > { %29787 = vmatpush3.msra.mxu1 %v33948_v2  ;;  %29790 = vmatprep.mubr.f32.mxu1 %v16148_v33  ;;  %v16152_v3 = vand.u32 4294901760, %v16151_v54 }
 0xc0e   : > { %v33983_v36 = vsub.f32 %v16586_v60, %v33978_v34  ;;  %29788 = vmatprep.subr.mxu1 %v16113_v35 }
 0xc0f   : > { %29789 = vmatpush3.msra.mxu1 %v16113_v35  ;;  %29755 = vmatprep.mubr.f32.mxu0 %v16152_v3 }
 0xc10   : > { %29756 = vmatmul.mubr.f32.vlgmr.msra.gmra.mxu0 %v16162_v26  ;;  %29791 = vmatmul.mubr.f32.vlgmr.msra.gmra.mxu1 %v16158_v24  ;;  %v33986_v20 = vand.u32 4294901760, %v33983_v36 }
 0xc11   : > { %29766 = vmatpush3.msra.mxu0 %v33953_v32  ;;  %29769 = vmatprep.mubr.f32.mxu0 %v16149_v41  ;;  %v34003_v41 = vsub.f32 %v2863_v12, %v33999_v22 }
 0xc12   : > { %29767 = vmatprep.subr.mxu0 %v16205_v39  ;;  %v16714_v2 = vsub.f32 %v33983_v36, %v33986_v20 }
 0xc13   : > { %29768 = vmatpush3.msra.mxu0 %v16205_v39  ;;  %v34008_v54 = vand.u32 4294901760, %v34003_v41 }
 0xc14   : > { %29779 = vmatprep.subr.mxu0 %v33958_v7  ;;  %29770 = vmatmul.mubr.f32.vlgmr.msra.gmra.mxu0 %v16159_v13  ;;  %v16715_v61 = vand.u32 4294901760, %v16714_v2 }
 0xc15   : > { %29780 = vmatpush3.msra.mxu0 %v33958_v7  ;;  %29783 = vmatprep.mubr.f32.mxu0 %v16148_v33  ;;  %v31100_v35 = vpop.eup %31099  ;;  %v17301_v2 = vsub.f32 %v34003_v41, %v34008_v54 }
 0xc16   : > { %29781 = vmatprep.subr.mxu0 %v16206_v47  ;;  %29800 = vmatprep.subr.mxu1 %v16715_v61  ;;  %v15040_v39 = vmul.f32 %v31100_v35, %v33862_v51 }
 0xc17   : > { %29782 = vmatpush3.msra.mxu0 %v16206_v47  ;;  %29801 = vmatpush3.msra.mxu1 %v16715_v61 }
 0xc18   : > { %29793 = vmatprep.subr.mxu0 %v33978_v34  ;;  %29784 = vmatmul.mubr.f32.vlgmr.msra.gmra.mxu0 %v16158_v24  ;;  %v16593_v47 = vsel %vm4946_vm11, %v15040_v39, 0  ;;  %v17302_v39 = vand.u32 4294901760, %v17301_v2 }
 0xc19   : > { %29794 = vmatpush3.msra.mxu0 %v33978_v34  ;;  %v16672_v13 = vand.u32 4294901760, %v16593_v47 }
 0xc1b   : > { %v16673_v59 = vsub.f32 %v16593_v47, %v16672_v13 }
 0xc1d   : > { %v16674_v60 = vand.u32 4294901760, %v16673_v59 }
 0xc1f   : > { %v16675_v26 = vsub.f32 %v16673_v59, %v16674_v60 }
 0xc21   : > { %v16676_v35 = vand.u32 4294901760, %v16675_v26 }
 0xc28   : > { %v15021_v32 = vpop.xlane.xlu1 %15020 }
 0xc29   : > { %31101 = vrcp.f32 %v15021_v32 }
 0xc2c   : > { %v16584_v9 = vpop.permute.xlu1 %16583 }
 0xc2d   : > { %v16627_v4 = vand.u32 4294901760, %v16584_v9 }
 0xc2f   : > { %v16719_v7 = vsub.f32 %v16584_v9, %v16627_v4  ;;  %29795 = vmatprep.subr.mxu0 %v16627_v4 }
 0xc30   : > { %29796 = vmatpush3.msra.mxu0 %v16627_v4 }
 0xc31   : > { %29807 = vmatprep.subr.mxu0 %v33983_v36  ;;  %v16720_v63 = vand.u32 4294901760, %v16719_v7 }
 0xc33   : > { %v16721_v24 = vsub.f32 %v16719_v7, %v16720_v63 }
 0xc35   : > { %v16722_v33 = vand.u32 4294901760, %v16721_v24 }
 0xc36   : > { %v31102_v19 = vpop.eup %31101 }
 0xc37   : > { %29802 = vmatprep.subr.mxu1 %v16722_v33  ;;  %v15039_v51 = vmul.f32 %v31102_v19, %v33873_v11 }
 0xc38   : > { %29803 = vmatpush3.msra.mxu1 %v16722_v33 }
 0xc39   : > { %29814 = vmatprep.subr.mxu1 %v33978_v34  ;;  %v16590_v14 = vsel %vm4946_vm11, %v15039_v51, 0 }
 0xc3a   : > { %v16662_v55 = vand.u32 4294901760, %v16590_v14 }
 0xc3c   : > { %29804 = vmatprep.mubr.f32.mxu1 %v16662_v55  ;;  %v16663_v3 = vsub.f32 %v16590_v14, %v16662_v55 }
 0xc3d   : > { %29805 = vmatmul.mubr.f32.vlgmr.msra.gmra.mxu1 %v16672_v13 }
 0xc3e   : > { %29815 = vmatpush3.msra.mxu1 %v33978_v34  ;;  %v16664_v11 = vand.u32 4294901760, %v16663_v3 }
 0xc3f   : > { %29816 = vmatprep.subr.mxu1 %v16627_v4 }
 0xc40   : > { %29817 = vmatpush3.msra.mxu1 %v16627_v4  ;;  %29818 = vmatprep.mubr.f32.mxu1 %v16664_v11  ;;  %v16665_v61 = vsub.f32 %v16663_v3, %v16664_v11 }
 0xc41   : > { %29828 = vmatprep.subr.mxu1 %v33978_v34  ;;  %29819 = vmatmul.mubr.f32.vlgmr.msra.gmra.mxu1 %v16674_v60 }
 0xc42   : > { %29829 = vmatpush3.msra.mxu1 %v33978_v34  ;;  %29832 = vmatprep.mubr.f32.mxu1 %v16662_v55  ;;  %v16666_v32 = vand.u32 4294901760, %v16665_v61 }
 0xc43   : > { %29830 = vmatprep.subr.mxu1 %v16627_v4 }
 0xc44   : > { %29831 = vmatpush3.msra.mxu1 %v16627_v4  ;;  %29797 = vmatprep.mubr.f32.mxu0 %v16666_v32 }
 0xc45   : > { %29798 = vmatmul.mubr.f32.vlgmr.msra.gmra.mxu0 %v16676_v35  ;;  %29833 = vmatmul.mubr.f32.vlgmr.msra.gmra.mxu1 %v16672_v13 }
 0xc46   : > { %29808 = vmatpush3.msra.mxu0 %v33983_v36  ;;  %29811 = vmatprep.mubr.f32.mxu0 %v16663_v3 }
 0xc47   : > { %29809 = vmatprep.subr.mxu0 %v16719_v7  ;;  %29849 = vmatprep.subr.mxu1 %v17302_v39 }
 0xc48   : > { %29810 = vmatpush3.msra.mxu0 %v16719_v7  ;;  %29850 = vmatpush3.msra.mxu1 %v17302_v39 }
 0xc49   : > { %29821 = vmatprep.subr.mxu0 %v33986_v20  ;;  %29812 = vmatmul.mubr.f32.vlgmr.msra.gmra.mxu0 %v16673_v59 }
 0xc4a   : > { %29822 = vmatpush3.msra.mxu0 %v33986_v20  ;;  %29825 = vmatprep.mubr.f32.mxu0 %v16662_v55 }
 0xc4b   : > { %29823 = vmatprep.subr.mxu0 %v16720_v63  ;;  %29877 = vmatprep.subr.mxu1 %v33999_v22 }
 0xc4c   : > { %29824 = vmatpush3.msra.mxu0 %v16720_v63 }
 0xc4d   : > { %29826 = vmatmul.mubr.f32.vlgmr.msra.gmra.mxu0 %v16672_v13  ;;  %29835 = vmatprep.subr.mxu0 %v33999_v22 }
 0xc4e   : > { %29836 = vmatpush3.msra.mxu0 %v33999_v22 }
 0xc4f   : > { %29863 = vmatprep.subr.mxu0 %v34003_v41 }
 0xc79   : > { %v29680_v34 = vpop.f32.mrf.mxu1 }
 0xc7b   : > { %v15217_v36 = vpop.f32.mrf.mxu1 }
 0xc7e   : > { %v29694_v4 = vpop.f32.mrf.mxu1 }
 0xc80   : > { %v15381_v12 = vpop.f32.mrf.mxu1 }
 0xc82   : > { %v29673_v9 = vpop.f32.mrf.mxu0 }
 0xc83   : > { %v15224_v47 = vadd.f32 %v29680_v34, %v29673_v9  ;;  %v29708_v13 = vpop.f32.mrf.mxu1 }
 0xc84   : > { %v15126_v7 = vpop.f32.mrf.mxu0 }
 0xc85   : > { %v15218_v24 = vadd.f32 %v15217_v36, %v15126_v7  ;;  %v15545_v26 = vpop.f32.mrf.mxu1 }
 0xc87   : > { %v29687_v20 = vpop.f32.mrf.mxu0 }
 0xc88   : > { %v15307_v33 = vadd.f32 %v29687_v20, %v15224_v47 }
 0xc89   : > { %v15299_v19 = vpop.f32.mrf.mxu0 }
 0xc8a   : > { %v15300_v51 = vadd.f32 %v15299_v19, %v15218_v24  ;;  %v15390_v63 = vadd.f32 %v29694_v4, %v15307_v33 }
 0xc8b   : > { %v29701_v59 = vpop.f32.mrf.mxu0 }
 0xc8c   : > { %v15473_v14 = vadd.f32 %v29701_v59, %v15390_v63  ;;  %v15382_v55 = vadd.f32 %v15381_v12, %v15300_v51 }
 0xc8d   : > { %v15466_v60 = vpop.f32.mrf.mxu0 }
 0xc8e   : > { %v15552_v3 = vadd.f32 %v29708_v13, %v15473_v14  ;;  %v15467_v11 = vadd.f32 %v15466_v60, %v15382_v55 }
 0xc90   : > { %v17101_v2 = vsel %vm2871_vm10, %v15552_v3, 0  ;;  %v15546_v61 = vadd.f32 %v15545_v26, %v15467_v11 }
 0xc91   : > { %v34023_v32 = vand.u32 4294901760, %v17101_v2 }
 0xc92   : > { %v17098_v35 = vsel %vm2871_vm10, %v15546_v61, 0 }
 0xc93   : > { %v34027_v39 = vsub.f32 %v17101_v2, %v34023_v32  ;;  %v34029_v34 = vand.u32 4294901760, %v17098_v35 }
 0xc95   : > { %v36168_v36 = vand.u32 4294901760, %v34027_v39  ;;  %v34033_v9 = vsub.f32 %v17098_v35, %v34029_v34  ;;  %29851 = vmatprep.mubr.f32.mxu1 %v34029_v34 }
 0xc96   : > { %29852 = vmatmul.mubr.f32.vlgmr.msra.gmra.mxu1 %v34023_v32 }
 0xc97   : > { %v36169_v4 = vand.u32 4294901760, %v34033_v9  ;;  %29878 = vmatpush3.msra.mxu1 %v33999_v22  ;;  %v17200_v7 = vsub.f32 %v34027_v39, %v36168_v36 }
 0xc98   : > { %29905 = vmatprep.subr.mxu1 %v33999_v22 }
 0xc99   : > { %v17190_v47 = vsub.f32 %v34033_v9, %v36169_v4  ;;  %v17201_v24 = vand.u32 4294901760, %v17200_v7 }
 0xc9b   : > { %v29715_v12 = vpop.f32.mrf.mxu0  ;;  %v17191_v20 = vand.u32 4294901760, %v17190_v47 }
 0xc9d   : > { %29837 = vmatprep.mubr.f32.mxu0 %v17191_v20  ;;  %v15640_v33 = vpop.f32.mrf.mxu0 }
 0xc9e   : > { %29838 = vmatmul.mubr.f32.vlgmr.msra.gmra.mxu0 %v17201_v24 }
 0xc9f   : > { %29864 = vmatpush3.msra.mxu0 %v34003_v41  ;;  %v29729_v19 = vpop.f32.mrf.mxu0 }
 0xca0   : > { %29891 = vmatprep.subr.mxu0 %v34008_v54 }
 0xca1   : > { %v15813_v63 = vpop.f32.mrf.mxu0 }
 0xca3   : > { %v29722_v51 = vpop.f32.mrf.mxu1 }
 0xca4   : > { %v15738_v13 = vadd.f32 %v29722_v51, %v29715_v12  ;;  %v29743_v60 = vpop.f32.mrf.mxu0 }
 0xca5   : > { %v15731_v59 = vpop.f32.mrf.mxu1 }
 0xca6   : > { %v15732_v14 = vadd.f32 %v15731_v59, %v15640_v33  ;;  %v15821_v55 = vadd.f32 %v29729_v19, %v15738_v13  ;;  %v15980_v7 = vpop.f32.mrf.mxu0 }
 0xca8   : > { %v29736_v3 = vpop.f32.mrf.mxu1  ;;  %v15814_v11 = vadd.f32 %v15813_v63, %v15732_v14 }
 0xca9   : > { %v15904_v26 = vadd.f32 %v29736_v3, %v15821_v55 }
 0xcaa   : > { %v15895_v2 = vpop.f32.mrf.mxu1 }
 0xcab   : > { %v15896_v61 = vadd.f32 %v15895_v2, %v15814_v11  ;;  %v15987_v35 = vadd.f32 %v29743_v60, %v15904_v26 }
 0xcac   : > { %v29750_v47 = vpop.f32.mrf.mxu1 }
 0xcad   : > { %v16066_v20 = vadd.f32 %v29750_v47, %v15987_v35  ;;  %v15981_v41 = vadd.f32 %v15980_v7, %v15896_v61 }
 0xcae   : > { %v16059_v24 = vpop.f32.mrf.mxu1 }
 0xcaf   : > { %v17107_v36 = vsel %vm2871_vm10, %v16066_v20, 0  ;;  %v16060_v4 = vadd.f32 %v16059_v24, %v15981_v41 }
 0xcb0   : > { %v34049_v42 = vand.u32 4294901760, %v17107_v36 }
 0xcb1   : > { %v17104_v12 = vsel %vm2871_vm10, %v16060_v4, 0 }
 0xcb2   : > { %v34053_v33 = vsub.f32 %v17107_v36, %v34049_v42  ;;  %v34055_v19 = vand.u32 4294901760, %v17104_v12 }
 0xcb4   : > { %v36170_v51 = vand.u32 4294901760, %v34053_v33  ;;  %v34059_v63 = vsub.f32 %v17104_v12, %v34055_v19  ;;  %29854 = vmatprep.mubr.f32.mxu1 %v34055_v19 }
 0xcb5   : > { %29855 = vmatmul.mubr.f32.gmra.mxu1 %v34049_v42 }
 0xcb6   : > { %v36171_v13 = vand.u32 4294901760, %v34059_v63  ;;  %v17220_v4 = vsub.f32 %v34053_v33, %v36170_v51 }
 0xcb8   : > { %v17210_v36 = vsub.f32 %v34059_v63, %v36171_v13  ;;  %v17221_v14 = vand.u32 4294901760, %v17220_v4 }
 0xcba   : > { %v17211_v59 = vand.u32 4294901760, %v17210_v36 }
 0xcbc   : > { %29840 = vmatprep.mubr.f32.mxu0 %v17211_v59 }
 0xcbd   : > { %29841 = vmatmul.mubr.f32.gmra.mxu0 %v17221_v14 }
 0xcc8   : > { %v29764_v55 = vpop.f32.mrf.mxu1 }
 0xcca   : > { %v16245_v60 = vpop.f32.mrf.mxu1 }
 0xccc   : > { %v29778_v3 = vpop.f32.mrf.mxu1 }
 0xcce   : > { %v16409_v61 = vpop.f32.mrf.mxu1 }
 0xcd0   : > { %v29757_v11 = vpop.f32.mrf.mxu0  ;;  %v29792_v12 = vpop.f32.mrf.mxu1 }
 0xcd1   : > { %v16252_v2 = vadd.f32 %v29764_v55, %v29757_v11 }
 0xcd2   : > { %v16154_v26 = vpop.f32.mrf.mxu0  ;;  %v16573_v27 = vpop.f32.mrf.mxu1 }
 0xcd3   : > { %v16246_v7 = vadd.f32 %v16245_v60, %v16154_v26 }
 0xcd4   : > { %v29771_v35 = vpop.f32.mrf.mxu0 }
 0xcd5   : > { %v16335_v47 = vadd.f32 %v29771_v35, %v16252_v2 }
 0xcd6   : > { %v16327_v20 = vpop.f32.mrf.mxu0 }
 0xcd7   : > { %v16328_v41 = vadd.f32 %v16327_v20, %v16246_v7  ;;  %v16418_v24 = vadd.f32 %v29778_v3, %v16335_v47  ;;  %v17883_v47 = vpop.permute.xlu0 %17882 }
 0xcd8   : > { %v29785_v51 = vpop.f32.mrf.mxu0 }
 0xcd9   : > { %v16501_v13 = vadd.f32 %v29785_v51, %v16418_v24  ;;  %v16410_v36 = vadd.f32 %v16409_v61, %v16328_v41  ;;  %v17890_v24 = vsel %vm2871_vm10, %v17883_v47, 0 }
 0xcda   : > { %v16494_v4 = vpop.f32.mrf.mxu0 }
 0xcdb   : > { %v16580_v59 = vadd.f32 %v29792_v12, %v16501_v13  ;;  %v16495_v14 = vadd.f32 %v16494_v4, %v16410_v36 }
 0xcdd   : > { %v17113_v37 = vsel %vm2871_vm10, %v16580_v59, 0  ;;  %v16574_v50 = vadd.f32 %v16573_v27, %v16495_v14 }
 0xcde   : > { %v34071_v38 = vand.u32 4294901760, %v17113_v37 }
 0xcdf   : > { %v17110_v55 = vsel %vm2871_vm10, %v16574_v50, 0 }
 0xce0   : > { %v34075_v60 = vsub.f32 %v17113_v37, %v34071_v38  ;;  %v34077_v11 = vand.u32 4294901760, %v17110_v55 }
 0xce2   : > { %v34080_v3 = vsub.f32 %v17110_v55, %v34077_v11  ;;  %29857 = vmatprep.mubr.f32.mxu1 %v34077_v11  ;;  %v36172_v51 = vand.u32 4294901760, %v34075_v60  ;;  %v34091_v55 = vand.u32 4294901760, %v17890_v24 }
 0xce3   : > { %29858 = vmatmul.mubr.f32.gmra.mxu1 %v34071_v38 }
 0xce4   : > { %v17229_v27 = vand.u32 4294901760, %v34080_v3  ;;  %v17240_v50 = vsub.f32 %v34075_v60, %v36172_v51  ;;  %v34094_v10 = vsub.f32 %v17890_v24, %v34091_v55 }
 0xce6   : > { %v17230_v37 = vsub.f32 %v34080_v3, %v17229_v27  ;;  %v17241_v26 = vand.u32 4294901760, %v17240_v50 }
 0xce8   : > { %v17231_v13 = vand.u32 4294901760, %v17230_v37 }
 0xcea   : > { %29843 = vmatprep.mubr.f32.mxu0 %v17231_v13 }
 0xceb   : > { %29844 = vmatmul.mubr.f32.gmra.mxu0 %v17241_v26 }
 0xcfd   : > { %v29806_v2 = vpop.f32.mrf.mxu1 }
 0xcff   : > { %v16759_v61 = vpop.f32.mrf.mxu1 }
 0xd01   : > { %v29820_v35 = vpop.f32.mrf.mxu1 }
 0xd03   : > { %v16923_v12 = vpop.f32.mrf.mxu1 }
 0xd05   : > { %v29799_v7 = vpop.f32.mrf.mxu0  ;;  %v29834_v13 = vpop.f32.mrf.mxu1 }
 0xd06   : > { %v16766_v41 = vadd.f32 %v29806_v2, %v29799_v7 }
 0xd07   : > { %v16668_v20 = vpop.f32.mrf.mxu0  ;;  %v17087_v47 = vpop.f32.mrf.mxu1 }
 0xd08   : > { %v16760_v4 = vadd.f32 %v16759_v61, %v16668_v20 }
 0xd09   : > { %v29813_v36 = vpop.f32.mrf.mxu0 }
 0xd0a   : > { %v16849_v59 = vadd.f32 %v29813_v36, %v16766_v41 }
 0xd0b   : > { %v16841_v14 = vpop.f32.mrf.mxu0 }
 0xd0c   : > { %v16842_v37 = vadd.f32 %v16841_v14, %v16760_v4  ;;  %v16932_v50 = vadd.f32 %v29820_v35, %v16849_v59  ;;  %v34101_v35 = vand.u32 4294901760, %v34094_v10  ;;  %v17881_v4 = vpop.permute.xlu1 %17880  ;;  %v36321_v59 = vand.u32 4294901760, %v34033_v9 }
 0xd0d   : > { %v29827_v26 = vpop.f32.mrf.mxu0 }
 0xd0e   : > { %v17015_v51 = vadd.f32 %v29827_v26, %v16932_v50  ;;  %v16924_v25 = vadd.f32 %v16923_v12, %v16842_v37 }
 0xd0f   : > { %v17008_v45 = vpop.f32.mrf.mxu0 }
 0xd10   : > { %v17094_v2 = vadd.f32 %v29834_v13, %v17015_v51  ;;  %v17009_v7 = vadd.f32 %v17008_v45, %v16924_v25  ;;  %v18011_v25 = vsub.f32 %v34094_v10, %v34101_v35  ;;  %v17888_v51 = vsel %vm2871_vm10, %v17881_v4, 0 }
 0xd11   : > { %v34114_v50 = vand.u32 4294901760, %v17888_v51  ;;  %v36322_v13 = vand.u32 4294901760, %v34027_v39 }
 0xd12   : > { %v17119_v40 = vsel %vm2871_vm10, %v17094_v2, 0  ;;  %v17088_v61 = vadd.f32 %v17087_v47, %v17009_v7  ;;  %v18012_v26 = vand.u32 4294901760, %v18011_v25  ;;  %v36323_v2 = vand.u32 4294901760, %v34059_v63  ;;  %v17879_v25 = vpop.permute.xlu1 %17878 }
 0xd13   : > { %v34097_v20 = vand.u32 4294901760, %v17119_v40 }
 0xd14   : > { %v17116_v41 = vsel %vm2871_vm10, %v17088_v61, 0  ;;  %v34122_v61 = vsub.f32 %v17888_v51, %v34114_v50 }
 0xd15   : > { %v17258_v36 = vsub.f32 %v17119_v40, %v34097_v20  ;;  %v34104_v12 = vand.u32 4294901760, %v17116_v41 }
 0xd16   : > { %v34131_v4 = vand.u32 4294901760, %v34122_v61 }
 0xd17   : > { %v17248_v24 = vsub.f32 %v17116_v41, %v34104_v12  ;;  %29860 = vmatprep.mubr.f32.mxu1 %v34104_v12  ;;  %v17259_v45 = vand.u32 4294901760, %v17258_v36  ;;  %v36324_v41 = vand.u32 4294901760, %v34053_v33 }
 0xd18   : > { %29861 = vmatmul.mubr.f32.gmra.mxu1 %v34097_v20 }
 0xd19   : > { %29879 = vmatprep.mubr.f32.mxu1 %v36321_v59  ;;  %v17249_v14 = vand.u32 4294901760, %v17248_v24  ;;  %v17260_v40 = vsub.f32 %v17258_v36, %v17259_v45 }
 0xd1b   : > { %v17250_v37 = vsub.f32 %v17248_v24, %v17249_v14  ;;  %v17261_v47 = vand.u32 4294901760, %v17260_v40 }
 0xd1c   : > { %29880 = vmatmul.mubr.f32.vlgmr.msra.gmra.mxu1 %v36322_v13 }
 0xd1d   : > { %29906 = vmatpush3.msra.mxu1 %v33999_v22  ;;  %29882 = vmatprep.mubr.f32.mxu1 %v36323_v2  ;;  %v17251_v7 = vand.u32 4294901760, %v17250_v37  ;;  %v36325_v22 = vand.u32 4294901760, %v34075_v60 }
 0xd1e   : > { %29926 = vmatprep.subr.mxu1 %v18012_v26 }
 0xd1f   : > { %29846 = vmatprep.mubr.f32.mxu0 %v17251_v7 }
 0xd20   : > { %29847 = vmatmul.mubr.f32.gmra.mxu0 %v17261_v47  ;;  %29883 = vmatmul.mubr.f32.gmra.mxu1 %v36324_v41 }
 0xd21   : > { %29865 = vmatprep.mubr.f32.mxu0 %v34033_v9  ;;  %29885 = vmatprep.mubr.f32.mxu1 %v17229_v27  ;;  %v18018_v9 = vsub.f32 %v34122_v61, %v34131_v4 }
 0xd24   : > { %29866 = vmatmul.mubr.f32.vlgmr.msra.gmra.mxu0 %v34027_v39  ;;  %29886 = vmatmul.mubr.f32.gmra.mxu1 %v36325_v22  ;;  %v17877_v39 = vpop.permute.xlu0 %17876 }
 0xd25   : > { %29892 = vmatpush3.msra.mxu0 %v34008_v54  ;;  %29868 = vmatprep.mubr.f32.mxu0 %v34059_v63  ;;  %v17884_v27 = vsel %vm2871_vm10, %v17877_v39, 0  ;;  %v18019_v54 = vand.u32 4294901760, %v18018_v9  ;;  %v17886_v63 = vsel %vm2871_vm10, %v17879_v25, 0 }
 0xd26   : > { %29888 = vmatprep.mubr.f32.mxu1 %v17249_v14  ;;  %29919 = vmatprep.subr.mxu0 %v34091_v55 }
 0xd28   : > { %29869 = vmatmul.mubr.f32.gmra.mxu0 %v34053_v33  ;;  %29889 = vmatmul.mubr.f32.gmra.mxu1 %v17259_v45  ;;  %v34145_v33 = vand.u32 4294901760, %v17884_v27  ;;  %v18399_v45 = vpop.permute.xlu1 %18398 }
 0xd29   : > { %29871 = vmatprep.mubr.f32.mxu0 %v34080_v3  ;;  %29907 = vmatprep.mubr.f32.mxu1 %v34029_v34  ;;  %v18401_v3 = vpop.permute.xlu0 %18400 }
 0xd2c   : > { %29872 = vmatmul.mubr.f32.gmra.mxu0 %v34075_v60  ;;  %29908 = vmatmul.mubr.f32.vlgmr.msra.gmra.mxu1 %v34023_v32  ;;  %v34150_v60 = vand.u32 4294901760, %v17886_v63  ;;  %v18397_v47 = vpop.permute.xlu1 %18396 }
 0xd2d   : > { %29927 = vmatpush3.xpose.msra.mxu1 %v18012_v26  ;;  %29874 = vmatprep.mubr.f32.mxu0 %v17248_v24  ;;  %v17960_v24 = vsub.f32 %v17884_v27, %v34145_v33  ;;  %v18404_v22 = vsel %vm2871_vm10, %v18397_v47, 0 }
 0xd2e   : > { %29910 = vmatprep.mubr.f32.mxu1 %v34055_v19  ;;  %29928 = vmatprep.subr.mxu1 %v18019_v54 }
 0xd2f   : > { %v17961_v51 = vand.u32 4294901760, %v17960_v24 }
 0xd30   : > { %29875 = vmatmul.mubr.f32.gmra.mxu0 %v17258_v36  ;;  %29911 = vmatmul.mubr.f32.gmra.mxu1 %v34049_v42  ;;  %v18408_v36 = vsel %vm2871_vm10, %v18401_v3, 0 }
 0xd31   : > { %29929 = vmatpush3.xpose.msra.mxu1 %v18019_v54  ;;  %29893 = vmatprep.mubr.f32.mxu0 %v34029_v34  ;;  %v17970_v34 = vsub.f32 %v17886_v63, %v34150_v60  ;;  %v34163_v59 = vand.u32 4294901760, %v18408_v36  ;;  %v17962_v14 = vsub.f32 %v17960_v24, %v17961_v51  ;;  %v18917_v63 = vpop.permute.xlu1 %18916 }
 0xd32   : > { %29913 = vmatprep.mubr.f32.mxu1 %v34077_v11  ;;  %29940 = vmatprep.subr.mxu1 %v34091_v55 }
 0xd33   : > { %v34173_v40 = vsub.f32 %v18408_v36, %v34163_v59  ;;  %v17963_v13 = vand.u32 4294901760, %v17962_v14 }
 0xd34   : > { %29894 = vmatmul.mubr.f32.vlgmr.msra.gmra.mxu0 %v34023_v32  ;;  %29914 = vmatmul.mubr.f32.gmra.mxu1 %v34071_v38  ;;  %v17971_v32 = vand.u32 4294901760, %v17970_v34 }
 0xd35   : > { %29920 = vmatpush3.xpose.msra.mxu0 %v34091_v55  ;;  %29896 = vmatprep.mubr.f32.mxu0 %v34055_v19  ;;  %v18406_v19 = vsel %vm2871_vm10, %v18399_v45, 0  ;;  %v34184_v26 = vand.u32 4294901760, %v34173_v40 }
 0xd36   : > { %29916 = vmatprep.mubr.f32.mxu1 %v34104_v12  ;;  %29921 = vmatprep.subr.mxu0 %v34114_v50  ;;  %v17972_v37 = vsub.f32 %v17970_v34, %v17971_v32 }
 0xd38   : > { %29897 = vmatmul.mubr.f32.gmra.mxu0 %v34049_v42  ;;  %29917 = vmatmul.mubr.f32.gmra.mxu1 %v34097_v20  ;;  %v34177_v42 = vand.u32 4294901760, %v18406_v19 }
 0xd39   : > { %29922 = vmatpush3.xpose.msra.mxu0 %v34114_v50  ;;  %29899 = vmatprep.mubr.f32.mxu0 %v34077_v11  ;;  %v18395_v11 = vpop.permute.xlu0 %18394 }
 0xd3a   : > { %29930 = vmatprep.mubr.f32.mxu1 %v34145_v33  ;;  %29933 = vmatprep.subr.mxu0 %v34094_v10  ;;  %v34188_v2 = vsub.f32 %v18406_v19, %v34177_v42 }
 0xd3c   : > { %29900 = vmatmul.mubr.f32.gmra.mxu0 %v34071_v38  ;;  %29931 = vmatmul.mubr.f32.vlgmr.msra.gmra.mxu1 %v34150_v60  ;;  %v18402_v38 = vsel %vm2871_vm10, %v18395_v11, 0  ;;  %v34199_v41 = vand.u32 4294901760, %v34188_v2 }
 0xd3d   : > { %29941 = vmatpush3.xpose.msra.mxu1 %v34091_v55  ;;  %29902 = vmatprep.mubr.f32.mxu0 %v34104_v12  ;;  %v17973_v12 = vand.u32 4294901760, %v17972_v37  ;;  %v34192_v7 = vand.u32 4294901760, %v18402_v38  ;;  %v18919_v27 = vpop.permute.xlu0 %18918  ;;  %v18915_v37 = vpop.permute.xlu1 %18914 }
 0xd3e   : > { %29942 = vmatprep.subr.mxu1 %v34114_v50  ;;  %29944 = vmatprep.mubr.f32.mxu1 %v17961_v51 }
 0xd3f   : > { %v18478_v9 = vsub.f32 %v18402_v38, %v34192_v7 }
 0xd40   : > { %29903 = vmatmul.mubr.f32.gmra.mxu0 %v34097_v20  ;;  %v18529_v20 = vsub.f32 %v34173_v40, %v34184_v26 }
 0xd41   : > { %29943 = vmatpush3.xpose.msra.mxu1 %v34114_v50  ;;  %29923 = vmatprep.mubr.f32.mxu0 %v17963_v13  ;;  %v18479_v25 = vand.u32 4294901760, %v18478_v9  ;;  %v18913_v45 = vpop.permute.xlu0 %18912 }
 0xd42   : > { %29954 = vmatprep.subr.mxu1 %v34091_v55  ;;  %v18530_v39 = vand.u32 4294901760, %v18529_v20  ;;  %v18922_v20 = vsel %vm2871_vm10, %v18915_v37, 0 }
 0xd43   : > { %v18480_v3 = vsub.f32 %v18478_v9, %v18479_v25 }
 0xd44   : > { %29945 = vmatmul.mubr.f32.vlgmr.msra.gmra.mxu1 %v17971_v32  ;;  %29924 = vmatmul.mubr.f32.vlgmr.msra.gmra.mxu0 %v17973_v12 }
 0xd45   : > { %29934 = vmatpush3.xpose.msra.mxu0 %v34094_v10  ;;  %29955 = vmatpush3.xpose.msra.mxu1 %v34091_v55  ;;  %v18536_v10 = vsub.f32 %v34188_v2, %v34199_v41  ;;  %v34210_v55 = vand.u32 4294901760, %v18404_v22  ;;  %v18481_v36 = vand.u32 4294901760, %v18480_v3 }
 0xd46   : > { %29958 = vmatprep.mubr.f32.mxu1 %v34145_v33  ;;  %29935 = vmatprep.subr.mxu0 %v34122_v61 }
 0xd47   : > { %29937 = vmatprep.mubr.f32.mxu0 %v17960_v24  ;;  %29956 = vmatprep.subr.mxu1 %v34114_v50  ;;  %v18488_v54 = vsub.f32 %v18404_v22, %v34210_v55 }
 0xd49   : > { %29936 = vmatpush3.xpose.msra.mxu0 %v34122_v61  ;;  %29957 = vmatpush3.xpose.msra.mxu1 %v34114_v50  ;;  %v18537_v61 = vand.u32 4294901760, %v18536_v10  ;;  %v18926_v50 = vsel %vm2871_vm10, %v18919_v27, 0  ;;  %v19437_v10 = vpop.permute.xlu0 %19436 }
 0xd4a   : > { %29947 = vmatprep.subr.mxu0 %v34101_v35  ;;  %29968 = vmatprep.subr.mxu1 %v18530_v39  ;;  %v34220_v24 = vand.u32 4294901760, %v18926_v50 }
 0xd4c   : > { %29938 = vmatmul.mubr.f32.vlgmr.msra.gmra.mxu0 %v17970_v34  ;;  %29959 = vmatmul.mubr.f32.vlgmr.msra.gmra.mxu1 %v34150_v60  ;;  %v34228_v34 = vsub.f32 %v18926_v50, %v34220_v24 }
 0xd4d   : > { %29948 = vmatpush3.xpose.msra.mxu0 %v34101_v35  ;;  %29951 = vmatprep.mubr.f32.mxu0 %v34145_v33  ;;  %v18489_v35 = vand.u32 4294901760, %v18488_v54  ;;  %v18924_v33 = vsel %vm2871_vm10, %v18917_v63, 0 }
 0xd4e   : > { %29969 = vmatpush3.xpose.msra.mxu1 %v18530_v39  ;;  %29972 = vmatprep.mubr.f32.mxu1 %v34192_v7  ;;  %v34232_v51 = vand.u32 4294901760, %v18924_v33  ;;  %v34240_v32 = vand.u32 4294901760, %v34228_v34  ;;  %v34265_v39 = vand.u32 4294901760, %v18922_v20 }
 0xd4f   : > { %29949 = vmatprep.subr.mxu0 %v34131_v4  ;;  %29970 = vmatprep.subr.mxu1 %v18537_v61 }
 0xd50   : > { %v34243_v14 = vsub.f32 %v18924_v33, %v34232_v51  ;;  %v19047_v13 = vsub.f32 %v34228_v34, %v34240_v32 }
 0xd51   : > { %29950 = vmatpush3.xpose.msra.mxu0 %v34131_v4  ;;  %v18490_v4 = vsub.f32 %v18488_v54, %v18489_v35 }
 0xd52   : > { %29971 = vmatpush3.xpose.msra.mxu1 %v18537_v61  ;;  %29961 = vmatprep.subr.mxu0 %v34163_v59  ;;  %v34255_v47 = vand.u32 4294901760, %v34243_v14  ;;  %v19435_v61 = vpop.permute.xlu1 %19434 }
 0xd53   : > { %29982 = vmatprep.subr.mxu1 %v34163_v59  ;;  %v18491_v19 = vand.u32 4294901760, %v18490_v4  ;;  %v19442_v63 = vsel %vm2871_vm10, %v19435_v61, 0 }
 0xd54   : > { %29952 = vmatmul.mubr.f32.vlgmr.msra.gmra.mxu0 %v34150_v60  ;;  %v18920_v60 = vsel %vm2871_vm10, %v18913_v45, 0  ;;  %v34290_v33 = vand.u32 4294901760, %v19442_v63 }
 0xd55   : > { %29973 = vmatmul.mubr.f32.vlgmr.msra.gmra.mxu1 %v34210_v55  ;;  %29962 = vmatpush3.xpose.msra.mxu0 %v34163_v59  ;;  %v34248_v11 = vand.u32 4294901760, %v18920_v60 }
 0xd56   : > { %29965 = vmatprep.mubr.f32.mxu0 %v18481_v36  ;;  %29983 = vmatpush3.xpose.msra.mxu1 %v34163_v59  ;;  %v29853_v38 = vpop.f32.mrf.mxu1  ;;  %v34301_v4 = vsub.f32 %v19442_v63, %v34290_v33 }
 0xd57   : > { %29986 = vmatprep.mubr.f32.mxu1 %v18479_v25  ;;  %29963 = vmatprep.subr.mxu0 %v34177_v42  ;;  %v19006_v25 = vsub.f32 %v18922_v20, %v34265_v39 }
 0xd58   : > { %29984 = vmatprep.subr.mxu1 %v34177_v42 }
 0xd59   : > { %29964 = vmatpush3.xpose.msra.mxu0 %v34177_v42 }
 0xd5a   : > { %29985 = vmatpush3.xpose.msra.mxu1 %v34177_v42  ;;  %29975 = vmatprep.subr.mxu0 %v34173_v40 }
 0xd5b   : > { %29996 = vmatprep.subr.mxu1 %v34163_v59 }
 0xd5c   : > { %29966 = vmatmul.mubr.f32.vlgmr.msra.gmra.mxu0 %v18491_v19  ;;  %v19433_v19 = vpop.permute.xlu1 %19432 }
 0xd5d   : > { %29987 = vmatmul.mubr.f32.vlgmr.msra.gmra.mxu1 %v18489_v35  ;;  %29976 = vmatpush3.xpose.msra.mxu0 %v34173_v40  ;;  %v18996_v40 = vsub.f32 %v18920_v60, %v34248_v11  ;;  %v19431_v35 = vpop.permute.xlu0 %19430 }
 0xd5e   : > { %v29839_v12 = vpop.f32.mrf.mxu0  ;;  %29979 = vmatprep.mubr.f32.mxu0 %v18478_v9  ;;  %29997 = vmatpush3.xpose.msra.mxu1 %v34163_v59  ;;  %v19048_v9 = vand.u32 4294901760, %v19047_v13  ;;  %v19054_v59 = vsub.f32 %v34243_v14, %v34255_v47  ;;  %v34313_v13 = vand.u32 4294901760, %v34301_v4 }
 0xd5f   : > { %v34258_v22 = vadd.f32 %v29853_v38, %v29839_v12  ;;  %30000 = vmatprep.mubr.f32.mxu1 %v34192_v7  ;;  %29977 = vmatprep.subr.mxu0 %v34188_v2  ;;  %v18997_v27 = vand.u32 4294901760, %v18996_v40  ;;  %v19440_v38 = vsel %vm2871_vm10, %v19433_v19, 0 }
 0xd60   : > { %29998 = vmatprep.subr.mxu1 %v34177_v42  ;;  %v34321_v20 = vand.u32 4294901760, %v19440_v38 }
 0xd61   : > { %29978 = vmatpush3.xpose.msra.mxu0 %v34188_v2  ;;  %v19444_v2 = vsel %vm2871_vm10, %v19437_v10, 0  ;;  %v18998_v50 = vsub.f32 %v18996_v40, %v18997_v27 }
 0xd62   : > { %29999 = vmatpush3.xpose.msra.mxu1 %v34177_v42  ;;  %29989 = vmatprep.subr.mxu0 %v34184_v26  ;;  %v19055_v42 = vand.u32 4294901760, %v19054_v59 }
 0xd63   : > { %30010 = vmatprep.subr.mxu1 %v19048_v9 }
 0xd64   : > { %29980 = vmatmul.mubr.f32.vlgmr.msra.gmra.mxu0 %v18488_v54  ;;  %v34278_v54 = vand.u32 4294901760, %v19444_v2 }
 0xd65   : > { %30001 = vmatmul.mubr.f32.vlgmr.msra.gmra.mxu1 %v34210_v55  ;;  %29990 = vmatpush3.xpose.msra.mxu0 %v34184_v26  ;;  %v19007_v26 = vand.u32 4294901760, %v19006_v25 }
 0xd66   : > { %29993 = vmatprep.mubr.f32.mxu0 %v34192_v7  ;;  %30011 = vmatpush3.xpose.msra.mxu1 %v19048_v9  ;;  %v18999_v7 = vand.u32 4294901760, %v18998_v50  ;;  %v34286_v3 = vsub.f32 %v19444_v2, %v34278_v54  ;;  %v34329_v9 = vpop.f32.mrf.mxu0 }
 0xd67   : > { %30014 = vmatprep.mubr.f32.mxu1 %v34248_v11  ;;  %29991 = vmatprep.subr.mxu0 %v34199_v41 }
 0xd68   : > { %30012 = vmatprep.subr.mxu1 %v19055_v42  ;;  %v34298_v36 = vand.u32 4294901760, %v34286_v3 }
 0xd69   : > { %29992 = vmatpush3.xpose.msra.mxu0 %v34199_v41  ;;  %v19008_v41 = vsub.f32 %v19006_v25, %v19007_v26 }
 0xd6a   : > { %30013 = vmatpush3.xpose.msra.mxu1 %v19055_v42  ;;  %30003 = vmatprep.subr.mxu0 %v34220_v24  ;;  %v19565_v37 = vsub.f32 %v34286_v3, %v34298_v36 }
 0xd6b   : > { %30024 = vmatprep.subr.mxu1 %v34220_v24  ;;  %v19009_v45 = vand.u32 4294901760, %v19008_v41 }
 0xd6c   : > { %29994 = vmatmul.mubr.f32.vlgmr.msra.gmra.mxu0 %v34210_v55  ;;  %v19438_v55 = vsel %vm2871_vm10, %v19431_v35, 0 }
 0xd6d   : > { %30015 = vmatmul.mubr.f32.vlgmr.msra.gmra.mxu1 %v34265_v39  ;;  %30004 = vmatpush3.xpose.msra.mxu0 %v34220_v24  ;;  %v34306_v60 = vand.u32 4294901760, %v19438_v55 }
 0xd6e   : > { %30007 = vmatprep.mubr.f32.mxu0 %v18999_v7  ;;  %30025 = vmatpush3.xpose.msra.mxu1 %v34220_v24 }
 0xd6f   : > { %30028 = vmatprep.mubr.f32.mxu1 %v18997_v27  ;;  %30005 = vmatprep.subr.mxu0 %v34232_v51  ;;  %v19514_v12 = vsub.f32 %v19438_v55, %v34306_v60  ;;  %v20055_v27 = vpop.permute.xlu1 %20054 }
 0xd70   : > { %30026 = vmatprep.subr.mxu1 %v34232_v51  ;;  %v34339_v61 = vand.u32 4294901760, %v20055_v27 }
 0xd71   : > { %30006 = vmatpush3.xpose.msra.mxu0 %v34232_v51  ;;  %v19515_v59 = vand.u32 4294901760, %v19514_v12 }
 0xd72   : > { %30027 = vmatpush3.xpose.msra.mxu1 %v34232_v51  ;;  %30017 = vmatprep.subr.mxu0 %v34228_v34  ;;  %v34346_v50 = vsub.f32 %v20055_v27, %v34339_v61 }
 0xd73   : > { %30038 = vmatprep.subr.mxu1 %v34220_v24 }
 0xd74   : > { %30008 = vmatmul.mubr.f32.vlgmr.msra.gmra.mxu0 %v19009_v45 }
 0xd75   : > { %30029 = vmatmul.mubr.f32.vlgmr.msra.gmra.mxu1 %v19007_v26  ;;  %30018 = vmatpush3.xpose.msra.mxu0 %v34228_v34  ;;  %v19566_v34 = vand.u32 4294901760, %v19565_v37 }
 0xd76   : > { %30021 = vmatprep.mubr.f32.mxu0 %v18996_v40  ;;  %30039 = vmatpush3.xpose.msra.mxu1 %v34220_v24  ;;  %v19572_v24 = vsub.f32 %v34301_v4, %v34313_v13  ;;  %v34327_v40 = vpop.f32.mrf.mxu1 }
 0xd77   : > { %30042 = vmatprep.mubr.f32.mxu1 %v34248_v11  ;;  %30019 = vmatprep.subr.mxu0 %v34243_v14 }
 0xd78   : > { %30040 = vmatprep.subr.mxu1 %v34232_v51  ;;  %v29856_v10 = vpop.f32.mrf.mxu1  ;;  %v19573_v42 = vand.u32 4294901760, %v19572_v24 }
 0xd79   : > { %30020 = vmatpush3.xpose.msra.mxu0 %v34243_v14 }
 0xd7a   : > { %30041 = vmatpush3.xpose.msra.mxu1 %v34232_v51  ;;  %30031 = vmatprep.subr.mxu0 %v34240_v32  ;;  %v19524_v51 = vsub.f32 %v19440_v38, %v34321_v20 }
 0xd7b   : > { %30052 = vmatprep.subr.mxu1 %v19566_v34 }
 0xd7c   : > { %30022 = vmatmul.mubr.f32.vlgmr.msra.gmra.mxu0 %v19006_v25  ;;  %v19516_v25 = vsub.f32 %v19514_v12, %v19515_v59 }
 0xd7d   : > { %30043 = vmatmul.mubr.f32.vlgmr.msra.gmra.mxu1 %v34265_v39  ;;  %v29842_v14 = vpop.f32.mrf.mxu0  ;;  %30032 = vmatpush3.xpose.msra.mxu0 %v34240_v32  ;;  %v19525_v32 = vand.u32 4294901760, %v19524_v51 }
 0xd7e   : > { %v34334_v2 = vadd.f32 %v29856_v10, %v29842_v14  ;;  %30035 = vmatprep.mubr.f32.mxu0 %v34248_v11  ;;  %30053 = vmatpush3.xpose.msra.mxu1 %v19566_v34  ;;  %v19517_v11 = vand.u32 4294901760, %v19516_v25 }
 0xd7f   : > { %30056 = vmatprep.mubr.f32.mxu1 %v34306_v60  ;;  %30033 = vmatprep.subr.mxu0 %v34255_v47  ;;  %v19526_v26 = vsub.f32 %v19524_v51, %v19525_v32 }
 0xd80   : > { %30054 = vmatprep.subr.mxu1 %v19573_v42 }
 0xd81   : > { %30034 = vmatpush3.xpose.msra.mxu0 %v34255_v47  ;;  %v34355_v47 = vand.u32 4294901760, %v34346_v50 }
 0xd82   : > { %30055 = vmatpush3.xpose.msra.mxu1 %v19573_v42  ;;  %30045 = vmatprep.subr.mxu0 %v34278_v54 }
 0xd83   : > { %30066 = vmatprep.subr.mxu1 %v34278_v54  ;;  %v20183_v63 = vsub.f32 %v34346_v50, %v34355_v47 }
 0xd84   : > { %30036 = vmatmul.mubr.f32.vlgmr.msra.gmra.mxu0 %v34265_v39  ;;  %v19527_v39 = vand.u32 4294901760, %v19526_v26 }
 0xd85   : > { %30057 = vmatmul.mubr.f32.vlgmr.msra.gmra.mxu1 %v34321_v20  ;;  %30046 = vmatpush3.xpose.msra.mxu0 %v34278_v54  ;;  %v20184_v7 = vand.u32 4294901760, %v20183_v63 }
 0xd86   : > { %30049 = vmatprep.mubr.f32.mxu0 %v19517_v11  ;;  %30067 = vmatpush3.xpose.msra.mxu1 %v34278_v54 }
 0xd87   : > { %30070 = vmatprep.mubr.f32.mxu1 %v19515_v59  ;;  %30047 = vmatprep.subr.mxu0 %v34290_v33 }
 0xd88   : > { %30068 = vmatprep.subr.mxu1 %v34290_v33 }
 0xd89   : > { %30048 = vmatpush3.xpose.msra.mxu0 %v34290_v33 }
 0xd8a   : > { %30069 = vmatpush3.xpose.msra.mxu1 %v34290_v33  ;;  %30059 = vmatprep.subr.mxu0 %v34286_v3 }
 0xd8b   : > { %30080 = vmatprep.subr.mxu1 %v34278_v54 }
 0xd8c   : > { %30050 = vmatmul.mubr.f32.vlgmr.msra.gmra.mxu0 %v19527_v39 }
 0xd8d   : > { %30071 = vmatmul.mubr.f32.vlgmr.msra.gmra.mxu1 %v19525_v32  ;;  %30060 = vmatpush3.xpose.msra.mxu0 %v34286_v3  ;;  %v34380_v3 = vpop.f32.mrf.mxu0 }
 0xd8e   : > { %30063 = vmatprep.mubr.f32.mxu0 %v19514_v12  ;;  %30081 = vmatpush3.xpose.msra.mxu1 %v34278_v54  ;;  %v34378_v54 = vpop.f32.mrf.mxu1 }
 0xd8f   : > { %30084 = vmatprep.mubr.f32.mxu1 %v34306_v60  ;;  %30061 = vmatprep.subr.mxu0 %v34301_v4 }
 0xd90   : > { %30082 = vmatprep.subr.mxu1 %v34290_v33 }
 0xd91   : > { %30062 = vmatpush3.xpose.msra.mxu0 %v34301_v4 }
 0xd92   : > { %30083 = vmatpush3.xpose.msra.mxu1 %v34290_v33  ;;  %30073 = vmatprep.subr.mxu0 %v34298_v36 }
 0xd93   : > { %30094 = vmatprep.subr.mxu1 %v20184_v7 }
 0xd94   : > { %30064 = vmatmul.mubr.f32.vlgmr.msra.gmra.mxu0 %v19524_v51 }
 0xd95   : > { %30085 = vmatmul.mubr.f32.vlgmr.msra.gmra.mxu1 %v34321_v20  ;;  %30074 = vmatpush3.xpose.msra.mxu0 %v34298_v36 }
 0xd96   : > { %30077 = vmatprep.mubr.f32.mxu0 %v34306_v60  ;;  %30095 = vmatpush3.msra.mxu1 %v20184_v7 }
 0xd97   : > { %30075 = vmatprep.subr.mxu0 %v34313_v13 }
 0xd99   : > { %30076 = vmatpush3.xpose.msra.mxu0 %v34313_v13 }
 0xd9a   : > { %30087 = vmatprep.subr.mxu0 %v34339_v61 }
 0xd9c   : > { %30078 = vmatmul.mubr.f32.vlgmr.msra.gmra.mxu0 %v34321_v20 }
 0xd9d   : > { %30088 = vmatpush3.msra.mxu0 %v34339_v61 }
 0xda3   : > { %v29859_v35 = vpop.f32.mrf.mxu1 }
 0xda5   : > { %v34382_v55 = vpop.f32.mrf.mxu1 }
 0xdab   : > { %v29845_v41 = vpop.f32.mrf.mxu0 }
 0xdac   : > { %v17370_v33 = vadd.f32 %v29859_v35, %v29845_v41 }
 0xdad   : > { %v34386_v60 = vpop.f32.mrf.mxu0 }
 0xdd8   : > { %v29862_v36 = vpop.f32.mrf.mxu1 }
 0xdda   : > { %v34384_v45 = vpop.f32.mrf.mxu1 }
 0xddb   : > { %36326 = vst [vmem:[#allocation33_spill] sm:$0xff] %v34384_v45 }
 0xddc   : > { %v29881_v4 = vpop.f32.mrf.mxu1 }
 0xdde   : > { %v34388_v19 = vpop.f32.mrf.mxu1 }
 0xde0   : > { %v29848_v37 = vpop.f32.mrf.mxu0  ;;  %v29884_v13 = vpop.f32.mrf.mxu1 }
 0xde1   : > { %v17382_v38 = vadd.f32 %v29862_v36, %v29848_v37 }
 0xde2   : > { %v34390_v12 = vpop.f32.mrf.mxu0  ;;  %v34392_v34 = vpop.f32.mrf.mxu1 }
 0xde3   : > { %36327 = vst [vmem:[#allocation35_spill] sm:$0xff] %v34390_v12  ;;  %36328 = vst [vmem:[#allocation34_spill] sm:$0xff] %v34392_v34 }
 0xde4   : > { %v29867_v20 = vpop.f32.mrf.mxu0  ;;  %v29887_v24 = vpop.f32.mrf.mxu1 }
 0xde5   : > { %v17463_v59 = vadd.f32 %v29867_v20, %v34258_v22 }
 0xde6   : > { %v34395_v10 = vpop.f32.mrf.mxu0  ;;  %v34397_v14 = vpop.f32.mrf.mxu1 }
 0xde7   : > { %36329 = vst [vmem:[#allocation36_spill] sm:$0xff] %v34397_v14  ;;  %v17587_v51 = vadd.f32 %v29881_v4, %v17463_v59 }
 0xde8   : > { %v29870_v27 = vpop.f32.mrf.mxu0  ;;  %v29890_v42 = vpop.f32.mrf.mxu1 }
 0xde9   : > { %v17477_v25 = vadd.f32 %v29870_v27, %v34334_v2 }
 0xdea   : > { %v34400_v32 = vpop.f32.mrf.mxu0  ;;  %v34402_v11 = vpop.f32.mrf.mxu1 }
 0xdeb   : > { %36330 = vst [vmem:[#allocation37_spill] sm:$0xff] %v34402_v11  ;;  %v17603_v26 = vadd.f32 %v29884_v13, %v17477_v25 }
 0xdec   : > { %v29873_v39 = vpop.f32.mrf.mxu0  ;;  %v29909_v63 = vpop.f32.mrf.mxu1 }
 0xded   : > { %v17491_v7 = vadd.f32 %v29873_v39, %v17370_v33 }
 0xdee   : > { %v34404_v35 = vpop.f32.mrf.mxu0  ;;  %v34406_v22 = vpop.f32.mrf.mxu1 }
 0xdef   : > { %36331 = vst [vmem:[#allocation32_spill] sm:$0xff] %v34406_v22  ;;  %v17619_v41 = vadd.f32 %v29887_v24, %v17491_v7 }
 0xdf0   : > { %v29876_v36 = vpop.f32.mrf.mxu0  ;;  %v29912_v37 = vpop.f32.mrf.mxu1 }
 0xdf1   : > { %v17505_v4 = vadd.f32 %v29876_v36, %v17382_v38 }
 0xdf2   : > { %v34408_v20 = vpop.f32.mrf.mxu0  ;;  %v34410_v2 = vpop.f32.mrf.mxu1 }
 0xdf3   : > { %36332 = vst [vmem:[#allocation38_spill] sm:$0xff] %v34408_v20  ;;  %v17635_v59 = vadd.f32 %v29890_v42, %v17505_v4  ;;  %36333 = vst [vmem:[#allocation73_spill] sm:$0xff] %v34410_v2 }
 0xdf4   : > { %v29895_v27 = vpop.f32.mrf.mxu0  ;;  %v29915_v25 = vpop.f32.mrf.mxu1 }
 0xdf5   : > { %v17715_v14 = vadd.f32 %v29895_v27, %v17587_v51 }
 0xdf6   : > { %v34412_v11 = vpop.f32.mrf.mxu0  ;;  %v34419_v38 = vpop.f32.mrf.mxu1 }
 0xdf7   : > { %36334 = vst [vmem:[#allocation74_spill] sm:$0xff] %v34412_v11  ;;  %v17829_v13 = vadd.f32 %v29909_v63, %v17715_v14  ;;  %36337 = vst [vmem:[#allocation77_spill] sm:$0xff] %v34419_v38 }
 0xdf8   : > { %v29898_v33 = vpop.f32.mrf.mxu0  ;;  %v29918_v14 = vpop.f32.mrf.mxu1 }
 0xdf9   : > { %v34415_v39 = vadd.f32 %v17829_v13, %v33751_v48  ;;  %v17727_v22 = vadd.f32 %v29898_v33, %v17603_v26 }
 0xdfa   : > { %v34417_v24 = vpop.f32.mrf.mxu0 }
 0xdfb   : > { %36335 = vst [vmem:[#allocation75_spill] sm:$0xff] %v34415_v39  ;;  %36336 = vst [vmem:[#allocation76_spill] sm:$0xff] %v34417_v24  ;;  %v17841_v7 = vadd.f32 %v29912_v37, %v17727_v22  ;;  %v34431_v22 = vpop.f32.mrf.mxu1 }
 0xdfc   : > { %v29901_v36 = vpop.f32.mrf.mxu0  ;;  %36342 = vst [vmem:[#allocation82_spill] sm:$0xff] %v34431_v22 }
 0xdfd   : > { %v34422_v42 = vadd.f32 %v17841_v7, %v33755_v49  ;;  %v17739_v4 = vadd.f32 %v29901_v36, %v17619_v41  ;;  %v29932_v33 = vpop.f32.mrf.mxu1 }
 0xdfe   : > { %v34424_v51 = vpop.f32.mrf.mxu0 }
 0xdff   : > { %36338 = vst [vmem:[#allocation78_spill] sm:$0xff] %v34422_v42  ;;  %36339 = vst [vmem:[#allocation79_spill] sm:$0xff] %v34424_v51  ;;  %v17853_v27 = vadd.f32 %v29915_v25, %v17739_v4  ;;  %v18056_v7 = vpop.f32.mrf.mxu1 }
 0xe00   : > { %v29904_v63 = vpop.f32.mrf.mxu0 }
 0xe01   : > { %v34427_v2 = vadd.f32 %v17853_v27, %v33761_v56  ;;  %v17751_v48 = vadd.f32 %v29904_v63, %v17635_v59 }
 0xe02   : > { %v34429_v26 = vpop.f32.mrf.mxu0 }
 0xe03   : > { %36340 = vst [vmem:[#allocation80_spill] sm:$0xff] %v34427_v2  ;;  %36341 = vst [vmem:[#allocation81_spill] sm:$0xff] %v34429_v26  ;;  %v17865_v13 = vadd.f32 %v29918_v14, %v17751_v48 }
 0xe04   : > { %v29925_v49 = vpop.f32.mrf.mxu0  ;;  %v29946_v4 = vpop.f32.mrf.mxu1 }
 0xe05   : > { %v34434_v37 = vadd.f32 %v17865_v13, %v33765_v17  ;;  %v18063_v25 = vadd.f32 %v29932_v33, %v29925_v49 }
 0xe06   : > { %v17965_v41 = vpop.f32.mrf.mxu0  ;;  %v18220_v59 = vpop.f32.mrf.mxu1 }
 0xe07   : > { %36343 = vst [vmem:[#allocation83_spill] sm:$0xff] %v34434_v37  ;;  %v18057_v39 = vadd.f32 %v18056_v7, %v17965_v41 }
 0xe0c   : > { %v29939_v36 = vpop.f32.mrf.mxu0  ;;  %v29960_v2 = vpop.f32.mrf.mxu1 }
 0xe0d   : > { %v18146_v56 = vadd.f32 %v29939_v36, %v18063_v25 }
 0xe0e   : > { %v18138_v42 = vpop.f32.mrf.mxu0  ;;  %v18384_v37 = vpop.f32.mrf.mxu1 }
 0xe0f   : > { %v18139_v27 = vadd.f32 %v18138_v42, %v18057_v39  ;;  %v18229_v63 = vadd.f32 %v29946_v4, %v18146_v56 }
 0xe11   : > { %v18221_v22 = vadd.f32 %v18220_v59, %v18139_v27 }
 0xe14   : > { %v29953_v14 = vpop.f32.mrf.mxu0 }
 0xe15   : > { %v18312_v48 = vadd.f32 %v29953_v14, %v18229_v63 }
 0xe16   : > { %v18305_v26 = vpop.f32.mrf.mxu0 }
 0xe17   : > { %v18391_v17 = vadd.f32 %v29960_v2, %v18312_v48  ;;  %v18306_v13 = vadd.f32 %v18305_v26, %v18221_v22  ;;  %v29974_v2 = vpop.f32.mrf.mxu1 }
 0xe19   : > { %v19949_v38 = vmul.f32 0.35355338, %v18391_v17  ;;  %v18385_v51 = vadd.f32 %v18384_v37, %v18306_v13  ;;  %v18574_v22 = vpop.f32.mrf.mxu1 }
 0xe1b   : > { %v34437_v24 = vadd.f32 %v19949_v38, %v31770_v5  ;;  %v19948_v49 = vmul.f32 0.35355338, %v18385_v51 }
 0xe1c   : > { %v29967_v42 = vpop.f32.mrf.mxu0 }
 0xe1d   : > { %v19967_v33 = vsel %vm4946_vm11, %v34437_v24, -inf  ;;  %v34442_v39 = vadd.f32 %v19948_v49, %v31770_v5  ;;  %v18581_v7 = vadd.f32 %v29974_v2, %v29967_v42  ;;  %v29988_v38 = vpop.f32.mrf.mxu1 }
 0xe1e   : > { %19968 = vmax.xlane.f32.xlu1 %v19967_v33  ;;  %v18483_v26 = vpop.f32.mrf.mxu0 }
 0xe1f   : > { %v19964_v41 = vsel %vm4946_vm11, %v34442_v39, -inf  ;;  %v18575_v51 = vadd.f32 %v18574_v22, %v18483_v26  ;;  %v18738_v56 = vpop.f32.mrf.mxu1 }
 0xe20   : > { %19965 = vmax.xlane.f32.xlu0 %v19964_v41 }
 0xe24   : > { %v29981_v37 = vpop.f32.mrf.mxu0 }
 0xe25   : > { %v18664_v25 = vadd.f32 %v29981_v37, %v18581_v7  ;;  %v30002_v59 = vpop.f32.mrf.mxu1 }
 0xe26   : > { %v18656_v36 = vpop.f32.mrf.mxu0 }
 0xe27   : > { %v18657_v4 = vadd.f32 %v18656_v36, %v18575_v51  ;;  %v18747_v27 = vadd.f32 %v29988_v38, %v18664_v25  ;;  %v18902_v33 = vpop.f32.mrf.mxu1 }
 0xe29   : > { %v18739_v48 = vadd.f32 %v18738_v56, %v18657_v4 }
 0xe2c   : > { %v29995_v63 = vpop.f32.mrf.mxu0 }
 0xe2d   : > { %v18830_v14 = vadd.f32 %v29995_v63, %v18747_v27  ;;  %v30016_v37 = vpop.f32.mrf.mxu1 }
 0xe2e   : > { %v18823_v17 = vpop.f32.mrf.mxu0 }
 0xe2f   : > { %v18909_v13 = vadd.f32 %v30002_v59, %v18830_v14  ;;  %v18824_v49 = vadd.f32 %v18823_v17, %v18739_v48  ;;  %v19092_v36 = vpop.f32.mrf.mxu1 }
 0xe31   : > { %v19951_v41 = vmul.f32 0.35355338, %v18909_v13  ;;  %v18903_v34 = vadd.f32 %v18902_v33, %v18824_v49 }
 0xe33   : > { %v34447_v20 = vadd.f32 %v19951_v41, %v31770_v5  ;;  %v19950_v42 = vmul.f32 0.35355338, %v18903_v34 }
 0xe34   : > { %v30009_v22 = vpop.f32.mrf.mxu0 }
 0xe35   : > { %v34450_v2 = vadd.f32 %v19950_v42, %v31770_v5  ;;  %v19973_v26 = vsel %vm4946_vm11, %v34447_v20, -inf  ;;  %v19099_v25 = vadd.f32 %v30016_v37, %v30009_v22  ;;  %v30030_v4 = vpop.f32.mrf.mxu1 }
 0xe36   : > { %19974 = vmax.xlane.f32.xlu0 %v19973_v26  ;;  %v19001_v38 = vpop.f32.mrf.mxu0 }
 0xe37   : > { %v19970_v7 = vsel %vm4946_vm11, %v34450_v2, -inf  ;;  %v19093_v34 = vadd.f32 %v19092_v36, %v19001_v38  ;;  %v19256_v63 = vpop.f32.mrf.mxu1 }
 0xe3a   : > { %19971 = vmax.xlane.f32.xlu0 %v19970_v7 }
 0xe3c   : > { %v30023_v51 = vpop.f32.mrf.mxu0 }
 0xe3d   : > { %v19182_v27 = vadd.f32 %v30023_v51, %v19099_v25  ;;  %v30044_v48 = vpop.f32.mrf.mxu1 }
 0xe3e   : > { %v19174_v56 = vpop.f32.mrf.mxu0 }
 0xe3f   : > { %v19175_v59 = vadd.f32 %v19174_v56, %v19093_v34  ;;  %v19265_v14 = vadd.f32 %v30030_v4, %v19182_v27  ;;  %v19420_v26 = vpop.f32.mrf.mxu1 }
 0xe41   : > { %v19257_v49 = vadd.f32 %v19256_v63, %v19175_v59 }
 0xe44   : > { %v30037_v17 = vpop.f32.mrf.mxu0 }
 0xe45   : > { %v19348_v13 = vadd.f32 %v30037_v17, %v19265_v14  ;;  %v30058_v25 = vpop.f32.mrf.mxu1 }
 0xe46   : > { %v19341_v33 = vpop.f32.mrf.mxu0 }
 0xe47   : > { %v19427_v41 = vadd.f32 %v30044_v48, %v19348_v13  ;;  %v19342_v42 = vadd.f32 %v19341_v33, %v19257_v49  ;;  %v19610_v27 = vpop.f32.mrf.mxu1 }
 0xe49   : > { %v19953_v45 = vmul.f32 0.35355338, %v19427_v41  ;;  %v19421_v7 = vadd.f32 %v19420_v26, %v19342_v42 }
 0xe4b   : > { %v34457_v12 = vadd.f32 %v19953_v45, %v31770_v5  ;;  %v19952_v22 = vmul.f32 0.35355338, %v19421_v7 }
 0xe4c   : > { %v30051_v36 = vpop.f32.mrf.mxu0 }
 0xe4d   : > { %v34460_v37 = vadd.f32 %v19952_v22, %v31770_v5  ;;  %v19979_v38 = vsel %vm4946_vm11, %v34457_v12, -inf  ;;  %v19617_v34 = vadd.f32 %v30058_v25, %v30051_v36  ;;  %v30072_v59 = vpop.f32.mrf.mxu1 }
 0xe4e   : > { %19980 = vmax.xlane.f32.xlu0 %v19979_v38  ;;  %v19519_v4 = vpop.f32.mrf.mxu0 }
 0xe4f   : > { %v19976_v51 = vsel %vm4946_vm11, %v34460_v37, -inf  ;;  %v19774_v48 = vpop.f32.mrf.mxu1  ;;  %v19611_v7 = vadd.f32 %v19610_v27, %v19519_v4 }
 0xe50   : > { %19977 = vmax.xlane.f32.xlu1 %v19976_v51 }
 0xe54   : > { %v30065_v56 = vpop.f32.mrf.mxu0 }
 0xe55   : > { %v19700_v45 = vadd.f32 %v30065_v56, %v19617_v34  ;;  %v30086_v49 = vpop.f32.mrf.mxu1 }
 0xe56   : > { %v19692_v63 = vpop.f32.mrf.mxu0 }
 0xe57   : > { %v19783_v14 = vadd.f32 %v30072_v59, %v19700_v45  ;;  %v19693_v22 = vadd.f32 %v19692_v63, %v19611_v7  ;;  %v19938_v25 = vpop.f32.mrf.mxu1 }
 0xe59   : > { %v19775_v36 = vadd.f32 %v19774_v48, %v19693_v22 }
 0xe5c   : > { %v30079_v17 = vpop.f32.mrf.mxu0 }
 0xe5d   : > { %v19866_v13 = vadd.f32 %v30079_v17, %v19783_v14 }
 0xe5e   : > { %v19859_v38 = vpop.f32.mrf.mxu0 }
 0xe5f   : > { %v19945_v33 = vadd.f32 %v30086_v49, %v19866_v13  ;;  %v19860_v51 = vadd.f32 %v19859_v38, %v19775_v36 }
 0xe61   : > { %v19955_v41 = vmul.f32 0.35355338, %v19945_v33  ;;  %20568 = vrot.lane.b32.xlu1 %v32116_v52, %s31475_s0  ;;  %v19939_v56 = vadd.f32 %v19938_v25, %v19860_v51 }
 0xe63   : > { %v34469_v42 = vadd.f32 %v19955_v41, %v31770_v5  ;;  %v19954_v34 = vmul.f32 0.35355338, %v19939_v56 }
 0xe65   : > { %v19985_v26 = vsel %vm4946_vm11, %v34469_v42, -inf  ;;  %v34476_v52 = vadd.f32 %v19954_v34, %v31770_v5 }
 0xe66   : > { %19986 = vmax.xlane.f32.xlu0 %v19985_v26 }
 0xe67   : > { %v19982_v45 = vsel %vm4946_vm11, %v34476_v52, -inf }
 0xe7c   : > { %20052 = vrot.lane.b32.xlu0 %v36314_v53, %s31475_s0 }
 0xe85   : > { %19983 = vmax.xlane.f32.xlu1 %v19982_v45 }
 0xea7   : > { %v19969_v59 = vpop.xlane.xlu1 %19968 }
 0xea8   : > { %v19989_v4 = vsub.f32 %v34437_v24, %v19969_v59 }
 0xea9   : > { %v19966_v27 = vpop.xlane.xlu0 %19965 }
 0xeaa   : > { %v19998_v63 = vmul.f32 1.442695, %v19989_v4  ;;  %v19988_v14 = vsub.f32 %v34442_v39, %v19966_v27 }
 0xeac   : > { %31103 = vpow2.f32 %v19998_v63  ;;  %v19996_v48 = vmul.f32 1.442695, %v19988_v14 }
 0xeae   : > { %31105 = vpow2.f32 %v19996_v48 }
 0xeb9   : > { %v34482_v17 = vpop.eup %31103 }
 0xeba   : > { %v20015_v5 = vsel %vm4946_vm11, %v34482_v17, 0.0 }
 0xebb   : > { %v34486_v53 = vpop.eup %31105  ;;  %20016 = vadd.xlane.f32.xlu0 %v20015_v5 }
 0xebc   : > { %v20012_v13 = vsel %vm4946_vm11, %v34486_v53, 0.0 }
 0xebd   : > { %20013 = vadd.xlane.f32.xlu1 %v20012_v13 }
 0xebf   : > { %v19975_v24 = vpop.xlane.xlu0 %19974 }
 0xec0   : > { %v19991_v49 = vsub.f32 %v34447_v20, %v19975_v24 }
 0xec2   : > { %v20002_v33 = vmul.f32 1.442695, %v19991_v49 }
 0xec3   : > { %v19972_v39 = vpop.xlane.xlu0 %19971 }
 0xec4   : > { %31107 = vpow2.f32 %v20002_v33  ;;  %v19990_v41 = vsub.f32 %v34450_v2, %v19972_v39 }
 0xec6   : > { %v20000_v26 = vmul.f32 1.442695, %v19990_v41 }
 0xec8   : > { %31109 = vpow2.f32 %v20000_v26 }
 0xed1   : > { %v34492_v7 = vpop.eup %31107 }
 0xed2   : > { %v20021_v22 = vsel %vm4946_vm11, %v34492_v7, 0.0 }
 0xed3   : > { %20022 = vadd.xlane.f32.xlu0 %v20021_v22 }
 0xed5   : > { %v34496_v38 = vpop.eup %31109 }
 0xed6   : > { %v20018_v36 = vsel %vm4946_vm11, %v34496_v38, 0.0 }
 0xed7   : > { %v19981_v51 = vpop.xlane.xlu0 %19980  ;;  %20019 = vadd.xlane.f32.xlu1 %v20018_v36 }
 0xed8   : > { %v19993_v20 = vsub.f32 %v34457_v12, %v19981_v51 }
 0xed9   : > { %v19978_v45 = vpop.xlane.xlu1 %19977 }
 0xeda   : > { %v20006_v25 = vmul.f32 1.442695, %v19993_v20  ;;  %v19992_v59 = vsub.f32 %v34460_v37, %v19978_v45 }
 0xedc   : > { %31111 = vpow2.f32 %v20006_v25  ;;  %v20004_v63 = vmul.f32 1.442695, %v19992_v59 }
 0xede   : > { %31113 = vpow2.f32 %v20004_v63 }
 0xee8   : > { %21082 = vrot.lane.b32.xlu1 %v36315_v46, %s31475_s0 }
 0xee9   : > { %v34503_v2 = vpop.eup %31111 }
 0xeea   : > { %v20027_v56 = vsel %vm4946_vm11, %v34503_v2, 0.0 }
 0xeeb   : > { %20028 = vadd.xlane.f32.xlu0 %v20027_v56  ;;  %v34525_v5 = vpop.eup %31113 }
 0xeec   : > { %v20024_v24 = vsel %vm4946_vm11, %v34525_v5, 0.0 }
 0xeef   : > { %v19987_v34 = vpop.xlane.xlu0 %19986 }
 0xef0   : > { %v19995_v48 = vsub.f32 %v34469_v42, %v19987_v34 }
 0xef2   : > { %v20010_v13 = vmul.f32 1.442695, %v19995_v48 }
 0xef3   : > { %v20053_v4 = vpop.permute.xlu0 %20052 }
 0xef4   : > { %v34508_v27 = vand.u32 4294901760, %v20053_v4  ;;  %31115 = vpow2.f32 %v20010_v13 }
 0xef6   : > { %v34511_v12 = vsub.f32 %v20053_v4, %v34508_v27  ;;  %30089 = vmatprep.subr.mxu0 %v34508_v27 }
 0xef7   : > { %30090 = vmatpush3.msra.mxu0 %v34508_v27 }
 0xef8   : > { %30101 = vmatprep.subr.mxu0 %v34346_v50  ;;  %v34517_v46 = vand.u32 4294901760, %v34511_v12 }
 0xefa   : > { %v20190_v14 = vsub.f32 %v34511_v12, %v34517_v46 }
 0xefc   : > { %v20191_v37 = vand.u32 4294901760, %v20190_v14 }
 0xefe   : > { %30096 = vmatprep.subr.mxu1 %v20191_v37 }
 0xeff   : > { %30097 = vmatpush3.msra.mxu1 %v20191_v37 }
 0xf00   : > { %30108 = vmatprep.subr.mxu1 %v34339_v61 }
 0xf01   : > { %20566 = vrot.lane.b32.xlu0 %v36316_v8, %s31475_s0  ;;  %v34529_v49 = vpop.eup %31115  ;;  %v20569_v8 = vpop.permute.xlu1 %20568 }
 0xf02   : > { %v20033_v33 = vsel %vm4946_vm11, %v34529_v49, 0.0  ;;  %v34542_v51 = vand.u32 4294901760, %v20569_v8 }
 0xf0c   : > { %20025 = vadd.xlane.f32.xlu1 %v20024_v24 }
 0xf0e   : > { %v19984_v39 = vpop.xlane.xlu1 %19983 }
 0xf0f   : > { %v19994_v42 = vsub.f32 %v34476_v52, %v19984_v39 }
 0xf11   : > { %v20008_v41 = vmul.f32 1.442695, %v19994_v42 }
 0xf13   : > { %31117 = vpow2.f32 %v20008_v41 }
 0xf1d   : > { %21080 = vrot.lane.b32.xlu1 %v36317_v44, %s31475_s0 }
 0xf20   : > { %20034 = vadd.xlane.f32.xlu0 %v20033_v33  ;;  %v34538_v26 = vpop.eup %31117 }
 0xf21   : > { %v20030_v22 = vsel %vm4946_vm11, %v34538_v26, 0.0 }
 0xf36   : > { %21596 = vrot.lane.b32.xlu0 %v36318_v16, %s31475_s0  ;;  %v34548_v16 = vsub.f32 %v20569_v8, %v34542_v51 }
 0xf38   : > { %v34554_v14 = vand.u32 4294901760, %v34548_v16 }
 0xf41   : > { %20031 = vadd.xlane.f32.xlu1 %v20030_v22 }
 0xf44   : > { %v20017_v44 = vpop.xlane.xlu0 %20016 }
 0xf45   : > { %31119 = vrcp.f32 %v20017_v44 }
 0xf46   : > { %v20014_v36 = vpop.xlane.xlu1 %20013 }
 0xf47   : > { %31121 = vrcp.f32 %v20014_v36 }
 0xf52   : > { %v31120_v20 = vpop.eup %31119  ;;  %21594 = vrot.lane.b32.xlu1 %v36320_v15, %s31475_s0  ;;  %s27068_s0 = sshll.u32 %s31435_s25, 6 }
 0xf53   : > { %v20045_v52 = vmul.f32 %v31120_v20, %v34482_v17 }
 0xf54   : > { %v31122_v25 = vpop.eup %31121 }
 0xf55   : > { %v20044_v56 = vmul.f32 %v31122_v25, %v34486_v53  ;;  %v20062_v34 = vsel %vm4946_vm11, %v20045_v52, 0  ;;  %v20697_v53 = vsub.f32 %v34548_v16, %v34554_v14 }
 0xf56   : > { %v20141_v45 = vand.u32 4294901760, %v20062_v34 }
 0xf57   : > { %v20059_v59 = vsel %vm4946_vm11, %v20044_v56, 0  ;;  %v20698_v39 = vand.u32 4294901760, %v20697_v53 }
 0xf58   : > { %v20131_v4 = vand.u32 4294901760, %v20059_v59  ;;  %v20142_v63 = vsub.f32 %v20062_v34, %v20141_v45 }
 0xf5a   : > { %30098 = vmatprep.mubr.f32.mxu1 %v20131_v4  ;;  %v20132_v15 = vsub.f32 %v20059_v59, %v20131_v4  ;;  %v20143_v37 = vand.u32 4294901760, %v20142_v63 }
 0xf5b   : > { %30099 = vmatmul.mubr.f32.vlgmr.msra.gmra.mxu1 %v20141_v45 }
 0xf5c   : > { %30109 = vmatpush3.msra.mxu1 %v34339_v61  ;;  %v20023_v17 = vpop.xlane.xlu0 %20022  ;;  %v20133_v48 = vand.u32 4294901760, %v20132_v15  ;;  %v20144_v13 = vsub.f32 %v20142_v63, %v20143_v37 }
 0xf5d   : > { %31123 = vrcp.f32 %v20023_v17  ;;  %30110 = vmatprep.subr.mxu1 %v34508_v27 }
 0xf5e   : > { %30111 = vmatpush3.msra.mxu1 %v34508_v27  ;;  %30112 = vmatprep.mubr.f32.mxu1 %v20133_v48  ;;  %v20134_v24 = vsub.f32 %v20132_v15, %v20133_v48  ;;  %v20145_v42 = vand.u32 4294901760, %v20144_v13 }
 0xf5f   : > { %30122 = vmatprep.subr.mxu1 %v34339_v61  ;;  %30113 = vmatmul.mubr.f32.vlgmr.msra.gmra.mxu1 %v20143_v37 }
 0xf60   : > { %30123 = vmatpush3.msra.mxu1 %v34339_v61  ;;  %30126 = vmatprep.mubr.f32.mxu1 %v20131_v4  ;;  %v20020_v33 = vpop.xlane.xlu1 %20019  ;;  %v20135_v8 = vand.u32 4294901760, %v20134_v24 }
 0xf61   : > { %30124 = vmatprep.subr.mxu1 %v34508_v27  ;;  %31125 = vrcp.f32 %v20020_v33 }
 0xf62   : > { %30125 = vmatpush3.msra.mxu1 %v34508_v27  ;;  %30091 = vmatprep.mubr.f32.mxu0 %v20135_v8 }
 0xf63   : > { %30136 = vmatprep.subr.mxu1 %v20698_v39  ;;  %30092 = vmatmul.mubr.f32.vlgmr.msra.gmra.mxu0 %v20145_v42 }
 0xf64   : > { %30102 = vmatpush3.msra.mxu0 %v34346_v50  ;;  %30127 = vmatmul.mubr.f32.vlgmr.msra.gmra.mxu1 %v20141_v45 }
 0xf65   : > { %30137 = vmatpush3.msra.mxu1 %v20698_v39  ;;  %30103 = vmatprep.subr.mxu0 %v34511_v12 }
 0xf66   : > { %30105 = vmatprep.mubr.f32.mxu0 %v20132_v15  ;;  %30104 = vmatpush3.msra.mxu0 %v34511_v12 }
 0xf67   : > { %30115 = vmatprep.subr.mxu0 %v34355_v47  ;;  %30106 = vmatmul.mubr.f32.vlgmr.msra.gmra.mxu0 %v20142_v63 }
 0xf68   : > { %30116 = vmatpush3.msra.mxu0 %v34355_v47  ;;  %30119 = vmatprep.mubr.f32.mxu0 %v20131_v4 }
 0xf69   : > { %30117 = vmatprep.subr.mxu0 %v34517_v46 }
 0xf6a   : > { %v31124_v61 = vpop.eup %31123  ;;  %30118 = vmatpush3.msra.mxu0 %v34517_v46 }
 0xf6b   : > { %v20047_v50 = vmul.f32 %v31124_v61, %v34492_v7  ;;  %30129 = vmatprep.subr.mxu0 %v34542_v51  ;;  %30120 = vmatmul.mubr.f32.vlgmr.msra.gmra.mxu0 %v20141_v45  ;;  %v21083_v45 = vpop.permute.xlu1 %21082 }
 0xf6c   : > { %30130 = vmatpush3.msra.mxu0 %v34542_v51  ;;  %v34578_v37 = vand.u32 4294901760, %v21083_v45 }
 0xf6d   : > { %v20576_v27 = vsel %vm4946_vm11, %v20047_v50, 0 }
 0xf6e   : > { %v31126_v12 = vpop.eup %31125  ;;  %v20655_v41 = vand.u32 4294901760, %v20576_v27  ;;  %v34583_v48 = vsub.f32 %v21083_v45, %v34578_v37 }
 0xf6f   : > { %v20046_v22 = vmul.f32 %v31126_v12, %v34496_v38 }
 0xf70   : > { %v20656_v47 = vsub.f32 %v20576_v27, %v20655_v41 }
 0xf71   : > { %v20573_v44 = vsel %vm4946_vm11, %v20046_v22, 0 }
 0xf72   : > { %v20645_v36 = vand.u32 4294901760, %v20573_v44  ;;  %v20657_v20 = vand.u32 4294901760, %v20656_v47 }
 0xf74   : > { %v20029_v52 = vpop.xlane.xlu0 %20028  ;;  %30140 = vmatprep.mubr.f32.mxu1 %v20645_v36  ;;  %v20646_v46 = vsub.f32 %v20573_v44, %v20645_v36  ;;  %v20658_v25 = vsub.f32 %v20656_v47, %v20657_v20 }
 0xf75   : > { %31127 = vrcp.f32 %v20029_v52 }
 0xf76   : > { %v20647_v7 = vand.u32 4294901760, %v20646_v46  ;;  %v20659_v15 = vand.u32 4294901760, %v20658_v25 }
 0xf78   : > { %v20567_v56 = vpop.permute.xlu0 %20566  ;;  %v20648_v34 = vsub.f32 %v20646_v46, %v20647_v7 }
 0xf79   : > { %v20610_v59 = vand.u32 4294901760, %v20567_v56 }
 0xf7a   : > { %v20649_v4 = vand.u32 4294901760, %v20648_v34 }
 0xf7b   : > { %v20702_v63 = vsub.f32 %v20567_v56, %v20610_v59  ;;  %30131 = vmatprep.subr.mxu0 %v20610_v59 }
 0xf7c   : > { %30132 = vmatpush3.msra.mxu0 %v20610_v59  ;;  %30133 = vmatprep.mubr.f32.mxu0 %v20649_v4 }
 0xf7d   : > { %30134 = vmatmul.mubr.f32.vlgmr.msra.gmra.mxu0 %v20659_v15  ;;  %30143 = vmatprep.subr.mxu0 %v34548_v16  ;;  %v20703_v38 = vand.u32 4294901760, %v20702_v63 }
 0xf7e   : > { %30144 = vmatpush3.msra.mxu0 %v34548_v16  ;;  %30147 = vmatprep.mubr.f32.mxu0 %v20646_v46  ;;  %v34588_v16 = vand.u32 4294901760, %v34583_v48 }
 0xf7f   : > { %30145 = vmatprep.subr.mxu0 %v20702_v63  ;;  %v20704_v17 = vsub.f32 %v20702_v63, %v20703_v38 }
 0xf80   : > { %30146 = vmatpush3.msra.mxu0 %v20702_v63 }
 0xf81   : > { %30148 = vmatmul.mubr.f32.vlgmr.msra.gmra.mxu0 %v20656_v47  ;;  %30157 = vmatprep.subr.mxu0 %v34554_v14  ;;  %v20705_v53 = vand.u32 4294901760, %v20704_v17 }
 0xf82   : > { %30158 = vmatpush3.msra.mxu0 %v34554_v14  ;;  %30161 = vmatprep.mubr.f32.mxu0 %v20645_v36  ;;  %v21211_v14 = vsub.f32 %v34583_v48, %v34588_v16  ;;  %v31128_v33 = vpop.eup %31127 }
 0xf83   : > { %30138 = vmatprep.subr.mxu1 %v20705_v53  ;;  %30159 = vmatprep.subr.mxu0 %v20703_v38  ;;  %v20049_v8 = vmul.f32 %v31128_v33, %v34503_v2 }
 0xf84   : > { %30139 = vmatpush3.msra.mxu1 %v20705_v53  ;;  %30160 = vmatpush3.msra.mxu0 %v20703_v38  ;;  %v21212_v13 = vand.u32 4294901760, %v21211_v14 }
 0xf85   : > { %30141 = vmatmul.mubr.f32.vlgmr.msra.gmra.mxu1 %v20655_v41  ;;  %30150 = vmatprep.subr.mxu1 %v34542_v51  ;;  %v21090_v50 = vsel %vm4946_vm11, %v20049_v8, 0 }
 0xf86   : > { %30162 = vmatmul.mubr.f32.vlgmr.msra.gmra.mxu0 %v20655_v41  ;;  %30171 = vmatprep.subr.mxu0 %v34578_v37  ;;  %v21169_v12 = vand.u32 4294901760, %v21090_v50 }
 0xf87   : > { %30151 = vmatpush3.msra.mxu1 %v34542_v51  ;;  %30154 = vmatprep.mubr.f32.mxu1 %v20647_v7 }
 0xf88   : > { %30172 = vmatpush3.msra.mxu0 %v34578_v37  ;;  %30152 = vmatprep.subr.mxu1 %v20610_v59  ;;  %v21170_v44 = vsub.f32 %v21090_v50, %v21169_v12 }
 0xf89   : > { %30153 = vmatpush3.msra.mxu1 %v20610_v59 }
 0xf8a   : > { %30155 = vmatmul.mubr.f32.vlgmr.msra.gmra.mxu1 %v20657_v20  ;;  %30164 = vmatprep.subr.mxu1 %v34542_v51  ;;  %v21171_v20 = vand.u32 4294901760, %v21170_v44 }
 0xf8b   : > { %30165 = vmatpush3.msra.mxu1 %v34542_v51  ;;  %30168 = vmatprep.mubr.f32.mxu1 %v20645_v36 }
 0xf8c   : > { %30166 = vmatprep.subr.mxu1 %v20610_v59  ;;  %v21172_v25 = vsub.f32 %v21170_v44, %v21171_v20 }
 0xf8d   : > { %30167 = vmatpush3.msra.mxu1 %v20610_v59 }
 0xf8e   : > { %30169 = vmatmul.mubr.f32.vlgmr.msra.gmra.mxu1 %v20655_v41  ;;  %30178 = vmatprep.subr.mxu1 %v21212_v13  ;;  %v21173_v4 = vand.u32 4294901760, %v21172_v25 }
 0xf8f   : > { %30179 = vmatpush3.msra.mxu1 %v21212_v13 }
 0xf95   : > { %v20026_v24 = vpop.xlane.xlu1 %20025 }
 0xf96   : > { %31129 = vrcp.f32 %v20026_v24  ;;  %v2864_v24 = vld [vmem:[%s33126_s6 + $0x18] sm:$0xff] }
 0xf99   : > { %v21081_v39 = vpop.permute.xlu1 %21080 }
 0xf9a   : > { %v21124_v42 = vand.u32 4294901760, %v21081_v39 }
 0xf9c   : > { %v21216_v61 = vsub.f32 %v21081_v39, %v21124_v42  ;;  %30173 = vmatprep.subr.mxu0 %v21124_v42 }
 0xf9d   : > { %30174 = vmatpush3.msra.mxu0 %v21124_v42 }
 0xf9e   : > { %30185 = vmatprep.subr.mxu0 %v34583_v48  ;;  %v21217_v51 = vand.u32 4294901760, %v21216_v61 }
 0xfa0   : > { %v21218_v27 = vsub.f32 %v21216_v61, %v21217_v51 }
 0xfa2   : > { %v21219_v41 = vand.u32 4294901760, %v21218_v27 }
 0xfa3   : > { %v31130_v22 = vpop.eup %31129 }
 0xfa4   : > { %30180 = vmatprep.subr.mxu1 %v21219_v41  ;;  %v20048_v47 = vmul.f32 %v31130_v22, %v34525_v5 }
 0xfa5   : > { %30181 = vmatpush3.msra.mxu1 %v21219_v41 }
 0xfa6   : > { %30192 = vmatprep.subr.mxu1 %v34578_v37  ;;  %v21087_v2 = vsel %vm4946_vm11, %v20048_v47, 0 }
 0xfa7   : > { %v21159_v36 = vand.u32 4294901760, %v21087_v2 }
 0xfa9   : > { %v20035_v52 = vpop.xlane.xlu0 %20034  ;;  %30182 = vmatprep.mubr.f32.mxu1 %v21159_v36  ;;  %v21160_v46 = vsub.f32 %v21087_v2, %v21159_v36 }
 0xfaa   : > { %30183 = vmatmul.mubr.f32.vlgmr.msra.gmra.mxu1 %v21169_v12  ;;  %31131 = vrcp.f32 %v20035_v52 }
 0xfab   : > { %30193 = vmatpush3.msra.mxu1 %v34578_v37  ;;  %v21161_v7 = vand.u32 4294901760, %v21160_v46 }
 0xfac   : > { %30194 = vmatprep.subr.mxu1 %v21124_v42 }
 0xfad   : > { %30195 = vmatpush3.msra.mxu1 %v21124_v42  ;;  %v21597_v56 = vpop.permute.xlu0 %21596  ;;  %30196 = vmatprep.mubr.f32.mxu1 %v21161_v7  ;;  %v21162_v5 = vsub.f32 %v21160_v46, %v21161_v7 }
 0xfae   : > { %v34605_v34 = vand.u32 4294901760, %v21597_v56  ;;  %30206 = vmatprep.subr.mxu1 %v34578_v37  ;;  %30197 = vmatmul.mubr.f32.vlgmr.msra.gmra.mxu1 %v21171_v20 }
 0xfaf   : > { %30207 = vmatpush3.msra.mxu1 %v34578_v37  ;;  %30210 = vmatprep.mubr.f32.mxu1 %v21159_v36  ;;  %v21163_v45 = vand.u32 4294901760, %v21162_v5 }
 0xfb0   : > { %v34610_v59 = vsub.f32 %v21597_v56, %v34605_v34  ;;  %30208 = vmatprep.subr.mxu1 %v21124_v42 }
 0xfb1   : > { %30209 = vmatpush3.msra.mxu1 %v21124_v42  ;;  %30175 = vmatprep.mubr.f32.mxu0 %v21163_v45  ;;  %v34626_v42 = vand.u32 4294901760, %v2864_v24 }
 0xfb2   : > { %v34613_v63 = vand.u32 4294901760, %v34610_v59  ;;  %30176 = vmatmul.mubr.f32.vlgmr.msra.gmra.mxu0 %v21173_v4  ;;  %30211 = vmatmul.mubr.f32.vlgmr.msra.gmra.mxu1 %v21169_v12 }
 0xfb3   : > { %30186 = vmatpush3.msra.mxu0 %v34583_v48  ;;  %30189 = vmatprep.mubr.f32.mxu0 %v21160_v46  ;;  %v34630_v27 = vsub.f32 %v2864_v24, %v34626_v42 }
 0xfb4   : > { %30187 = vmatprep.subr.mxu0 %v21216_v61  ;;  %v21725_v15 = vsub.f32 %v34610_v59, %v34613_v63 }
 0xfb5   : > { %30188 = vmatpush3.msra.mxu0 %v21216_v61  ;;  %v34635_v47 = vand.u32 4294901760, %v34630_v27 }
 0xfb6   : > { %30199 = vmatprep.subr.mxu0 %v34588_v16  ;;  %30190 = vmatmul.mubr.f32.vlgmr.msra.gmra.mxu0 %v21170_v44  ;;  %v21726_v37 = vand.u32 4294901760, %v21725_v15 }
 0xfb7   : > { %30200 = vmatpush3.msra.mxu0 %v34588_v16  ;;  %30203 = vmatprep.mubr.f32.mxu0 %v21159_v36  ;;  %v31132_v17 = vpop.eup %31131  ;;  %v22312_v36 = vsub.f32 %v34630_v27, %v34635_v47 }
 0xfb8   : > { %30201 = vmatprep.subr.mxu0 %v21217_v51  ;;  %30220 = vmatprep.subr.mxu1 %v21726_v37  ;;  %v20051_v48 = vmul.f32 %v31132_v17, %v34529_v49 }
 0xfb9   : > { %30202 = vmatpush3.msra.mxu0 %v21217_v51  ;;  %30221 = vmatpush3.msra.mxu1 %v21726_v37  ;;  %v22313_v7 = vand.u32 4294901760, %v22312_v36 }
 0xfba   : > { %30213 = vmatprep.subr.mxu0 %v34605_v34  ;;  %30204 = vmatmul.mubr.f32.vlgmr.msra.gmra.mxu0 %v21169_v12  ;;  %v21604_v13 = vsel %vm4946_vm11, %v20051_v48, 0 }
 0xfbb   : > { %30214 = vmatpush3.msra.mxu0 %v34605_v34  ;;  %v21683_v39 = vand.u32 4294901760, %v21604_v13 }
 0xfbd   : > { %v21684_v51 = vsub.f32 %v21604_v13, %v21683_v39 }
 0xfbf   : > { %v21685_v22 = vand.u32 4294901760, %v21684_v51 }
 0xfc1   : > { %v21686_v2 = vsub.f32 %v21684_v51, %v21685_v22 }
 0xfc3   : > { %v21687_v46 = vand.u32 4294901760, %v21686_v2 }
 0xfca   : > { %v20032_v38 = vpop.xlane.xlu1 %20031 }
 0xfcb   : > { %31133 = vrcp.f32 %v20032_v38 }
 0xfce   : > { %v21595_v53 = vpop.permute.xlu1 %21594 }
 0xfcf   : > { %v21638_v14 = vand.u32 4294901760, %v21595_v53 }
 0xfd1   : > { %v21730_v16 = vsub.f32 %v21595_v53, %v21638_v14  ;;  %30215 = vmatprep.subr.mxu0 %v21638_v14 }
 0xfd2   : > { %30216 = vmatpush3.msra.mxu0 %v21638_v14 }
 0xfd3   : > { %v21731_v33 = vand.u32 4294901760, %v21730_v16  ;;  %30227 = vmatprep.subr.mxu0 %v34610_v59 }
 0xfd5   : > { %v21732_v8 = vsub.f32 %v21730_v16, %v21731_v33 }
 0xfd7   : > { %v21733_v61 = vand.u32 4294901760, %v21732_v8 }
 0xfd8   : > { %v31134_v50 = vpop.eup %31133 }
 0xfd9   : > { %30222 = vmatprep.subr.mxu1 %v21733_v61  ;;  %v20050_v49 = vmul.f32 %v31134_v50, %v34538_v26 }
 0xfda   : > { %30223 = vmatpush3.msra.mxu1 %v21733_v61 }
 0xfdb   : > { %30234 = vmatprep.subr.mxu1 %v34605_v34  ;;  %v21601_v12 = vsel %vm4946_vm11, %v20050_v49, 0 }
 0xfdc   : > { %v21673_v41 = vand.u32 4294901760, %v21601_v12 }
 0xfde   : > { %30224 = vmatprep.mubr.f32.mxu1 %v21673_v41  ;;  %v21674_v44 = vsub.f32 %v21601_v12, %v21673_v41 }
 0xfdf   : > { %30225 = vmatmul.mubr.f32.vlgmr.msra.gmra.mxu1 %v21683_v39 }
 0xfe0   : > { %30235 = vmatpush3.msra.mxu1 %v34605_v34  ;;  %v21675_v26 = vand.u32 4294901760, %v21674_v44 }
 0xfe1   : > { %30236 = vmatprep.subr.mxu1 %v21638_v14 }
 0xfe2   : > { %30237 = vmatpush3.msra.mxu1 %v21638_v14  ;;  %30238 = vmatprep.mubr.f32.mxu1 %v21675_v26  ;;  %v21676_v20 = vsub.f32 %v21674_v44, %v21675_v26 }
 0xfe3   : > { %30248 = vmatprep.subr.mxu1 %v34605_v34  ;;  %30239 = vmatmul.mubr.f32.vlgmr.msra.gmra.mxu1 %v21685_v22 }
 0xfe4   : > { %30249 = vmatpush3.msra.mxu1 %v34605_v34  ;;  %30252 = vmatprep.mubr.f32.mxu1 %v21673_v41  ;;  %v21677_v52 = vand.u32 4294901760, %v21676_v20 }
 0xfe5   : > { %30250 = vmatprep.subr.mxu1 %v21638_v14 }
 0xfe6   : > { %30251 = vmatpush3.msra.mxu1 %v21638_v14  ;;  %30217 = vmatprep.mubr.f32.mxu0 %v21677_v52 }
 0xfe7   : > { %30218 = vmatmul.mubr.f32.vlgmr.msra.gmra.mxu0 %v21687_v46  ;;  %30253 = vmatmul.mubr.f32.vlgmr.msra.gmra.mxu1 %v21683_v39 }
 0xfe8   : > { %30228 = vmatpush3.msra.mxu0 %v34610_v59  ;;  %30231 = vmatprep.mubr.f32.mxu0 %v21674_v44 }
 0xfe9   : > { %30229 = vmatprep.subr.mxu0 %v21730_v16  ;;  %30269 = vmatprep.subr.mxu1 %v22313_v7 }
 0xfea   : > { %30230 = vmatpush3.msra.mxu0 %v21730_v16  ;;  %30270 = vmatpush3.msra.mxu1 %v22313_v7 }
 0xfeb   : > { %30241 = vmatprep.subr.mxu0 %v34613_v63  ;;  %30232 = vmatmul.mubr.f32.vlgmr.msra.gmra.mxu0 %v21684_v51 }
 0xfec   : > { %30242 = vmatpush3.msra.mxu0 %v34613_v63  ;;  %30245 = vmatprep.mubr.f32.mxu0 %v21673_v41 }
 0xfed   : > { %30243 = vmatprep.subr.mxu0 %v21731_v33  ;;  %30297 = vmatprep.subr.mxu1 %v34626_v42 }
 0xfee   : > { %30244 = vmatpush3.msra.mxu0 %v21731_v33 }
 0xfef   : > { %30246 = vmatmul.mubr.f32.vlgmr.msra.gmra.mxu0 %v21683_v39  ;;  %30255 = vmatprep.subr.mxu0 %v34626_v42 }
 0xff0   : > { %30256 = vmatpush3.msra.mxu0 %v34626_v42 }
 0xff1   : > { %30283 = vmatprep.subr.mxu0 %v34630_v27 }
0x101b   : > { %v30100_v25 = vpop.f32.mrf.mxu1 }
0x101d   : > { %v20228_v56 = vpop.f32.mrf.mxu1 }
0x101f   : > { %v30114_v5 = vpop.f32.mrf.mxu1 }
0x1021   : > { %v20392_v4 = vpop.f32.mrf.mxu1 }
0x1023   : > { %v30093_v34 = vpop.f32.mrf.mxu0 }
0x1024   : > { %v20235_v59 = vadd.f32 %v30100_v25, %v30093_v34  ;;  %v30128_v53 = vpop.f32.mrf.mxu1 }
0x1025   : > { %v20137_v45 = vpop.f32.mrf.mxu0 }
0x1026   : > { %v20229_v15 = vadd.f32 %v20228_v56, %v20137_v45  ;;  %v20556_v39 = vpop.f32.mrf.mxu1 }
0x1027   : > { %v30107_v63 = vpop.f32.mrf.mxu0 }
0x1028   : > { %v20318_v37 = vadd.f32 %v30107_v63, %v20235_v59 }
0x1029   : > { %v20310_v38 = vpop.f32.mrf.mxu0 }
0x102a   : > { %v20311_v17 = vadd.f32 %v20310_v38, %v20229_v15  ;;  %v20401_v48 = vadd.f32 %v30114_v5, %v20318_v37 }
0x102b   : > { %v30121_v14 = vpop.f32.mrf.mxu0 }
0x102c   : > { %v20484_v16 = vadd.f32 %v30121_v14, %v20401_v48  ;;  %v20393_v13 = vadd.f32 %v20392_v4, %v20311_v17 }
0x102d   : > { %v20477_v24 = vpop.f32.mrf.mxu0 }
0x102e   : > { %v20563_v33 = vadd.f32 %v30128_v53, %v20484_v16  ;;  %v20478_v8 = vadd.f32 %v20477_v24, %v20393_v13 }
0x1030   : > { %v22112_v61 = vsel %vm2871_vm10, %v20563_v33, 0  ;;  %v20557_v50 = vadd.f32 %v20556_v39, %v20478_v8 }
0x1031   : > { %v34650_v49 = vand.u32 4294901760, %v22112_v61 }
0x1032   : > { %v22109_v51 = vsel %vm2871_vm10, %v20557_v50, 0 }
0x1033   : > { %v34654_v12 = vsub.f32 %v22112_v61, %v34650_v49  ;;  %v34656_v41 = vand.u32 4294901760, %v22109_v51 }
0x1035   : > { %v36175_v22 = vand.u32 4294901760, %v34654_v12  ;;  %v34660_v44 = vsub.f32 %v22109_v51, %v34656_v41  ;;  %30271 = vmatprep.mubr.f32.mxu1 %v34656_v41 }
0x1036   : > { %30272 = vmatmul.mubr.f32.vlgmr.msra.gmra.mxu1 %v34650_v49 }
0x1037   : > { %v36176_v26 = vand.u32 4294901760, %v34660_v44  ;;  %30298 = vmatpush3.msra.mxu1 %v34626_v42  ;;  %v22211_v2 = vsub.f32 %v34654_v12, %v36175_v22 }
0x1038   : > { %30325 = vmatprep.subr.mxu1 %v34626_v42 }
0x1039   : > { %v22201_v36 = vsub.f32 %v34660_v44, %v36176_v26  ;;  %v22212_v52 = vand.u32 4294901760, %v22211_v2 }
0x103b   : > { %v22202_v20 = vand.u32 4294901760, %v22201_v36 }
0x103d   : > { %v30135_v46 = vpop.f32.mrf.mxu0  ;;  %30257 = vmatprep.mubr.f32.mxu0 %v22202_v20 }
0x103e   : > { %30258 = vmatmul.mubr.f32.vlgmr.msra.gmra.mxu0 %v22212_v52 }
0x103f   : > { %v20651_v7 = vpop.f32.mrf.mxu0  ;;  %30284 = vmatpush3.msra.mxu0 %v34630_v27 }
0x1040   : > { %30311 = vmatprep.subr.mxu0 %v34635_v47 }
0x1041   : > { %v30149_v25 = vpop.f32.mrf.mxu0 }
0x1043   : > { %v20824_v5 = vpop.f32.mrf.mxu0 }
0x1045   : > { %v30142_v56 = vpop.f32.mrf.mxu1 }
0x1046   : > { %v20749_v34 = vadd.f32 %v30142_v56, %v30135_v46  ;;  %v30163_v63 = vpop.f32.mrf.mxu0 }
0x1047   : > { %v20742_v45 = vpop.f32.mrf.mxu1 }
0x1048   : > { %v20743_v59 = vadd.f32 %v20742_v45, %v20651_v7  ;;  %v20832_v4 = vadd.f32 %v30149_v25, %v20749_v34  ;;  %v20991_v14 = vpop.f32.mrf.mxu0 }
0x104a   : > { %v30156_v15 = vpop.f32.mrf.mxu1  ;;  %v20825_v37 = vadd.f32 %v20824_v5, %v20743_v59 }
0x104b   : > { %v20915_v38 = vadd.f32 %v30156_v15, %v20832_v4 }
0x104c   : > { %v20906_v17 = vpop.f32.mrf.mxu1 }
0x104d   : > { %v20907_v48 = vadd.f32 %v20906_v17, %v20825_v37  ;;  %v20998_v53 = vadd.f32 %v30163_v63, %v20915_v38 }
0x104e   : > { %v30170_v16 = vpop.f32.mrf.mxu1 }
0x104f   : > { %v21077_v13 = vadd.f32 %v30170_v16, %v20998_v53  ;;  %v20992_v27 = vadd.f32 %v20991_v14, %v20907_v48 }
0x1050   : > { %v21070_v24 = vpop.f32.mrf.mxu1 }
0x1051   : > { %v22118_v33 = vsel %vm2871_vm10, %v21077_v13, 0  ;;  %v21071_v8 = vadd.f32 %v21070_v24, %v20992_v27 }
0x1052   : > { %v34676_v39 = vand.u32 4294901760, %v22118_v33 }
0x1053   : > { %v22115_v61 = vsel %vm2871_vm10, %v21071_v8, 0 }
0x1054   : > { %v34680_v50 = vsub.f32 %v22118_v33, %v34676_v39  ;;  %v34682_v51 = vand.u32 4294901760, %v22115_v61 }
0x1056   : > { %v36173_v2 = vand.u32 4294901760, %v34680_v50  ;;  %v34686_v36 = vsub.f32 %v22115_v61, %v34682_v51  ;;  %30274 = vmatprep.mubr.f32.mxu1 %v34682_v51 }
0x1057   : > { %30275 = vmatmul.mubr.f32.gmra.mxu1 %v34676_v39 }
0x1058   : > { %v36174_v20 = vand.u32 4294901760, %v34686_v36  ;;  %v22231_v52 = vsub.f32 %v34680_v50, %v36173_v2 }
0x105a   : > { %v22221_v46 = vsub.f32 %v34686_v36, %v36174_v20  ;;  %v22232_v25 = vand.u32 4294901760, %v22231_v52 }
0x105c   : > { %v22222_v7 = vand.u32 4294901760, %v22221_v46 }
0x105e   : > { %30260 = vmatprep.mubr.f32.mxu0 %v22222_v7 }
0x105f   : > { %30261 = vmatmul.mubr.f32.gmra.mxu0 %v22232_v25 }
0x106a   : > { %v30184_v56 = vpop.f32.mrf.mxu1 }
0x106c   : > { %v21256_v5 = vpop.f32.mrf.mxu1 }
0x106e   : > { %v30198_v34 = vpop.f32.mrf.mxu1 }
0x1070   : > { %v21420_v63 = vpop.f32.mrf.mxu1 }
0x1072   : > { %v30177_v45 = vpop.f32.mrf.mxu0  ;;  %v30212_v14 = vpop.f32.mrf.mxu1 }
0x1073   : > { %v21263_v4 = vadd.f32 %v30184_v56, %v30177_v45 }
0x1074   : > { %v21165_v59 = vpop.f32.mrf.mxu0  ;;  %v21584_v61 = vpop.f32.mrf.mxu1 }
0x1075   : > { %v21257_v37 = vadd.f32 %v21256_v5, %v21165_v59 }
0x1076   : > { %v30191_v15 = vpop.f32.mrf.mxu0 }
0x1077   : > { %v21346_v38 = vadd.f32 %v30191_v15, %v21263_v4 }
0x1078   : > { %v21338_v17 = vpop.f32.mrf.mxu0 }
0x1079   : > { %v21339_v48 = vadd.f32 %v21338_v17, %v21257_v37  ;;  %v21429_v53 = vadd.f32 %v30198_v34, %v21346_v38 }
0x107a   : > { %v30205_v16 = vpop.f32.mrf.mxu0 }
0x107b   : > { %v21512_v13 = vadd.f32 %v30205_v16, %v21429_v53  ;;  %v21421_v27 = vadd.f32 %v21420_v63, %v21339_v48 }
0x107c   : > { %v21505_v24 = vpop.f32.mrf.mxu0 }
0x107d   : > { %v21591_v33 = vadd.f32 %v30212_v14, %v21512_v13  ;;  %v21506_v8 = vadd.f32 %v21505_v24, %v21421_v27 }
0x107f   : > { %v22124_v52 = vsel %vm2871_vm10, %v21591_v33, 0  ;;  %v21585_v46 = vadd.f32 %v21584_v61, %v21506_v8 }
0x1080   : > { %v34698_v7 = vand.u32 4294901760, %v22124_v52 }
0x1081   : > { %v22121_v25 = vsel %vm2871_vm10, %v21585_v46, 0 }
0x1082   : > { %v34702_v56 = vsub.f32 %v22124_v52, %v34698_v7  ;;  %v34704_v5 = vand.u32 4294901760, %v22121_v25 }
0x1084   : > { %v22239_v34 = vsub.f32 %v22121_v25, %v34704_v5  ;;  %30277 = vmatprep.mubr.f32.mxu1 %v34704_v5  ;;  %v22250_v45 = vand.u32 4294901760, %v34702_v56 }
0x1085   : > { %30278 = vmatmul.mubr.f32.gmra.mxu1 %v34698_v7 }
0x1086   : > { %v22240_v59 = vand.u32 4294901760, %v22239_v34  ;;  %v22251_v4 = vsub.f32 %v34702_v56, %v22250_v45 }
0x1088   : > { %v22241_v63 = vsub.f32 %v22239_v34, %v22240_v59  ;;  %v22252_v37 = vand.u32 4294901760, %v22251_v4 }
0x108a   : > { %v22242_v15 = vand.u32 4294901760, %v22241_v63 }
0x108c   : > { %30263 = vmatprep.mubr.f32.mxu0 %v22242_v15 }
0x108d   : > { %30264 = vmatmul.mubr.f32.gmra.mxu0 %v22252_v37 }
0x109f   : > { %v30226_v38 = vpop.f32.mrf.mxu1 }
0x10a1   : > { %v21770_v17 = vpop.f32.mrf.mxu1 }
0x10a3   : > { %v30240_v48 = vpop.f32.mrf.mxu1 }
0x10a5   : > { %v21934_v13 = vpop.f32.mrf.mxu1 }
0x10a7   : > { %v30219_v53 = vpop.f32.mrf.mxu0  ;;  %v30254_v46 = vpop.f32.mrf.mxu1 }
0x10a8   : > { %v21777_v16 = vadd.f32 %v30226_v38, %v30219_v53 }
0x10a9   : > { %v21679_v14 = vpop.f32.mrf.mxu0  ;;  %v22098_v20 = vpop.f32.mrf.mxu1 }
0x10aa   : > { %v21771_v24 = vadd.f32 %v21770_v17, %v21679_v14 }
0x10ab   : > { %v30233_v27 = vpop.f32.mrf.mxu0 }
0x10ac   : > { %v21860_v33 = vadd.f32 %v30233_v27, %v21777_v16 }
0x10ad   : > { %v21852_v8 = vpop.f32.mrf.mxu0 }
0x10ae   : > { %v21853_v61 = vadd.f32 %v21852_v8, %v21771_v24  ;;  %v21943_v52 = vadd.f32 %v30240_v48, %v21860_v33  ;;  %v36344_v48 = vand.u32 4294901760, %v34660_v44  ;;  %v36345_v24 = vand.u32 4294901760, %v34654_v12 }
0x10af   : > { %v30247_v25 = vpop.f32.mrf.mxu0 }
0x10b0   : > { %v22026_v2 = vadd.f32 %v30247_v25, %v21943_v52  ;;  %v21935_v63 = vadd.f32 %v21934_v13, %v21853_v61 }
0x10b1   : > { %v22019_v4 = vpop.f32.mrf.mxu0 }
0x10b2   : > { %v22105_v15 = vadd.f32 %v30254_v46, %v22026_v2  ;;  %v22020_v37 = vadd.f32 %v22019_v4, %v21935_v63 }
0x10b4   : > { %v22130_v22 = vsel %vm2871_vm10, %v22105_v15, 0  ;;  %v22099_v26 = vadd.f32 %v22098_v20, %v22020_v37  ;;  %v36346_v20 = vand.u32 4294901760, %v34686_v36 }
0x10b5   : > { %v22268_v11 = vand.u32 4294901760, %v22130_v22 }
0x10b6   : > { %v22127_v38 = vsel %vm2871_vm10, %v22099_v26, 0  ;;  %v36347_v26 = vand.u32 4294901760, %v34680_v50 }
0x10b7   : > { %v22269_v53 = vsub.f32 %v22130_v22, %v22268_v11  ;;  %v22258_v17 = vand.u32 4294901760, %v22127_v38 }
0x10b9   : > { %v22259_v14 = vsub.f32 %v22127_v38, %v22258_v17  ;;  %30280 = vmatprep.mubr.f32.mxu1 %v22258_v17  ;;  %v22270_v16 = vand.u32 4294901760, %v22269_v53 }
0x10ba   : > { %30281 = vmatmul.mubr.f32.gmra.mxu1 %v22268_v11 }
0x10bb   : > { %30299 = vmatprep.mubr.f32.mxu1 %v36344_v48  ;;  %v22260_v13 = vand.u32 4294901760, %v22259_v14  ;;  %v22271_v27 = vsub.f32 %v22269_v53, %v22270_v16 }
0x10bd   : > { %v22261_v2 = vsub.f32 %v22259_v14, %v22260_v13  ;;  %v22272_v22 = vand.u32 4294901760, %v22271_v27 }
0x10be   : > { %30300 = vmatmul.mubr.f32.vlgmr.msra.gmra.mxu1 %v36345_v24  ;;  %v11590_v24 = vadd.f32 %v33670_v57, %v33674_v30 }
0x10bf   : > { %30302 = vmatprep.mubr.f32.mxu1 %v36346_v20  ;;  %v22262_v33 = vand.u32 4294901760, %v22261_v2  ;;  %30326 = vmatpush3.msra.mxu1 %v34626_v42  ;;  %v23075_v42 = vld [vmem:[%s23071_s3 + $0x18] sm:$0xff]  ;;  %v11578_v2 = vadd.f32 %v33611_v62, %v33613_v0 }
0x10c1   : > { %30266 = vmatprep.mubr.f32.mxu0 %v22262_v33 }
0x10c2   : > { %30267 = vmatmul.mubr.f32.gmra.mxu0 %v22272_v22  ;;  %30303 = vmatmul.mubr.f32.gmra.mxu1 %v36347_v26  ;;  %v11696_v26 = vadd.f32 %v33688_v6, %v11578_v2  ;;  %v36354_v6 = vld [vmem:[#allocation39_spill] sm:$0xff] }
0x10c3   : > { %30285 = vmatprep.mubr.f32.mxu0 %v34660_v44  ;;  %30305 = vmatprep.mubr.f32.mxu1 %v22240_v59  ;;  %v23073_v44 = vld [vmem:[%s23071_s3 + $0x8] sm:$0xff] }
0x10c4   : > { %v11821_v57 = vadd.f32 %v33680_v28, %v11696_v26  ;;  %v36361_v26 = vld [vmem:[#allocation51_spill] sm:$0xff] }
0x10c6   : > { %30286 = vmatmul.mubr.f32.vlgmr.msra.gmra.mxu0 %v34654_v12  ;;  %30306 = vmatmul.mubr.f32.gmra.mxu1 %v22250_v45 }
0x10c7   : > { %30288 = vmatprep.mubr.f32.mxu0 %v34686_v36  ;;  %30308 = vmatprep.mubr.f32.mxu1 %v22260_v13  ;;  %v11566_v13 = vadd.f32 %v33496_v58, %v33498_v23  ;;  %v11602_v23 = vadd.f32 %v33672_v31, %v33678_v1 }
0x10c8   : > { %30312 = vmatpush3.msra.mxu0 %v34635_v47  ;;  %v34744_v47 = vand.u32 4294901760, %v23075_v42 }
0x10c9   : > { %v11682_v20 = vadd.f32 %v33683_v43, %v11566_v13  ;;  %v11724_v30 = vadd.f32 %v33697_v18, %v11602_v23  ;;  %v36353_v43 = vld [vmem:[#allocation43_spill] sm:$0xff]  ;;  %v36359_v13 = vld [vmem:[#allocation41_spill] sm:$0xff]  ;;  %v36362_v23 = vld [vmem:[#allocation44_spill] sm:$0xff] }
0x10ca   : > { %30289 = vmatmul.mubr.f32.gmra.mxu0 %v34680_v50  ;;  %30309 = vmatmul.mubr.f32.gmra.mxu1 %v22270_v16  ;;  %v34747_v12 = vsub.f32 %v23075_v42, %v34744_v47  ;;  %v34759_v50 = vand.u32 4294901760, %v23073_v44  ;;  %v11710_v42 = vadd.f32 %v33693_v29, %v11590_v24  ;;  %v36360_v24 = vld [vmem:[#allocation49_spill] sm:$0xff] }
0x10cb   : > { %30291 = vmatprep.mubr.f32.mxu0 %v22239_v34  ;;  %30327 = vmatprep.mubr.f32.mxu1 %v34656_v41  ;;  %v11805_v62 = vadd.f32 %v33676_v21, %v11682_v20 }
0x10cc   : > { %30339 = vmatprep.subr.mxu0 %v34744_v47 }
0x10ce   : > { %30292 = vmatmul.mubr.f32.gmra.mxu0 %v34702_v56  ;;  %30328 = vmatmul.mubr.f32.vlgmr.msra.gmra.mxu1 %v34650_v49  ;;  %v34769_v56 = vsub.f32 %v23073_v44, %v34759_v50  ;;  %v11935_v44 = vadd.f32 %v36353_v43, %v11805_v62 }
0x10cf   : > { %30294 = vmatprep.mubr.f32.mxu0 %v22259_v14  ;;  %30330 = vmatprep.mubr.f32.mxu1 %v34682_v51 }
0x10d0   : > { %v34778_v59 = vand.u32 4294901760, %v34769_v56 }
0x10d2   : > { %30295 = vmatmul.mubr.f32.gmra.mxu0 %v22269_v53  ;;  %30331 = vmatmul.mubr.f32.gmra.mxu1 %v34676_v39  ;;  %36350 = vst [vmem:[#allocation86_spill] sm:$0xff] %v34778_v59  ;;  %v23299_v52 = vsub.f32 %v34769_v56, %v34778_v59 }
0x10d3   : > { %30313 = vmatprep.mubr.f32.mxu0 %v34656_v41  ;;  %30333 = vmatprep.mubr.f32.mxu1 %v34704_v5 }
0x10d4   : > { %v23300_v25 = vand.u32 4294901760, %v23299_v52  ;;  %v36357_v52 = vld [vmem:[#allocation42_spill] sm:$0xff] }
0x10d5   : > { %v11853_v28 = vadd.f32 %v36357_v52, %v11724_v30  ;;  %v36364_v30 = vld [vmem:[#allocation55_spill] sm:$0xff]  ;;  %v17340_v52 = vadd.f32 %v34327_v40, %v34329_v9  ;;  %v36371_v40 = vld [vmem:[#allocation61_spill] sm:$0xff] }
0x10d6   : > { %30314 = vmatmul.mubr.f32.vlgmr.msra.gmra.mxu0 %v34650_v49  ;;  %30334 = vmatmul.mubr.f32.gmra.mxu1 %v34698_v7  ;;  %v23074_v49 = vld [vmem:[%s23071_s3 + $0x10] sm:$0xff] }
0x10d7   : > { %30316 = vmatprep.mubr.f32.mxu0 %v34682_v51  ;;  %30336 = vmatprep.mubr.f32.mxu1 %v22258_v17  ;;  %v34749_v41 = vand.u32 4294901760, %v23074_v49  ;;  %v23072_v51 = vld [vmem:[%s23071_s3] sm:$0xff]  ;;  %v11971_v20 = vadd.f32 %v36360_v24, %v11853_v28  ;;  %s35220_s3 = scalar_lea.vmem %s36122_s17, %s27068_s0 }
0x10d8   : > { %30340 = vmatpush3.msra.mxu0 %v34744_v47  ;;  %v36366_v28 = vld [vmem:[#allocation48_spill] sm:$0xff] }
0x10d9   : > { %30341 = vmatprep.subr.mxu0 %v34749_v41 }
0x10da   : > { %30317 = vmatmul.mubr.f32.gmra.mxu0 %v34676_v39  ;;  %30337 = vmatmul.mubr.f32.gmra.mxu1 %v22268_v11  ;;  %v34757_v39 = vsub.f32 %v23074_v49, %v34749_v41 }
0x10db   : > { %30319 = vmatprep.mubr.f32.mxu0 %v34704_v5  ;;  %30342 = vmatpush3.msra.mxu0 %v34749_v41  ;;  %v34771_v5 = vand.u32 4294901760, %v23072_v51 }
0x10dc   : > { %30343 = vmatprep.subr.mxu0 %v34759_v50 }
0x10dd   : > { %30344 = vmatpush3.msra.mxu0 %v34759_v50  ;;  %v34781_v8 = vsub.f32 %v23072_v51, %v34771_v5  ;;  %v11837_v51 = vadd.f32 %v36354_v6, %v11710_v42  ;;  %v36363_v6 = vld [vmem:[#allocation53_spill] sm:$0xff] }
0x10de   : > { %30320 = vmatmul.mubr.f32.gmra.mxu0 %v34698_v7  ;;  %v34766_v7 = vand.u32 4294901760, %v34757_v39  ;;  %30345 = vmatprep.subr.mxu0 %v34771_v5 }
0x10df   : > { %30322 = vmatprep.mubr.f32.mxu0 %v22258_v17  ;;  %36351 = vst [vmem:[#allocation87_spill] sm:$0xff] %v34781_v8  ;;  %30346 = vmatpush3.msra.mxu0 %v34771_v5  ;;  %v34788_v46 = vand.u32 4294901760, %v34781_v8 }
0x10e0   : > { %36349 = vst [vmem:[#allocation85_spill] sm:$0xff] %v34766_v7  ;;  %v23292_v45 = vsub.f32 %v34757_v39, %v34766_v7  ;;  %30379 = vmatprep.subr.mxu0 %v34747_v12 }
0x10e1   : > { %36352 = vst [vmem:[#allocation88_spill] sm:$0xff] %v34788_v46  ;;  %v23306_v63 = vsub.f32 %v34781_v8, %v34788_v46  ;;  %v36370_v46 = vld [vmem:[#allocation52_spill] sm:$0xff] }
0x10e2   : > { %30323 = vmatmul.mubr.f32.gmra.mxu0 %v22268_v11  ;;  %v34754_v11 = vand.u32 4294901760, %v34747_v12  ;;  %v23293_v61 = vand.u32 4294901760, %v23292_v45 }
0x10e3   : > { %v23307_v4 = vand.u32 4294901760, %v23306_v63 }
0x10e4   : > { %36348 = vst [vmem:[#allocation84_spill] sm:$0xff] %v34754_v11  ;;  %v23285_v36 = vsub.f32 %v34747_v12, %v34754_v11 }
0x10e6   : > { %v23286_v34 = vand.u32 4294901760, %v23285_v36 }
0x10e8   : > { %30359 = vmatprep.subr.mxu1 %v23286_v34 }
0x10e9   : > { %30360 = vmatpush3.msra.mxu1 %v23286_v34  ;;  %v36355_v34 = vld [vmem:[#allocation45_spill] sm:$0xff] }
0x10ea   : > { %30361 = vmatprep.subr.mxu1 %v23293_v61  ;;  %v11947_v45 = vadd.f32 %v36355_v34, %v11821_v57 }
0x10eb   : > { %30362 = vmatpush3.msra.mxu1 %v23293_v61  ;;  %v36356_v61 = vld [vmem:[#allocation47_spill] sm:$0xff] }
0x10ec   : > { %30363 = vmatprep.subr.mxu1 %v23300_v25  ;;  %v11959_v31 = vadd.f32 %v36356_v61, %v11837_v51  ;;  %v12061_v2 = vadd.f32 %v36359_v13, %v11947_v45  ;;  %v36365_v45 = vld [vmem:[#allocation46_spill] sm:$0xff] }
0x10ed   : > { %30364 = vmatpush3.msra.mxu1 %v23300_v25  ;;  %v36358_v25 = vld [vmem:[#allocation40_spill] sm:$0xff] }
0x10ee   : > { %30365 = vmatprep.subr.mxu1 %v23307_v4  ;;  %v12049_v18 = vadd.f32 %v36358_v25, %v11935_v44  ;;  %v12073_v62 = vadd.f32 %v36362_v23, %v11959_v31  ;;  %v12211_v51 = vadd.f32 %v36363_v6, %v12061_v2  ;;  %v12085_v25 = vadd.f32 %v36365_v45, %v11971_v20  ;;  %v36367_v31 = vld [vmem:[#allocation50_spill] sm:$0xff]  ;;  %v36368_v2 = vld [vmem:[#allocation57_spill] sm:$0xff]  ;;  %v36372_v20 = vld [vmem:[#allocation63_spill] sm:$0xff] }
0x10ef   : > { %30366 = vmatpush3.msra.mxu1 %v23307_v4  ;;  %v17456_v23 = vadd.f32 %v34395_v10, %v17340_v52  ;;  %v17352_v45 = vadd.f32 %v34378_v54, %v34380_v3  ;;  %v36375_v54 = vld [vmem:[#allocation58_spill] sm:$0xff] }
0x10f0   : > { %30399 = vmatprep.subr.mxu1 %v34744_v47  ;;  %v12191_v42 = vadd.f32 %v36361_v26, %v12049_v18  ;;  %v12231_v34 = vadd.f32 %v36364_v30, %v12073_v62  ;;  %v12349_v26 = vadd.f32 %v36367_v31, %v12211_v51  ;;  %v12251_v6 = vadd.f32 %v36368_v2, %v12085_v25  ;;  %v36369_v62 = vld [vmem:[#allocation59_spill] sm:$0xff] }
0x10f1   : > { %v17364_v51 = vadd.f32 %v34382_v55, %v34386_v60  ;;  %v17579_v25 = vadd.f32 %v34388_v19, %v17456_v23  ;;  %v36377_v23 = vld [vmem:[#allocation65_spill] sm:$0xff] }
0x10f2   : > { %v12337_v13 = vadd.f32 %v36366_v28, %v12191_v42  ;;  %v12361_v59 = vadd.f32 %v36370_v46, %v12231_v34  ;;  %v12467_v9 = vadd.f32 %v36371_v40, %v12349_v26  ;;  %v36373_v46 = vld [vmem:[#allocation54_spill] sm:$0xff]  ;;  %v17470_v26 = vadd.f32 %v34400_v32, %v17352_v45  ;;  %v36381_v32 = vld [vmem:[#allocation33_spill] sm:$0xff] }
0x10f3   : > { %v12373_v34 = vadd.f32 %v36373_v46, %v12251_v6  ;;  %v36376_v40 = vld [vmem:[#allocation74_spill] sm:$0xff]  ;;  %v36380_v46 = vld [vmem:[#allocation35_spill] sm:$0xff] }
0x10f4   : > { %v12453_v30 = vadd.f32 %v36369_v62, %v12337_v13  ;;  %v12481_v42 = vadd.f32 %v36372_v20, %v12361_v59  ;;  %v36374_v13 = vld [vmem:[#allocation56_spill] sm:$0xff]  ;;  %v17484_v59 = vadd.f32 %v34404_v35, %v17364_v51  ;;  %v12592_v3 = vadd.f32 %v36375_v54, %v12467_v9  ;;  %v36383_v54 = vld [vmem:[#allocation70_spill] sm:$0xff] }
0x10f5   : > { %v17709_v55 = vadd.f32 %v36376_v40, %v17579_v25  ;;  %v36379_v20 = vld [vmem:[#allocation60_spill] sm:$0xff]  ;;  %v17376_v45 = vadd.f32 %v36381_v32, %v36380_v46 }
0x10f6   : > { %v34793_v15 = vpop.f32.mrf.mxu1  ;;  %v12576_v31 = vadd.f32 %v36374_v13, %v12453_v30  ;;  %v12608_v30 = vadd.f32 %v36379_v20, %v12481_v42  ;;  %v36382_v13 = vld [vmem:[#allocation68_spill] sm:$0xff] }
0x10f7   : > { %v12718_v8 = vadd.f32 %v36382_v13, %v12592_v3  ;;  %v36388_v32 = vld [vmem:[#allocation64_spill] sm:$0xff] }
0x10f8   : > { %v34796_v37 = vpop.f32.mrf.mxu1 }
0x10fe   : > { %v30259_v53 = vpop.f32.mrf.mxu0 }
0x10ff   : > { %v22357_v28 = vadd.f32 %v34793_v15, %v30259_v53  ;;  %v12495_v15 = vadd.f32 %v36377_v23, %v12373_v34  ;;  %v36378_v53 = vld [vmem:[#allocation67_spill] sm:$0xff]  ;;  %v36387_v23 = vld [vmem:[#allocation32_spill] sm:$0xff] }
0x1100   : > { %v34802_v14 = vpop.f32.mrf.mxu0  ;;  %v12706_v6 = vadd.f32 %v36378_v53, %v12576_v31  ;;  %v36386_v31 = vld [vmem:[#allocation36_spill] sm:$0xff]  ;;  %v17823_v53 = vadd.f32 %v36387_v23, %v17709_v55 }
0x1101   : > { %v22351_v60 = vadd.f32 %v34796_v37, %v34802_v14  ;;  %v12730_v37 = vadd.f32 %v36383_v54, %v12608_v30  ;;  %v36384_v14 = vld [vmem:[#allocation38_spill] sm:$0xff]  ;;  %v17611_v40 = vadd.f32 %v36386_v31, %v17484_v59 }
0x1102   : > { %v36392_v54 = vld [vmem:[#allocation66_spill] sm:$0xff] }
0x1117   : > { %v34798_v38 = vpop.f32.mrf.mxu1 }
0x1119   : > { %v34800_v17 = vpop.f32.mrf.mxu1 }
0x111f   : > { %v34806_v48 = vpop.f32.mrf.mxu0 }
0x1120   : > { %v22369_v9 = vadd.f32 %v34798_v38, %v34806_v48  ;;  %v12820_v38 = vadd.f32 %v36388_v32, %v12706_v6  ;;  %v36389_v48 = vld [vmem:[#allocation62_spill] sm:$0xff]  ;;  %v36395_v6 = vld [vmem:[#allocation37_spill] sm:$0xff] }
0x1121   : > { %v34817_v33 = vpop.f32.mrf.mxu0 }
0x1122   : > { %v22363_v20 = vadd.f32 %v34800_v17, %v34817_v33  ;;  %v36393_v33 = vld [vmem:[#allocation69_spill] sm:$0xff]  ;;  %v17868_v31 = vadd.f32 %v17823_v53, %v12820_v38  ;;  %v36398_v53 = vld [vmem:[#allocation75_spill] sm:$0xff] }
0x1145   : > { %v34804_v16 = vpop.f32.mrf.mxu1 }
0x1147   : > { %v34810_v27 = vpop.f32.mrf.mxu1 }
0x114d   : > { %v34823_v49 = vpop.f32.mrf.mxu0 }
0x114f   : > { %v34836_v29 = vpop.f32.mrf.mxu0 }
0x117a   : > { %v34819_v22 = vpop.f32.mrf.mxu1 }
0x117c   : > { %v34825_v58 = vpop.f32.mrf.mxu1 }
0x117e   : > { %v34830_v0 = vpop.f32.mrf.mxu1 }
0x1180   : > { %v34838_v36 = vpop.f32.mrf.mxu1 }
0x1182   : > { %v34842_v1 = vpop.f32.mrf.mxu0  ;;  %v34844_v21 = vpop.f32.mrf.mxu1 }
0x1184   : > { %v34848_v63 = vpop.f32.mrf.mxu0  ;;  %v34850_v4 = vpop.f32.mrf.mxu1 }
0x1186   : > { %v30287_v57 = vpop.f32.mrf.mxu0  ;;  %v34856_v43 = vpop.f32.mrf.mxu1 }
0x1187   : > { %v22474_v19 = vadd.f32 %v30287_v57, %v22357_v28  ;;  %v17498_v57 = vadd.f32 %v36384_v14, %v17376_v45  ;;  %v36385_v28 = vld [vmem:[#allocation34_spill] sm:$0xff]  ;;  %v36391_v45 = vld [vmem:[#allocation79_spill] sm:$0xff]  ;;  %v12832_v14 = vadd.f32 %v36392_v54, %v12718_v8 }
0x1188   : > { %v22466_v44 = vpop.f32.mrf.mxu0  ;;  %v34860_v61 = vpop.f32.mrf.mxu1  ;;  %v17595_v34 = vadd.f32 %v36385_v28, %v17470_v26  ;;  %v17733_v26 = vadd.f32 %v36391_v45, %v17611_v40 }
0x1189   : > { %v22467_v25 = vadd.f32 %v22466_v44, %v22351_v60  ;;  %v22598_v3 = vadd.f32 %v34830_v0, %v22474_v19  ;;  %v12624_v44 = vadd.f32 %v36389_v48, %v12495_v15  ;;  %v36390_v60 = vld [vmem:[#allocation76_spill] sm:$0xff]  ;;  %v36394_v0 = vld [vmem:[#allocation71_spill] sm:$0xff]  ;;  %v17627_v15 = vadd.f32 %v36395_v6, %v17498_v57  ;;  %v36399_v48 = vld [vmem:[#allocation81_spill] sm:$0xff] }
0x118a   : > { %v30290_v18 = vpop.f32.mrf.mxu0  ;;  %v34866_v24 = vpop.f32.mrf.mxu1  ;;  %v17721_v30 = vadd.f32 %v36390_v60, %v17595_v34  ;;  %v22375_v57 = vadd.f32 %v34810_v27, %v34836_v29  ;;  %v34936_v27 = vld [vmem:[%s22895_s26] ss:$0 sm:$0xff]  ;;  %v36401_v6 = vld [vmem:[#allocation82_spill] sm:$0xff]  ;;  %s23076_s26 = scalar_lea.vmem %s36121_s16, %s31435_s25 }
0x118b   : > { %v22488_v46 = vadd.f32 %v30290_v18, %v22369_v9  ;;  %v22590_v17 = vadd.f32 %v34838_v36, %v22467_v25  ;;  %v12844_v18 = vadd.f32 %v36393_v33, %v12730_v37  ;;  %v34915_v19 = vadd.f32 %v36394_v0, %v12624_v44  ;;  %v36396_v36 = vld [vmem:[#allocation73_spill] sm:$0xff] }
0x118c   : > { %v22480_v7 = vpop.f32.mrf.mxu0  ;;  %v34873_v11 = vpop.f32.mrf.mxu1  ;;  %v22381_v9 = vadd.f32 %v34804_v16, %v34823_v49  ;;  %v17835_v25 = vadd.f32 %v36396_v36, %v17721_v30  ;;  %v36397_v37 = vld [vmem:[#allocation77_spill] sm:$0xff]  ;;  %v17745_v44 = vadd.f32 %v36399_v48, %v17627_v15 }
0x118d   : > { %v22481_v55 = vadd.f32 %v22480_v7, %v22363_v20  ;;  %v22614_v8 = vadd.f32 %v34844_v21, %v22488_v46  ;;  %v17847_v23 = vadd.f32 %v36397_v37, %v17733_v26  ;;  %v22393_v21 = vadd.f32 %v34819_v22, %v34842_v1 }
0x118e   : > { %v30293_v10 = vpop.f32.mrf.mxu0  ;;  %v30329_v52 = vpop.f32.mrf.mxu1  ;;  %v22387_v46 = vadd.f32 %v34825_v58, %v34848_v63  ;;  %v31152_v63 = vld [vmem:[%s31784_s28] sm:$0xff] }
0x118f   : > { %v22502_v20 = vadd.f32 %v30293_v10, %v22381_v9  ;;  %v22606_v38 = vadd.f32 %v34850_v4, %v22481_v55  ;;  %v31151_v10 = vld [vmem:[%s31784_s28 + $0x8] sm:$0xff]  ;;  %v17872_v0 = vadd.f32 %v17847_v23, %v12844_v18 }
0x1190   : > { %v22494_v2 = vpop.f32.mrf.mxu0  ;;  %v22833_v62 = vpop.f32.mrf.mxu1 }
0x1191   : > { %v22495_v60 = vadd.f32 %v22494_v2, %v22375_v57  ;;  %v22630_v22 = vadd.f32 %v34856_v43, %v22502_v20  ;;  %v31154_v57 = vld [vmem:[%s31784_s28 + $0x10] sm:$0xff] }
0x1192   : > { %v30296_v35 = vpop.f32.mrf.mxu0  ;;  %v30332_v51 = vpop.f32.mrf.mxu1 }
0x1193   : > { %v22516_v4 = vadd.f32 %v30296_v35, %v22393_v21  ;;  %v22622_v35 = vadd.f32 %v34860_v61, %v22495_v60  ;;  %v31155_v60 = vld [vmem:[%s31784_s28 + $0x28] sm:$0xff] }
0x1194   : > { %v22508_v42 = vpop.f32.mrf.mxu0  ;;  %v22845_v13 = vpop.f32.mrf.mxu1 }
0x1195   : > { %v22509_v54 = vadd.f32 %v22508_v42, %v22387_v46  ;;  %v22646_v18 = vadd.f32 %v34866_v24, %v22516_v4 }
0x1196   : > { %v30315_v59 = vpop.f32.mrf.mxu0  ;;  %v30335_v16 = vpop.f32.mrf.mxu1 }
0x1197   : > { %v22726_v28 = vadd.f32 %v30315_v59, %v22598_v3  ;;  %v17870_v59 = vadd.f32 %v17835_v25, %v12832_v14  ;;  %v36402_v14 = vld [vmem:[#allocation31_spill] sm:$0xff]  ;;  %v22638_v25 = vadd.f32 %v34873_v11, %v22509_v54 }
0x1198   : > { %v22719_v34 = vpop.f32.mrf.mxu0  ;;  %v22857_v55 = vpop.f32.mrf.mxu1 }
0x1199   : > { %v22840_v40 = vadd.f32 %v30329_v52, %v22726_v28  ;;  %v22720_v7 = vadd.f32 %v22719_v34, %v22590_v17  ;;  %v36400_v28 = vld [vmem:[#allocation78_spill] sm:$0xff]  ;;  %v31153_v34 = vld [vmem:[%s31784_s28 + $0x18] sm:$0xff] }
0x119a   : > { %v30318_v49 = vpop.f32.mrf.mxu0 }
0x119b   : > { %v22880_v52 = vadd.f32 %v22840_v40, %v36398_v53  ;;  %v22834_v3 = vadd.f32 %v22833_v62, %v22720_v7  ;;  %v22738_v32 = vadd.f32 %v30318_v49, %v22614_v8  ;;  %v30338_v7 = vpop.f32.mrf.mxu1  ;;  %v36403_v53 = vld [vmem:[#allocation80_spill] sm:$0xff] }
0x119c   : > { %v22731_v29 = vpop.f32.mrf.mxu0 }
0x119d   : > { %v22888_v30 = vadd.f32 %v31151_v10, %v22880_v52  ;;  %v22879_v45 = vadd.f32 %v22834_v3, %v17868_v31  ;;  %v22852_v62 = vadd.f32 %v30332_v51, %v22738_v32  ;;  %v22732_v26 = vadd.f32 %v22731_v29, %v22606_v38  ;;  %v36404_v32 = vld [vmem:[#allocation72_spill] sm:$0xff]  ;;  %v22869_v46 = vpop.f32.mrf.mxu1 }
0x119e   : > { %v30321_v1 = vpop.f32.mrf.mxu0  ;;  %v17859_v51 = vadd.f32 %v36401_v6, %v17745_v44  ;;  %v12856_v11 = vadd.f32 %v36404_v32, %v34915_v19  ;;  %v31157_v6 = vld [vmem:[%s31784_s28 + $0x38] sm:$0xff] }
0x119f   : > { %v34941_v58 = vadd.f32 %v34936_v27, %v22888_v30  ;;  %v22887_v2 = vadd.f32 %v31152_v63, %v22879_v45  ;;  %v22882_v17 = vadd.f32 %v22852_v62, %v36400_v28  ;;  %v22846_v33 = vadd.f32 %v22845_v13, %v22732_v26 }
0x11a0   : > { %v22750_v15 = vadd.f32 %v30321_v1, %v22630_v22  ;;  %v22743_v42 = vpop.f32.mrf.mxu0  ;;  %v17874_v45 = vadd.f32 %v17859_v51, %v12856_v11  ;;  %v36405_v1 = vld [vmem:[#allocation83_spill] sm:$0xff] }
0x11a1   : > { %v22916_v43 = vmul.f32 %v36402_v14, %v34941_v58  ;;  %v34950_v9 = vadd.f32 %v34936_v27, %v22887_v2  ;;  %v22890_v31 = vadd.f32 %v31153_v34, %v22882_v17  ;;  %v22881_v40 = vadd.f32 %v22846_v33, %v17870_v59 }
0x11a2   : > { %v22864_v8 = vadd.f32 %v30335_v16, %v22750_v15  ;;  %v22744_v13 = vadd.f32 %v22743_v42, %v22622_v35  ;;  %v30324_v36 = vpop.f32.mrf.mxu0  ;;  %v31158_v15 = vld [vmem:[%s31784_s28 + $0x30] sm:$0xff] }
0x11a3   : > { %v22923_v61 = vsel %vm2049_vm9, %v34950_v9, 0.0  ;;  %v22924_v37 = vsel %vm2049_vm9, %v22916_v43, 0.0  ;;  %v34959_v23 = vadd.f32 %v34936_v27, %v22890_v31  ;;  %v22889_v20 = vadd.f32 %v31154_v57, %v22881_v40 }
0x11a4   : > { %v22925_v49 = vadd.f32 %v22924_v37, %v22923_v61  ;;  %v22884_v16 = vadd.f32 %v22864_v8, %v36403_v53  ;;  %v22858_v52 = vadd.f32 %v22857_v55, %v22744_v13  ;;  %v22762_v3 = vadd.f32 %v30324_v36, %v22646_v18  ;;  %v22755_v24 = vpop.f32.mrf.mxu0  ;;  %v31156_v55 = vld [vmem:[%s31784_s28 + $0x20] sm:$0xff] }
0x11a5   : > { %v22918_v38 = vmul.f32 %v36402_v14, %v34959_v23  ;;  %v22905_v48 = vadd.f32 %v34936_v27, %v22889_v20  ;;  %v22756_v44 = vadd.f32 %v22755_v24, %v22638_v25 }
0x11a6   : > { %v22926_v21 = vrot.slane %v22925_v49, 4  ;;  %v22892_v29 = vadd.f32 %v31155_v60, %v22884_v16  ;;  %v22883_v10 = vadd.f32 %v22858_v52, %v17872_v0  ;;  %v22876_v30 = vadd.f32 %v30338_v7, %v22762_v3 }
0x11a7   : > { %v22932_v62 = vsel %vm2049_vm9, %v22905_v48, 0.0  ;;  %v22933_v19 = vsel %vm2049_vm9, %v22918_v38, 0.0  ;;  %v22870_v26 = vadd.f32 %v22869_v46, %v22756_v44 }
0x11a8   : > { %v22927_v59 = vadd.f32 %v22926_v21, %v22925_v49  ;;  %v22934_v4 = vadd.f32 %v22933_v19, %v22932_v62  ;;  %v22908_v54 = vadd.f32 %v34936_v27, %v22892_v29  ;;  %v22891_v22 = vadd.f32 %v31156_v55, %v22883_v10 }
0x11a9   : > { %v22886_v63 = vadd.f32 %v22876_v30, %v36405_v1  ;;  %v22885_v2 = vadd.f32 %v22870_v26, %v17874_v45 }
0x11aa   : > { %v22928_v28 = vrot.slane %v22927_v59, 2  ;;  %v22935_v17 = vrot.slane %v22934_v4, 4  ;;  %v22920_v33 = vmul.f32 %v36402_v14, %v22908_v54  ;;  %v22907_v0 = vadd.f32 %v34936_v27, %v22891_v22 }
0x11ab   : > { %v22894_v51 = vadd.f32 %v31157_v6, %v22886_v63  ;;  %v22893_v35 = vadd.f32 %v31158_v15, %v22885_v2 }
0x11ac   : > { %v22929_v42 = vadd.f32 %v22928_v28, %v22927_v59  ;;  %v22936_v43 = vadd.f32 %v22935_v17, %v22934_v4  ;;  %v22941_v34 = vsel %vm2049_vm9, %v22907_v0, 0.0  ;;  %v22942_v31 = vsel %vm2049_vm9, %v22920_v33, 0.0 }
0x11ad   : > { %v22943_v40 = vadd.f32 %v22942_v31, %v22941_v34  ;;  %v22910_v7 = vadd.f32 %v34936_v27, %v22894_v51  ;;  %v22909_v8 = vadd.f32 %v34936_v27, %v22893_v35 }
0x11ae   : > { %v22930_v13 = vrot.slane %v22929_v42, 1  ;;  %v22937_v18 = vrot.slane %v22936_v43, 2 }
0x11af   : > { %v22944_v36 = vrot.slane %v22943_v40, 4  ;;  %v22922_v25 = vmul.f32 %v36402_v14, %v22910_v7  ;;  %v22950_v61 = vsel %vm2049_vm9, %v22909_v8, 0.0 }
0x11b0   : > { %v22931_v37 = vadd.f32 %v22930_v13, %v22929_v42  ;;  %v22938_v57 = vadd.f32 %v22937_v18, %v22936_v43 }
0x11b1   : > { %v22945_v20 = vadd.f32 %v22944_v36, %v22943_v40  ;;  %v22951_v49 = vsel %vm2049_vm9, %v22922_v25, 0.0 }
0x11b2   : > { %v22959_v53 = vmul.f32 0.11111111, %v22931_v37  ;;  %v22939_v16 = vrot.slane %v22938_v57, 1  ;;  %v22952_v52 = vadd.f32 %v22951_v49, %v22950_v61 }
0x11b3   : > { %v22946_v3 = vrot.slane %v22945_v20, 2 }
0x11b4   : > { %v34986_v24 = vsub.f32 %v34950_v9, %v22959_v53  ;;  %v34989_v27 = vsub.f32 %v34941_v58, %v22959_v53  ;;  %v22940_v32 = vadd.f32 %v22939_v16, %v22938_v57  ;;  %v22953_v11 = vrot.slane %v22952_v52, 4 }
0x11b5   : > { %v22947_v38 = vadd.f32 %v22946_v3, %v22945_v20 }
0x11b6   : > { %v22972_v44 = vmul.f32 %v36402_v14, %v34989_v27  ;;  %v22979_v21 = vmul.f32 %v34986_v24, %v34986_v24  ;;  %v22960_v46 = vmul.f32 0.11111111, %v22940_v32  ;;  %v22954_v60 = vadd.f32 %v22953_v11, %v22952_v52 }
0x11b7   : > { %v22948_v29 = vrot.slane %v22947_v38, 1 }
0x11b8   : > { %v22980_v10 = vmul.f32 %v22972_v44, %v22972_v44  ;;  %v34995_v30 = vsub.f32 %v22905_v48, %v22960_v46  ;;  %v34998_v9 = vsub.f32 %v34959_v23, %v22960_v46  ;;  %v22955_v45 = vrot.slane %v22954_v60, 2 }
0x11b9   : > { %v22949_v58 = vadd.f32 %v22948_v29, %v22947_v38  ;;  %v22987_v62 = vsel %vm2049_vm9, %v22979_v21, 0.0 }
0x11ba   : > { %v22988_v19 = vsel %vm2049_vm9, %v22980_v10, 0.0  ;;  %v22974_v26 = vmul.f32 %v36402_v14, %v34998_v9  ;;  %v22981_v59 = vmul.f32 %v34995_v30, %v34995_v30  ;;  %v22956_v22 = vadd.f32 %v22955_v45, %v22954_v60 }
0x11bb   : > { %v22989_v4 = vadd.f32 %v22988_v19, %v22987_v62  ;;  %v22961_v55 = vmul.f32 0.11111111, %v22949_v58 }
0x11bc   : > { %v22982_v48 = vmul.f32 %v22974_v26, %v22974_v26  ;;  %v22957_v2 = vrot.slane %v22956_v22, 1  ;;  %v22996_v28 = vsel %vm2049_vm9, %v22981_v59, 0.0 }
0x11bd   : > { %v22990_v1 = vrot.slane %v22989_v4, 4  ;;  %v35006_v63 = vsub.f32 %v22907_v0, %v22961_v55  ;;  %v35008_v23 = vsub.f32 %v22908_v54, %v22961_v55 }
0x11be   : > { %v22997_v17 = vsel %vm2049_vm9, %v22982_v48, 0.0  ;;  %v22958_v35 = vadd.f32 %v22957_v2, %v22956_v22 }
0x11bf   : > { %v22991_v33 = vadd.f32 %v22990_v1, %v22989_v4  ;;  %v22998_v6 = vadd.f32 %v22997_v17, %v22996_v28  ;;  %v22976_v51 = vmul.f32 %v36402_v14, %v35008_v23  ;;  %v22983_v15 = vmul.f32 %v35006_v63, %v35006_v63  ;;  %v35036_v28 = vld [vmem:[%s22911_s2] ss:$0 sm:$0xff]  ;;  %s23912_s2 = scalar_lea.vmem %s36123_s18, %s31435_s25 }
0x11c0   : > { %v22962_v34 = vmul.f32 0.11111111, %v22958_v35 }
0x11c1   : > { %v22992_v42 = vrot.slane %v22991_v33, 2  ;;  %v22999_v43 = vrot.slane %v22998_v6, 4  ;;  %v22984_v0 = vmul.f32 %v22976_v51, %v22976_v51  ;;  %v23005_v40 = vsel %vm2049_vm9, %v22983_v15, 0.0  ;;  %v35040_v51 = vld [vmem:[%s22913_s27] ss:$0 sm:$0xff]  ;;  %s24791_s27 = scalar_lea.vmem %s36126_s21, %s31435_s25 }
0x11c2   : > { %v35018_v36 = vsub.f32 %v22909_v8, %v22962_v34  ;;  %v35020_v25 = vsub.f32 %v22910_v7, %v22962_v34 }
0x11c3   : > { %v22993_v54 = vadd.f32 %v22992_v42, %v22991_v33  ;;  %v23000_v31 = vadd.f32 %v22999_v43, %v22998_v6  ;;  %v23006_v13 = vsel %vm2049_vm9, %v22984_v0, 0.0 }
0x11c4   : > { %v23007_v18 = vadd.f32 %v23006_v13, %v23005_v40  ;;  %v22978_v20 = vmul.f32 %v36402_v14, %v35020_v25  ;;  %v22985_v49 = vmul.f32 %v35018_v36, %v35018_v36 }
0x11c5   : > { %v22994_v61 = vrot.slane %v22993_v54, 1  ;;  %v23001_v37 = vrot.slane %v23000_v31, 2 }
0x11c6   : > { %v23008_v57 = vrot.slane %v23007_v18, 4  ;;  %v22986_v3 = vmul.f32 %v22978_v20, %v22978_v20  ;;  %v23014_v8 = vsel %vm2049_vm9, %v22985_v49, 0.0 }
0x11c7   : > { %v22995_v53 = vadd.f32 %v22994_v61, %v22993_v54  ;;  %v23002_v16 = vadd.f32 %v23001_v37, %v23000_v31 }
0x11c8   : > { %v23009_v52 = vadd.f32 %v23008_v57, %v23007_v18  ;;  %v23015_v7 = vsel %vm2049_vm9, %v22986_v3, 0.0 }
0x11c9   : > { %v23023_v32 = vmul.f32 0.11111111, %v22995_v53  ;;  %v23003_v11 = vrot.slane %v23002_v16, 1  ;;  %v23016_v46 = vadd.f32 %v23015_v7, %v23014_v8 }
0x11ca   : > { %v23010_v38 = vrot.slane %v23009_v52, 2 }
0x11cb   : > { %v23027_v44 = vadd.f32 1e-05, %v23023_v32  ;;  %v23004_v21 = vadd.f32 %v23003_v11, %v23002_v16  ;;  %v23017_v10 = vrot.slane %v23016_v46, 4 }
0x11cc   : > { %v23011_v60 = vadd.f32 %v23010_v38, %v23009_v52 }
0x11cd   : > { %31135 = vrsqrt.f32 %v23027_v44  ;;  %v23024_v29 = vmul.f32 0.11111111, %v23004_v21  ;;  %v23018_v62 = vadd.f32 %v23017_v10, %v23016_v46 }
0x11ce   : > { %v23012_v58 = vrot.slane %v23011_v60, 1 }
0x11cf   : > { %v23028_v45 = vadd.f32 1e-05, %v23024_v29  ;;  %v23019_v26 = vrot.slane %v23018_v62, 2 }
0x11d0   : > { %v23013_v19 = vadd.f32 %v23012_v58, %v23011_v60 }
0x11d1   : > { %31137 = vrsqrt.f32 %v23028_v45  ;;  %v23020_v4 = vadd.f32 %v23019_v26, %v23018_v62 }
0x11d2   : > { %v23025_v59 = vmul.f32 0.11111111, %v23013_v19 }
0x11d3   : > { %v23021_v22 = vrot.slane %v23020_v4, 1 }
0x11d4   : > { %v23029_v55 = vadd.f32 1e-05, %v23025_v59 }
0x11d5   : > { %v23022_v48 = vadd.f32 %v23021_v22, %v23020_v4 }
0x11d6   : > { %31139 = vrsqrt.f32 %v23029_v55 }
0x11d7   : > { %v23026_v1 = vmul.f32 0.11111111, %v23022_v48 }
0x11d9   : > { %v23030_v6 = vadd.f32 1e-05, %v23026_v1 }
0x11da   : > { %v31136_v2 = vpop.eup %31135 }
0x11db   : > { %v23035_v17 = vmul.f32 %v31136_v2, %v34986_v24  ;;  %v23036_v33 = vmul.f32 %v31136_v2, %v34989_v27  ;;  %31141 = vrsqrt.f32 %v23030_v6 }
0x11dd   : > { %v23050_v15 = vmul.f32 %v35036_v28, %v23036_v33  ;;  %v23049_v35 = vmul.f32 %v35036_v28, %v23035_v17 }
0x11de   : > { %v31138_v42 = vpop.eup %31137 }
0x11df   : > { %v23037_v43 = vmul.f32 %v31138_v42, %v34995_v30  ;;  %v35046_v0 = vadd.f32 %v35040_v51, %v23049_v35  ;;  %v35049_v34 = vadd.f32 %v35040_v51, %v23050_v15  ;;  %v23038_v24 = vmul.f32 %v31138_v42, %v34998_v9 }
0x11e1   : > { %36406 = vst [vmem:[#allocation43_spill] sm:$0xff] %v35046_v0  ;;  %36407 = vst [vmem:[#allocation39_spill] sm:$0xff] %v35049_v34  ;;  %v23085_v27 = vsel %vm2049_vm9, %v35046_v0, 0  ;;  %v23088_v54 = vsel %vm2049_vm9, %v35049_v34, 0  ;;  %v23051_v31 = vmul.f32 %v35036_v28, %v23037_v43  ;;  %v23052_v40 = vmul.f32 %v35036_v28, %v23038_v24 }
0x11e2   : > { %v35058_v13 = vand.u32 4294901760, %v23085_v27  ;;  %v35060_v30 = vand.u32 4294901760, %v23088_v54 }
0x11e3   : > { %v31140_v18 = vpop.eup %31139  ;;  %v35063_v61 = vadd.f32 %v35040_v51, %v23051_v31  ;;  %v35066_v9 = vadd.f32 %v35040_v51, %v23052_v40 }
0x11e4   : > { %v23039_v37 = vmul.f32 %v31140_v18, %v35006_v63  ;;  %30367 = vmatprep.mubr.f32.mxu1 %v35058_v13  ;;  %v35071_v57 = vsub.f32 %v23088_v54, %v35060_v30  ;;  %v35074_v20 = vsub.f32 %v23085_v27, %v35058_v13  ;;  %v23040_v49 = vmul.f32 %v31140_v18, %v35008_v23 }
0x11e5   : > { %36408 = vst [vmem:[#allocation45_spill] sm:$0xff] %v35063_v61  ;;  %36409 = vst [vmem:[#allocation47_spill] sm:$0xff] %v35066_v9  ;;  %30368 = vmatmul.mubr.f32.vlgmr.msra.gmra.mxu1 %v35060_v30  ;;  %v23091_v53 = vsel %vm2049_vm9, %v35063_v61, 0  ;;  %v23094_v16 = vsel %vm2049_vm9, %v35066_v9, 0 }
0x11e6   : > { %v35082_v52 = vand.u32 4294901760, %v23091_v53  ;;  %v35084_v63 = vand.u32 4294901760, %v23094_v16  ;;  %v23179_v3 = vand.u32 4294901760, %v35074_v20  ;;  %v23053_v32 = vmul.f32 %v35036_v28, %v23039_v37  ;;  %30400 = vmatpush3.msra.mxu1 %v34744_v47 }
0x11e7   : > { %v23189_v23 = vand.u32 4294901760, %v35071_v57  ;;  %v23054_v11 = vmul.f32 %v35036_v28, %v23040_v49  ;;  %30401 = vmatprep.subr.mxu1 %v34749_v41  ;;  %v36414_v49 = vld [vmem:[#allocation87_spill] sm:$0xff] }
0x11e8   : > { %30370 = vmatprep.mubr.f32.mxu1 %v35082_v52  ;;  %v35094_v38 = vsub.f32 %v23094_v16, %v35084_v63  ;;  %v23180_v8 = vsub.f32 %v35074_v20, %v23179_v3  ;;  %v35100_v7 = vadd.f32 %v35040_v51, %v23053_v32  ;;  %v35103_v44 = vsub.f32 %v23091_v53, %v35082_v52  ;;  %v31142_v60 = vpop.eup %31141  ;;  %v36415_v16 = vld [vmem:[#allocation84_spill] sm:$0xff] }
0x11e9   : > { %30371 = vmatmul.mubr.f32.gmra.mxu1 %v35084_v63  ;;  %v23190_v21 = vsub.f32 %v35071_v57, %v23189_v23  ;;  %v35110_v46 = vadd.f32 %v35040_v51, %v23054_v11  ;;  %v23041_v62 = vmul.f32 %v31142_v60, %v35018_v36  ;;  %v23042_v48 = vmul.f32 %v31142_v60, %v35020_v25 }
0x11ea   : > { %36410 = vst [vmem:[#allocation42_spill] sm:$0xff] %v35100_v7  ;;  %v23181_v29 = vand.u32 4294901760, %v23180_v8  ;;  %v23097_v10 = vsel %vm2049_vm9, %v35100_v7, 0  ;;  %v23199_v58 = vand.u32 4294901760, %v35103_v44  ;;  %30402 = vmatpush3.msra.mxu1 %v34749_v41  ;;  %v23209_v45 = vand.u32 4294901760, %v35094_v38 }
0x11eb   : > { %36411 = vst [vmem:[#allocation40_spill] sm:$0xff] %v35110_v46  ;;  %v35118_v19 = vand.u32 4294901760, %v23097_v10  ;;  %v23191_v26 = vand.u32 4294901760, %v23190_v21  ;;  %v23100_v59 = vsel %vm2049_vm9, %v35110_v46, 0  ;;  %30403 = vmatprep.subr.mxu1 %v34759_v50  ;;  %v23055_v36 = vmul.f32 %v35036_v28, %v23041_v62 }
0x11ec   : > { %30347 = vmatprep.mubr.f32.mxu0 %v23181_v29  ;;  %v35123_v4 = vand.u32 4294901760, %v23100_v59  ;;  %v23200_v55 = vsub.f32 %v35103_v44, %v23199_v58  ;;  %v23210_v22 = vsub.f32 %v35094_v38, %v23209_v45  ;;  %30404 = vmatpush3.msra.mxu1 %v34759_v50  ;;  %v23056_v6 = vmul.f32 %v35036_v28, %v23042_v48  ;;  %v23907_v29 = vld [vmem:[%s35220_s3 + $0x18] sm:$0xff] }
0x11ed   : > { %30373 = vmatprep.mubr.f32.mxu1 %v35118_v19  ;;  %30348 = vmatmul.mubr.f32.vlgmr.msra.gmra.mxu0 %v23191_v26  ;;  %v35134_v1 = vsub.f32 %v23097_v10, %v35118_v19  ;;  %v35143_v25 = vadd.f32 %v35040_v51, %v23055_v36  ;;  %v23906_v26 = vld [vmem:[%s35220_s3 + $0x10] sm:$0xff]  ;;  %v23905_v36 = vld [vmem:[%s35220_s3 + $0x8] sm:$0xff] }
0x11ee   : > { %v35137_v2 = vsub.f32 %v23100_v59, %v35123_v4  ;;  %30374 = vmatmul.mubr.f32.gmra.mxu1 %v35123_v4  ;;  %v23201_v17 = vand.u32 4294901760, %v23200_v55  ;;  %v23211_v33 = vand.u32 4294901760, %v23210_v22  ;;  %30405 = vmatprep.subr.mxu1 %v34771_v5  ;;  %v35149_v35 = vadd.f32 %v35040_v51, %v23056_v6 }
0x11ef   : > { %36412 = vst [vmem:[#allocation41_spill] sm:$0xff] %v35143_v25  ;;  %v23219_v15 = vand.u32 4294901760, %v35134_v1  ;;  %30406 = vmatpush3.msra.mxu1 %v34771_v5  ;;  %30380 = vmatpush3.msra.mxu0 %v34747_v12  ;;  %v23103_v28 = vsel %vm2049_vm9, %v35143_v25, 0  ;;  %v35276_v22 = vand.u32 4294901760, %v23906_v26 }
0x11f0   : > { %30350 = vmatprep.mubr.f32.mxu0 %v23201_v17  ;;  %36413 = vst [vmem:[#allocation49_spill] sm:$0xff] %v35149_v35  ;;  %v23229_v42 = vand.u32 4294901760, %v35137_v2  ;;  %30381 = vmatprep.subr.mxu0 %v34757_v39  ;;  %v35157_v24 = vand.u32 4294901760, %v23103_v28  ;;  %v23106_v12 = vsel %vm2049_vm9, %v35149_v35, 0 }
0x11f1   : > { %30351 = vmatmul.mubr.f32.gmra.mxu0 %v23211_v33  ;;  %v23220_v43 = vsub.f32 %v35134_v1, %v23219_v15  ;;  %30439 = vmatprep.subr.mxu1 %v34744_v47  ;;  %v35163_v27 = vand.u32 4294901760, %v23106_v12  ;;  %v35286_v17 = vsub.f32 %v23906_v26, %v35276_v22  ;;  %v35288_v33 = vand.u32 4294901760, %v23905_v36 }
0x11f2   : > { %v23230_v51 = vsub.f32 %v35137_v2, %v23229_v42  ;;  %30382 = vmatpush3.msra.mxu0 %v34757_v39  ;;  %30376 = vmatprep.mubr.f32.mxu1 %v35157_v24  ;;  %v23238_v40 = vsub.f32 %v23103_v28, %v35157_v24 }
0x11f3   : > { %v23221_v54 = vand.u32 4294901760, %v23220_v43  ;;  %30383 = vmatprep.subr.mxu0 %v34769_v56  ;;  %v23248_v18 = vsub.f32 %v23106_v12, %v35163_v27  ;;  %30377 = vmatmul.mubr.f32.gmra.mxu1 %v35163_v27  ;;  %36424 = vst [vmem:[#allocation48_spill] sm:$0xff] %v35286_v17  ;;  %v35297_v28 = vand.u32 4294901760, %v35286_v17  ;;  %v35300_v43 = vsub.f32 %v23905_v36, %v35288_v33 }
0x11f4   : > { %v23231_v31 = vand.u32 4294901760, %v23230_v51  ;;  %30384 = vmatpush3.msra.mxu0 %v34769_v56  ;;  %30407 = vmatprep.mubr.f32.mxu1 %v23179_v3  ;;  %v23239_v39 = vand.u32 4294901760, %v23238_v40 }
0x11f5   : > { %30353 = vmatprep.mubr.f32.mxu0 %v23221_v54  ;;  %v23249_v37 = vand.u32 4294901760, %v23248_v18  ;;  %30385 = vmatprep.subr.mxu0 %v36414_v49  ;;  %36426 = vst [vmem:[#allocation57_spill] sm:$0xff] %v35297_v28  ;;  %36427 = vst [vmem:[#allocation59_spill] sm:$0xff] %v35300_v43  ;;  %v24153_v51 = vsub.f32 %v35286_v17, %v35297_v28 }
0x11f6   : > { %30354 = vmatmul.mubr.f32.gmra.mxu0 %v23231_v31  ;;  %v23240_v53 = vsub.f32 %v23238_v40, %v23239_v39 }
0x11f7   : > { %30386 = vmatpush3.msra.mxu0 %v36414_v49  ;;  %30408 = vmatmul.mubr.f32.vlgmr.msra.gmra.mxu1 %v23189_v23  ;;  %v23250_v56 = vsub.f32 %v23248_v18, %v23249_v37 }
0x11f8   : > { %30419 = vmatprep.subr.mxu0 %v36415_v16  ;;  %30410 = vmatprep.mubr.f32.mxu1 %v23199_v58  ;;  %v23241_v32 = vand.u32 4294901760, %v23240_v53 }
0x11f9   : > { %30440 = vmatpush3.msra.mxu1 %v34744_v47  ;;  %v23251_v11 = vand.u32 4294901760, %v23250_v56  ;;  %v36416_v47 = vld [vmem:[#allocation85_spill] sm:$0xff] }
0x11fa   : > { %30441 = vmatprep.subr.mxu1 %v34749_v41  ;;  %30356 = vmatprep.mubr.f32.mxu0 %v23241_v32 }
0x11fb   : > { %30442 = vmatpush3.msra.mxu1 %v34749_v41  ;;  %30357 = vmatmul.mubr.f32.gmra.mxu0 %v23251_v11  ;;  %v36417_v41 = vld [vmem:[#allocation86_spill] sm:$0xff] }
0x11fc   : > { %30411 = vmatmul.mubr.f32.gmra.mxu1 %v23209_v45  ;;  %30387 = vmatprep.mubr.f32.mxu0 %v35074_v20 }
0x11fd   : > { %30413 = vmatprep.mubr.f32.mxu1 %v23219_v15  ;;  %30443 = vmatprep.subr.mxu1 %v34759_v50  ;;  %v23904_v15 = vld [vmem:[%s35220_s3] sm:$0xff] }
0x11fe   : > { %30444 = vmatpush3.msra.mxu1 %v34759_v50  ;;  %v36418_v50 = vld [vmem:[#allocation88_spill] sm:$0xff] }
0x11ff   : > { %30388 = vmatmul.mubr.f32.vlgmr.msra.gmra.mxu0 %v35071_v57  ;;  %30445 = vmatprep.subr.mxu1 %v34771_v5 }
0x1200   : > { %30414 = vmatmul.mubr.f32.gmra.mxu1 %v23229_v42  ;;  %30390 = vmatprep.mubr.f32.mxu0 %v35103_v44 }
0x1201   : > { %30416 = vmatprep.mubr.f32.mxu1 %v23239_v39  ;;  %30420 = vmatpush3.msra.mxu0 %v36415_v16 }
0x1202   : > { %30446 = vmatpush3.msra.mxu1 %v34771_v5  ;;  %30421 = vmatprep.subr.mxu0 %v36416_v47  ;;  %v23911_v5 = vld [vmem:[%s35220_s3 + $0x38] sm:$0xff] }
0x1203   : > { %30391 = vmatmul.mubr.f32.gmra.mxu0 %v35094_v38  ;;  %v23908_v38 = vld [vmem:[%s35220_s3 + $0x20] sm:$0xff] }
0x1204   : > { %30417 = vmatmul.mubr.f32.gmra.mxu1 %v23249_v37  ;;  %30393 = vmatprep.mubr.f32.mxu0 %v35134_v1  ;;  %v35253_v60 = vand.u32 4294901760, %v23908_v38 }
0x1205   : > { %30447 = vmatprep.mubr.f32.mxu1 %v35058_v13  ;;  %30422 = vmatpush3.msra.mxu0 %v36416_v47 }
0x1206   : > { %30423 = vmatprep.subr.mxu0 %v36417_v41  ;;  %v35264_v62 = vsub.f32 %v23908_v38, %v35253_v60 }
0x1207   : > { %30394 = vmatmul.mubr.f32.gmra.mxu0 %v35137_v2 }
0x1208   : > { %30448 = vmatmul.mubr.f32.vlgmr.msra.gmra.mxu1 %v35060_v30  ;;  %30396 = vmatprep.mubr.f32.mxu0 %v23238_v40  ;;  %v35274_v55 = vand.u32 4294901760, %v35264_v62  ;;  %v24154_v40 = vand.u32 4294901760, %v24153_v51 }
0x1209   : > { %30450 = vmatprep.mubr.f32.mxu1 %v35082_v52  ;;  %30424 = vmatpush3.msra.mxu0 %v36417_v41 }
0x120a   : > { %30425 = vmatprep.subr.mxu0 %v36418_v50  ;;  %36422 = vst [vmem:[#allocation55_spill] sm:$0xff] %v35274_v55  ;;  %v24139_v2 = vsub.f32 %v35264_v62, %v35274_v55 }
0x120b   : > { %30397 = vmatmul.mubr.f32.gmra.mxu0 %v23248_v18 }
0x120c   : > { %30451 = vmatmul.mubr.f32.gmra.mxu1 %v35084_v63  ;;  %30427 = vmatprep.mubr.f32.mxu0 %v35058_v13  ;;  %v35223_v13 = vand.u32 4294901760, %v23911_v5  ;;  %v24140_v42 = vand.u32 4294901760, %v24139_v2 }
0x120d   : > { %30453 = vmatprep.mubr.f32.mxu1 %v35118_v19  ;;  %30426 = vmatpush3.msra.mxu0 %v36418_v50 }
0x120e   : > { %v35227_v57 = vsub.f32 %v23911_v5, %v35223_v13  ;;  %30459 = vmatprep.subr.mxu0 %v35223_v13 }
0x120f   : > { %30428 = vmatmul.mubr.f32.vlgmr.msra.gmra.mxu0 %v35060_v30  ;;  %v23910_v30 = vld [vmem:[%s35220_s3 + $0x30] sm:$0xff] }
0x1210   : > { %30454 = vmatmul.mubr.f32.gmra.mxu1 %v35123_v4  ;;  %30430 = vmatprep.mubr.f32.mxu0 %v35082_v52  ;;  %v35229_v20 = vand.u32 4294901760, %v23910_v30  ;;  %v23909_v52 = vld [vmem:[%s35220_s3 + $0x28] sm:$0xff] }
0x1211   : > { %30456 = vmatprep.mubr.f32.mxu1 %v35157_v24  ;;  %30460 = vmatpush3.msra.mxu0 %v35223_v13  ;;  %v35240_v23 = vand.u32 4294901760, %v23909_v52 }
0x1212   : > { %v35238_v3 = vsub.f32 %v23910_v30, %v35229_v20  ;;  %30461 = vmatprep.subr.mxu0 %v35229_v20 }
0x1213   : > { %30431 = vmatmul.mubr.f32.gmra.mxu0 %v35084_v63  ;;  %v35235_v63 = vand.u32 4294901760, %v35227_v57  ;;  %v35251_v21 = vsub.f32 %v23909_v52, %v35240_v23 }
0x1214   : > { %30457 = vmatmul.mubr.f32.gmra.mxu1 %v35163_v27  ;;  %30433 = vmatprep.mubr.f32.mxu0 %v35118_v19  ;;  %v35248_v44 = vand.u32 4294901760, %v35238_v3  ;;  %v35267_v19 = vand.u32 4294901760, %v23907_v29 }
0x1215   : > { %36419 = vst [vmem:[#allocation51_spill] sm:$0xff] %v35235_v63  ;;  %30462 = vmatpush3.msra.mxu0 %v35229_v20  ;;  %v24118_v8 = vsub.f32 %v35227_v57, %v35235_v63  ;;  %v35261_v45 = vand.u32 4294901760, %v35251_v21 }
0x1216   : > { %36420 = vst [vmem:[#allocation44_spill] sm:$0xff] %v35248_v44  ;;  %30463 = vmatprep.subr.mxu0 %v35240_v23  ;;  %v24125_v58 = vsub.f32 %v35238_v3, %v35248_v44  ;;  %v35279_v48 = vsub.f32 %v23907_v29, %v35267_v19 }
0x1217   : > { %30434 = vmatmul.mubr.f32.gmra.mxu0 %v35123_v4  ;;  %v24119_v10 = vand.u32 4294901760, %v24118_v8  ;;  %36421 = vst [vmem:[#allocation53_spill] sm:$0xff] %v35261_v45  ;;  %v24132_v4 = vsub.f32 %v35251_v21, %v35261_v45 }
0x1218   : > { %30436 = vmatprep.mubr.f32.mxu0 %v35157_v24  ;;  %30464 = vmatpush3.msra.mxu0 %v35240_v23  ;;  %v24126_v59 = vand.u32 4294901760, %v24125_v58  ;;  %36423 = vst [vmem:[#allocation46_spill] sm:$0xff] %v35279_v48  ;;  %v35292_v6 = vand.u32 4294901760, %v35279_v48  ;;  %v35302_v24 = vand.u32 4294901760, %v23904_v15 }
0x1219   : > { %30465 = vmatprep.subr.mxu0 %v35253_v60  ;;  %30487 = vmatprep.subr.mxu1 %v24119_v10  ;;  %v24133_v1 = vand.u32 4294901760, %v24132_v4 }
0x121a   : > { %30466 = vmatpush3.msra.mxu0 %v35253_v60  ;;  %30488 = vmatpush3.msra.mxu1 %v24119_v10  ;;  %36425 = vst [vmem:[#allocation50_spill] sm:$0xff] %v35292_v6  ;;  %v24146_v12 = vsub.f32 %v35279_v48, %v35292_v6  ;;  %v35314_v54 = vsub.f32 %v23904_v15, %v35302_v24 }
0x121b   : > { %30437 = vmatmul.mubr.f32.gmra.mxu0 %v35163_v27  ;;  %30467 = vmatprep.subr.mxu0 %v35267_v19  ;;  %v35311_v27 = vand.u32 4294901760, %v35300_v43 }
0x121c   : > { %30489 = vmatprep.subr.mxu1 %v24126_v59  ;;  %30468 = vmatpush3.msra.mxu0 %v35267_v19  ;;  %36429 = vst [vmem:[#allocation61_spill] sm:$0xff] %v35314_v54  ;;  %v24147_v31 = vand.u32 4294901760, %v24146_v12  ;;  %v35321_v39 = vand.u32 4294901760, %v35314_v54 }
0x121d   : > { %30490 = vmatpush3.msra.mxu1 %v24126_v59  ;;  %30469 = vmatprep.subr.mxu0 %v35276_v22  ;;  %36428 = vst [vmem:[#allocation52_spill] sm:$0xff] %v35311_v27  ;;  %v24160_v18 = vsub.f32 %v35300_v43, %v35311_v27 }
0x121e   : > { %30491 = vmatprep.subr.mxu1 %v24133_v1  ;;  %30470 = vmatpush3.msra.mxu0 %v35276_v22  ;;  %36430 = vst [vmem:[#allocation63_spill] sm:$0xff] %v35321_v39  ;;  %v24167_v49 = vsub.f32 %v35314_v54, %v35321_v39 }
0x121f   : > { %30492 = vmatpush3.msra.mxu1 %v24133_v1  ;;  %30471 = vmatprep.subr.mxu0 %v35288_v33  ;;  %v24161_v37 = vand.u32 4294901760, %v24160_v18 }
0x1220   : > { %30493 = vmatprep.subr.mxu1 %v24140_v42  ;;  %30472 = vmatpush3.msra.mxu0 %v35288_v33  ;;  %v24168_v53 = vand.u32 4294901760, %v24167_v49 }
0x1221   : > { %30494 = vmatpush3.msra.mxu1 %v24140_v42  ;;  %30473 = vmatprep.subr.mxu0 %v35302_v24  ;;  %v27067_v42 = vld [vmem:[%s23076_s26] ss:$0 sm:$0xff] }
0x1222   : > { %30474 = vmatpush3.msra.mxu0 %v35302_v24  ;;  %30495 = vmatprep.subr.mxu1 %v24147_v31 }
0x1223   : > { %30515 = vmatprep.subr.mxu0 %v35227_v57  ;;  %30496 = vmatpush3.msra.mxu1 %v24147_v31 }
0x1224   : > { %30497 = vmatprep.subr.mxu1 %v24154_v40 }
0x1225   : > { %30498 = vmatpush3.msra.mxu1 %v24154_v40 }
0x1226   : > { %30499 = vmatprep.subr.mxu1 %v24161_v37 }
0x1227   : > { %30500 = vmatpush3.msra.mxu1 %v24161_v37 }
0x1228   : > { %30501 = vmatprep.subr.mxu1 %v24168_v53 }
0x1229   : > { %30502 = vmatpush3.msra.mxu1 %v24168_v53 }
0x122a   : > { %30543 = vmatprep.subr.mxu1 %v35223_v13 }
0x12a5   : > { %v30369_v56 = vpop.f32.mrf.mxu1 }
0x12a7   : > { %v23344_v16 = vpop.f32.mrf.mxu1 }
0x12a9   : > { %v30372_v32 = vpop.f32.mrf.mxu1 }
0x12ab   : > { %v23356_v11 = vpop.f32.mrf.mxu1 }
0x12ad   : > { %v30349_v47 = vpop.f32.mrf.mxu0 }
0x12ae   : > { %v30375_v41 = vpop.f32.mrf.mxu1  ;;  %v23194_v18 = vadd.f32 %v30349_v47, %v27067_v42 }
0x12af   : > { %v23183_v50 = vpop.f32.mrf.mxu0 }
0x12b0   : > { %v23368_v5 = vpop.f32.mrf.mxu1  ;;  %v23184_v53 = vadd.f32 %v27067_v42, %v23183_v50  ;;  %v23351_v46 = vadd.f32 %v30369_v56, %v23194_v18 }
0x12b1   : > { %v30352_v30 = vpop.f32.mrf.mxu0 }
0x12b2   : > { %v23214_v7 = vadd.f32 %v30352_v30, %v27067_v42  ;;  %v23345_v34 = vadd.f32 %v23344_v16, %v23184_v53 }
0x12b3   : > { %v23203_v52 = vpop.f32.mrf.mxu0  ;;  %v30378_v38 = vpop.f32.mrf.mxu1 }
0x12b4   : > { %v23204_v0 = vadd.f32 %v27067_v42, %v23203_v52  ;;  %v23363_v55 = vadd.f32 %v30372_v32, %v23214_v7 }
0x12b5   : > { %v35328_v29 = vpop.f32.mrf.mxu1 }
0x12b6   : > { %v30355_v8 = vpop.f32.mrf.mxu0  ;;  %v23357_v63 = vadd.f32 %v23356_v11, %v23204_v0 }
0x12b7   : > { %v30409_v10 = vpop.f32.mrf.mxu1  ;;  %v23234_v39 = vadd.f32 %v30355_v8, %v27067_v42 }
0x12b8   : > { %v23223_v58 = vpop.f32.mrf.mxu0 }
0x12b9   : > { %v23592_v26 = vpop.f32.mrf.mxu1  ;;  %v23224_v45 = vadd.f32 %v27067_v42, %v23223_v58  ;;  %v23375_v43 = vadd.f32 %v30375_v41, %v23234_v39 }
0x12bb   : > { %v30358_v59 = vpop.f32.mrf.mxu0  ;;  %v23369_v16 = vadd.f32 %v23368_v5, %v23224_v45 }
0x12bc   : > { %v30412_v4 = vpop.f32.mrf.mxu1  ;;  %v23254_v50 = vadd.f32 %v30358_v59, %v27067_v42 }
0x12bd   : > { %v23243_v36 = vpop.f32.mrf.mxu0 }
0x12be   : > { %v23608_v1 = vpop.f32.mrf.mxu1  ;;  %v23244_v52 = vadd.f32 %v27067_v42, %v23243_v36  ;;  %v23387_v32 = vadd.f32 %v30378_v38, %v23254_v50 }
0x12bf   : > { %v30389_v2 = vpop.f32.mrf.mxu0 }
0x12c0   : > { %v30415_v15 = vpop.f32.mrf.mxu1  ;;  %v23474_v14 = vadd.f32 %v30389_v2, %v23351_v46 }
0x12c1   : > { %v23466_v12 = vpop.f32.mrf.mxu0 }
0x12c2   : > { %v23624_v51 = vpop.f32.mrf.mxu1  ;;  %v23467_v6 = vadd.f32 %v23466_v12, %v23345_v34  ;;  %v23601_v54 = vadd.f32 %v30409_v10, %v23474_v14 }
0x12c3   : > { %v30392_v31 = vpop.f32.mrf.mxu0 }
0x12c4   : > { %v35334_v40 = vpop.f32.mrf.mxu1  ;;  %v23488_v44 = vadd.f32 %v30392_v31, %v23363_v55  ;;  %v23593_v48 = vadd.f32 %v23592_v26, %v23467_v6 }
0x12c5   : > { %v23480_v37 = vpop.f32.mrf.mxu0 }
0x12c6   : > { %v35336_v49 = vpop.f32.mrf.mxu1  ;;  %v23481_v56 = vadd.f32 %v23480_v37, %v23357_v63  ;;  %v23617_v34 = vadd.f32 %v30412_v4, %v23488_v44  ;;  %v23381_v63 = vadd.f32 %v35328_v29, %v23244_v52 }
0x12c7   : > { %v30395_v25 = vpop.f32.mrf.mxu0 }
0x12c8   : > { %v30449_v35 = vpop.f32.mrf.mxu1  ;;  %v23502_v46 = vadd.f32 %v30395_v25, %v23375_v43  ;;  %v23609_v41 = vadd.f32 %v23608_v1, %v23481_v56 }
0x12c9   : > { %v23494_v61 = vpop.f32.mrf.mxu0 }
0x12ca   : > { %v23848_v9 = vpop.f32.mrf.mxu1  ;;  %v23495_v7 = vadd.f32 %v23494_v61, %v23369_v16 }
0x12cb   : > { %v30398_v27 = vpop.f32.mrf.mxu0 }
0x12cc   : > { %v30452_v28 = vpop.f32.mrf.mxu1  ;;  %v23516_v10 = vadd.f32 %v30398_v27, %v23387_v32  ;;  %v23625_v38 = vadd.f32 %v23624_v51, %v23495_v7 }
0x12cd   : > { %v23508_v47 = vpop.f32.mrf.mxu0 }
0x12ce   : > { %v23860_v17 = vpop.f32.mrf.mxu1  ;;  %v23509_v44 = vadd.f32 %v23508_v47, %v23381_v63 }
0x12cf   : > { %v30429_v30 = vpop.f32.mrf.mxu0 }
0x12d0   : > { %v23738_v18 = vadd.f32 %v30429_v30, %v23601_v54  ;;  %v30455_v55 = vpop.f32.mrf.mxu1  ;;  %v23633_v54 = vadd.f32 %v30415_v15, %v23502_v46  ;;  %v23641_v47 = vadd.f32 %v35336_v49, %v23509_v44 }
0x12d1   : > { %v23731_v8 = vpop.f32.mrf.mxu0 }
0x12d2   : > { %v23855_v2 = vadd.f32 %v30449_v35, %v23738_v18  ;;  %v23732_v53 = vadd.f32 %v23731_v8, %v23593_v48  ;;  %v23872_v43 = vpop.f32.mrf.mxu1 }
0x12d3   : > { %v30432_v0 = vpop.f32.mrf.mxu0 }
0x12d4   : > { %v23895_v14 = vmax.f32 %v23855_v2, 0.0  ;;  %v23849_v11 = vadd.f32 %v23848_v9, %v23732_v53  ;;  %v23750_v39 = vadd.f32 %v30432_v0, %v23617_v34  ;;  %v30458_v31 = vpop.f32.mrf.mxu1 }
0x12d5   : > { %v23743_v6 = vpop.f32.mrf.mxu0 }
0x12d6   : > { %v23925_v25 = vsel %vm23920_vm12, %v23895_v14, 0  ;;  %v23894_v45 = vmax.f32 %v23849_v11, 0.0  ;;  %v23867_v35 = vadd.f32 %v30452_v28, %v23750_v39  ;;  %v23744_v48 = vadd.f32 %v23743_v6, %v23609_v41  ;;  %v23884_v32 = vpop.f32.mrf.mxu1 }
0x12d7   : > { %v35340_v61 = vand.u32 4294901760, %v23925_v25  ;;  %v30435_v5 = vpop.f32.mrf.mxu0  ;;  %v23649_v28 = vadd.f32 %v35334_v40, %v23516_v10 }
0x12d8   : > { %v23922_v9 = vsel %vm23920_vm12, %v23894_v45, 0  ;;  %v23897_v58 = vmax.f32 %v23867_v35, 0.0  ;;  %v23861_v26 = vadd.f32 %v23860_v17, %v23744_v48  ;;  %v23762_v27 = vadd.f32 %v30435_v5, %v23633_v54 }
0x12d9   : > { %v35344_v29 = vsub.f32 %v23925_v25, %v35340_v61  ;;  %v35346_v59 = vand.u32 4294901760, %v23922_v9  ;;  %v23755_v4 = vpop.f32.mrf.mxu0 }
0x12da   : > { %v23931_v36 = vsel %vm23920_vm12, %v23897_v58, 0  ;;  %v23896_v1 = vmax.f32 %v23861_v26, 0.0  ;;  %v23879_v15 = vadd.f32 %v30455_v55, %v23762_v27  ;;  %v23756_v42 = vadd.f32 %v23755_v4, %v23625_v38 }
0x12db   : > { %v24030_v12 = vand.u32 4294901760, %v35344_v29  ;;  %v35352_v51 = vsub.f32 %v23922_v9, %v35346_v59  ;;  %v35354_v17 = vand.u32 4294901760, %v23931_v36  ;;  %v30438_v37 = vpop.f32.mrf.mxu0  ;;  %30503 = vmatprep.mubr.f32.mxu1 %v35346_v59 }
0x12dc   : > { %v23928_v40 = vsel %vm23920_vm12, %v23896_v1, 0  ;;  %v23899_v50 = vmax.f32 %v23879_v15, 0.0  ;;  %v23873_v30 = vadd.f32 %v23872_v43, %v23756_v42  ;;  %v23774_v56 = vadd.f32 %v30438_v37, %v23649_v28  ;;  %30504 = vmatmul.mubr.f32.vlgmr.msra.gmra.mxu1 %v35340_v61 }
0x12dd   : > { %v24031_v18 = vsub.f32 %v35344_v29, %v24030_v12  ;;  %v35364_v52 = vsub.f32 %v23931_v36, %v35354_v17  ;;  %v35366_v46 = vand.u32 4294901760, %v23928_v40  ;;  %v23767_v16 = vpop.f32.mrf.mxu0  ;;  %30544 = vmatpush3.msra.mxu1 %v35223_v13  ;;  %v24020_v49 = vand.u32 4294901760, %v35352_v51 }
0x12de   : > { %v23937_v8 = vsel %vm23920_vm12, %v23899_v50, 0  ;;  %v23898_v2 = vmax.f32 %v23873_v30, 0.0  ;;  %v23891_v53 = vadd.f32 %v30458_v31, %v23774_v56  ;;  %v23768_v34 = vadd.f32 %v23767_v16, %v23641_v47  ;;  %30545 = vmatprep.subr.mxu1 %v35229_v20  ;;  %v36432_v50 = vld [vmem:[#allocation48_spill] sm:$0xff]  ;;  %v36433_v30 = vld [vmem:[#allocation59_spill] sm:$0xff] }
0x12df   : > { %v35373_v7 = vsub.f32 %v23928_v40, %v35366_v46  ;;  %v35375_v55 = vand.u32 4294901760, %v23937_v8  ;;  %30506 = vmatprep.mubr.f32.mxu1 %v35366_v46  ;;  %30546 = vmatpush3.msra.mxu1 %v35229_v20  ;;  %v24021_v0 = vsub.f32 %v35352_v51, %v24020_v49  ;;  %v24050_v41 = vand.u32 4294901760, %v35364_v52 }
0x12e0   : > { %v23934_v14 = vsel %vm23920_vm12, %v23898_v2, 0  ;;  %v23901_v11 = vmax.f32 %v23891_v53, 0.0  ;;  %v23885_v39 = vadd.f32 %v23884_v32, %v23768_v34  ;;  %30507 = vmatmul.mubr.f32.gmra.mxu1 %v35354_v17  ;;  %30547 = vmatprep.subr.mxu1 %v35240_v23  ;;  %v24032_v54 = vand.u32 4294901760, %v24031_v18 }
0x12e1   : > { %v35386_v10 = vand.u32 4294901760, %v23934_v14  ;;  %30548 = vmatpush3.msra.mxu1 %v35240_v23  ;;  %v24022_v63 = vand.u32 4294901760, %v24021_v0  ;;  %v24040_v6 = vand.u32 4294901760, %v35373_v7  ;;  %v35391_v25 = vsub.f32 %v23937_v8, %v35375_v55 }
0x12e2   : > { %v23943_v45 = vsel %vm23920_vm12, %v23901_v11, 0  ;;  %v23900_v35 = vmax.f32 %v23885_v39, 0.0  ;;  %30549 = vmatprep.subr.mxu1 %v35253_v60  ;;  %v24051_v38 = vsub.f32 %v35364_v52, %v24050_v41 }
0x12e3   : > { %v35396_v48 = vsub.f32 %v23934_v14, %v35386_v10  ;;  %30475 = vmatprep.mubr.f32.mxu0 %v24022_v63  ;;  %30509 = vmatprep.mubr.f32.mxu1 %v35386_v10  ;;  %v24041_v44 = vsub.f32 %v35373_v7, %v24040_v6  ;;  %v35400_v43 = vand.u32 4294901760, %v23943_v45  ;;  %v24070_v27 = vand.u32 4294901760, %v35391_v25 }
0x12e4   : > { %v23940_v5 = vsel %vm23920_vm12, %v23900_v35, 0  ;;  %30550 = vmatpush3.msra.mxu1 %v35253_v60  ;;  %30476 = vmatmul.mubr.f32.vlgmr.msra.gmra.mxu0 %v24032_v54  ;;  %v27069_v54 = vld [vmem:[%s23912_s2] ss:$0 sm:$0xff] }
0x12e5   : > { %v35407_v9 = vand.u32 4294901760, %v23940_v5  ;;  %30510 = vmatmul.mubr.f32.gmra.mxu1 %v35375_v55  ;;  %30551 = vmatprep.subr.mxu1 %v35267_v19  ;;  %v24042_v58 = vand.u32 4294901760, %v24041_v44  ;;  %v24060_v26 = vand.u32 4294901760, %v35396_v48  ;;  %v35422_v36 = vsub.f32 %v23943_v45, %v35400_v43 }
0x12e6   : > { %30516 = vmatpush3.msra.mxu0 %v35227_v57  ;;  %30552 = vmatpush3.msra.mxu1 %v35267_v19  ;;  %v24052_v57 = vand.u32 4294901760, %v24051_v38  ;;  %v24071_v42 = vsub.f32 %v35391_v25, %v24070_v27 }
0x12e7   : > { %v35416_v4 = vsub.f32 %v23940_v5, %v35407_v9  ;;  %30517 = vmatprep.subr.mxu0 %v35238_v3  ;;  %30553 = vmatprep.subr.mxu1 %v35276_v22  ;;  %v24061_v28 = vsub.f32 %v35396_v48, %v24060_v26  ;;  %v24090_v31 = vand.u32 4294901760, %v35422_v36 }
0x12e8   : > { %30478 = vmatprep.mubr.f32.mxu0 %v24042_v58  ;;  %30512 = vmatprep.mubr.f32.mxu1 %v35407_v9  ;;  %v24072_v37 = vand.u32 4294901760, %v24071_v42 }
0x12e9   : > { %30518 = vmatpush3.msra.mxu0 %v35238_v3  ;;  %30554 = vmatpush3.msra.mxu1 %v35276_v22  ;;  %v24080_v1 = vand.u32 4294901760, %v35416_v4  ;;  %v24062_v15 = vand.u32 4294901760, %v24061_v28  ;;  %v24091_v40 = vsub.f32 %v35422_v36, %v24090_v31 }
0x12ea   : > { %30479 = vmatmul.mubr.f32.gmra.mxu0 %v24052_v57  ;;  %30513 = vmatmul.mubr.f32.gmra.mxu1 %v35400_v43 }
0x12eb   : > { %30519 = vmatprep.subr.mxu0 %v35251_v21  ;;  %30555 = vmatprep.subr.mxu1 %v35288_v33  ;;  %v24081_v3 = vsub.f32 %v35416_v4, %v24080_v1 }
0x12ec   : > { %30520 = vmatpush3.msra.mxu0 %v35251_v21  ;;  %30556 = vmatpush3.msra.mxu1 %v35288_v33  ;;  %v36431_v21 = vld [vmem:[#allocation46_spill] sm:$0xff] }
0x12ed   : > { %30559 = vmatprep.mubr.f32.mxu1 %v24020_v49  ;;  %30521 = vmatprep.subr.mxu0 %v35264_v62  ;;  %v24082_v47 = vand.u32 4294901760, %v24081_v3 }
0x12ee   : > { %30557 = vmatprep.subr.mxu1 %v35302_v24  ;;  %30481 = vmatprep.mubr.f32.mxu0 %v24062_v15 }
0x12ef   : > { %30522 = vmatpush3.msra.mxu0 %v35264_v62  ;;  %30558 = vmatpush3.msra.mxu1 %v35302_v24  ;;  %v24092_v62 = vand.u32 4294901760, %v24091_v40 }
0x12f0   : > { %30482 = vmatmul.mubr.f32.gmra.mxu0 %v24072_v37  ;;  %30523 = vmatprep.subr.mxu0 %v36431_v21 }
0x12f1   : > { %30560 = vmatmul.mubr.f32.vlgmr.msra.gmra.mxu1 %v24030_v12  ;;  %30599 = vmatprep.subr.mxu1 %v35223_v13 }
0x12f2   : > { %30524 = vmatpush3.msra.mxu0 %v36431_v21  ;;  %30562 = vmatprep.mubr.f32.mxu1 %v24040_v6 }
0x12f3   : > { %30600 = vmatpush3.msra.mxu1 %v35223_v13  ;;  %30525 = vmatprep.subr.mxu0 %v36432_v50  ;;  %v36434_v13 = vld [vmem:[#allocation61_spill] sm:$0xff] }
0x12f4   : > { %30601 = vmatprep.subr.mxu1 %v35229_v20  ;;  %30484 = vmatprep.mubr.f32.mxu0 %v24082_v47 }
0x12f5   : > { %30526 = vmatpush3.msra.mxu0 %v36432_v50  ;;  %30602 = vmatpush3.msra.mxu1 %v35229_v20  ;;  %v36435_v20 = vld [vmem:[#allocation51_spill] sm:$0xff] }
0x12f6   : > { %30485 = vmatmul.mubr.f32.gmra.mxu0 %v24092_v62  ;;  %30527 = vmatprep.subr.mxu0 %v36433_v30 }
0x12f7   : > { %30563 = vmatmul.mubr.f32.gmra.mxu1 %v24050_v41  ;;  %30603 = vmatprep.subr.mxu1 %v35240_v23 }
0x12f8   : > { %30528 = vmatpush3.msra.mxu0 %v36433_v30  ;;  %30531 = vmatprep.mubr.f32.mxu0 %v35352_v51 }
0x12f9   : > { %30565 = vmatprep.mubr.f32.mxu1 %v24060_v26  ;;  %30604 = vmatpush3.msra.mxu1 %v35240_v23  ;;  %v36436_v23 = vld [vmem:[#allocation44_spill] sm:$0xff] }
0x12fa   : > { %30529 = vmatprep.subr.mxu0 %v36434_v13  ;;  %30605 = vmatprep.subr.mxu1 %v35253_v60 }
0x12fb   : > { %30530 = vmatpush3.msra.mxu0 %v36434_v13  ;;  %30606 = vmatpush3.msra.mxu1 %v35253_v60  ;;  %v36437_v60 = vld [vmem:[#allocation53_spill] sm:$0xff] }
0x12fc   : > { %30532 = vmatmul.mubr.f32.vlgmr.msra.gmra.mxu0 %v35344_v29  ;;  %30566 = vmatmul.mubr.f32.gmra.mxu1 %v24070_v27  ;;  %v36441_v29 = vld [vmem:[#allocation52_spill] sm:$0xff] }
0x12fd   : > { %30571 = vmatprep.subr.mxu0 %v36435_v20  ;;  %30607 = vmatprep.subr.mxu1 %v35267_v19 }
0x12fe   : > { %30534 = vmatprep.mubr.f32.mxu0 %v35373_v7  ;;  %30568 = vmatprep.mubr.f32.mxu1 %v24080_v1 }
0x12ff   : > { %30572 = vmatpush3.msra.mxu0 %v36435_v20  ;;  %30608 = vmatpush3.msra.mxu1 %v35267_v19  ;;  %v36438_v19 = vld [vmem:[#allocation55_spill] sm:$0xff] }
0x1300   : > { %30573 = vmatprep.subr.mxu0 %v36436_v23  ;;  %30609 = vmatprep.subr.mxu1 %v35276_v22 }
0x1301   : > { %30574 = vmatpush3.msra.mxu0 %v36436_v23  ;;  %30610 = vmatpush3.msra.mxu1 %v35276_v22  ;;  %v36439_v22 = vld [vmem:[#allocation50_spill] sm:$0xff] }
0x1302   : > { %30535 = vmatmul.mubr.f32.gmra.mxu0 %v35364_v52  ;;  %30569 = vmatmul.mubr.f32.gmra.mxu1 %v24090_v31 }
0x1303   : > { %30575 = vmatprep.subr.mxu0 %v36437_v60  ;;  %30611 = vmatprep.subr.mxu1 %v35288_v33 }
0x1304   : > { %30537 = vmatprep.mubr.f32.mxu0 %v35396_v48  ;;  %30576 = vmatpush3.msra.mxu0 %v36437_v60 }
0x1305   : > { %30612 = vmatpush3.msra.mxu1 %v35288_v33  ;;  %30615 = vmatprep.mubr.f32.mxu1 %v35346_v59  ;;  %v36440_v33 = vld [vmem:[#allocation57_spill] sm:$0xff] }
0x1306   : > { %30577 = vmatprep.subr.mxu0 %v36438_v19  ;;  %30613 = vmatprep.subr.mxu1 %v35302_v24 }
0x1307   : > { %30578 = vmatpush3.msra.mxu0 %v36438_v19  ;;  %30614 = vmatpush3.msra.mxu1 %v35302_v24  ;;  %v36442_v24 = vld [vmem:[#allocation63_spill] sm:$0xff] }
0x1308   : > { %30538 = vmatmul.mubr.f32.gmra.mxu0 %v35391_v25  ;;  %30579 = vmatprep.subr.mxu0 %v36439_v22 }
0x1309   : > { %30616 = vmatmul.mubr.f32.vlgmr.msra.gmra.mxu1 %v35340_v61  ;;  %30540 = vmatprep.mubr.f32.mxu0 %v35416_v4 }
0x130a   : > { %30580 = vmatpush3.msra.mxu0 %v36439_v22  ;;  %30618 = vmatprep.mubr.f32.mxu1 %v35366_v46 }
0x130b   : > { %30581 = vmatprep.subr.mxu0 %v36440_v33 }
0x130c   : > { %30582 = vmatpush3.msra.mxu0 %v36440_v33 }
0x130d   : > { %30541 = vmatmul.mubr.f32.gmra.mxu0 %v35422_v36  ;;  %30583 = vmatprep.subr.mxu0 %v36441_v29 }
0x130e   : > { %30619 = vmatmul.mubr.f32.gmra.mxu1 %v35354_v17  ;;  %30584 = vmatpush3.msra.mxu0 %v36441_v29 }
0x130f   : > { %30587 = vmatprep.mubr.f32.mxu0 %v35346_v59  ;;  %30621 = vmatprep.mubr.f32.mxu1 %v35386_v10 }
0x1310   : > { %30585 = vmatprep.subr.mxu0 %v36442_v24 }
0x1311   : > { %30586 = vmatpush3.msra.mxu0 %v36442_v24 }
0x1312   : > { %30588 = vmatmul.mubr.f32.vlgmr.msra.gmra.mxu0 %v35340_v61  ;;  %30622 = vmatmul.mubr.f32.gmra.mxu1 %v35375_v55 }
0x1313   : > { %30590 = vmatprep.mubr.f32.mxu0 %v35366_v46  ;;  %30624 = vmatprep.mubr.f32.mxu1 %v35407_v9 }
0x1316   : > { %30591 = vmatmul.mubr.f32.gmra.mxu0 %v35354_v17  ;;  %30625 = vmatmul.mubr.f32.gmra.mxu1 %v35400_v43 }
0x1317   : > { %30593 = vmatprep.mubr.f32.mxu0 %v35386_v10 }
0x131a   : > { %30594 = vmatmul.mubr.f32.gmra.mxu0 %v35375_v55 }
0x131b   : > { %30596 = vmatprep.mubr.f32.mxu0 %v35407_v9 }
0x131e   : > { %30597 = vmatmul.mubr.f32.gmra.mxu0 %v35400_v43 }
0x139c   : > { %v30505_v59 = vpop.f32.mrf.mxu1 }
0x139e   : > { %v24205_v61 = vpop.f32.mrf.mxu1 }
0x13a0   : > { %v30508_v12 = vpop.f32.mrf.mxu1 }
0x13a2   : > { %v24217_v51 = vpop.f32.mrf.mxu1 }
0x13a4   : > { %v30477_v56 = vpop.f32.mrf.mxu0 }
0x13a5   : > { %v30511_v18 = vpop.f32.mrf.mxu1  ;;  %v24035_v35 = vadd.f32 %v30477_v56, %v27069_v54 }
0x13a6   : > { %v24024_v52 = vpop.f32.mrf.mxu0 }
0x13a7   : > { %v24229_v46 = vpop.f32.mrf.mxu1  ;;  %v24025_v44 = vadd.f32 %v27069_v54, %v24024_v52  ;;  %v24212_v9 = vadd.f32 %v30505_v59, %v24035_v35 }
0x13a9   : > { %v24206_v4 = vadd.f32 %v24205_v61, %v24025_v44 }
0x13aa   : > { %v30480_v16 = vpop.f32.mrf.mxu0  ;;  %v30514_v17 = vpop.f32.mrf.mxu1 }
0x13ab   : > { %v24055_v38 = vadd.f32 %v30480_v16, %v27069_v54 }
0x13ac   : > { %v24044_v49 = vpop.f32.mrf.mxu0  ;;  %v35511_v8 = vpop.f32.mrf.mxu1 }
0x13ad   : > { %v24045_v26 = vadd.f32 %v27069_v54, %v24044_v49  ;;  %v24224_v1 = vadd.f32 %v30508_v12, %v24055_v38 }
0x13af   : > { %v24218_v37 = vadd.f32 %v24217_v51, %v24045_v26  ;;  %v36443_v51 = vld [vmem:[#allocation39_spill] sm:$0xff] }
0x13b0   : > { %v30483_v2 = vpop.f32.mrf.mxu0 }
0x13b1   : > { %v30561_v53 = vpop.f32.mrf.mxu1  ;;  %v24075_v42 = vadd.f32 %v30483_v2, %v27069_v54 }
0x13b2   : > { %v24064_v34 = vpop.f32.mrf.mxu0 }
0x13b3   : > { %v24465_v7 = vpop.f32.mrf.mxu1  ;;  %v24065_v3 = vadd.f32 %v27069_v54, %v24064_v34  ;;  %v24236_v23 = vadd.f32 %v30511_v18, %v24075_v42 }
0x13b5   : > { %v24230_v60 = vadd.f32 %v24229_v46, %v24065_v3  ;;  %v36444_v46 = vld [vmem:[#allocation31_spill] sm:$0xff] }
0x13b6   : > { %v30486_v32 = vpop.f32.mrf.mxu0 }
0x13b7   : > { %v30564_v55 = vpop.f32.mrf.mxu1  ;;  %v24095_v47 = vadd.f32 %v30486_v32, %v27069_v54  ;;  %v36445_v32 = vld [vmem:[#allocation43_spill] sm:$0xff] }
0x13b8   : > { %v24084_v0 = vpop.f32.mrf.mxu0 }
0x13b9   : > { %v24481_v14 = vpop.f32.mrf.mxu1  ;;  %v24085_v20 = vadd.f32 %v27069_v54, %v24084_v0  ;;  %v24248_v61 = vadd.f32 %v30514_v17, %v24095_v47 }
0x13bb   : > { %v24242_v34 = vadd.f32 %v35511_v8, %v24085_v20 }
0x13bc   : > { %v30533_v11 = vpop.f32.mrf.mxu0  ;;  %v30567_v39 = vpop.f32.mrf.mxu1 }
0x13bd   : > { %v24343_v27 = vadd.f32 %v30533_v11, %v24212_v9 }
0x13be   : > { %v24335_v41 = vpop.f32.mrf.mxu0  ;;  %v24497_v10 = vpop.f32.mrf.mxu1 }
0x13bf   : > { %v24336_v57 = vadd.f32 %v24335_v41, %v24206_v4  ;;  %v24474_v21 = vadd.f32 %v30561_v53, %v24343_v27 }
0x13c1   : > { %v24466_v13 = vadd.f32 %v24465_v7, %v24336_v57 }
0x13c2   : > { %v30536_v63 = vpop.f32.mrf.mxu0  ;;  %v35517_v6 = vpop.f32.mrf.mxu1 }
0x13c3   : > { %v24357_v31 = vadd.f32 %v30536_v63, %v24224_v1 }
0x13c4   : > { %v24349_v25 = vpop.f32.mrf.mxu0  ;;  %v35519_v45 = vpop.f32.mrf.mxu1 }
0x13c5   : > { %v24350_v62 = vadd.f32 %v24349_v25, %v24218_v37  ;;  %v24490_v29 = vadd.f32 %v30564_v55, %v24357_v31 }
0x13c7   : > { %v24482_v2 = vadd.f32 %v24481_v14, %v24350_v62 }
0x13c8   : > { %v30539_v48 = vpop.f32.mrf.mxu0 }
0x13c9   : > { %v30617_v43 = vpop.f32.mrf.mxu1  ;;  %v24371_v24 = vadd.f32 %v30539_v48, %v24236_v23  ;;  %v36446_v48 = vld [vmem:[#allocation47_spill] sm:$0xff] }
0x13ca   : > { %v24363_v5 = vpop.f32.mrf.mxu0 }
0x13cb   : > { %v24737_v58 = vpop.f32.mrf.mxu1  ;;  %v24364_v59 = vadd.f32 %v24363_v5, %v24230_v60  ;;  %v24506_v63 = vadd.f32 %v30567_v39, %v24371_v24 }
0x13cd   : > { %v30542_v28 = vpop.f32.mrf.mxu0  ;;  %v24498_v25 = vadd.f32 %v24497_v10, %v24364_v59 }
0x13ce   : > { %v30620_v36 = vpop.f32.mrf.mxu1  ;;  %v24385_v53 = vadd.f32 %v30542_v28, %v24248_v61 }
0x13cf   : > { %v24377_v15 = vpop.f32.mrf.mxu0 }
0x13d0   : > { %v24749_v40 = vpop.f32.mrf.mxu1  ;;  %v24378_v17 = vadd.f32 %v24377_v15, %v24242_v34  ;;  %v24522_v39 = vadd.f32 %v35517_v6, %v24385_v53 }
0x13d2   : > { %v30589_v50 = vpop.f32.mrf.mxu0  ;;  %v30623_v12 = vpop.f32.mrf.mxu1  ;;  %v24514_v57 = vadd.f32 %v35519_v45, %v24378_v17 }
0x13d3   : > { %v24623_v30 = vadd.f32 %v30589_v50, %v24474_v21  ;;  %v36448_v21 = vld [vmem:[#allocation40_spill] sm:$0xff]  ;;  %v36449_v50 = vld [vmem:[#allocation42_spill] sm:$0xff] }
0x13d4   : > { %v24616_v19 = vpop.f32.mrf.mxu0  ;;  %v24761_v41 = vpop.f32.mrf.mxu1 }
0x13d5   : > { %v24744_v22 = vadd.f32 %v30617_v43, %v24623_v30  ;;  %v24617_v33 = vadd.f32 %v24616_v19, %v24466_v13  ;;  %v36450_v19 = vld [vmem:[#allocation49_spill] sm:$0xff] }
0x13d6   : > { %v30592_v56 = vpop.f32.mrf.mxu0  ;;  %v30626_v4 = vpop.f32.mrf.mxu1 }
0x13d7   : > { %v35522_v52 = vadd.f32 %v24744_v22, %v36443_v51  ;;  %v24738_v16 = vadd.f32 %v24737_v58, %v24617_v33  ;;  %v24635_v49 = vadd.f32 %v30592_v56, %v24490_v29  ;;  %v36447_v58 = vld [vmem:[#allocation45_spill] sm:$0xff] }
0x13d8   : > { %v24628_v18 = vpop.f32.mrf.mxu0  ;;  %v24773_v23 = vpop.f32.mrf.mxu1  ;;  %v36451_v56 = vld [vmem:[#allocation41_spill] sm:$0xff] }
0x13d9   : > { %v24796_v7 = vmul.f32 %v36444_v46, %v35522_v52  ;;  %v24783_v55 = vadd.f32 %v24738_v16, %v36445_v32  ;;  %v24756_v0 = vadd.f32 %v30620_v36, %v24635_v49  ;;  %v24629_v11 = vadd.f32 %v24628_v18, %v24482_v2 }
0x13da   : > { %v30595_v54 = vpop.f32.mrf.mxu0 }
0x13db   : > { %v24803_v35 = vsel %vm2049_vm9, %v24783_v55, 0.0  ;;  %v24804_v14 = vsel %vm2049_vm9, %v24796_v7, 0.0  ;;  %v35531_v44 = vadd.f32 %v24756_v0, %v36446_v48  ;;  %v24750_v8 = vadd.f32 %v24749_v40, %v24629_v11 }
0x13dc   : > { %v24805_v43 = vadd.f32 %v24804_v14, %v24803_v35  ;;  %v24647_v5 = vadd.f32 %v30595_v54, %v24506_v63  ;;  %v24640_v38 = vpop.f32.mrf.mxu0 }
0x13dd   : > { %v24798_v9 = vmul.f32 %v36444_v46, %v35531_v44  ;;  %v24785_v26 = vadd.f32 %v24750_v8, %v36447_v58  ;;  %v24641_v27 = vadd.f32 %v24640_v38, %v24498_v25 }
0x13de   : > { %v24806_v10 = vrot.slane %v24805_v43, 4  ;;  %v24768_v28 = vadd.f32 %v30623_v12, %v24647_v5  ;;  %v30598_v36 = vpop.f32.mrf.mxu0 }
0x13df   : > { %v24812_v1 = vsel %vm2049_vm9, %v24785_v26, 0.0  ;;  %v24813_v15 = vsel %vm2049_vm9, %v24798_v9, 0.0  ;;  %v24762_v42 = vadd.f32 %v24761_v41, %v24641_v27  ;;  %v24659_v3 = vadd.f32 %v30598_v36, %v24522_v39 }
0x13e0   : > { %v24807_v31 = vadd.f32 %v24806_v10, %v24805_v43  ;;  %v24814_v37 = vadd.f32 %v24813_v15, %v24812_v1  ;;  %v24788_v47 = vadd.f32 %v24768_v28, %v36448_v21  ;;  %v24652_v40 = vpop.f32.mrf.mxu0 }
0x13e1   : > { %v24787_v62 = vadd.f32 %v24762_v42, %v36449_v50  ;;  %v24780_v6 = vadd.f32 %v30626_v4, %v24659_v3  ;;  %v24653_v30 = vadd.f32 %v24652_v40, %v24514_v57 }
0x13e2   : > { %v24808_v13 = vrot.slane %v24807_v31, 2  ;;  %v24815_v20 = vrot.slane %v24814_v37, 4  ;;  %v24800_v45 = vmul.f32 %v36444_v46, %v24788_v47 }
0x13e3   : > { %v24821_v60 = vsel %vm2049_vm9, %v24787_v62, 0.0  ;;  %v24790_v22 = vadd.f32 %v24780_v6, %v36450_v19  ;;  %v24774_v33 = vadd.f32 %v24773_v23, %v24653_v30 }
0x13e4   : > { %v24809_v29 = vadd.f32 %v24808_v13, %v24807_v31  ;;  %v24816_v24 = vadd.f32 %v24815_v20, %v24814_v37  ;;  %v24822_v59 = vsel %vm2049_vm9, %v24800_v45, 0.0 }
0x13e5   : > { %v24823_v61 = vadd.f32 %v24822_v59, %v24821_v60  ;;  %v24802_v12 = vmul.f32 %v36444_v46, %v24790_v22  ;;  %v24789_v51 = vadd.f32 %v24774_v33, %v36451_v56 }
0x13e6   : > { %v24810_v16 = vrot.slane %v24809_v29, 1  ;;  %v24817_v49 = vrot.slane %v24816_v24, 2 }
0x13e7   : > { %v24824_v2 = vrot.slane %v24823_v61, 4  ;;  %v24830_v53 = vsel %vm2049_vm9, %v24789_v51, 0.0  ;;  %v24831_v34 = vsel %vm2049_vm9, %v24802_v12, 0.0 }
0x13e8   : > { %v24811_v18 = vadd.f32 %v24810_v16, %v24809_v29  ;;  %v24818_v7 = vadd.f32 %v24817_v49, %v24816_v24  ;;  %v24832_v32 = vadd.f32 %v24831_v34, %v24830_v53 }
0x13e9   : > { %v24825_v0 = vadd.f32 %v24824_v2, %v24823_v61 }
0x13ea   : > { %v24839_v11 = vmul.f32 0.11111111, %v24811_v18  ;;  %v24819_v17 = vrot.slane %v24818_v7, 1  ;;  %v24833_v41 = vrot.slane %v24832_v32, 4 }
0x13eb   : > { %v24826_v63 = vrot.slane %v24825_v0, 2 }
0x13ec   : > { %v35550_v54 = vsub.f32 %v24783_v55, %v24839_v11  ;;  %v35553_v25 = vsub.f32 %v35522_v52, %v24839_v11  ;;  %v24820_v35 = vadd.f32 %v24819_v17, %v24818_v7  ;;  %v24834_v14 = vadd.f32 %v24833_v41, %v24832_v32 }
0x13ed   : > { %v24827_v48 = vadd.f32 %v24826_v63, %v24825_v0 }
0x13ee   : > { %v24852_v8 = vmul.f32 %v36444_v46, %v35553_v25  ;;  %v24859_v43 = vmul.f32 %v35550_v54, %v35550_v54  ;;  %v24840_v5 = vmul.f32 0.11111111, %v24820_v35  ;;  %v24835_v38 = vrot.slane %v24834_v14, 2 }
0x13ef   : > { %v24828_v9 = vrot.slane %v24827_v48, 1 }
0x13f0   : > { %v24860_v58 = vmul.f32 %v24852_v8, %v24852_v8  ;;  %v35559_v27 = vsub.f32 %v24785_v26, %v24840_v5  ;;  %v35562_v55 = vsub.f32 %v35531_v44, %v24840_v5  ;;  %v24836_v39 = vadd.f32 %v24835_v38, %v24834_v14 }
0x13f1   : > { %v24829_v52 = vadd.f32 %v24828_v9, %v24827_v48  ;;  %v24867_v10 = vsel %vm2049_vm9, %v24859_v43, 0.0 }
0x13f2   : > { %v24868_v4 = vsel %vm2049_vm9, %v24860_v58, 0.0  ;;  %v24854_v28 = vmul.f32 %v36444_v46, %v35562_v55  ;;  %v24861_v36 = vmul.f32 %v35559_v27, %v35559_v27  ;;  %v24837_v15 = vrot.slane %v24836_v39, 1 }
0x13f3   : > { %v24869_v57 = vadd.f32 %v24868_v4, %v24867_v10  ;;  %v24841_v1 = vmul.f32 0.11111111, %v24829_v52 }
0x13f4   : > { %v24862_v26 = vmul.f32 %v24854_v28, %v24854_v28  ;;  %v24838_v31 = vadd.f32 %v24837_v15, %v24836_v39  ;;  %v24876_v37 = vsel %vm2049_vm9, %v24861_v36, 0.0  ;;  %v27070_v28 = vld [vmem:[%s24791_s27] ss:$0 sm:$0xff]  ;;  %s36454_s27 = smov (!%p27072_p10), %s36453_s4 }
0x13f5   : > { %v24870_v42 = vrot.slane %v24869_v57, 4  ;;  %v35570_v3 = vsub.f32 %v24787_v62, %v24841_v1  ;;  %v35572_v44 = vsub.f32 %v24788_v47, %v24841_v1  ;;  %v27071_v1 = vld [vmem:[%s24793_s29] ss:$0 sm:$0xff] }
0x13f6   : > { %v24877_v21 = vsel %vm2049_vm9, %v24862_v26, 0.0  ;;  %v24842_v13 = vmul.f32 0.11111111, %v24838_v31 }
0x13f7   : > { %v24871_v40 = vadd.f32 %v24870_v42, %v24869_v57  ;;  %v24878_v50 = vadd.f32 %v24877_v21, %v24876_v37  ;;  %v24856_v6 = vmul.f32 %v36444_v46, %v35572_v44  ;;  %v24863_v30 = vmul.f32 %v35570_v3, %v35570_v3 }
0x13f8   : > { %v35580_v45 = vsub.f32 %v24789_v51, %v24842_v13  ;;  %v35582_v47 = vsub.f32 %v24790_v22, %v24842_v13 }
0x13f9   : > { %v24872_v20 = vrot.slane %v24871_v40, 2  ;;  %v24879_v23 = vrot.slane %v24878_v50, 4  ;;  %v24864_v62 = vmul.f32 %v24856_v6, %v24856_v6  ;;  %v24885_v33 = vsel %vm2049_vm9, %v24863_v30, 0.0 }
0x13fa   : > { %v24858_v59 = vmul.f32 %v36444_v46, %v35582_v47  ;;  %v24865_v61 = vmul.f32 %v35580_v45, %v35580_v45 }
0x13fb   : > { %v24873_v60 = vadd.f32 %v24872_v20, %v24871_v40  ;;  %v24880_v19 = vadd.f32 %v24879_v23, %v24878_v50  ;;  %v24886_v29 = vsel %vm2049_vm9, %v24864_v62, 0.0 }
0x13fc   : > { %v24887_v24 = vadd.f32 %v24886_v29, %v24885_v33  ;;  %v24866_v51 = vmul.f32 %v24858_v59, %v24858_v59  ;;  %v24894_v53 = vsel %vm2049_vm9, %v24865_v61, 0.0 }
0x13fd   : > { %v24874_v12 = vrot.slane %v24873_v60, 1  ;;  %v24881_v56 = vrot.slane %v24880_v19, 2 }
0x13fe   : > { %v24888_v16 = vrot.slane %v24887_v24, 4  ;;  %v24895_v34 = vsel %vm2049_vm9, %v24866_v51, 0.0 }
0x13ff   : > { %v24875_v49 = vadd.f32 %v24874_v12, %v24873_v60  ;;  %v24882_v22 = vadd.f32 %v24881_v56, %v24880_v19  ;;  %v24896_v32 = vadd.f32 %v24895_v34, %v24894_v53 }
0x1400   : > { %v24889_v2 = vadd.f32 %v24888_v16, %v24887_v24 }
0x1401   : > { %v24903_v18 = vmul.f32 0.11111111, %v24875_v49  ;;  %v24883_v7 = vrot.slane %v24882_v22, 1  ;;  %v24897_v17 = vrot.slane %v24896_v32, 4 }
0x1402   : > { %v24890_v0 = vrot.slane %v24889_v2, 2 }
0x1403   : > { %v24907_v11 = vadd.f32 1e-05, %v24903_v18  ;;  %v24884_v46 = vadd.f32 %v24883_v7, %v24882_v22  ;;  %v24898_v35 = vadd.f32 %v24897_v17, %v24896_v32 }
0x1404   : > { %v24891_v41 = vadd.f32 %v24890_v0, %v24889_v2 }
0x1405   : > { %31143 = vrsqrt.f32 %v24907_v11  ;;  %v24904_v63 = vmul.f32 0.11111111, %v24884_v46  ;;  %v24899_v8 = vrot.slane %v24898_v35, 2 }
0x1406   : > { %v24892_v14 = vrot.slane %v24891_v41, 1 }
0x1407   : > { %v24908_v48 = vadd.f32 1e-05, %v24904_v63  ;;  %v24900_v5 = vadd.f32 %v24899_v8, %v24898_v35 }
0x1408   : > { %v24893_v43 = vadd.f32 %v24892_v14, %v24891_v41 }
0x1409   : > { %31145 = vrsqrt.f32 %v24908_v48  ;;  %v24901_v9 = vrot.slane %v24900_v5, 1 }
0x140a   : > { %v24905_v38 = vmul.f32 0.11111111, %v24893_v43 }
0x140b   : > { %v24902_v52 = vadd.f32 %v24901_v9, %v24900_v5 }
0x140c   : > { %v24909_v58 = vadd.f32 1e-05, %v24905_v38 }
0x140d   : > { %v24906_v39 = vmul.f32 0.11111111, %v24902_v52 }
0x140e   : > { %31147 = vrsqrt.f32 %v24909_v58 }
0x140f   : > { %v24910_v10 = vadd.f32 1e-05, %v24906_v39 }
0x1411   : > { %31149 = vrsqrt.f32 %v24910_v10 }
0x1412   : > { %v31144_v4 = vpop.eup %31143 }
0x1413   : > { %v24915_v36 = vmul.f32 %v31144_v4, %v35550_v54  ;;  %v24916_v57 = vmul.f32 %v31144_v4, %v35553_v25 }
0x1415   : > { %v24929_v15 = vmul.f32 %v27070_v28, %v24915_v36  ;;  %v24930_v26 = vmul.f32 %v27070_v28, %v24916_v57 }
0x1416   : > { %v31146_v42 = vpop.eup %31145 }
0x1417   : > { %v35602_v31 = vadd.f32 %v27071_v1, %v24929_v15  ;;  %v35604_v37 = vadd.f32 %v27071_v1, %v24930_v26  ;;  %v24917_v21 = vmul.f32 %v31146_v42, %v35559_v27  ;;  %v24918_v40 = vmul.f32 %v31146_v42, %v35562_v55 }
0x1419   : > { %24951 = vst.msk [vmem:[%s31784_s28] sm:$0xff] %vm2049_vm9, %v35602_v31  ;;  %24952 = vst.msk [vmem:[%s31784_s28 + $0x8] sm:$0xff] %vm2049_vm9, %v35604_v37  ;;  %v24931_v54 = vmul.f32 %v27070_v28, %v24917_v21  ;;  %v24932_v25 = vmul.f32 %v27070_v28, %v24918_v40 }
0x141b   : > { %v31148_v50 = vpop.eup %31147  ;;  %v35614_v6 = vadd.f32 %v27071_v1, %v24931_v54  ;;  %v35616_v30 = vadd.f32 %v27071_v1, %v24932_v25 }
0x141c   : > { %v24919_v13 = vmul.f32 %v31148_v50, %v35570_v3  ;;  %v24920_v27 = vmul.f32 %v31148_v50, %v35572_v44 }
0x141d   : > { %24953 = vst.msk [vmem:[%s31784_s28 + $0x10] sm:$0xff] %vm2049_vm9, %v35614_v6  ;;  %24954 = vst.msk [vmem:[%s31784_s28 + $0x18] sm:$0xff] %vm2049_vm9, %v35616_v30 }
0x141e   : > { %v24933_v55 = vmul.f32 %v27070_v28, %v24919_v13  ;;  %v24934_v20 = vmul.f32 %v27070_v28, %v24920_v27  ;;  %v31150_v23 = vpop.eup %31149 }
0x141f   : > { %v24921_v19 = vmul.f32 %v31150_v23, %v35580_v45  ;;  %v24922_v3 = vmul.f32 %v31150_v23, %v35582_v47 }
0x1420   : > { %v35626_v62 = vadd.f32 %v27071_v1, %v24933_v55  ;;  %v35628_v60 = vadd.f32 %v27071_v1, %v24934_v20 }
0x1421   : > { %v24935_v44 = vmul.f32 %v27070_v28, %v24921_v19  ;;  %v24936_v33 = vmul.f32 %v27070_v28, %v24922_v3  ;;  %24962 = sbr.rel (%p27072_p10) target bundleno = 5670 (0x1626), region = 148 }
0x1422   : > { %24955 = vst.msk [vmem:[%s31784_s28 + $0x20] sm:$0xff] %vm2049_vm9, %v35626_v62  ;;  %24956 = vst.msk [vmem:[%s31784_s28 + $0x28] sm:$0xff] %vm2049_vm9, %v35628_v60 }
0x1423   : > { %v35638_v29 = vadd.f32 %v27071_v1, %v24935_v44  ;;  %v35640_v24 = vadd.f32 %v27071_v1, %v24936_v33 }
0x1425   : > { %24957 = vst.msk [vmem:[%s31784_s28 + $0x30] sm:$0xff] %vm2049_vm9, %v35638_v29  ;;  %24958 = vst.msk [vmem:[%s31784_s28 + $0x38] sm:$0xff] %vm2049_vm9, %v35640_v24 }
0x1426   : > { %v24967_v45 = vld [vmem:[#allocation10] sm:$0x3]  ;;  %vm25018_vm13 = vcmask 1041408   ;;  %v31476_v47 = vmov 0.0   ;;  %v24963_v61 = vld [vmem:[%s31780_s8] sm:$0x1] }
0x1427   : > { %30627 = vmatprep.subr.mxu0 %v31476_v47  ;;  %30632 = vmatprep.subr.mxu1 %v31476_v47  ;;  %v25020_v59 = vsel %vm25018_vm13, %v24967_v45, 0  ;;  %v24964_v12 = vld [vmem:[%s31780_s8 + $0x1] sm:$0x1]  ;;  %vm31477_vm14 = vmmov 0   ;;  %v24965_v16 = vld [vmem:[%s31780_s8 + $0x2] sm:$0x1] }
0x1428   : > { %v25053_v56 = vand.u32 4294901760, %v25020_v59  ;;  %30629 = vmatprep.mubr.msk.f32.mxu0 %vm31477_vm14, %v31476_v47  ;;  %30634 = vmatprep.mubr.msk.f32.mxu1 %vm31477_vm14, %v31476_v47  ;;  %v24966_v51 = vld [vmem:[%s31780_s8 + $0x3] sm:$0x1]  ;;  %v31478_v22 = vmov 1966171168   ;;  %v24973_v34 = vcombine.low %v24963_v61, %v24964_v12  ;;  %v36452_v0 = vld [vmem:[#allocation30_spill] sm:$0xff] }
0x1429   : > { %v24976_v2 = vunpack.c.l.s4 %v31478_v22  ;;  %v24974_v18 = vcombine.low %v24965_v16, %v24966_v51  ;;  %vm25015_vm15 = vcmask 15360   ;;  %v25471_v9 = vld [vmem:[%s36115_s10 + $0x18] sm:$0xff]  ;;  %v25470_v52 = vld [vmem:[%s36115_s10 + $0x10] sm:$0xff]  ;;  %v25469_v4 = vld [vmem:[%s36115_s10 + $0x8] sm:$0xff] }
0x142a   : > { %30628 = vmatpush3.msra.mxu0 %v25053_v56  ;;  %v25130_v49 = vsub.f32 %v25020_v59, %v25053_v56  ;;  %v35686_v58 = vand.u32 4294901760, %v25471_v9  ;;  %v35694_v10 = vand.u32 4294901760, %v25470_v52  ;;  %v35705_v57 = vand.u32 4294901760, %v25469_v4  ;;  %v25468_v1 = vld [vmem:[%s36115_s10] sm:$0xff] }
0x142b   : > { %30637 = vmatprep.subr.mxu0 %v31476_v47  ;;  %v24977_v7 = vunpack.c.0.s8 %v24976_v2  ;;  %v35719_v21 = vand.u32 4294901760, %v25468_v1  ;;  %v31159_v3 = vld [vmem:[#allocation11] ss:$0 sps:$4 sm:$0x11]  }
0x142c   : > { %v25131_v53 = vand.u32 4294901760, %v25130_v49  ;;  %v35692_v39 = vsub.f32 %v25471_v9, %v35686_v58  ;;  %v35703_v36 = vsub.f32 %v25470_v52, %v35694_v10  ;;  %v35717_v42 = vsub.f32 %v25469_v4, %v35705_v57 }
0x142d   : > { %v35661_v11 = vsub.s32 %v24977_v7, %v36452_v0  ;;  %v35728_v50 = vsub.f32 %v25468_v1, %v35719_v21 }
0x142e   : > { %v25132_v32 = vsub.f32 %v25130_v49, %v25131_v53  ;;  %v25600_v28 = vand.u32 4294901760, %v35692_v39  ;;  %v25607_v26 = vand.u32 4294901760, %v35703_v36  ;;  %v25614_v25 = vand.u32 4294901760, %v35717_v42 }
0x142f   : > { %v24981_v17 = vrot.slane %v24973_v34, %v35661_v11  ;;  %v24988_v41 = vrot.slane %v24974_v18, %v35661_v11  ;;  %v25621_v55 = vand.u32 4294901760, %v35728_v50  ;;  %v25005_v44 = vrot.slane %v31159_v3, %v35661_v11 }
0x1430   : > { %v25133_v46 = vand.u32 4294901760, %v25132_v32  ;;  %v25601_v15 = vsub.f32 %v35692_v39, %v25600_v28  ;;  %v25608_v54 = vsub.f32 %v35703_v36, %v25607_v26  ;;  %v25615_v27 = vsub.f32 %v35717_v42, %v25614_v25 }
0x1431   : > { %v24989_v63 = vcombine.low %v24981_v17, %v24988_v41  ;;  %v25622_v23 = vsub.f32 %v35728_v50, %v25621_v55  ;;  %v25006_v45 = vcombine.low %v25005_v44, %v25005_v44 }
0x1432   : > { %30633 = vmatpush3.msra.mxu1 %v25133_v46  ;;  %v25602_v40 = vand.u32 4294901760, %v25601_v15  ;;  %v25609_v13 = vand.u32 4294901760, %v25608_v54  ;;  %v25616_v20 = vand.u32 4294901760, %v25615_v27  ;;  %v26004_v54 = vld [vmem:[%s36454_s27] sm:$0xff] }
0x1433   : > { %30642 = vmatprep.subr.mxu1 %v31476_v47  ;;  %v24996_v35 = vrot.slane %v24989_v63, %v35661_v11  ;;  %v25623_v19 = vand.u32 4294901760, %v25622_v23  ;;  %v25013_v12 = vrot.slane %v25006_v45, %v35661_v11 }
0x1435   : > { %v25016_v14 = vsel %vm25015_vm15, %v24996_v35, 0 }
0x1436   : > { %v25088_v48 = vand.u32 4294901760, %v25016_v14 }
0x1438   : > { %v25089_v8 = vsub.f32 %v25016_v14, %v25088_v48  ;;  %30635 = vmatmul.mubr.f32.vlgmr.msra.gmra.mxu1 %v25088_v48  ;;  %v26007_v14 = vld [vmem:[%s36453_s4 + $0x18] sm:$0xff] }
0x1439   : > { %30643 = vmatpush3.msra.mxu1 %v25053_v56  ;;  %30644 = vmatprep.mubr.msk.f32.mxu1 %vm31477_vm14, %v31476_v47 }
0x143a   : > { %v25090_v43 = vand.u32 4294901760, %v25089_v8  ;;  %30652 = vmatprep.subr.mxu1 %v31476_v47 }
0x143c   : > { %v25091_v5 = vsub.f32 %v25089_v8, %v25090_v43  ;;  %30645 = vmatmul.mubr.f32.vlgmr.msra.gmra.mxu1 %v25090_v43 }
0x143d   : > { %30653 = vmatpush3.msra.mxu1 %v25053_v56  ;;  %30654 = vmatprep.mubr.msk.f32.mxu1 %vm31477_vm14, %v31476_v47 }
0x143e   : > { %v25092_v38 = vand.u32 4294901760, %v25091_v5  ;;  %30668 = vmatprep.subr.mxu1 %v31476_v47  ;;  %v35756_v5 = vand.u32 4294901760, %v26007_v14 }
0x1440   : > { %30630 = vmatmul.mubr.f32.vlgmr.msra.gmra.mxu0 %v25092_v38  ;;  %30655 = vmatmul.mubr.f32.vlgmr.msra.gmra.mxu1 %v25088_v48  ;;  %v26005_v38 = vld [vmem:[%s36454_s27 + $0x8] sm:$0xff]  ;;  %v35770_v1 = vsub.f32 %v26007_v14, %v35756_v5 }
0x1441   : > { %30638 = vmatpush3.msra.mxu0 %v25130_v49  ;;  %30639 = vmatprep.mubr.msk.f32.mxu0 %vm31477_vm14, %v31476_v47  ;;  %v35772_v15 = vand.u32 4294901760, %v26005_v38 }
0x1442   : > { %30647 = vmatprep.subr.mxu0 %v31476_v47  ;;  %30676 = vmatprep.mubr.msk.f32.mxu1 %vm31477_vm14, %v31476_v47 }
0x1443   : > { %30669 = vmatpush3.msra.mxu1 %v25602_v40  ;;  %v26029_v40 = vsel %vm2049_vm9, %v35602_v31, 0  ;;  %v35789_v31 = vand.u32 4294901760, %v35770_v1  ;;  %v35792_v23 = vsub.f32 %v26005_v38, %v35772_v15 }
0x1444   : > { %30640 = vmatmul.mubr.f32.vlgmr.msra.gmra.mxu0 %v25089_v8  ;;  %30670 = vmatprep.subr.mxu1 %v31476_v47  ;;  %v26006_v8 = vld [vmem:[%s36454_s27 + $0x10] sm:$0xff] }
0x1445   : > { %30648 = vmatpush3.msra.mxu0 %v25131_v53  ;;  %30649 = vmatprep.mubr.msk.f32.mxu0 %vm31477_vm14, %v31476_v47  ;;  %v35765_v52 = vand.u32 4294901760, %v26006_v8  ;;  %v26229_v45 = vsub.f32 %v35770_v1, %v35789_v31 }
0x1446   : > { %30657 = vmatprep.subr.mxu0 %v31476_v47  ;;  %30671 = vmatpush3.msra.mxu1 %v25609_v13 }
0x1447   : > { %30672 = vmatprep.subr.mxu1 %v31476_v47  ;;  %v35782_v27 = vsub.f32 %v26006_v8, %v35765_v52 }
0x1448   : > { %30650 = vmatmul.mubr.f32.vlgmr.msra.gmra.mxu0 %v25088_v48  ;;  %30673 = vmatpush3.msra.mxu1 %v25616_v20  ;;  %v35785_v20 = vand.u32 4294901760, %v26029_v40 }
0x1449   : > { %30665 = vmatprep.mubr.msk.f32.mxu0 %vm31477_vm14, %v31476_v47  ;;  %30658 = vmatpush3.msra.mxu0 %v35686_v58  ;;  %v35800_v3 = vand.u32 4294901760, %v35782_v27 }
0x144a   : > { %30659 = vmatprep.subr.mxu0 %v31476_v47  ;;  %30674 = vmatprep.subr.mxu1 %v31476_v47  ;;  %v35805_v44 = vsub.f32 %v26029_v40, %v35785_v20 }
0x144b   : > { %30660 = vmatpush3.msra.mxu0 %v35694_v10  ;;  %30675 = vmatpush3.msra.mxu1 %v25623_v19  ;;  %v35794_v19 = vand.u32 4294901760, %v26004_v54 }
0x144c   : > { %30661 = vmatprep.subr.mxu0 %v31476_v47  ;;  %30690 = vmatprep.subr.mxu1 %v31476_v47 }
0x144d   : > { %30662 = vmatpush3.msra.mxu0 %v35705_v57 }
0x144e   : > { %30663 = vmatprep.subr.mxu0 %v31476_v47 }
0x144f   : > { %30664 = vmatpush3.msra.mxu0 %v35719_v21 }
0x1450   : > { %30679 = vmatprep.subr.mxu0 %v31476_v47 }
0x14f8   : > { %v25170_v33 = vpop.f32.mrf.mxu1 }
0x14fa   : > { %v30636_v59 = vpop.f32.mrf.mxu1 }
0x14fb   : > { %v35816_v59 = vand.u32 4294901760, %v35792_v23 }
0x14fc   : > { %v25318_v61 = vpop.f32.mrf.mxu1 }
0x14fe   : > { %v30646_v56 = vpop.f32.mrf.mxu1 }
0x14ff   : > { %v26230_v56 = vand.u32 4294901760, %v26229_v45 }
0x1500   : > { %v25094_v16 = vpop.f32.mrf.mxu0  ;;  %v25464_v51 = vpop.f32.mrf.mxu1 }
0x1501   : > { %v25095_v49 = vadd.f32 %v25094_v16, %v25013_v12  ;;  %v26123_v12 = vand.u32 4294901760, %v35805_v44  ;;  %v26243_v16 = vsub.f32 %v35792_v23, %v35816_v59 }
0x1502   : > { %v30631_v22 = vpop.f32.mrf.mxu0  ;;  %v30656_v2 = vpop.f32.mrf.mxu1 }
0x1503   : > { %v25171_v53 = vadd.f32 %v25170_v33, %v25095_v49  ;;  %v26032_v33 = vsel %vm2049_vm9, %v35604_v37, 0  ;;  %v26236_v37 = vsub.f32 %v35782_v27, %v35800_v3  ;;  %v26041_v49 = vsel %vm2049_vm9, %v35626_v62, 0 }
0x1504   : > { %v25244_v34 = vpop.f32.mrf.mxu0  ;;  %v26124_v62 = vsub.f32 %v35805_v44, %v26123_v12 }
0x1505   : > { %v25245_v18 = vadd.f32 %v25244_v34, %v25171_v53  ;;  %v35865_v53 = vand.u32 4294901760, %v26041_v49  ;;  %v26044_v34 = vsel %vm2049_vm9, %v35628_v60, 0 }
0x1506   : > { %v30641_v7 = vpop.f32.mrf.mxu0 }
0x1507   : > { %v25319_v32 = vadd.f32 %v25318_v61, %v25245_v18  ;;  %v26244_v18 = vand.u32 4294901760, %v26243_v16 }
0x1508   : > { %v25392_v46 = vpop.f32.mrf.mxu0 }
0x1509   : > { %v25393_v17 = vadd.f32 %v25392_v46, %v25319_v32  ;;  %v35882_v46 = vand.u32 4294901760, %v26044_v34 }
0x150a   : > { %v30651_v41 = vpop.f32.mrf.mxu0 }
0x150b   : > { %v25465_v63 = vadd.f32 %v25464_v51, %v25393_v17  ;;  %v26050_v17 = vsel %vm2049_vm9, %v35640_v24, 0  ;;  %v35903_v24 = vsub.f32 %v26044_v34, %v35882_v46 }
0x150d   : > { %v25492_v35 = vsel %vm2049_vm9, %v25465_v63, 0 }
0x150e   : > { %v35749_v48 = vand.u32 4294901760, %v25492_v35 }
0x1510   : > { %v25564_v43 = vsub.f32 %v25492_v35, %v35749_v48  ;;  %30677 = vmatmul.mubr.f32.vlgmr.msra.gmra.mxu1 %v35749_v48 }
0x1511   : > { %30691 = vmatpush3.msra.mxu1 %v35686_v58  ;;  %30698 = vmatprep.mubr.msk.f32.mxu1 %vm31477_vm14, %v31476_v47 }
0x1512   : > { %v25565_v9 = vand.u32 4294901760, %v25564_v43  ;;  %30692 = vmatprep.subr.mxu1 %v31476_v47 }
0x1513   : > { %30693 = vmatpush3.msra.mxu1 %v35694_v10 }
0x1514   : > { %v25566_v4 = vsub.f32 %v25564_v43, %v25565_v9  ;;  %30694 = vmatprep.subr.mxu1 %v31476_v47 }
0x1515   : > { %30695 = vmatpush3.msra.mxu1 %v35705_v57 }
0x1516   : > { %v25567_v13 = vand.u32 4294901760, %v25566_v4  ;;  %30696 = vmatprep.subr.mxu1 %v31476_v47 }
0x1517   : > { %30697 = vmatpush3.msra.mxu1 %v35719_v21 }
0x1518   : > { %30699 = vmatmul.mubr.f32.vlgmr.msra.gmra.mxu1 %v25565_v9  ;;  %30712 = vmatprep.subr.mxu1 %v31476_v47 }
0x1519   : > { %30666 = vmatmul.mubr.f32.vlgmr.msra.gmra.mxu0 %v25567_v13  ;;  %30713 = vmatpush3.msra.mxu1 %v35686_v58  ;;  %v26035_v58 = vsel %vm2049_vm9, %v35614_v6, 0  ;;  %v35827_v6 = vand.u32 4294901760, %v26032_v33 }
0x151a   : > { %30680 = vmatpush3.msra.mxu0 %v35692_v39  ;;  %30714 = vmatprep.subr.mxu1 %v31476_v47  ;;  %v35829_v61 = vand.u32 4294901760, %v26035_v58 }
0x151b   : > { %30681 = vmatprep.subr.mxu0 %v31476_v47  ;;  %30715 = vmatpush3.msra.mxu1 %v35694_v10  ;;  %v35819_v10 = vsub.f32 %v26004_v54, %v35794_v19 }
0x151c   : > { %30682 = vmatpush3.msra.mxu0 %v35703_v36  ;;  %30716 = vmatprep.subr.mxu1 %v31476_v47  ;;  %v35854_v22 = vsub.f32 %v26035_v58, %v35829_v61  ;;  %v35887_v36 = vsub.f32 %v26041_v49, %v35865_v53 }
0x151d   : > { %30683 = vmatprep.subr.mxu0 %v31476_v47  ;;  %30717 = vmatpush3.msra.mxu1 %v35705_v57  ;;  %v26038_v57 = vsel %vm2049_vm9, %v35616_v30, 0  ;;  %v35842_v51 = vand.u32 4294901760, %v35819_v10  ;;  %v26237_v30 = vand.u32 4294901760, %v26236_v37 }
0x151e   : > { %30684 = vmatpush3.msra.mxu0 %v35717_v42  ;;  %30718 = vmatprep.subr.mxu1 %v31476_v47  ;;  %v35856_v2 = vand.u32 4294901760, %v26038_v57  ;;  %v26143_v60 = vand.u32 4294901760, %v35854_v22 }
0x151f   : > { %30685 = vmatprep.subr.mxu0 %v31476_v47  ;;  %30687 = vmatprep.mubr.msk.f32.mxu0 %vm31477_vm14, %v31476_v47  ;;  %v26250_v39 = vsub.f32 %v35819_v10, %v35842_v51 }
0x1520   : > { %30686 = vmatpush3.msra.mxu0 %v35728_v50  ;;  %30719 = vmatpush3.msra.mxu1 %v35719_v21  ;;  %v35851_v21 = vsub.f32 %v26032_v33, %v35827_v6  ;;  %v35880_v32 = vsub.f32 %v26038_v57, %v35856_v2  ;;  %v26144_v50 = vsub.f32 %v35854_v22, %v26143_v60 }
0x1521   : > { %30720 = vmatprep.mubr.msk.f32.mxu1 %vm31477_vm14, %v31476_v47  ;;  %30688 = vmatmul.mubr.f32.vlgmr.msra.gmra.mxu0 %v25564_v43  ;;  %v26251_v41 = vand.u32 4294901760, %v26250_v39 }
0x1522   : > { %30701 = vmatprep.subr.mxu0 %v31476_v47  ;;  %30721 = vmatmul.mubr.f32.vlgmr.msra.gmra.mxu1 %v35749_v48  ;;  %v26133_v7 = vand.u32 4294901760, %v35851_v21  ;;  %v26145_v43 = vand.u32 4294901760, %v26144_v50 }
0x1523   : > { %30702 = vmatpush3.msra.mxu0 %v25600_v28  ;;  %30709 = vmatprep.mubr.msk.f32.mxu0 %vm31477_vm14, %v31476_v47  ;;  %v26047_v28 = vsel %vm2049_vm9, %v35638_v29, 0  ;;  %v26125_v29 = vand.u32 4294901760, %v26124_v62 }
0x1524   : > { %30703 = vmatprep.subr.mxu0 %v31476_v47  ;;  %30743 = vmatprep.subr.mxu1 %v26230_v56  ;;  %v26134_v42 = vsub.f32 %v35851_v21, %v26133_v7 }
0x1525   : > { %30704 = vmatpush3.msra.mxu0 %v25607_v26  ;;  %30744 = vmatpush3.msra.mxu1 %v26230_v56  ;;  %v35889_v26 = vand.u32 4294901760, %v26047_v28 }
0x1526   : > { %30705 = vmatprep.subr.mxu0 %v31476_v47  ;;  %30745 = vmatprep.subr.mxu1 %v26237_v30  ;;  %v26135_v35 = vand.u32 4294901760, %v26134_v42 }
0x1527   : > { %30706 = vmatpush3.msra.mxu0 %v25614_v25  ;;  %30746 = vmatpush3.msra.mxu1 %v26237_v30  ;;  %v26153_v25 = vand.u32 4294901760, %v35880_v32  ;;  %v35913_v63 = vsub.f32 %v26047_v28, %v35889_v26 }
0x1528   : > { %30707 = vmatprep.subr.mxu0 %v31476_v47  ;;  %30747 = vmatprep.subr.mxu1 %v26244_v18  ;;  %v35905_v47 = vand.u32 4294901760, %v26050_v17 }
0x1529   : > { %30708 = vmatpush3.msra.mxu0 %v25621_v55  ;;  %30748 = vmatpush3.msra.mxu1 %v26244_v18  ;;  %v26163_v55 = vand.u32 4294901760, %v35887_v36  ;;  %v26154_v14 = vsub.f32 %v35880_v32, %v26153_v25  ;;  %v26183_v9 = vand.u32 4294901760, %v35913_v63 }
0x152a   : > { %30710 = vmatmul.mubr.f32.vlgmr.msra.gmra.mxu0 %v35749_v48  ;;  %30723 = vmatprep.subr.mxu0 %v35756_v5  ;;  %v26173_v48 = vand.u32 4294901760, %v35903_v24  ;;  %v35924_v8 = vsub.f32 %v26050_v17, %v35905_v47 }
0x152b   : > { %30724 = vmatpush3.msra.mxu0 %v35756_v5  ;;  %30731 = vmatprep.mubr.f32.mxu0 %v26125_v29  ;;  %v26164_v38 = vsub.f32 %v35887_v36, %v26163_v55  ;;  %v26155_v4 = vand.u32 4294901760, %v26154_v14  ;;  %v26184_v33 = vsub.f32 %v35913_v63, %v26183_v9 }
0x152c   : > { %30725 = vmatprep.subr.mxu0 %v35765_v52  ;;  %30749 = vmatprep.subr.mxu1 %v26251_v41  ;;  %v26174_v40 = vsub.f32 %v35903_v24, %v26173_v48  ;;  %v26193_v54 = vand.u32 4294901760, %v35924_v8 }
0x152d   : > { %30726 = vmatpush3.msra.mxu0 %v35765_v52  ;;  %30750 = vmatpush3.msra.mxu1 %v26251_v41  ;;  %v26165_v13 = vand.u32 4294901760, %v26164_v38  ;;  %v26185_v45 = vand.u32 4294901760, %v26184_v33  ;;  %v26010_v41 = vsub.s32 0, %v36452_v0 }
0x152e   : > { %30727 = vmatprep.subr.mxu0 %v35772_v15  ;;  %30751 = vmatprep.mubr.f32.mxu1 %v35785_v20  ;;  %v26175_v58 = vand.u32 4294901760, %v26174_v40 }
0x152f   : > { %30728 = vmatpush3.msra.mxu0 %v35772_v15  ;;  %30752 = vmatmul.mubr.f32.vlgmr.msra.gmra.mxu1 %v35827_v6 }
0x1530   : > { %30729 = vmatprep.subr.mxu0 %v35794_v19  ;;  %30783 = vmatprep.subr.mxu1 %v35756_v5 }
0x1531   : > { %30730 = vmatpush3.msra.mxu0 %v35794_v19  ;;  %30784 = vmatpush3.msra.mxu1 %v35756_v5 }
0x1532   : > { %30732 = vmatmul.mubr.f32.vlgmr.msra.gmra.mxu0 %v26135_v35  ;;  %30763 = vmatprep.subr.mxu0 %v35770_v1 }
0x1533   : > { %30764 = vmatpush3.msra.mxu0 %v35770_v1  ;;  %30734 = vmatprep.mubr.f32.mxu0 %v26145_v43  ;;  %v26194_v1 = vsub.f32 %v35924_v8, %v26193_v54 }
0x1534   : > { %30754 = vmatprep.mubr.f32.mxu1 %v35829_v61  ;;  %30765 = vmatprep.subr.mxu0 %v35782_v27 }
0x1535   : > { %30755 = vmatmul.mubr.f32.gmra.mxu1 %v35856_v2  ;;  %30766 = vmatpush3.msra.mxu0 %v35782_v27  ;;  %v26195_v27 = vand.u32 4294901760, %v26194_v1 }
0x1536   : > { %30735 = vmatmul.mubr.f32.gmra.mxu0 %v26155_v4  ;;  %30785 = vmatprep.subr.mxu1 %v35765_v52 }
0x1537   : > { %30737 = vmatprep.mubr.f32.mxu0 %v26165_v13  ;;  %30786 = vmatpush3.msra.mxu1 %v35765_v52 }
0x1538   : > { %30757 = vmatprep.mubr.f32.mxu1 %v35865_v53  ;;  %30767 = vmatprep.subr.mxu0 %v35792_v23 }
0x1539   : > { %30758 = vmatmul.mubr.f32.gmra.mxu1 %v35882_v46  ;;  %30768 = vmatpush3.msra.mxu0 %v35792_v23 }
0x153a   : > { %30738 = vmatmul.mubr.f32.gmra.mxu0 %v26175_v58  ;;  %30787 = vmatprep.subr.mxu1 %v35772_v15 }
0x153b   : > { %30740 = vmatprep.mubr.f32.mxu0 %v26185_v45  ;;  %30788 = vmatpush3.msra.mxu1 %v35772_v15 }
0x153c   : > { %30760 = vmatprep.mubr.f32.mxu1 %v35889_v26  ;;  %30769 = vmatprep.subr.mxu0 %v35819_v10 }
0x153d   : > { %30761 = vmatmul.mubr.f32.gmra.mxu1 %v35905_v47  ;;  %30770 = vmatpush3.msra.mxu0 %v35819_v10 }
0x153e   : > { %30741 = vmatmul.mubr.f32.gmra.mxu0 %v26195_v27  ;;  %30789 = vmatprep.subr.mxu1 %v35794_v19 }
0x153f   : > { %30771 = vmatprep.mubr.f32.mxu0 %v35805_v44  ;;  %30790 = vmatpush3.msra.mxu1 %v35794_v19 }
0x1540   : > { %30791 = vmatprep.mubr.f32.mxu1 %v26123_v12  ;;  %30803 = vmatprep.subr.mxu0 %v35789_v31 }
0x1541   : > { %30792 = vmatmul.mubr.f32.vlgmr.msra.gmra.mxu1 %v26133_v7  ;;  %30823 = vmatprep.subr.mxu1 %v35756_v5 }
0x1542   : > { %30772 = vmatmul.mubr.f32.vlgmr.msra.gmra.mxu0 %v35851_v21  ;;  %30824 = vmatpush3.msra.mxu1 %v35756_v5 }
0x1543   : > { %30804 = vmatpush3.msra.mxu0 %v35789_v31  ;;  %30774 = vmatprep.mubr.f32.mxu0 %v35854_v22 }
0x1544   : > { %30794 = vmatprep.mubr.f32.mxu1 %v26143_v60  ;;  %30805 = vmatprep.subr.mxu0 %v35800_v3 }
0x1545   : > { %30795 = vmatmul.mubr.f32.gmra.mxu1 %v26153_v25  ;;  %30806 = vmatpush3.msra.mxu0 %v35800_v3 }
0x1546   : > { %30775 = vmatmul.mubr.f32.gmra.mxu0 %v35880_v32  ;;  %30825 = vmatprep.subr.mxu1 %v35765_v52 }
0x1547   : > { %30777 = vmatprep.mubr.f32.mxu0 %v35887_v36  ;;  %30826 = vmatpush3.msra.mxu1 %v35765_v52 }
0x1548   : > { %30797 = vmatprep.mubr.f32.mxu1 %v26163_v55  ;;  %30807 = vmatprep.subr.mxu0 %v35816_v59 }
0x1549   : > { %30798 = vmatmul.mubr.f32.gmra.mxu1 %v26173_v48  ;;  %30808 = vmatpush3.msra.mxu0 %v35816_v59 }
0x154a   : > { %30778 = vmatmul.mubr.f32.gmra.mxu0 %v35903_v24  ;;  %30827 = vmatprep.subr.mxu1 %v35772_v15 }
0x154b   : > { %30780 = vmatprep.mubr.f32.mxu0 %v35913_v63  ;;  %30828 = vmatpush3.msra.mxu1 %v35772_v15  ;;  %v31160_v15 = vld [vmem:[#allocation13] ss:$0 sps:$4 sm:$0x11]  }
0x154c   : > { %30800 = vmatprep.mubr.f32.mxu1 %v26183_v9  ;;  %30809 = vmatprep.subr.mxu0 %v35842_v51 }
0x154d   : > { %30801 = vmatmul.mubr.f32.gmra.mxu1 %v26193_v54  ;;  %30810 = vmatpush3.msra.mxu0 %v35842_v51 }
0x154e   : > { %30781 = vmatmul.mubr.f32.gmra.mxu0 %v35924_v8  ;;  %30829 = vmatprep.subr.mxu1 %v35794_v19 }
0x154f   : > { %30811 = vmatprep.mubr.f32.mxu0 %v35785_v20  ;;  %30830 = vmatpush3.msra.mxu1 %v35794_v19  ;;  %v25481_v19 = vrot.slane %v31160_v15, %v35661_v11 }
0x1550   : > { %30831 = vmatprep.mubr.f32.mxu1 %v35785_v20 }
0x1551   : > { %30832 = vmatmul.mubr.f32.vlgmr.msra.gmra.mxu1 %v35827_v6  ;;  %v25482_v44 = vcombine.low %v25481_v19, %v25481_v19 }
0x1552   : > { %30812 = vmatmul.mubr.f32.vlgmr.msra.gmra.mxu0 %v35827_v6  ;;  %30834 = vmatprep.mubr.f32.mxu1 %v35829_v61 }
0x1553   : > { %30814 = vmatprep.mubr.f32.mxu0 %v35829_v61  ;;  %v25489_v37 = vrot.slane %v25482_v44, %v35661_v11 }
0x1555   : > { %30835 = vmatmul.mubr.f32.gmra.mxu1 %v35856_v2 }
0x1556   : > { %30815 = vmatmul.mubr.f32.gmra.mxu0 %v35856_v2  ;;  %30837 = vmatprep.mubr.f32.mxu1 %v35865_v53 }
0x1557   : > { %30817 = vmatprep.mubr.f32.mxu0 %v35865_v53 }
0x1559   : > { %30838 = vmatmul.mubr.f32.gmra.mxu1 %v35882_v46 }
0x155a   : > { %30818 = vmatmul.mubr.f32.gmra.mxu0 %v35882_v46  ;;  %30840 = vmatprep.mubr.f32.mxu1 %v35889_v26 }
0x155b   : > { %30820 = vmatprep.mubr.f32.mxu0 %v35889_v26 }
0x155d   : > { %30841 = vmatmul.mubr.f32.gmra.mxu1 %v35905_v47 }
0x155e   : > { %30821 = vmatmul.mubr.f32.gmra.mxu0 %v35905_v47 }
0x15d0   : > { %v25660_v5 = vpop.f32.mrf.mxu1 }
0x15d2   : > { %v30678_v52 = vpop.f32.mrf.mxu1 }
0x15d8   : > { %v25817_v20 = vpop.f32.mrf.mxu1 }
0x15d9   : > { %v25569_v31 = vpop.f32.mrf.mxu0 }
0x15da   : > { %v30700_v23 = vpop.f32.mrf.mxu1  ;;  %v25570_v12 = vadd.f32 %v25569_v31, %v25489_v37 }
0x15db   : > { %v30667_v3 = vpop.f32.mrf.mxu0 }
0x15dc   : > { %v25661_v56 = vadd.f32 %v25660_v5, %v25570_v12 }
0x15e1   : > { %v25740_v59 = vpop.f32.mrf.mxu0 }
0x15e2   : > { %v25975_v10 = vpop.f32.mrf.mxu1  ;;  %v25741_v51 = vadd.f32 %v25740_v59, %v25661_v56 }
0x15e3   : > { %v30689_v6 = vpop.f32.mrf.mxu0 }
0x15e4   : > { %v30722_v61 = vpop.f32.mrf.mxu1  ;;  %v25818_v30 = vadd.f32 %v25817_v20, %v25741_v51 }
0x15ea   : > { %v25900_v57 = vpop.f32.mrf.mxu0 }
0x15eb   : > { %v25901_v2 = vadd.f32 %v25900_v57, %v25818_v30 }
0x15ec   : > { %v30711_v16 = vpop.f32.mrf.mxu0 }
0x15ed   : > { %v25976_v18 = vadd.f32 %v25975_v10, %v25901_v2 }
0x15ef   : > { %v30753_v49 = vpop.f32.mrf.mxu1  ;;  %v25986_v32 = vrot.slane %v25976_v18, %v35661_v11 }
0x15f1   : > { %v26288_v21 = vpop.f32.mrf.mxu1  ;;  %v25994_v17 = vrot.slane %v25986_v32, %v35661_v11  ;;  %v25987_v42 = vcombine.high %v25986_v32, %v25986_v32 }
0x15f2   : > { %v30733_v22 = vpop.f32.mrf.mxu0 }
0x15f3   : > { %v26011_v55 = vrot.slane %v25994_v17, %v26010_v41  ;;  %v26001_v63 = vrot.slane %v25987_v42, %v35661_v11  ;;  %v26002_v54 = vcombine.high %v25994_v17, %v25994_v17 }
0x15f4   : > { %v26127_v62 = vpop.f32.mrf.mxu0 }
0x15f5   : > { %v30756_v53 = vpop.f32.mrf.mxu1  ;;  %v26138_v43 = vadd.f32 %v30733_v22, %v26011_v55  ;;  %v26015_v38 = vrot.slane %v26001_v63, %v26010_v41  ;;  %v26128_v40 = vadd.f32 %v26127_v62, %v26011_v55  ;;  %v26003_v45 = vcombine.high %v26001_v63, %v26001_v63 }
0x15f6   : > { %v30736_v34 = vpop.f32.mrf.mxu0  ;;  %v26019_v11 = vrot.slane %v26002_v54, %v26010_v41 }
0x15f7   : > { %v26300_v39 = vpop.f32.mrf.mxu1  ;;  %v26295_v33 = vadd.f32 %v30753_v49, %v26138_v43  ;;  %v26158_v58 = vadd.f32 %v30736_v34, %v26015_v38  ;;  %v26289_v5 = vadd.f32 %v26288_v21, %v26128_v40  ;;  %v26023_v10 = vrot.slane %v26003_v45, %v26010_v41 }
0x15f8   : > { %v26147_v28 = vpop.f32.mrf.mxu0 }
0x15f9   : > { %v30759_v7 = vpop.f32.mrf.mxu1  ;;  %v26148_v52 = vadd.f32 %v26147_v28, %v26015_v38  ;;  %v26307_v23 = vadd.f32 %v30756_v53, %v26158_v58 }
0x15fa   : > { %v30739_v60 = vpop.f32.mrf.mxu0 }
0x15fb   : > { %v26312_v46 = vpop.f32.mrf.mxu1  ;;  %v26178_v19 = vadd.f32 %v30739_v60, %v26019_v11  ;;  %v26301_v6 = vadd.f32 %v26300_v39, %v26148_v52 }
0x15fc   : > { %v26167_v29 = vpop.f32.mrf.mxu0 }
0x15fd   : > { %v30762_v36 = vpop.f32.mrf.mxu1  ;;  %v26168_v59 = vadd.f32 %v26167_v29, %v26019_v11  ;;  %v26319_v51 = vadd.f32 %v30759_v7, %v26178_v19 }
0x15fe   : > { %v30742_v26 = vpop.f32.mrf.mxu0 }
0x15ff   : > { %v36023_v25 = vpop.f32.mrf.mxu1  ;;  %v26198_v56 = vadd.f32 %v30742_v26, %v26023_v10  ;;  %v26313_v2 = vadd.f32 %v26312_v46, %v26168_v59 }
0x1600   : > { %v26187_v24 = vpop.f32.mrf.mxu0 }
0x1601   : > { %v30793_v47 = vpop.f32.mrf.mxu1  ;;  %v26188_v62 = vadd.f32 %v26187_v24, %v26023_v10  ;;  %v26331_v32 = vadd.f32 %v30762_v36, %v26198_v56 }
0x1602   : > { %v30773_v50 = vpop.f32.mrf.mxu0 }
0x1603   : > { %v26536_v35 = vpop.f32.mrf.mxu1  ;;  %v26418_v15 = vadd.f32 %v30773_v50, %v26295_v33  ;;  %v26325_v46 = vadd.f32 %v36023_v25, %v26188_v62 }
0x1604   : > { %v26410_v14 = vpop.f32.mrf.mxu0 }
0x1605   : > { %v30796_v48 = vpop.f32.mrf.mxu1  ;;  %v26411_v3 = vadd.f32 %v26410_v14, %v26289_v5  ;;  %v26545_v61 = vadd.f32 %v30793_v47, %v26418_v15 }
0x1606   : > { %v30776_v8 = vpop.f32.mrf.mxu0 }
0x1607   : > { %v26552_v9 = vpop.f32.mrf.mxu1  ;;  %v26432_v12 = vadd.f32 %v30776_v8, %v26307_v23  ;;  %v26537_v49 = vadd.f32 %v26536_v35, %v26411_v3 }
0x1608   : > { %v26424_v4 = vpop.f32.mrf.mxu0 }
0x1609   : > { %v30799_v0 = vpop.f32.mrf.mxu1  ;;  %v26425_v30 = vadd.f32 %v26424_v4, %v26301_v6  ;;  %v26561_v34 = vadd.f32 %v30796_v48, %v26432_v12 }
0x160a   : > { %v30779_v13 = vpop.f32.mrf.mxu0 }
0x160b   : > { %v26568_v1 = vpop.f32.mrf.mxu1  ;;  %v26446_v18 = vadd.f32 %v30779_v13, %v26319_v51  ;;  %v26553_v17 = vadd.f32 %v26552_v9, %v26425_v30 }
0x160c   : > { %v26438_v27 = vpop.f32.mrf.mxu0 }
0x160d   : > { %v30802_v20 = vpop.f32.mrf.mxu1  ;;  %v26439_v26 = vadd.f32 %v26438_v27, %v26313_v2  ;;  %v26577_v47 = vadd.f32 %v30799_v0, %v26446_v18 }
0x160e   : > { %v30782_v31 = vpop.f32.mrf.mxu0 }
0x160f   : > { %v26584_v44 = vpop.f32.mrf.mxu1  ;;  %v26460_v50 = vadd.f32 %v30782_v31, %v26331_v32  ;;  %v26569_v14 = vadd.f32 %v26568_v1, %v26439_v26 }
0x1610   : > { %v26452_v37 = vpop.f32.mrf.mxu0 }
0x1611   : > { %v30833_v57 = vpop.f32.mrf.mxu1  ;;  %v26453_v48 = vadd.f32 %v26452_v37, %v26325_v46  ;;  %v26593_v9 = vadd.f32 %v30802_v20, %v26460_v50 }
0x1612   : > { %v30813_v16 = vpop.f32.mrf.mxu0 }
0x1613   : > { %v26682_v21 = vadd.f32 %v30813_v16, %v26545_v61  ;;  %v26792_v22 = vpop.f32.mrf.mxu1  ;;  %v26585_v13 = vadd.f32 %v26584_v44, %v26453_v48 }
0x1614   : > { %v26675_v53 = vpop.f32.mrf.mxu0 }
0x1615   : > { %v26799_v28 = vadd.f32 %v30833_v57, %v26682_v21  ;;  %v26676_v60 = vadd.f32 %v26675_v53, %v26537_v49  ;;  %v30836_v39 = vpop.f32.mrf.mxu1 }
0x1616   : > { %v30816_v29 = vpop.f32.mrf.mxu0 }
0x1617   : > { %26839 = vst.msk [vmem:[%s31784_s28 + $0x8] sm:$0xff] %vm2049_vm9, %v26799_v28  ;;  %v26793_v7 = vadd.f32 %v26792_v22, %v26676_v60  ;;  %v26694_v41 = vadd.f32 %v30816_v29, %v26561_v34  ;;  %v26804_v42 = vpop.f32.mrf.mxu1 }
0x1618   : > { %v26687_v24 = vpop.f32.mrf.mxu0 }
0x1619   : > { %26838 = vst.msk [vmem:[%s31784_s28] sm:$0xff] %vm2049_vm9, %v26793_v7  ;;  %v26811_v55 = vadd.f32 %v30836_v39, %v26694_v41  ;;  %v26688_v63 = vadd.f32 %v26687_v24, %v26553_v17  ;;  %v30839_v36 = vpop.f32.mrf.mxu1 }
0x161a   : > { %v30819_v35 = vpop.f32.mrf.mxu0 }
0x161b   : > { %26841 = vst.msk [vmem:[%s31784_s28 + $0x18] sm:$0xff] %vm2049_vm9, %v26811_v55  ;;  %v26805_v8 = vadd.f32 %v26804_v42, %v26688_v63  ;;  %v26706_v43 = vadd.f32 %v30819_v35, %v26577_v47  ;;  %v26816_v38 = vpop.f32.mrf.mxu1 }
0x161c   : > { %v26699_v25 = vpop.f32.mrf.mxu0 }
0x161d   : > { %26840 = vst.msk [vmem:[%s31784_s28 + $0x10] sm:$0xff] %vm2049_vm9, %v26805_v8  ;;  %v26823_v4 = vadd.f32 %v30839_v36, %v26706_v43  ;;  %v26700_v40 = vadd.f32 %v26699_v25, %v26569_v14  ;;  %v30842_v0 = vpop.f32.mrf.mxu1 }
0x161e   : > { %v30822_v54 = vpop.f32.mrf.mxu0 }
0x161f   : > { %26843 = vst.msk [vmem:[%s31784_s28 + $0x28] sm:$0xff] %vm2049_vm9, %v26823_v4  ;;  %v26817_v33 = vadd.f32 %v26816_v38, %v26700_v40  ;;  %v26718_v58 = vadd.f32 %v30822_v54, %v26593_v9  ;;  %v26828_v5 = vpop.f32.mrf.mxu1 }
0x1620   : > { %v26711_v1 = vpop.f32.mrf.mxu0 }
0x1621   : > { %26842 = vst.msk [vmem:[%s31784_s28 + $0x20] sm:$0xff] %vm2049_vm9, %v26817_v33  ;;  %v26835_v45 = vadd.f32 %v30842_v0, %v26718_v58  ;;  %v26712_v27 = vadd.f32 %v26711_v1, %v26585_v13 }
0x1623   : > { %26845 = vst.msk [vmem:[%s31784_s28 + $0x38] sm:$0xff] %vm2049_vm9, %v26835_v45  ;;  %v26829_v52 = vadd.f32 %v26828_v5, %v26712_v27 }
0x1625   : > { %26844 = vst.msk [vmem:[%s31784_s28 + $0x30] sm:$0xff] %vm2049_vm9, %v26829_v52 }
0x1626 PF: > { %s36455_s1 = sld [smem:[#allocation26_spill]]  ;;  %s27080_s9 = sshll.u32 %s31439_s5, 10 }
0x1627   : > { %s36456_s7 = sld [smem:[#allocation99_spill]]  ;;  %s26861_s6 = sshll.u32 %s31784_s28, 4  ;;  %s36050_s6 = int_to_ptr.vmem [resolvable:$true] %s26861_s6 }
0x1628   : > { %s36457_s4 = sand.u32 1, %s31427_s30   ;;  %s31343_s24 = scalar_lea.vmem %s36050_s6, 1024 }
0x1629   : > { %s36054_s0 = scalar_lea.sflag [#allocation4], %s36457_s4  ;;  %p31344_p7 = scmp.ne.s32.totalorder %s36050_s6, %s31343_s24 }
0x162a   : > { %s31479_s5 = smov [#allocation14]  }
0x162b   : > { %s31347_s29 = sshll.u32 %s31479_s5, 4  ;;  %s31348_s29 = int_to_ptr.vmem [resolvable:$false] %s31347_s29 }
0x162c   : > { %p36458_p8 = scmp.ne.s32.totalorder %s36455_s1, 0  ;;  %s31349_s8 = scalar_lea.vmem %s31348_s29, 2048 }
0x162d   : > { %s36047_s2 = scalar_lea.hbm %s36456_s7, %s27080_s9  ;;  %p31350_p11 = scmp.lt.s32.totalorder %s36050_s6, %s31348_s29 }
0x162e   : > { %p31345_p3 = pnand %p31344_p7, %p36458_p8  ;;  %p31351_p12 = scmp.lt.s32.totalorder %s31349_s8, %s31343_s24 }
0x1630   : > { %p31346_p13 = pneg %p31345_p3  ;;  %p31352_p2 = por %p31351_p12, %p31350_p11 }
0x1632   : > { %p31353_p4 = pnand %p31352_p2, %p31346_p13 }
0x1634   : > { %31356 = shalt.err (!%p31353_p4)
}
0x1635   : > { %s31357_s28 = scalar_lea.hbm %s36047_s2, 1024  ;;  %s31361_s9 = scalar_lea.hbm %s36456_s7, 2048 }
0x1636   : > { %p31358_p6 = scmp.ne.s32.totalorder %s36047_s2, %s31357_s28  ;;  %p31362_p0 = scmp.lt.s32.totalorder %s36047_s2, %s36456_s7 }
0x1637   : > { %p31363_p1 = scmp.lt.s32.totalorder %s31361_s9, %s31357_s28 }
0x1638   : > { %p31359_p5 = pnand %p31358_p6, %p36458_p8 }
0x1639   : > { %p31364_p10 = por %p31363_p1, %p31362_p0 }
0x163a   : > { %p31360_p9 = pneg %p31359_p5 }
0x163c   : > { %p31365_p7 = pnand %p31364_p10, %p31360_p9 }
0x163e   : > { %31368 = shalt.err (!%p31365_p7)
}
0x163f   : > { %s31480_s4 = smov 128   ;;  %s31481_s24 = smov 8  }
0x1640   : > { %30871 = dma.vmem_to_hbm [thread:$0]  (%p36458_p8), %s36050_s6, 1024, %s36047_s2, %s36054_s0, %s31480_s4, %s31480_s4, %s31481_s24  }
0x1641 PF: > { %s36459_s5 = sld [smem:[#allocation24_spill]] }
0x1642   : > { %s36460_s29 = sld [smem:[#allocation20_spill]] }
0x1643   : > { %s36461_s8 = sld [smem:[#allocation28_spill]] }
0x1647   : > { %p30913_p3 = scmp.ge.s32.totalorder %s36459_s5, 2 }
0x1648   : > { %s26876_s25 = sand.u32 1, %s36460_s29  }
0x1649   : > { %p36462_p13 = scmp.ne.s32.totalorder %s36461_s8, 0  ;;  %s26877_s28 = scalar_lea.sflag [#allocation4], %s26876_s25 }
0x164b   : > { %p30896_p11 = pnand %p30913_p3, %p36462_p13 }
0x164d   : > { %p30897_p12 = pneg %p30896_p11 }
0x164f   : > { %31418 = dma.done.wait (%p30897_p12), %s26877_s28, 1024  }
0x1650   : > { %31420 = vsyncadd (%p30897_p12), %s26877_s28, 4294966272  ;;  %s40_s2 = sadd.s32 1, %s36459_s5   ;;  %s36463_s3 = sld [smem:[#allocation21_spill]] }
0x1651   : > { %p37_p2 = scmp.ge.s32.totalorder %s40_s2, 6   ;;  %s36464_s24 = sld [smem:[#allocation29_spill]] }
0x1652   : > { %s36465_s25 = sld [smem:[#allocation22_spill]]  ;;  %s36469_s4 = smov %s31427_s30 }
0x1653   : > { %s36466_s5 = sld [smem:[#allocation23_spill]]  ;;  %39 = sbr.rel (!%p37_p2) target bundleno = 21 (0x15), region = 201 }
0x1654   : > { %s36467_s1 = sld [smem:[#allocation25_spill]] }
0x1655   : > { %s36468_s26 = sld [smem:[#allocation27_spill]] }
0x1656   : > { %s36470_s30 = smov %s36463_s3 }
0x1658   :  { %26882 = vsyncpa [#allocation3], 1 }
0x1659   :  { %26884 = vsyncpa [#allocation3 + $0x1], 1 }
0x165a   :  { %26885 = vsyncpa [#allocation6], 1 }
0x165b   :  { %26886 = vsyncpa [#allocation9], 1 }
0x165c   :  { %26887 = vsyncpa [#allocation12], 1 }
0x165d   :  { %26888 = vsyncpa [#allocation4], 1 }
0x165e   :  { %26890 = vsyncpa [#allocation4 + $0x1], 1 }

</bundles_post_ra>
